<compile_context>
chip_gen: v7x
topology: tpu7x:2x2x1
jax: 0.10.0
libtpu: 0.0.40
codegen_flags: <defaults>
</compile_context>

<pallas_src>
import functools

import jax
import jax.numpy as jnp
from jax import lax
from jax.experimental import pallas as pl
from jax.experimental.pallas import tpu as pltpu

HIDDEN_DIM = 256   # hidden_dim in the PyTorch module
LSTM_DIM = 256     # lstm_dim1 in the PyTorch module
NEG_INF = -1e30    # padding value for padded logit columns (masked in softmax)


def _full_spec(a):
    nd = a.ndim
    return pl.BlockSpec(a.shape, lambda i, _nd=nd: (0,) * _nd)


# ---------------------------------------------------------------------------
# Kernel 1: batched feedforward (4 x Linear+ReLU) + x-half of the LSTM gates.
# Operates on a chunk of (time*batch) rows; fully parallel across chunks.
# ---------------------------------------------------------------------------
def ff_kernel(x_ref, w1, b1, w2, b2, w3, b3, w4, b4, wih, blstm, gx_ref):
    def dense_relu(v, w_ref, b_ref):
        return jax.nn.relu(
            jnp.dot(v.astype(jnp.bfloat16), w_ref[...],
                    preferred_element_type=jnp.float32) + b_ref[...])

    h = dense_relu(x_ref[...], w1, b1)
    h = dense_relu(h, w2, b2)
    h = dense_relu(h, w3, b3)
    h = dense_relu(h, w4, b4)
    # gates_x = h4 @ W_ih + (b_ih + b_hh), precomputed for every timestep.
    gx_ref[...] = (jnp.dot(h.astype(jnp.bfloat16), wih[...],
                           preferred_element_type=jnp.float32) + blstm[...])


# ---------------------------------------------------------------------------
# Kernel 2: LSTM recurrence + fused dense5 + log_softmax.
# Grid iterates sequentially over time chunks; (h, c) persist in VMEM scratch.
# Per-chunk hidden states are buffered in VMEM and projected with one matmul.
# ---------------------------------------------------------------------------
def lstm_proj_kernel(gx_ref, whh_ref, w5_ref, b5_ref, out_ref,
                     h_scr, c_scr, hbuf, *, tt, b_pad, unroll):
    @pl.when(pl.program_id(0) == 0)
    def _():
        h_scr[...] = jnp.zeros_like(h_scr)
        c_scr[...] = jnp.zeros_like(c_scr)

    whh = whh_ref[...]          # (H, 4H) bf16, VMEM-resident across grid steps
    H = LSTM_DIM

    def step(i, carry):
        h_prev, c_prev = carry
        gates = gx_ref[i] + jnp.dot(h_prev.astype(jnp.bfloat16), whh,
                                    preferred_element_type=jnp.float32)
        i_g = jax.nn.sigmoid(gates[:, 0 * H:1 * H])
        f_g = jax.nn.sigmoid(gates[:, 1 * H:2 * H])
        g_g = jnp.tanh(gates[:, 2 * H:3 * H])
        o_g = jax.nn.sigmoid(gates[:, 3 * H:4 * H])
        c_new = f_g * c_prev + i_g * g_g
        h_new = o_g * jnp.tanh(c_new)
        row0 = pl.multiple_of(i * b_pad, b_pad)
        hbuf[pl.ds(row0, b_pad), :] = h_new
        return (h_new, c_new)

    h_fin, c_fin = lax.fori_loop(0, tt, step, (h_scr[...], c_scr[...]),
                                 unroll=unroll)
    h_scr[...] = h_fin
    c_scr[...] = c_fin

    # Fused dense5 + log_softmax for the whole chunk (lane-dense padded C).
    logits = (jnp.dot(hbuf[...].astype(jnp.bfloat16), w5_ref[...],
                      preferred_element_type=jnp.float32) + b5_ref[...])
    m = jnp.max(logits, axis=-1, keepdims=True)
    lse = m + jnp.log(jnp.sum(jnp.exp(logits - m), axis=-1, keepdims=True))
    out_ref[...] = logits - lse


@jax.jit
def net_forward(x_bts, params):
    """x_bts: (B, T, S) float32 -> (B, T, num_tags+1) log-probs."""
    B, T, S = x_bts.shape
    C = params["b5"].shape[-1]

    # Padded / tiled sizes (all static under jit).
    b_pad = ((B + 7) // 8) * 8            # sublane-width batch
    c_pad = ((C + 127) // 128) * 128      # lane-dense class dim
    tt = T if T <= 64 else 64             # timesteps per grid chunk
    n_chunks = -(-T // tt)
    t_pad = n_chunks * tt
    n_rows = t_pad * b_pad                # flattened (time, batch) rows
    rb = tt * b_pad                       # rows per chunk
    G4 = 4 * LSTM_DIM

    # --- layout: (B,T,S) -> padded (T_pad, B_pad, S) -> flat (N, S) ---------
    x_tbs = jnp.transpose(x_bts, (1, 0, 2))
    x_p = jnp.pad(x_tbs, ((0, t_pad - T), (0, b_pad - B), (0, 0)))
    x_flat = x_p.reshape(n_rows, S)

    # --- weights: bf16 MXU operands, f32 biases; pad dense5 to 128 lanes ----
    bf = lambda a: a.astype(jnp.bfloat16)
    w1, w2, w3, w4 = bf(params["w1"]), bf(params["w2"]), bf(params["w3"]), bf(params["w4"])
    b1, b2, b3, b4 = params["b1"], params["b2"], params["b3"], params["b4"]
    wih, whh = bf(params["wih"]), bf(params["whh"])
    blstm = params["blstm"]
    w5_p = jnp.pad(params["w5"], ((0, 0), (0, c_pad - C))).astype(jnp.bfloat16)
    b5_p = jnp.pad(params["b5"], ((0, 0), (0, c_pad - C)),
                   constant_values=NEG_INF)   # padded logits -> ~0 after exp

    ff_weights = [w1, b1, w2, b2, w3, b3, w4, b4, wih, blstm]

    # --- Kernel 1: batched feedforward + gate-x precompute (parallel) -------
    gx = pl.pallas_call(
        ff_kernel,
        out_shape=jax.ShapeDtypeStruct((n_rows, G4), jnp.float32),
        grid_spec=pltpu.PrefetchScalarGridSpec(
            num_scalar_prefetch=0,
            grid=(n_chunks,),
            in_specs=[pl.BlockSpec((rb, S), lambda i: (i, 0))]
                     + [_full_spec(w) for w in ff_weights],
            out_specs=pl.BlockSpec((rb, G4), lambda i: (i, 0)),
        ),
        compiler_params=pltpu.CompilerParams(
            dimension_semantics=("parallel",)),
    )(x_flat, *ff_weights)

    # --- Kernel 2: sequential LSTM recurrence + fused dense5/log_softmax ----
    gx3 = gx.reshape(t_pad, b_pad, G4)
    unroll = tt if tt <= 8 else 8
    out_flat = pl.pallas_call(
        functools.partial(lstm_proj_kernel, tt=tt, b_pad=b_pad, unroll=unroll),
        out_shape=jax.ShapeDtypeStruct((n_rows, c_pad), jnp.float32),
        grid_spec=pltpu.PrefetchScalarGridSpec(
            num_scalar_prefetch=0,
            grid=(n_chunks,),
            in_specs=[pl.BlockSpec((tt, b_pad, G4), lambda t: (t, 0, 0)),
                      _full_spec(whh), _full_spec(w5_p), _full_spec(b5_p)],
            out_specs=pl.BlockSpec((rb, c_pad), lambda t: (t, 0)),
            scratch_shapes=[pltpu.VMEM((b_pad, LSTM_DIM), jnp.float32),
                            pltpu.VMEM((b_pad, LSTM_DIM), jnp.float32),
                            pltpu.VMEM((rb, LSTM_DIM), jnp.float32)],
        ),
        compiler_params=pltpu.CompilerParams(
            dimension_semantics=("arbitrary",)),  # carries (h, c): keep sequential
    )(gx3, whh, w5_p, b5_p)

    out = out_flat.reshape(t_pad, b_pad, c_pad)
    out = jnp.transpose(out, (1, 0, 2))[:B, :T, :C]   # back to (B, T, C)
    return out


def init_params(key, spectrogram_size, num_out):
    """Deterministic synthetic weights (PyTorch-style uniform fan-in init)."""
    ks = jax.random.split(key, 8)

    def dense(k, fin, fout):
        kw, kb = jax.random.split(k)
        bound = 1.0 / jnp.sqrt(jnp.float32(fin))
        w = jax.random.uniform(kw, (fin, fout), jnp.float32, -bound, bound)
        b = jax.random.uniform(kb, (1, fout), jnp.float32, -bound, bound)
        return w, b

    p = {}
    p["w1"], p["b1"] = dense(ks[0], spectrogram_size, HIDDEN_DIM)
    p["w2"], p["b2"] = dense(ks[1], HIDDEN_DIM, HIDDEN_DIM)
    p["w3"], p["b3"] = dense(ks[2], HIDDEN_DIM, HIDDEN_DIM)
    p["w4"], p["b4"] = dense(ks[3], HIDDEN_DIM, LSTM_DIM)
    # LSTM weights, stored transposed: (in, 4H) / (H, 4H); gate order i,f,g,o.
    bound = 1.0 / jnp.sqrt(jnp.float32(LSTM_DIM))
    p["wih"] = jax.random.uniform(ks[4], (LSTM_DIM, 4 * LSTM_DIM), jnp.float32, -bound, bound)
    p["whh"] = jax.random.uniform(ks[5], (LSTM_DIM, 4 * LSTM_DIM), jnp.float32, -bound, bound)
    # blstm stands in for (b_ih + b_hh) of the PyTorch LSTM.
    p["blstm"] = jax.random.uniform(ks[6], (1, 4 * LSTM_DIM), jnp.float32, -bound, bound) * 2.0
    p["w5"], p["b5"] = dense(ks[7], LSTM_DIM, num_out)
    return p


def net_reference(x, p):
    """Pure-JAX f32 reference of the same forward pass (for correctness check)."""
    def dr(v, w, b):
        return jax.nn.relu(v @ w + b)

    h = dr(x, p["w1"], p["b1"])
    h = dr(h, p["w2"], p["b2"])
    h = dr(h, p["w3"], p["b3"])
    h = dr(h, p["w4"], p["b4"])

    B = x.shape[0]
    H = LSTM_DIM

    def cell(carry, xt):
        h_prev, c_prev = carry
        gates = xt @ p["wih"] + h_prev @ p["whh"] + p["blstm"]
        i_g = jax.nn.sigmoid(gates[:, 0 * H:1 * H])
        f_g = jax.nn.sigmoid(gates[:, 1 * H:2 * H])
        g_g = jnp.tanh(gates[:, 2 * H:3 * H])
        o_g = jax.nn.sigmoid(gates[:, 3 * H:4 * H])
        c_new = f_g * c_prev + i_g * g_g
        h_new = o_g * jnp.tanh(c_new)
        return (h_new, c_new), h_new

    xs = jnp.transpose(h, (1, 0, 2))
    init = (jnp.zeros((B, H), jnp.float32), jnp.zeros((B, H), jnp.float32))
    _, hs = jax.lax.scan(cell, init, xs)
    h = jnp.transpose(hs, (1, 0, 2))
    logits = h @ p["w5"] + p["b5"]
    return jax.nn.log_softmax(logits, axis=2)


if __name__ == "__main__":
    # Small shapes consistent with the module's forward:
    # x: (batch, seq, spectrogram_size); ALPHABET assumed to have 26 symbols.
    BATCH, SEQ, SPEC = 2, 8, 32
    NUM_TAGS = 26 + 1  # num_tags = len(ALPHABET) + 1 inside __init__

    key = jax.random.PRNGKey(0)
    kx, kp = jax.random.split(key)
    x = jax.random.normal(kx, (BATCH, SEQ, SPEC), jnp.float32)
    params = init_params(kp, SPEC, NUM_TAGS)

    out = net_forward(x, params)
    out = jax.block_until_ready(out)

    ref = net_reference(x, params)
    assert out.shape == (BATCH, SEQ, NUM_TAGS), out.shape
    assert jnp.allclose(out, ref, atol=5e-2, rtol=5e-2), \
        f"max abs err {jnp.max(jnp.abs(out - ref))}"

    print("KERNEL_OK")
</pallas_src>

<mosaic_0001>
module attributes {stable_mosaic.version = 11 : i64} {
  func.func @ff_kernel(%arg0: i32, %arg1: memref<64x32xf32, #tpu.memory_space<vmem>>, %arg2: memref<32x256xbf16, #tpu.memory_space<vmem>>, %arg3: memref<1x256xf32, #tpu.memory_space<vmem>>, %arg4: memref<256x256xbf16, #tpu.memory_space<vmem>>, %arg5: memref<1x256xf32, #tpu.memory_space<vmem>>, %arg6: memref<256x256xbf16, #tpu.memory_space<vmem>>, %arg7: memref<1x256xf32, #tpu.memory_space<vmem>>, %arg8: memref<256x256xbf16, #tpu.memory_space<vmem>>, %arg9: memref<1x256xf32, #tpu.memory_space<vmem>>, %arg10: memref<256x1024xbf16, #tpu.memory_space<vmem>>, %arg11: memref<1x1024xf32, #tpu.memory_space<vmem>>, %arg12: memref<64x1024xf32, #tpu.memory_space<vmem>>) attributes {dimension_semantics = [#tpu.dimension_semantics<parallel>], iteration_bounds = array<i64: 1>, scalar_prefetch = 0 : i64, scratch_operands = 0 : i64, tpu.core_type = #tpu.core_type<tc>, window_params = [{transform_indices = @transform_0, window_bounds = array<i64: 64, 32>}, {pipeline_mode = #tpu.pipeline_mode<synchronous>, transform_indices = @transform_1, window_bounds = array<i64: 32, 256>}, {pipeline_mode = #tpu.pipeline_mode<synchronous>, transform_indices = @transform_2, window_bounds = array<i64: 1, 256>}, {pipeline_mode = #tpu.pipeline_mode<synchronous>, transform_indices = @transform_3, window_bounds = array<i64: 256, 256>}, {pipeline_mode = #tpu.pipeline_mode<synchronous>, transform_indices = @transform_4, window_bounds = array<i64: 1, 256>}, {pipeline_mode = #tpu.pipeline_mode<synchronous>, transform_indices = @transform_5, window_bounds = array<i64: 256, 256>}, {pipeline_mode = #tpu.pipeline_mode<synchronous>, transform_indices = @transform_6, window_bounds = array<i64: 1, 256>}, {pipeline_mode = #tpu.pipeline_mode<synchronous>, transform_indices = @transform_7, window_bounds = array<i64: 256, 256>}, {pipeline_mode = #tpu.pipeline_mode<synchronous>, transform_indices = @transform_8, window_bounds = array<i64: 1, 256>}, {pipeline_mode = #tpu.pipeline_mode<synchronous>, transform_indices = @transform_9, window_bounds = array<i64: 256, 1024>}, {pipeline_mode = #tpu.pipeline_mode<synchronous>, transform_indices = @transform_10, window_bounds = array<i64: 1, 1024>}, {transform_indices = @transform_11, window_bounds = array<i64: 64, 1024>}]} {
    %c0 = arith.constant 0 : index
    %c0_0 = arith.constant 0 : index
    %0 = vector.load %arg1[%c0, %c0_0] : memref<64x32xf32, #tpu.memory_space<vmem>>, vector<64x32xf32>
    %1 = arith.truncf %0 : vector<64x32xf32> to vector<64x32xbf16>
    %c0_1 = arith.constant 0 : index
    %c0_2 = arith.constant 0 : index
    %2 = vector.load %arg2[%c0_1, %c0_2] : memref<32x256xbf16, #tpu.memory_space<vmem>>, vector<32x256xbf16>
    %cst = arith.constant dense<0.000000e+00> : vector<64x256xf32>
    %3 = tpu.matmul %1, %2, %cst {dimension_numbers = #tpu.dot_dimension_numbers<[1], [0], [0], [1], [0, 0, 1, 1], [], []>} : vector<64x32xbf16>, vector<32x256xbf16>, vector<64x256xf32> -> vector<64x256xf32>
    %c0_3 = arith.constant 0 : index
    %c0_4 = arith.constant 0 : index
    %4 = vector.load %arg3[%c0_3, %c0_4] : memref<1x256xf32, #tpu.memory_space<vmem>>, vector<1x256xf32>
    %5 = vector.broadcast %4 : vector<1x256xf32> to vector<64x256xf32>
    %6 = arith.addf %3, %5 : vector<64x256xf32>
    %cst_5 = arith.constant 0.000000e+00 : f32
    %7 = vector.broadcast %cst_5 : f32 to vector<64x256xf32>
    %8 = arith.maximumf %6, %7 : vector<64x256xf32>
    %9 = arith.truncf %8 : vector<64x256xf32> to vector<64x256xbf16>
    %c0_6 = arith.constant 0 : index
    %c0_7 = arith.constant 0 : index
    %10 = vector.load %arg4[%c0_6, %c0_7] : memref<256x256xbf16, #tpu.memory_space<vmem>>, vector<256x256xbf16>
    %cst_8 = arith.constant dense<0.000000e+00> : vector<64x256xf32>
    %11 = tpu.matmul %9, %10, %cst_8 {dimension_numbers = #tpu.dot_dimension_numbers<[1], [0], [0], [1], [0, 0, 1, 1], [], []>} : vector<64x256xbf16>, vector<256x256xbf16>, vector<64x256xf32> -> vector<64x256xf32>
    %c0_9 = arith.constant 0 : index
    %c0_10 = arith.constant 0 : index
    %12 = vector.load %arg5[%c0_9, %c0_10] : memref<1x256xf32, #tpu.memory_space<vmem>>, vector<1x256xf32>
    %13 = vector.broadcast %12 : vector<1x256xf32> to vector<64x256xf32>
    %14 = arith.addf %11, %13 : vector<64x256xf32>
    %cst_11 = arith.constant 0.000000e+00 : f32
    %15 = vector.broadcast %cst_11 : f32 to vector<64x256xf32>
    %16 = arith.maximumf %14, %15 : vector<64x256xf32>
    %17 = arith.truncf %16 : vector<64x256xf32> to vector<64x256xbf16>
    %c0_12 = arith.constant 0 : index
    %c0_13 = arith.constant 0 : index
    %18 = vector.load %arg6[%c0_12, %c0_13] : memref<256x256xbf16, #tpu.memory_space<vmem>>, vector<256x256xbf16>
    %cst_14 = arith.constant dense<0.000000e+00> : vector<64x256xf32>
    %19 = tpu.matmul %17, %18, %cst_14 {dimension_numbers = #tpu.dot_dimension_numbers<[1], [0], [0], [1], [0, 0, 1, 1], [], []>} : vector<64x256xbf16>, vector<256x256xbf16>, vector<64x256xf32> -> vector<64x256xf32>
    %c0_15 = arith.constant 0 : index
    %c0_16 = arith.constant 0 : index
    %20 = vector.load %arg7[%c0_15, %c0_16] : memref<1x256xf32, #tpu.memory_space<vmem>>, vector<1x256xf32>
    %21 = vector.broadcast %20 : vector<1x256xf32> to vector<64x256xf32>
    %22 = arith.addf %19, %21 : vector<64x256xf32>
    %cst_17 = arith.constant 0.000000e+00 : f32
    %23 = vector.broadcast %cst_17 : f32 to vector<64x256xf32>
    %24 = arith.maximumf %22, %23 : vector<64x256xf32>
    %25 = arith.truncf %24 : vector<64x256xf32> to vector<64x256xbf16>
    %c0_18 = arith.constant 0 : index
    %c0_19 = arith.constant 0 : index
    %26 = vector.load %arg8[%c0_18, %c0_19] : memref<256x256xbf16, #tpu.memory_space<vmem>>, vector<256x256xbf16>
    %cst_20 = arith.constant dense<0.000000e+00> : vector<64x256xf32>
    %27 = tpu.matmul %25, %26, %cst_20 {dimension_numbers = #tpu.dot_dimension_numbers<[1], [0], [0], [1], [0, 0, 1, 1], [], []>} : vector<64x256xbf16>, vector<256x256xbf16>, vector<64x256xf32> -> vector<64x256xf32>
    %c0_21 = arith.constant 0 : index
    %c0_22 = arith.constant 0 : index
    %28 = vector.load %arg9[%c0_21, %c0_22] : memref<1x256xf32, #tpu.memory_space<vmem>>, vector<1x256xf32>
    %29 = vector.broadcast %28 : vector<1x256xf32> to vector<64x256xf32>
    %30 = arith.addf %27, %29 : vector<64x256xf32>
    %cst_23 = arith.constant 0.000000e+00 : f32
    %31 = vector.broadcast %cst_23 : f32 to vector<64x256xf32>
    %32 = arith.maximumf %30, %31 : vector<64x256xf32>
    %33 = arith.truncf %32 : vector<64x256xf32> to vector<64x256xbf16>
    %c0_24 = arith.constant 0 : index
    %c0_25 = arith.constant 0 : index
    %34 = vector.load %arg10[%c0_24, %c0_25] : memref<256x1024xbf16, #tpu.memory_space<vmem>>, vector<256x1024xbf16>
    %cst_26 = arith.constant dense<0.000000e+00> : vector<64x1024xf32>
    %35 = tpu.matmul %33, %34, %cst_26 {dimension_numbers = #tpu.dot_dimension_numbers<[1], [0], [0], [1], [0, 0, 1, 1], [], []>} : vector<64x256xbf16>, vector<256x1024xbf16>, vector<64x1024xf32> -> vector<64x1024xf32>
    %c0_27 = arith.constant 0 : index
    %c0_28 = arith.constant 0 : index
    %36 = vector.load %arg11[%c0_27, %c0_28] : memref<1x1024xf32, #tpu.memory_space<vmem>>, vector<1x1024xf32>
    %37 = vector.broadcast %36 : vector<1x1024xf32> to vector<64x1024xf32>
    %38 = arith.addf %35, %37 : vector<64x1024xf32>
    %c0_29 = arith.constant 0 : index
    %c0_30 = arith.constant 0 : index
    %39 = vector.load %arg12[%c0_29, %c0_30] : memref<64x1024xf32, #tpu.memory_space<vmem>>, vector<64x1024xf32>
    tpu.vector_store %arg12[%c0_29, %c0_30], %38 {strides = array<i32>} : memref<64x1024xf32, #tpu.memory_space<vmem>>, vector<64x1024xf32>,
    return
  }
  func.func @transform_0(%arg0: i32) -> (i32, i32) {
    %c0_i32 = arith.constant 0 : i32
    %c0_i32_0 = arith.constant 0 : i32
    return %arg0, %c0_i32 : i32, i32
  }
  func.func @transform_1(%arg0: i32) -> (i32, i32) {
    %c0_i32 = arith.constant 0 : i32
    %c0_i32_0 = arith.constant 0 : i32
    %c0_i32_1 = arith.constant 0 : i32
    return %c0_i32, %c0_i32_0 : i32, i32
  }
  func.func @transform_2(%arg0: i32) -> (i32, i32) {
    %c0_i32 = arith.constant 0 : i32
    %c0_i32_0 = arith.constant 0 : i32
    %c0_i32_1 = arith.constant 0 : i32
    return %c0_i32, %c0_i32_0 : i32, i32
  }
  func.func @transform_3(%arg0: i32) -> (i32, i32) {
    %c0_i32 = arith.constant 0 : i32
    %c0_i32_0 = arith.constant 0 : i32
    %c0_i32_1 = arith.constant 0 : i32
    return %c0_i32, %c0_i32_0 : i32, i32
  }
  func.func @transform_4(%arg0: i32) -> (i32, i32) {
    %c0_i32 = arith.constant 0 : i32
    %c0_i32_0 = arith.constant 0 : i32
    %c0_i32_1 = arith.constant 0 : i32
    return %c0_i32, %c0_i32_0 : i32, i32
  }
  func.func @transform_5(%arg0: i32) -> (i32, i32) {
    %c0_i32 = arith.constant 0 : i32
    %c0_i32_0 = arith.constant 0 : i32
    %c0_i32_1 = arith.constant 0 : i32
    return %c0_i32, %c0_i32_0 : i32, i32
  }
  func.func @transform_6(%arg0: i32) -> (i32, i32) {
    %c0_i32 = arith.constant 0 : i32
    %c0_i32_0 = arith.constant 0 : i32
    %c0_i32_1 = arith.constant 0 : i32
    return %c0_i32, %c0_i32_0 : i32, i32
  }
  func.func @transform_7(%arg0: i32) -> (i32, i32) {
    %c0_i32 = arith.constant 0 : i32
    %c0_i32_0 = arith.constant 0 : i32
    %c0_i32_1 = arith.constant 0 : i32
    return %c0_i32, %c0_i32_0 : i32, i32
  }
  func.func @transform_8(%arg0: i32) -> (i32, i32) {
    %c0_i32 = arith.constant 0 : i32
    %c0_i32_0 = arith.constant 0 : i32
    %c0_i32_1 = arith.constant 0 : i32
    return %c0_i32, %c0_i32_0 : i32, i32
  }
  func.func @transform_9(%arg0: i32) -> (i32, i32) {
    %c0_i32 = arith.constant 0 : i32
    %c0_i32_0 = arith.constant 0 : i32
    %c0_i32_1 = arith.constant 0 : i32
    return %c0_i32, %c0_i32_0 : i32, i32
  }
  func.func @transform_10(%arg0: i32) -> (i32, i32) {
    %c0_i32 = arith.constant 0 : i32
    %c0_i32_0 = arith.constant 0 : i32
    %c0_i32_1 = arith.constant 0 : i32
    return %c0_i32, %c0_i32_0 : i32, i32
  }
  func.func @transform_11(%arg0: i32) -> (i32, i32) {
    %c0_i32 = arith.constant 0 : i32
    %c0_i32_0 = arith.constant 0 : i32
    return %arg0, %c0_i32 : i32, i32
  }
}

module attributes {stable_mosaic.version = 11 : i64} {
  func.func @lstm_proj_kernel(%arg0: i32, %arg1: memref<8x8x1024xf32, #tpu.memory_space<vmem>>, %arg2: memref<256x1024xbf16, #tpu.memory_space<vmem>>, %arg3: memref<256x128xbf16, #tpu.memory_space<vmem>>, %arg4: memref<1x128xf32, #tpu.memory_space<vmem>>, %arg5: memref<64x128xf32, #tpu.memory_space<vmem>>, %arg6: memref<8x256xf32, #tpu.memory_space<vmem>>, %arg7: memref<8x256xf32, #tpu.memory_space<vmem>>, %arg8: memref<64x256xf32, #tpu.memory_space<vmem>>) attributes {dimension_semantics = [#tpu.dimension_semantics<arbitrary>], iteration_bounds = array<i64: 1>, scalar_prefetch = 0 : i64, scratch_operands = 3 : i64, tpu.core_type = #tpu.core_type<tc>, window_params = [{transform_indices = @transform_0, window_bounds = array<i64: 8, 8, 1024>}, {pipeline_mode = #tpu.pipeline_mode<synchronous>, transform_indices = @transform_1, window_bounds = array<i64: 256, 1024>}, {pipeline_mode = #tpu.pipeline_mode<synchronous>, transform_indices = @transform_2, window_bounds = array<i64: 256, 128>}, {pipeline_mode = #tpu.pipeline_mode<synchronous>, transform_indices = @transform_3, window_bounds = array<i64: 1, 128>}, {transform_indices = @transform_4, window_bounds = array<i64: 64, 128>}]} {
    %c0_i32 = arith.constant 0 : i32
    %0 = arith.cmpi eq, %arg0, %c0_i32 : i32
    %1 = arith.extui %0 : i1 to i32
    %c0_i32_0 = arith.constant 0 : i32
    %2 = arith.cmpi ne, %1, %c0_i32_0 : i32
    scf.if %2 {
      %cst_85 = arith.constant 0.000000e+00 : f32
      %307 = vector.broadcast %cst_85 : f32 to vector<8x256xf32>
      %c0_86 = arith.constant 0 : index
      %c0_87 = arith.constant 0 : index
      %308 = vector.load %arg6[%c0_86, %c0_87] : memref<8x256xf32, #tpu.memory_space<vmem>>, vector<8x256xf32>
      tpu.vector_store %arg6[%c0_86, %c0_87], %307 {strides = array<i32>} : memref<8x256xf32, #tpu.memory_space<vmem>>, vector<8x256xf32>,
      %cst_88 = arith.constant 0.000000e+00 : f32
      %309 = vector.broadcast %cst_88 : f32 to vector<8x256xf32>
      %c0_89 = arith.constant 0 : index
      %c0_90 = arith.constant 0 : index
      %310 = vector.load %arg7[%c0_89, %c0_90] : memref<8x256xf32, #tpu.memory_space<vmem>>, vector<8x256xf32>
      tpu.vector_store %arg7[%c0_89, %c0_90], %309 {strides = array<i32>} : memref<8x256xf32, #tpu.memory_space<vmem>>, vector<8x256xf32>,
    } else {
    }
    %c0 = arith.constant 0 : index
    %c0_1 = arith.constant 0 : index
    %3 = vector.load %arg2[%c0, %c0_1] : memref<256x1024xbf16, #tpu.memory_space<vmem>>, vector<256x1024xbf16>
    %c0_2 = arith.constant 0 : index
    %c0_3 = arith.constant 0 : index
    %4 = vector.load %arg6[%c0_2, %c0_3] : memref<8x256xf32, #tpu.memory_space<vmem>>, vector<8x256xf32>
    %c0_4 = arith.constant 0 : index
    %c0_5 = arith.constant 0 : index
    %5 = vector.load %arg7[%c0_4, %c0_5] : memref<8x256xf32, #tpu.memory_space<vmem>>, vector<8x256xf32>
    %c0_i32_6 = arith.constant 0 : i32
    %6 = arith.index_cast %c0_i32_6 : i32 to index
    %c0_7 = arith.constant 0 : index
    %c0_8 = arith.constant 0 : index
    %7 = vector.load %arg1[%6, %c0_7, %c0_8] : memref<8x8x1024xf32, #tpu.memory_space<vmem>>, vector<1x8x1024xf32>
    %8 = vector.shape_cast %7 : vector<1x8x1024xf32> to vector<8x1024xf32>
    %9 = arith.truncf %4 : vector<8x256xf32> to vector<8x256xbf16>
    %cst = arith.constant dense<0.000000e+00> : vector<8x1024xf32>
    %10 = tpu.matmul %9, %3, %cst {dimension_numbers = #tpu.dot_dimension_numbers<[1], [0], [0], [1], [0, 0, 1, 1], [], []>} : vector<8x256xbf16>, vector<256x1024xbf16>, vector<8x1024xf32> -> vector<8x1024xf32>
    %11 = arith.addf %8, %10 : vector<8x1024xf32>
    %12 = vector.extract_strided_slice %11 {offsets = [0, 0], sizes = [8, 256], strides = [1, 1]} : vector<8x1024xf32> to vector<8x256xf32>
    %13 = arith.negf %12 : vector<8x256xf32>
    %14 = math.exp %13 : vector<8x256xf32>
    %cst_9 = arith.constant 1.000000e+00 : f32
    %15 = vector.broadcast %cst_9 : f32 to vector<8x256xf32>
    %16 = arith.addf %15, %14 : vector<8x256xf32>
    %17 = arith.divf %15, %16 : vector<8x256xf32>
    %18 = vector.extract_strided_slice %11 {offsets = [0, 256], sizes = [8, 256], strides = [1, 1]} : vector<8x1024xf32> to vector<8x256xf32>
    %19 = arith.negf %18 : vector<8x256xf32>
    %20 = math.exp %19 : vector<8x256xf32>
    %cst_10 = arith.constant 1.000000e+00 : f32
    %21 = vector.broadcast %cst_10 : f32 to vector<8x256xf32>
    %22 = arith.addf %21, %20 : vector<8x256xf32>
    %23 = arith.divf %21, %22 : vector<8x256xf32>
    %24 = vector.extract_strided_slice %11 {offsets = [0, 512], sizes = [8, 256], strides = [1, 1]} : vector<8x1024xf32> to vector<8x256xf32>
    %25 = math.tanh %24 : vector<8x256xf32>
    %26 = vector.extract_strided_slice %11 {offsets = [0, 768], sizes = [8, 256], strides = [1, 1]} : vector<8x1024xf32> to vector<8x256xf32>
    %27 = arith.negf %26 : vector<8x256xf32>
    %28 = math.exp %27 : vector<8x256xf32>
    %cst_11 = arith.constant 1.000000e+00 : f32
    %29 = vector.broadcast %cst_11 : f32 to vector<8x256xf32>
    %30 = arith.addf %29, %28 : vector<8x256xf32>
    %31 = arith.divf %29, %30 : vector<8x256xf32>
    %32 = arith.mulf %23, %5 : vector<8x256xf32>
    %33 = arith.mulf %17, %25 : vector<8x256xf32>
    %34 = arith.addf %32, %33 : vector<8x256xf32>
    %35 = math.tanh %34 : vector<8x256xf32>
    %36 = arith.mulf %31, %35 : vector<8x256xf32>
    %c8_i32 = arith.constant 8 : i32
    %37 = arith.muli %c0_i32_6, %c8_i32 : i32
    %38 = tpu.assume_multiple %37, 8 : i32
    %39 = arith.index_cast %38 : i32 to index
    %c0_12 = arith.constant 0 : index
    %40 = vector.load %arg8[%39, %c0_12] : memref<64x256xf32, #tpu.memory_space<vmem>>, vector<8x256xf32>
    tpu.vector_store %arg8[%39, %c0_12], %36 {strides = array<i32>} : memref<64x256xf32, #tpu.memory_space<vmem>>, vector<8x256xf32>,
    %c1_i32 = arith.constant 1 : i32
    %41 = arith.index_cast %c1_i32 : i32 to index
    %c0_13 = arith.constant 0 : index
    %c0_14 = arith.constant 0 : index
    %42 = vector.load %arg1[%41, %c0_13, %c0_14] : memref<8x8x1024xf32, #tpu.memory_space<vmem>>, vector<1x8x1024xf32>
    %43 = vector.shape_cast %42 : vector<1x8x1024xf32> to vector<8x1024xf32>
    %44 = arith.truncf %36 : vector<8x256xf32> to vector<8x256xbf16>
    %cst_15 = arith.constant dense<0.000000e+00> : vector<8x1024xf32>
    %45 = tpu.matmul %44, %3, %cst_15 {dimension_numbers = #tpu.dot_dimension_numbers<[1], [0], [0], [1], [0, 0, 1, 1], [], []>} : vector<8x256xbf16>, vector<256x1024xbf16>, vector<8x1024xf32> -> vector<8x1024xf32>
    %46 = arith.addf %43, %45 : vector<8x1024xf32>
    %47 = vector.extract_strided_slice %46 {offsets = [0, 0], sizes = [8, 256], strides = [1, 1]} : vector<8x1024xf32> to vector<8x256xf32>
    %48 = arith.negf %47 : vector<8x256xf32>
    %49 = math.exp %48 : vector<8x256xf32>
    %cst_16 = arith.constant 1.000000e+00 : f32
    %50 = vector.broadcast %cst_16 : f32 to vector<8x256xf32>
    %51 = arith.addf %50, %49 : vector<8x256xf32>
    %52 = arith.divf %50, %51 : vector<8x256xf32>
    %53 = vector.extract_strided_slice %46 {offsets = [0, 256], sizes = [8, 256], strides = [1, 1]} : vector<8x1024xf32> to vector<8x256xf32>
    %54 = arith.negf %53 : vector<8x256xf32>
    %55 = math.exp %54 : vector<8x256xf32>
    %cst_17 = arith.constant 1.000000e+00 : f32
    %56 = vector.broadcast %cst_17 : f32 to vector<8x256xf32>
    %57 = arith.addf %56, %55 : vector<8x256xf32>
    %58 = arith.divf %56, %57 : vector<8x256xf32>
    %59 = vector.extract_strided_slice %46 {offsets = [0, 512], sizes = [8, 256], strides = [1, 1]} : vector<8x1024xf32> to vector<8x256xf32>
    %60 = math.tanh %59 : vector<8x256xf32>
    %61 = vector.extract_strided_slice %46 {offsets = [0, 768], sizes = [8, 256], strides = [1, 1]} : vector<8x1024xf32> to vector<8x256xf32>
    %62 = arith.negf %61 : vector<8x256xf32>
    %63 = math.exp %62 : vector<8x256xf32>
    %cst_18 = arith.constant 1.000000e+00 : f32
    %64 = vector.broadcast %cst_18 : f32 to vector<8x256xf32>
    %65 = arith.addf %64, %63 : vector<8x256xf32>
    %66 = arith.divf %64, %65 : vector<8x256xf32>
    %67 = arith.mulf %58, %34 : vector<8x256xf32>
    %68 = arith.mulf %52, %60 : vector<8x256xf32>
    %69 = arith.addf %67, %68 : vector<8x256xf32>
    %70 = math.tanh %69 : vector<8x256xf32>
    %71 = arith.mulf %66, %70 : vector<8x256xf32>
    %c8_i32_19 = arith.constant 8 : i32
    %72 = arith.muli %c1_i32, %c8_i32_19 : i32
    %73 = tpu.assume_multiple %72, 8 : i32
    %74 = arith.index_cast %73 : i32 to index
    %c0_20 = arith.constant 0 : index
    %75 = vector.load %arg8[%74, %c0_20] : memref<64x256xf32, #tpu.memory_space<vmem>>, vector<8x256xf32>
    tpu.vector_store %arg8[%74, %c0_20], %71 {strides = array<i32>} : memref<64x256xf32, #tpu.memory_space<vmem>>, vector<8x256xf32>,
    %c2_i32 = arith.constant 2 : i32
    %76 = arith.index_cast %c2_i32 : i32 to index
    %c0_21 = arith.constant 0 : index
    %c0_22 = arith.constant 0 : index
    %77 = vector.load %arg1[%76, %c0_21, %c0_22] : memref<8x8x1024xf32, #tpu.memory_space<vmem>>, vector<1x8x1024xf32>
    %78 = vector.shape_cast %77 : vector<1x8x1024xf32> to vector<8x1024xf32>
    %79 = arith.truncf %71 : vector<8x256xf32> to vector<8x256xbf16>
    %cst_23 = arith.constant dense<0.000000e+00> : vector<8x1024xf32>
    %80 = tpu.matmul %79, %3, %cst_23 {dimension_numbers = #tpu.dot_dimension_numbers<[1], [0], [0], [1], [0, 0, 1, 1], [], []>} : vector<8x256xbf16>, vector<256x1024xbf16>, vector<8x1024xf32> -> vector<8x1024xf32>
    %81 = arith.addf %78, %80 : vector<8x1024xf32>
    %82 = vector.extract_strided_slice %81 {offsets = [0, 0], sizes = [8, 256], strides = [1, 1]} : vector<8x1024xf32> to vector<8x256xf32>
    %83 = arith.negf %82 : vector<8x256xf32>
    %84 = math.exp %83 : vector<8x256xf32>
    %cst_24 = arith.constant 1.000000e+00 : f32
    %85 = vector.broadcast %cst_24 : f32 to vector<8x256xf32>
    %86 = arith.addf %85, %84 : vector<8x256xf32>
    %87 = arith.divf %85, %86 : vector<8x256xf32>
    %88 = vector.extract_strided_slice %81 {offsets = [0, 256], sizes = [8, 256], strides = [1, 1]} : vector<8x1024xf32> to vector<8x256xf32>
    %89 = arith.negf %88 : vector<8x256xf32>
    %90 = math.exp %89 : vector<8x256xf32>
    %cst_25 = arith.constant 1.000000e+00 : f32
    %91 = vector.broadcast %cst_25 : f32 to vector<8x256xf32>
    %92 = arith.addf %91, %90 : vector<8x256xf32>
    %93 = arith.divf %91, %92 : vector<8x256xf32>
    %94 = vector.extract_strided_slice %81 {offsets = [0, 512], sizes = [8, 256], strides = [1, 1]} : vector<8x1024xf32> to vector<8x256xf32>
    %95 = math.tanh %94 : vector<8x256xf32>
    %96 = vector.extract_strided_slice %81 {offsets = [0, 768], sizes = [8, 256], strides = [1, 1]} : vector<8x1024xf32> to vector<8x256xf32>
    %97 = arith.negf %96 : vector<8x256xf32>
    %98 = math.exp %97 : vector<8x256xf32>
    %cst_26 = arith.constant 1.000000e+00 : f32
    %99 = vector.broadcast %cst_26 : f32 to vector<8x256xf32>
    %100 = arith.addf %99, %98 : vector<8x256xf32>
    %101 = arith.divf %99, %100 : vector<8x256xf32>
    %102 = arith.mulf %93, %69 : vector<8x256xf32>
    %103 = arith.mulf %87, %95 : vector<8x256xf32>
    %104 = arith.addf %102, %103 : vector<8x256xf32>
    %105 = math.tanh %104 : vector<8x256xf32>
    %106 = arith.mulf %101, %105 : vector<8x256xf32>
    %c8_i32_27 = arith.constant 8 : i32
    %107 = arith.muli %c2_i32, %c8_i32_27 : i32
    %108 = tpu.assume_multiple %107, 8 : i32
    %109 = arith.index_cast %108 : i32 to index
    %c0_28 = arith.constant 0 : index
    %110 = vector.load %arg8[%109, %c0_28] : memref<64x256xf32, #tpu.memory_space<vmem>>, vector<8x256xf32>
    tpu.vector_store %arg8[%109, %c0_28], %106 {strides = array<i32>} : memref<64x256xf32, #tpu.memory_space<vmem>>, vector<8x256xf32>,
    %c3_i32 = arith.constant 3 : i32
    %111 = arith.index_cast %c3_i32 : i32 to index
    %c0_29 = arith.constant 0 : index
    %c0_30 = arith.constant 0 : index
    %112 = vector.load %arg1[%111, %c0_29, %c0_30] : memref<8x8x1024xf32, #tpu.memory_space<vmem>>, vector<1x8x1024xf32>
    %113 = vector.shape_cast %112 : vector<1x8x1024xf32> to vector<8x1024xf32>
    %114 = arith.truncf %106 : vector<8x256xf32> to vector<8x256xbf16>
    %cst_31 = arith.constant dense<0.000000e+00> : vector<8x1024xf32>
    %115 = tpu.matmul %114, %3, %cst_31 {dimension_numbers = #tpu.dot_dimension_numbers<[1], [0], [0], [1], [0, 0, 1, 1], [], []>} : vector<8x256xbf16>, vector<256x1024xbf16>, vector<8x1024xf32> -> vector<8x1024xf32>
    %116 = arith.addf %113, %115 : vector<8x1024xf32>
    %117 = vector.extract_strided_slice %116 {offsets = [0, 0], sizes = [8, 256], strides = [1, 1]} : vector<8x1024xf32> to vector<8x256xf32>
    %118 = arith.negf %117 : vector<8x256xf32>
    %119 = math.exp %118 : vector<8x256xf32>
    %cst_32 = arith.constant 1.000000e+00 : f32
    %120 = vector.broadcast %cst_32 : f32 to vector<8x256xf32>
    %121 = arith.addf %120, %119 : vector<8x256xf32>
    %122 = arith.divf %120, %121 : vector<8x256xf32>
    %123 = vector.extract_strided_slice %116 {offsets = [0, 256], sizes = [8, 256], strides = [1, 1]} : vector<8x1024xf32> to vector<8x256xf32>
    %124 = arith.negf %123 : vector<8x256xf32>
    %125 = math.exp %124 : vector<8x256xf32>
    %cst_33 = arith.constant 1.000000e+00 : f32
    %126 = vector.broadcast %cst_33 : f32 to vector<8x256xf32>
    %127 = arith.addf %126, %125 : vector<8x256xf32>
    %128 = arith.divf %126, %127 : vector<8x256xf32>
    %129 = vector.extract_strided_slice %116 {offsets = [0, 512], sizes = [8, 256], strides = [1, 1]} : vector<8x1024xf32> to vector<8x256xf32>
    %130 = math.tanh %129 : vector<8x256xf32>
    %131 = vector.extract_strided_slice %116 {offsets = [0, 768], sizes = [8, 256], strides = [1, 1]} : vector<8x1024xf32> to vector<8x256xf32>
    %132 = arith.negf %131 : vector<8x256xf32>
    %133 = math.exp %132 : vector<8x256xf32>
    %cst_34 = arith.constant 1.000000e+00 : f32
    %134 = vector.broadcast %cst_34 : f32 to vector<8x256xf32>
    %135 = arith.addf %134, %133 : vector<8x256xf32>
    %136 = arith.divf %134, %135 : vector<8x256xf32>
    %137 = arith.mulf %128, %104 : vector<8x256xf32>
    %138 = arith.mulf %122, %130 : vector<8x256xf32>
    %139 = arith.addf %137, %138 : vector<8x256xf32>
    %140 = math.tanh %139 : vector<8x256xf32>
    %141 = arith.mulf %136, %140 : vector<8x256xf32>
    %c8_i32_35 = arith.constant 8 : i32
    %142 = arith.muli %c3_i32, %c8_i32_35 : i32
    %143 = tpu.assume_multiple %142, 8 : i32
    %144 = arith.index_cast %143 : i32 to index
    %c0_36 = arith.constant 0 : index
    %145 = vector.load %arg8[%144, %c0_36] : memref<64x256xf32, #tpu.memory_space<vmem>>, vector<8x256xf32>
    tpu.vector_store %arg8[%144, %c0_36], %141 {strides = array<i32>} : memref<64x256xf32, #tpu.memory_space<vmem>>, vector<8x256xf32>,
    %c4_i32 = arith.constant 4 : i32
    %146 = arith.index_cast %c4_i32 : i32 to index
    %c0_37 = arith.constant 0 : index
    %c0_38 = arith.constant 0 : index
    %147 = vector.load %arg1[%146, %c0_37, %c0_38] : memref<8x8x1024xf32, #tpu.memory_space<vmem>>, vector<1x8x1024xf32>
    %148 = vector.shape_cast %147 : vector<1x8x1024xf32> to vector<8x1024xf32>
    %149 = arith.truncf %141 : vector<8x256xf32> to vector<8x256xbf16>
    %cst_39 = arith.constant dense<0.000000e+00> : vector<8x1024xf32>
    %150 = tpu.matmul %149, %3, %cst_39 {dimension_numbers = #tpu.dot_dimension_numbers<[1], [0], [0], [1], [0, 0, 1, 1], [], []>} : vector<8x256xbf16>, vector<256x1024xbf16>, vector<8x1024xf32> -> vector<8x1024xf32>
    %151 = arith.addf %148, %150 : vector<8x1024xf32>
    %152 = vector.extract_strided_slice %151 {offsets = [0, 0], sizes = [8, 256], strides = [1, 1]} : vector<8x1024xf32> to vector<8x256xf32>
    %153 = arith.negf %152 : vector<8x256xf32>
    %154 = math.exp %153 : vector<8x256xf32>
    %cst_40 = arith.constant 1.000000e+00 : f32
    %155 = vector.broadcast %cst_40 : f32 to vector<8x256xf32>
    %156 = arith.addf %155, %154 : vector<8x256xf32>
    %157 = arith.divf %155, %156 : vector<8x256xf32>
    %158 = vector.extract_strided_slice %151 {offsets = [0, 256], sizes = [8, 256], strides = [1, 1]} : vector<8x1024xf32> to vector<8x256xf32>
    %159 = arith.negf %158 : vector<8x256xf32>
    %160 = math.exp %159 : vector<8x256xf32>
    %cst_41 = arith.constant 1.000000e+00 : f32
    %161 = vector.broadcast %cst_41 : f32 to vector<8x256xf32>
    %162 = arith.addf %161, %160 : vector<8x256xf32>
    %163 = arith.divf %161, %162 : vector<8x256xf32>
    %164 = vector.extract_strided_slice %151 {offsets = [0, 512], sizes = [8, 256], strides = [1, 1]} : vector<8x1024xf32> to vector<8x256xf32>
    %165 = math.tanh %164 : vector<8x256xf32>
    %166 = vector.extract_strided_slice %151 {offsets = [0, 768], sizes = [8, 256], strides = [1, 1]} : vector<8x1024xf32> to vector<8x256xf32>
    %167 = arith.negf %166 : vector<8x256xf32>
    %168 = math.exp %167 : vector<8x256xf32>
    %cst_42 = arith.constant 1.000000e+00 : f32
    %169 = vector.broadcast %cst_42 : f32 to vector<8x256xf32>
    %170 = arith.addf %169, %168 : vector<8x256xf32>
    %171 = arith.divf %169, %170 : vector<8x256xf32>
    %172 = arith.mulf %163, %139 : vector<8x256xf32>
    %173 = arith.mulf %157, %165 : vector<8x256xf32>
    %174 = arith.addf %172, %173 : vector<8x256xf32>
    %175 = math.tanh %174 : vector<8x256xf32>
    %176 = arith.mulf %171, %175 : vector<8x256xf32>
    %c8_i32_43 = arith.constant 8 : i32
    %177 = arith.muli %c4_i32, %c8_i32_43 : i32
    %178 = tpu.assume_multiple %177, 8 : i32
    %179 = arith.index_cast %178 : i32 to index
    %c0_44 = arith.constant 0 : index
    %180 = vector.load %arg8[%179, %c0_44] : memref<64x256xf32, #tpu.memory_space<vmem>>, vector<8x256xf32>
    tpu.vector_store %arg8[%179, %c0_44], %176 {strides = array<i32>} : memref<64x256xf32, #tpu.memory_space<vmem>>, vector<8x256xf32>,
    %c5_i32 = arith.constant 5 : i32
    %181 = arith.index_cast %c5_i32 : i32 to index
    %c0_45 = arith.constant 0 : index
    %c0_46 = arith.constant 0 : index
    %182 = vector.load %arg1[%181, %c0_45, %c0_46] : memref<8x8x1024xf32, #tpu.memory_space<vmem>>, vector<1x8x1024xf32>
    %183 = vector.shape_cast %182 : vector<1x8x1024xf32> to vector<8x1024xf32>
    %184 = arith.truncf %176 : vector<8x256xf32> to vector<8x256xbf16>
    %cst_47 = arith.constant dense<0.000000e+00> : vector<8x1024xf32>
    %185 = tpu.matmul %184, %3, %cst_47 {dimension_numbers = #tpu.dot_dimension_numbers<[1], [0], [0], [1], [0, 0, 1, 1], [], []>} : vector<8x256xbf16>, vector<256x1024xbf16>, vector<8x1024xf32> -> vector<8x1024xf32>
    %186 = arith.addf %183, %185 : vector<8x1024xf32>
    %187 = vector.extract_strided_slice %186 {offsets = [0, 0], sizes = [8, 256], strides = [1, 1]} : vector<8x1024xf32> to vector<8x256xf32>
    %188 = arith.negf %187 : vector<8x256xf32>
    %189 = math.exp %188 : vector<8x256xf32>
    %cst_48 = arith.constant 1.000000e+00 : f32
    %190 = vector.broadcast %cst_48 : f32 to vector<8x256xf32>
    %191 = arith.addf %190, %189 : vector<8x256xf32>
    %192 = arith.divf %190, %191 : vector<8x256xf32>
    %193 = vector.extract_strided_slice %186 {offsets = [0, 256], sizes = [8, 256], strides = [1, 1]} : vector<8x1024xf32> to vector<8x256xf32>
    %194 = arith.negf %193 : vector<8x256xf32>
    %195 = math.exp %194 : vector<8x256xf32>
    %cst_49 = arith.constant 1.000000e+00 : f32
    %196 = vector.broadcast %cst_49 : f32 to vector<8x256xf32>
    %197 = arith.addf %196, %195 : vector<8x256xf32>
    %198 = arith.divf %196, %197 : vector<8x256xf32>
    %199 = vector.extract_strided_slice %186 {offsets = [0, 512], sizes = [8, 256], strides = [1, 1]} : vector<8x1024xf32> to vector<8x256xf32>
    %200 = math.tanh %199 : vector<8x256xf32>
    %201 = vector.extract_strided_slice %186 {offsets = [0, 768], sizes = [8, 256], strides = [1, 1]} : vector<8x1024xf32> to vector<8x256xf32>
    %202 = arith.negf %201 : vector<8x256xf32>
    %203 = math.exp %202 : vector<8x256xf32>
    %cst_50 = arith.constant 1.000000e+00 : f32
    %204 = vector.broadcast %cst_50 : f32 to vector<8x256xf32>
    %205 = arith.addf %204, %203 : vector<8x256xf32>
    %206 = arith.divf %204, %205 : vector<8x256xf32>
    %207 = arith.mulf %198, %174 : vector<8x256xf32>
    %208 = arith.mulf %192, %200 : vector<8x256xf32>
    %209 = arith.addf %207, %208 : vector<8x256xf32>
    %210 = math.tanh %209 : vector<8x256xf32>
    %211 = arith.mulf %206, %210 : vector<8x256xf32>
    %c8_i32_51 = arith.constant 8 : i32
    %212 = arith.muli %c5_i32, %c8_i32_51 : i32
    %213 = tpu.assume_multiple %212, 8 : i32
    %214 = arith.index_cast %213 : i32 to index
    %c0_52 = arith.constant 0 : index
    %215 = vector.load %arg8[%214, %c0_52] : memref<64x256xf32, #tpu.memory_space<vmem>>, vector<8x256xf32>
    tpu.vector_store %arg8[%214, %c0_52], %211 {strides = array<i32>} : memref<64x256xf32, #tpu.memory_space<vmem>>, vector<8x256xf32>,
    %c6_i32 = arith.constant 6 : i32
    %216 = arith.index_cast %c6_i32 : i32 to index
    %c0_53 = arith.constant 0 : index
    %c0_54 = arith.constant 0 : index
    %217 = vector.load %arg1[%216, %c0_53, %c0_54] : memref<8x8x1024xf32, #tpu.memory_space<vmem>>, vector<1x8x1024xf32>
    %218 = vector.shape_cast %217 : vector<1x8x1024xf32> to vector<8x1024xf32>
    %219 = arith.truncf %211 : vector<8x256xf32> to vector<8x256xbf16>
    %cst_55 = arith.constant dense<0.000000e+00> : vector<8x1024xf32>
    %220 = tpu.matmul %219, %3, %cst_55 {dimension_numbers = #tpu.dot_dimension_numbers<[1], [0], [0], [1], [0, 0, 1, 1], [], []>} : vector<8x256xbf16>, vector<256x1024xbf16>, vector<8x1024xf32> -> vector<8x1024xf32>
    %221 = arith.addf %218, %220 : vector<8x1024xf32>
    %222 = vector.extract_strided_slice %221 {offsets = [0, 0], sizes = [8, 256], strides = [1, 1]} : vector<8x1024xf32> to vector<8x256xf32>
    %223 = arith.negf %222 : vector<8x256xf32>
    %224 = math.exp %223 : vector<8x256xf32>
    %cst_56 = arith.constant 1.000000e+00 : f32
    %225 = vector.broadcast %cst_56 : f32 to vector<8x256xf32>
    %226 = arith.addf %225, %224 : vector<8x256xf32>
    %227 = arith.divf %225, %226 : vector<8x256xf32>
    %228 = vector.extract_strided_slice %221 {offsets = [0, 256], sizes = [8, 256], strides = [1, 1]} : vector<8x1024xf32> to vector<8x256xf32>
    %229 = arith.negf %228 : vector<8x256xf32>
    %230 = math.exp %229 : vector<8x256xf32>
    %cst_57 = arith.constant 1.000000e+00 : f32
    %231 = vector.broadcast %cst_57 : f32 to vector<8x256xf32>
    %232 = arith.addf %231, %230 : vector<8x256xf32>
    %233 = arith.divf %231, %232 : vector<8x256xf32>
    %234 = vector.extract_strided_slice %221 {offsets = [0, 512], sizes = [8, 256], strides = [1, 1]} : vector<8x1024xf32> to vector<8x256xf32>
    %235 = math.tanh %234 : vector<8x256xf32>
    %236 = vector.extract_strided_slice %221 {offsets = [0, 768], sizes = [8, 256], strides = [1, 1]} : vector<8x1024xf32> to vector<8x256xf32>
    %237 = arith.negf %236 : vector<8x256xf32>
    %238 = math.exp %237 : vector<8x256xf32>
    %cst_58 = arith.constant 1.000000e+00 : f32
    %239 = vector.broadcast %cst_58 : f32 to vector<8x256xf32>
    %240 = arith.addf %239, %238 : vector<8x256xf32>
    %241 = arith.divf %239, %240 : vector<8x256xf32>
    %242 = arith.mulf %233, %209 : vector<8x256xf32>
    %243 = arith.mulf %227, %235 : vector<8x256xf32>
    %244 = arith.addf %242, %243 : vector<8x256xf32>
    %245 = math.tanh %244 : vector<8x256xf32>
    %246 = arith.mulf %241, %245 : vector<8x256xf32>
    %c8_i32_59 = arith.constant 8 : i32
    %247 = arith.muli %c6_i32, %c8_i32_59 : i32
    %248 = tpu.assume_multiple %247, 8 : i32
    %249 = arith.index_cast %248 : i32 to index
    %c0_60 = arith.constant 0 : index
    %250 = vector.load %arg8[%249, %c0_60] : memref<64x256xf32, #tpu.memory_space<vmem>>, vector<8x256xf32>
    tpu.vector_store %arg8[%249, %c0_60], %246 {strides = array<i32>} : memref<64x256xf32, #tpu.memory_space<vmem>>, vector<8x256xf32>,
    %c7_i32 = arith.constant 7 : i32
    %251 = arith.index_cast %c7_i32 : i32 to index
    %c0_61 = arith.constant 0 : index
    %c0_62 = arith.constant 0 : index
    %252 = vector.load %arg1[%251, %c0_61, %c0_62] : memref<8x8x1024xf32, #tpu.memory_space<vmem>>, vector<1x8x1024xf32>
    %253 = vector.shape_cast %252 : vector<1x8x1024xf32> to vector<8x1024xf32>
    %254 = arith.truncf %246 : vector<8x256xf32> to vector<8x256xbf16>
    %cst_63 = arith.constant dense<0.000000e+00> : vector<8x1024xf32>
    %255 = tpu.matmul %254, %3, %cst_63 {dimension_numbers = #tpu.dot_dimension_numbers<[1], [0], [0], [1], [0, 0, 1, 1], [], []>} : vector<8x256xbf16>, vector<256x1024xbf16>, vector<8x1024xf32> -> vector<8x1024xf32>
    %256 = arith.addf %253, %255 : vector<8x1024xf32>
    %257 = vector.extract_strided_slice %256 {offsets = [0, 0], sizes = [8, 256], strides = [1, 1]} : vector<8x1024xf32> to vector<8x256xf32>
    %258 = arith.negf %257 : vector<8x256xf32>
    %259 = math.exp %258 : vector<8x256xf32>
    %cst_64 = arith.constant 1.000000e+00 : f32
    %260 = vector.broadcast %cst_64 : f32 to vector<8x256xf32>
    %261 = arith.addf %260, %259 : vector<8x256xf32>
    %262 = arith.divf %260, %261 : vector<8x256xf32>
    %263 = vector.extract_strided_slice %256 {offsets = [0, 256], sizes = [8, 256], strides = [1, 1]} : vector<8x1024xf32> to vector<8x256xf32>
    %264 = arith.negf %263 : vector<8x256xf32>
    %265 = math.exp %264 : vector<8x256xf32>
    %cst_65 = arith.constant 1.000000e+00 : f32
    %266 = vector.broadcast %cst_65 : f32 to vector<8x256xf32>
    %267 = arith.addf %266, %265 : vector<8x256xf32>
    %268 = arith.divf %266, %267 : vector<8x256xf32>
    %269 = vector.extract_strided_slice %256 {offsets = [0, 512], sizes = [8, 256], strides = [1, 1]} : vector<8x1024xf32> to vector<8x256xf32>
    %270 = math.tanh %269 : vector<8x256xf32>
    %271 = vector.extract_strided_slice %256 {offsets = [0, 768], sizes = [8, 256], strides = [1, 1]} : vector<8x1024xf32> to vector<8x256xf32>
    %272 = arith.negf %271 : vector<8x256xf32>
    %273 = math.exp %272 : vector<8x256xf32>
    %cst_66 = arith.constant 1.000000e+00 : f32
    %274 = vector.broadcast %cst_66 : f32 to vector<8x256xf32>
    %275 = arith.addf %274, %273 : vector<8x256xf32>
    %276 = arith.divf %274, %275 : vector<8x256xf32>
    %277 = arith.mulf %268, %244 : vector<8x256xf32>
    %278 = arith.mulf %262, %270 : vector<8x256xf32>
    %279 = arith.addf %277, %278 : vector<8x256xf32>
    %280 = math.tanh %279 : vector<8x256xf32>
    %281 = arith.mulf %276, %280 : vector<8x256xf32>
    %c8_i32_67 = arith.constant 8 : i32
    %282 = arith.muli %c7_i32, %c8_i32_67 : i32
    %283 = tpu.assume_multiple %282, 8 : i32
    %284 = arith.index_cast %283 : i32 to index
    %c0_68 = arith.constant 0 : index
    %285 = vector.load %arg8[%284, %c0_68] : memref<64x256xf32, #tpu.memory_space<vmem>>, vector<8x256xf32>
    tpu.vector_store %arg8[%284, %c0_68], %281 {strides = array<i32>} : memref<64x256xf32, #tpu.memory_space<vmem>>, vector<8x256xf32>,
    %c8_i32_69 = arith.constant 8 : i32
    %c0_70 = arith.constant 0 : index
    %c0_71 = arith.constant 0 : index
    %286 = vector.load %arg6[%c0_70, %c0_71] : memref<8x256xf32, #tpu.memory_space<vmem>>, vector<8x256xf32>
    tpu.vector_store %arg6[%c0_70, %c0_71], %281 {strides = array<i32>} : memref<8x256xf32, #tpu.memory_space<vmem>>, vector<8x256xf32>,
    %c0_72 = arith.constant 0 : index
    %c0_73 = arith.constant 0 : index
    %287 = vector.load %arg7[%c0_72, %c0_73] : memref<8x256xf32, #tpu.memory_space<vmem>>, vector<8x256xf32>
    tpu.vector_store %arg7[%c0_72, %c0_73], %279 {strides = array<i32>} : memref<8x256xf32, #tpu.memory_space<vmem>>, vector<8x256xf32>,
    %c0_74 = arith.constant 0 : index
    %c0_75 = arith.constant 0 : index
    %288 = vector.load %arg8[%c0_74, %c0_75] : memref<64x256xf32, #tpu.memory_space<vmem>>, vector<64x256xf32>
    %289 = arith.truncf %288 : vector<64x256xf32> to vector<64x256xbf16>
    %c0_76 = arith.constant 0 : index
    %c0_77 = arith.constant 0 : index
    %290 = vector.load %arg3[%c0_76, %c0_77] : memref<256x128xbf16, #tpu.memory_space<vmem>>, vector<256x128xbf16>
    %cst_78 = arith.constant dense<0.000000e+00> : vector<64x128xf32>
    %291 = tpu.matmul %289, %290, %cst_78 {dimension_numbers = #tpu.dot_dimension_numbers<[1], [0], [0], [1], [0, 0, 1, 1], [], []>} : vector<64x256xbf16>, vector<256x128xbf16>, vector<64x128xf32> -> vector<64x128xf32>
    %c0_79 = arith.constant 0 : index
    %c0_80 = arith.constant 0 : index
    %292 = vector.load %arg4[%c0_79, %c0_80] : memref<1x128xf32, #tpu.memory_space<vmem>>, vector<1x128xf32>
    %293 = vector.broadcast %292 : vector<1x128xf32> to vector<64x128xf32>
    %294 = arith.addf %291, %293 : vector<64x128xf32>
    %cst_81 = arith.constant dense<0xFF800000> : vector<64xf32>
    %295 = vector.multi_reduction <maximumf>, %294, %cst_81 [1] : vector<64x128xf32> to vector<64xf32>
    %296 = vector.shape_cast %295 : vector<64xf32> to vector<64x1xf32>
    %297 = vector.broadcast %296 : vector<64x1xf32> to vector<64x128xf32>
    %298 = arith.subf %294, %297 : vector<64x128xf32>
    %299 = math.exp %298 : vector<64x128xf32>
    %cst_82 = arith.constant dense<0.000000e+00> : vector<64xf32>
    %300 = vector.multi_reduction <add>, %299, %cst_82 [1] : vector<64x128xf32> to vector<64xf32>
    %301 = vector.shape_cast %300 : vector<64xf32> to vector<64x1xf32>
    %302 = math.log %301 : vector<64x1xf32>
    %303 = arith.addf %296, %302 : vector<64x1xf32>
    %304 = vector.broadcast %303 : vector<64x1xf32> to vector<64x128xf32>
    %305 = arith.subf %294, %304 : vector<64x128xf32>
    %c0_83 = arith.constant 0 : index
    %c0_84 = arith.constant 0 : index
    %306 = vector.load %arg5[%c0_83, %c0_84] : memref<64x128xf32, #tpu.memory_space<vmem>>, vector<64x128xf32>
    tpu.vector_store %arg5[%c0_83, %c0_84], %305 {strides = array<i32>} : memref<64x128xf32, #tpu.memory_space<vmem>>, vector<64x128xf32>,
    return
  }
  func.func @transform_0(%arg0: i32) -> (i32, i32, i32) {
    %c0_i32 = arith.constant 0 : i32
    %c0_i32_0 = arith.constant 0 : i32
    %c0_i32_1 = arith.constant 0 : i32
    return %arg0, %c0_i32, %c0_i32_0 : i32, i32, i32
  }
  func.func @transform_1(%arg0: i32) -> (i32, i32) {
    %c0_i32 = arith.constant 0 : i32
    %c0_i32_0 = arith.constant 0 : i32
    %c0_i32_1 = arith.constant 0 : i32
    return %c0_i32, %c0_i32_0 : i32, i32
  }
  func.func @transform_2(%arg0: i32) -> (i32, i32) {
    %c0_i32 = arith.constant 0 : i32
    %c0_i32_0 = arith.constant 0 : i32
    %c0_i32_1 = arith.constant 0 : i32
    return %c0_i32, %c0_i32_0 : i32, i32
  }
  func.func @transform_3(%arg0: i32) -> (i32, i32) {
    %c0_i32 = arith.constant 0 : i32
    %c0_i32_0 = arith.constant 0 : i32
    %c0_i32_1 = arith.constant 0 : i32
    return %c0_i32, %c0_i32_0 : i32, i32
  }
  func.func @transform_4(%arg0: i32) -> (i32, i32) {
    %c0_i32 = arith.constant 0 : i32
    %c0_i32_0 = arith.constant 0 : i32
    return %arg0, %c0_i32 : i32, i32
  }
}

</mosaic_0001>

<bundles_post_ra>
// kernel: net_forward.2
= control target key start
LH: loop header
LB: loop body
LE: loop exit
PB: predicated region body
PF: predicated region fallthrough
CT: control target
= control target key end

     0   :  { %v2685_v1 = vmov 0   ;;  %vm87_vm0 = vcmask 261120   ;;  %s3990_s1 = inlined_call_operand.vmem [shape: bf16[32,256], index: 1, kind: input, shape index: {}]   ;;  %s3991_s0 = inlined_call_operand.vmem [shape: f32[64,32], index: 0, kind: input, shape index: {}]   ;;  %s3992_s3 = inlined_call_operand.vmem [shape: bf16[256,256], index: 3, kind: input, shape index: {}]   ;;  %s3993_s5 = inlined_call_operand.vmem [shape: bf16[256,256], index: 5, kind: input, shape index: {}]   ;;  %s3994_s2 = inlined_call_operand.vmem [shape: f32[1,256], index: 2, kind: input, shape index: {}]   ;;  %s3995_s7 = inlined_call_operand.vmem [shape: bf16[256,256], index: 7, kind: input, shape index: {}]   ;;  %s3996_s4 = inlined_call_operand.vmem [shape: f32[1,256], index: 4, kind: input, shape index: {}]   ;;  %s3997_s9 = inlined_call_operand.vmem [shape: bf16[256,1024], index: 9, kind: input, shape index: {}]   ;;  %s3998_s6 = inlined_call_operand.vmem [shape: f32[1,256], index: 6, kind: input, shape index: {}]   ;;  %s3999_s8 = inlined_call_operand.vmem [shape: f32[1,256], index: 8, kind: input, shape index: {}]   ;;  %s4000_s10 = inlined_call_operand.vmem [shape: f32[1,1024], index: 10, kind: input, shape index: {}]   ;;  %s4001_s11 = inlined_call_operand.vmem [shape: f32[64,1024], index: 11, kind: output, shape index: {}]  }
   0x1   :  { %v2535_v0 = vld [vmem:[%s3990_s1 + $0x4] ss:$8 sps:$4 sm:$0xff]   ;;  %132 = vmatprep.mubr.bf16.mxu0 %v2685_v1  ;;  %v2537_v2 = vld [vmem:[%s3990_s1] ss:$8 sps:$4 sm:$0xff]   ;;  %v2538_v3 = vld [vmem:[%s3990_s1 + $0x14] ss:$8 sps:$4 sm:$0xff]  }
   0x2   :  { %100 = vmatprep.subr.bf16.mxu0 %v2535_v0  ;;  %v2540_v4 = vld [vmem:[%s3990_s1 + $0x10] ss:$8 sps:$4 sm:$0xff]   ;;  %v39_v5 = vld [vmem:[%s3991_s0] sm:$0xff]  ;;  %v40_v6 = vld [vmem:[%s3991_s0 + $0x8] sm:$0xff] }
   0x3   :  { %101 = vmatpush1.bf16.msra.mxu0 %v2537_v2  ;;  %v47_v7 = vpack.c.bf16 %v40_v6, %v39_v5  ;;  %v2541_v8 = vld [vmem:[%s3992_s3 + $0x4] ss:$8 sps:$4 sm:$0xff]   ;;  %v2543_v9 = vld [vmem:[%s3992_s3] ss:$8 sps:$4 sm:$0xff]   ;;  %v2544_v10 = vld [vmem:[%s3992_s3 + $0x14] ss:$8 sps:$4 sm:$0xff]  }
   0x4   :  { %102 = vmatprep.subr.bf16.mxu0 %v2538_v3  ;;  %401 = vmatprep.subr.bf16.mxu1 %v2541_v8  ;;  %v2546_v11 = vld [vmem:[%s3992_s3 + $0x10] ss:$8 sps:$4 sm:$0xff]   ;;  %v2547_v12 = vld [vmem:[%s3992_s3 + $0x24] ss:$8 sps:$4 sm:$0xff]   ;;  %v2549_v15 = vld [vmem:[%s3992_s3 + $0x20] ss:$8 sps:$4 sm:$0xff]  }
   0x5   :  { %402 = vmatpush1.bf16.msra.mxu1 %v2543_v9  ;;  %v41_v13 = vld [vmem:[%s3991_s0 + $0x10] sm:$0xff]  ;;  %v42_v14 = vld [vmem:[%s3991_s0 + $0x18] sm:$0xff]  ;;  %v2553_v19 = vld [vmem:[%s3992_s3 + $0x44] ss:$8 sps:$4 sm:$0xff]  }
   0x6   :  { %403 = vmatprep.subr.bf16.mxu1 %v2544_v10  ;;  %v48_v16 = vpack.c.bf16 %v42_v14, %v41_v13  ;;  %v2550_v17 = vld [vmem:[%s3992_s3 + $0x34] ss:$8 sps:$4 sm:$0xff]   ;;  %v2552_v18 = vld [vmem:[%s3992_s3 + $0x30] ss:$8 sps:$4 sm:$0xff]   ;;  %v43_v20 = vld [vmem:[%s3991_s0 + $0x20] sm:$0xff]  ;;  %v57_v13 = vlaneseq }
   0x7   :  { %103 = vmatpush1.bf16.msra.mxu0 %v2540_v4  ;;  %v44_v21 = vld [vmem:[%s3991_s0 + $0x28] sm:$0xff]  ;;  %v2556_v24 = vld [vmem:[%s3992_s3 + $0x54] ss:$8 sps:$4 sm:$0xff]   ;;  %v2558_v25 = vld [vmem:[%s3992_s3 + $0x50] ss:$8 sps:$4 sm:$0xff]  }
   0x8   :  { %v2555_v22 = vld [vmem:[%s3992_s3 + $0x40] ss:$8 sps:$4 sm:$0xff]   ;;  %v49_v23 = vpack.c.bf16 %v44_v21, %v43_v20  ;;  %v2559_v26 = vld [vmem:[%s3992_s3 + $0x64] ss:$8 sps:$4 sm:$0xff]   ;;  %v45_v27 = vld [vmem:[%s3991_s0 + $0x30] sm:$0xff]  ;;  %v2966_v14 = vshrl.u32 %v57_v13, 7 }
   0x9   :  { %404 = vmatpush1.bf16.msra.mxu1 %v2546_v11  ;;  %v46_v28 = vld [vmem:[%s3991_s0 + $0x38] sm:$0xff]  ;;  %v2561_v29 = vld [vmem:[%s3992_s3 + $0x60] ss:$8 sps:$4 sm:$0xff]   ;;  %v2565_v33 = vld [vmem:[%s3992_s3 + $0x84] ss:$8 sps:$4 sm:$0xff]  }
   0xa   :  { %2274 = vmatmul.mubr.msk.bf16.vlgmr.msra.gmra.mrb[0].mxu0 %vm87_vm0, %v47_v7  ;;  %405 = vmatprep.subr.bf16.mxu1 %v2547_v12  ;;  %v50_v30 = vpack.c.bf16 %v46_v28, %v45_v27  ;;  %v2562_v31 = vld [vmem:[%s3992_s3 + $0x74] ss:$8 sps:$4 sm:$0xff]   ;;  %v2564_v32 = vld [vmem:[%s3992_s3 + $0x70] ss:$8 sps:$4 sm:$0xff]   ;;  %v2567_v34 = vld [vmem:[%s3992_s3 + $0x80] ss:$8 sps:$4 sm:$0xff]  }
   0xb   :  { %142 = vmatprep.mubr.bf16.mxu0 %v2685_v1  ;;  %v2568_v35 = vld [vmem:[%s3992_s3 + $0x94] ss:$8 sps:$4 sm:$0xff]   ;;  %v2570_v36 = vld [vmem:[%s3992_s3 + $0x90] ss:$8 sps:$4 sm:$0xff]   ;;  %v2571_v37 = vld [vmem:[%s3992_s3 + $0xa4] ss:$8 sps:$4 sm:$0xff]  }
   0xc   :  { %v2573_v38 = vld [vmem:[%s3992_s3 + $0xa0] ss:$8 sps:$4 sm:$0xff]   ;;  %v2574_v39 = vld [vmem:[%s3992_s3 + $0xb4] ss:$8 sps:$4 sm:$0xff]   ;;  %v2576_v40 = vld [vmem:[%s3992_s3 + $0xb0] ss:$8 sps:$4 sm:$0xff]  }
   0xd   :  { %406 = vmatpush1.bf16.msra.mxu1 %v2549_v15  ;;  %v2577_v41 = vld [vmem:[%s3992_s3 + $0xc4] ss:$8 sps:$4 sm:$0xff]   ;;  %v2579_v42 = vld [vmem:[%s3992_s3 + $0xc0] ss:$8 sps:$4 sm:$0xff]   ;;  %v2580_v43 = vld [vmem:[%s3992_s3 + $0xd4] ss:$8 sps:$4 sm:$0xff]  }
   0xe   :  { %407 = vmatprep.subr.bf16.mxu1 %v2550_v17  ;;  %v2582_v44 = vld [vmem:[%s3992_s3 + $0xd0] ss:$8 sps:$4 sm:$0xff]   ;;  %v2583_v45 = vld [vmem:[%s3992_s3 + $0xe4] ss:$8 sps:$4 sm:$0xff]   ;;  %v2585_v46 = vld [vmem:[%s3992_s3 + $0xe0] ss:$8 sps:$4 sm:$0xff]  }
   0xf   :  { %v2586_v47 = vld [vmem:[%s3992_s3 + $0xf4] ss:$8 sps:$4 sm:$0xff]   ;;  %v2588_v48 = vld [vmem:[%s3992_s3 + $0xf0] ss:$8 sps:$4 sm:$0xff]   ;;  %v2589_v49 = vld [vmem:[%s3993_s5] ss:$8 sps:$4 sm:$0xff]  }
  0x10   :  { %v2591_v50 = vld [vmem:[%s3993_s5 + $0x4] ss:$8 sps:$4 sm:$0xff]   ;;  %v2594_v51 = vld [vmem:[%s3993_s5 + $0x14] ss:$8 sps:$4 sm:$0xff]   ;;  %v2592_v52 = vld [vmem:[%s3993_s5 + $0x10] ss:$8 sps:$4 sm:$0xff]  }
  0x11   :  { %408 = vmatpush1.bf16.msra.mxu1 %v2552_v18  ;;  %702 = vmatprep.subr.bf16.mxu0 %v2591_v50  ;;  %v2597_v53 = vld [vmem:[%s3993_s5 + $0x24] ss:$8 sps:$4 sm:$0xff]   ;;  %v2595_v54 = vld [vmem:[%s3993_s5 + $0x20] ss:$8 sps:$4 sm:$0xff]   ;;  %v2600_v55 = vld [vmem:[%s3993_s5 + $0x34] ss:$8 sps:$4 sm:$0xff]  }
  0x12   :  { %2275 = vmatmul.mubr.msk.bf16.gmra.mrb[4].mxu0 %vm87_vm0, %v48_v16  ;;  %409 = vmatprep.subr.bf16.mxu1 %v2553_v19  ;;  %v2598_v56 = vld [vmem:[%s3993_s5 + $0x30] ss:$8 sps:$4 sm:$0xff]   ;;  %v2603_v57 = vld [vmem:[%s3993_s5 + $0x44] ss:$8 sps:$4 sm:$0xff]   ;;  %v2601_v58 = vld [vmem:[%s3993_s5 + $0x40] ss:$8 sps:$4 sm:$0xff]  }
  0x13   :  { %152 = vmatprep.mubr.bf16.mxu0 %v2685_v1  ;;  %703 = vmatpush1.bf16.msra.mxu0 %v2589_v49  ;;  %v2606_v59 = vld [vmem:[%s3993_s5 + $0x54] ss:$8 sps:$4 sm:$0xff]   ;;  %v2604_v60 = vld [vmem:[%s3993_s5 + $0x50] ss:$8 sps:$4 sm:$0xff]   ;;  %v2609_v61 = vld [vmem:[%s3993_s5 + $0x64] ss:$8 sps:$4 sm:$0xff]  }
  0x14   :  { %704 = vmatprep.subr.bf16.mxu0 %v2594_v51  ;;  %v2607_v62 = vld [vmem:[%s3993_s5 + $0x60] ss:$8 sps:$4 sm:$0xff]   ;;  %v2612_v63 = vld [vmem:[%s3993_s5 + $0x74] ss:$8 sps:$4 sm:$0xff]   ;;  %v2610_v0 = vld [vmem:[%s3993_s5 + $0x70] ss:$8 sps:$4 sm:$0xff]  }
  0x15   :  { %410 = vmatpush1.bf16.msra.mxu1 %v2555_v22  ;;  %v2613_v2 = vld [vmem:[%s3993_s5 + $0x80] ss:$8 sps:$4 sm:$0xff]   ;;  %v2618_v3 = vld [vmem:[%s3993_s5 + $0x94] ss:$8 sps:$4 sm:$0xff]   ;;  %v2616_v4 = vld [vmem:[%s3993_s5 + $0x90] ss:$8 sps:$4 sm:$0xff]  }
  0x16   :  { %411 = vmatprep.subr.bf16.mxu1 %v2556_v24  ;;  %v2621_v5 = vld [vmem:[%s3993_s5 + $0xa4] ss:$8 sps:$4 sm:$0xff]   ;;  %v2619_v6 = vld [vmem:[%s3993_s5 + $0xa0] ss:$8 sps:$4 sm:$0xff]   ;;  %v2624_v7 = vld [vmem:[%s3993_s5 + $0xb4] ss:$8 sps:$4 sm:$0xff]  }
  0x17   :  { %705 = vmatpush1.bf16.msra.mxu0 %v2592_v52  ;;  %v2622_v8 = vld [vmem:[%s3993_s5 + $0xb0] ss:$8 sps:$4 sm:$0xff]   ;;  %v2627_v9 = vld [vmem:[%s3993_s5 + $0xc4] ss:$8 sps:$4 sm:$0xff]   ;;  %v2625_v10 = vld [vmem:[%s3993_s5 + $0xc0] ss:$8 sps:$4 sm:$0xff]  }
  0x18   :  { %706 = vmatprep.subr.bf16.mxu0 %v2597_v53  ;;  %v2630_v11 = vld [vmem:[%s3993_s5 + $0xd4] ss:$8 sps:$4 sm:$0xff]   ;;  %v2628_v12 = vld [vmem:[%s3993_s5 + $0xd0] ss:$8 sps:$4 sm:$0xff]   ;;  %v2969_v15 = vsub.s32 0, %v2966_v14  ;;  %v2975_v17 = vsub.s32 1, %v2966_v14 }
  0x19   :  { %412 = vmatpush1.bf16.msra.mxu1 %v2558_v25  ;;  %v55_v16 = vld [vmem:[%s3994_s2] sm:$0x3] }
  0x1a   :  { %2276 = vmatmul.mubr.msk.bf16.gmra.mrb[8].mxu0 %vm87_vm0, %v49_v23  ;;  %413 = vmatprep.subr.bf16.mxu1 %v2559_v26  ;;  %v60_v18 = vrot.slane %v55_v16, %v2969_v15  ;;  %v64_v19 = vrot.slane %v55_v16, %v2975_v17  ;;  %v2631_v13 = vld [vmem:[%s3993_s5 + $0xe0] ss:$8 sps:$4 sm:$0xff]   ;;  %v2636_v16 = vld [vmem:[%s3993_s5 + $0xf4] ss:$8 sps:$4 sm:$0xff]  }
  0x1b   :  { %162 = vmatprep.mubr.bf16.mxu0 %v2685_v1  ;;  %707 = vmatpush1.bf16.msra.mxu0 %v2595_v54  ;;  %v2615_v1 = vld [vmem:[%s3993_s5 + $0x84] ss:$8 sps:$4 sm:$0xff]  }
  0x1c   :  { %708 = vmatprep.subr.bf16.mxu0 %v2600_v55 }
  0x1d   :  { %414 = vmatpush1.bf16.msra.mxu1 %v2561_v29 }
  0x1e   :  { %415 = vmatprep.subr.bf16.mxu1 %v2562_v31 }
  0x1f   :  { %709 = vmatpush1.bf16.msra.mxu0 %v2598_v56 }
  0x20   :  { %710 = vmatprep.subr.bf16.mxu0 %v2603_v57 }
  0x21   :  { %416 = vmatpush1.bf16.msra.mxu1 %v2564_v32 }
  0x22   :  { %2277 = vmatmul.mubr.msk.bf16.gmra.mrb[12].mxu0 %vm87_vm0, %v50_v30  ;;  %417 = vmatprep.subr.bf16.mxu1 %v2565_v33 }
  0x23   :  { %711 = vmatpush1.bf16.msra.mxu0 %v2601_v58 }
  0x24   :  { %712 = vmatprep.subr.bf16.mxu0 %v2606_v59 }
  0x25   :  { %418 = vmatpush1.bf16.msra.mxu1 %v2567_v34 }
  0x26   :  { %419 = vmatprep.subr.bf16.mxu1 %v2568_v35 }
  0x27   :  { %713 = vmatpush1.bf16.msra.mxu0 %v2604_v60 }
  0x28   :  { %714 = vmatprep.subr.bf16.mxu0 %v2609_v61 }
  0x29   :  { %420 = vmatpush1.bf16.msra.mxu1 %v2570_v36 }
  0x2a   :  { %421 = vmatprep.subr.bf16.mxu1 %v2571_v37 }
  0x2b   :  { %715 = vmatpush1.bf16.msra.mxu0 %v2607_v62 }
  0x2c   :  { %716 = vmatprep.subr.bf16.mxu0 %v2612_v63 }
  0x2d   :  { %422 = vmatpush1.bf16.msra.mxu1 %v2573_v38 }
  0x2e   :  { %423 = vmatprep.subr.bf16.mxu1 %v2574_v39 }
  0x2f   :  { %717 = vmatpush1.bf16.msra.mxu0 %v2610_v0 }
  0x30   :  { %718 = vmatprep.subr.bf16.mxu0 %v2615_v1 }
  0x31   :  { %424 = vmatpush1.bf16.msra.mxu1 %v2576_v40 }
  0x32   :  { %425 = vmatprep.subr.bf16.mxu1 %v2577_v41 }
  0x33   :  { %719 = vmatpush1.bf16.msra.mxu0 %v2613_v2 }
  0x34   :  { %720 = vmatprep.subr.bf16.mxu0 %v2618_v3 }
  0x35   :  { %426 = vmatpush1.bf16.msra.mxu1 %v2579_v42 }
  0x36   :  { %427 = vmatprep.subr.bf16.mxu1 %v2580_v43 }
  0x37   :  { %721 = vmatpush1.bf16.msra.mxu0 %v2616_v4 }
  0x38   :  { %722 = vmatprep.subr.bf16.mxu0 %v2621_v5 }
  0x39   :  { %428 = vmatpush1.bf16.msra.mxu1 %v2582_v44 }
  0x3a   :  { %429 = vmatprep.subr.bf16.mxu1 %v2583_v45 }
  0x3b   :  { %723 = vmatpush1.bf16.msra.mxu0 %v2619_v6 }
  0x3c   :  { %724 = vmatprep.subr.bf16.mxu0 %v2624_v7 }
  0x3d   :  { %430 = vmatpush1.bf16.msra.mxu1 %v2585_v46 }
  0x3e   :  { %431 = vmatprep.subr.bf16.mxu1 %v2586_v47 }
  0x3f   :  { %725 = vmatpush1.bf16.msra.mxu0 %v2622_v8 }
  0x40   :  { %726 = vmatprep.subr.bf16.mxu0 %v2627_v9 }
  0x41   :  { %432 = vmatpush1.bf16.msra.mxu1 %v2588_v48 }
  0x43   :  { %727 = vmatpush1.bf16.msra.mxu0 %v2625_v10 }
  0x44   :  { %728 = vmatprep.subr.bf16.mxu0 %v2630_v11 }
  0x47   :  { %729 = vmatpush1.bf16.msra.mxu0 %v2628_v12  ;;  %v2633_v12 = vld [vmem:[%s3993_s5 + $0xe4] ss:$8 sps:$4 sm:$0xff]  }
  0x48   :  { %730 = vmatprep.subr.bf16.mxu0 %v2633_v12 }
  0x4b   :  { %731 = vmatpush1.bf16.msra.mxu0 %v2631_v13 }
  0x4c   :  { %732 = vmatprep.subr.bf16.mxu0 %v2636_v16 }
  0xdd   :  { %v134_v20 = vpop.f32.mrb[0].mxu0 }
  0xde   :  { %v135_v21 = vadd.f32 %v134_v20, %v60_v18  ;;  %v136_v22 = vpop.f32.mrb[1].mxu0  ;;  %v2639_v20 = vld [vmem:[%s3995_s7 + $0x4] ss:$8 sps:$4 sm:$0xff]  }
  0xdf   :  { %v137_v23 = vadd.f32 %v136_v22, %v64_v19  ;;  %v138_v24 = vpop.f32.mrb[2].mxu0  ;;  %1003 = vmatprep.subr.bf16.mxu1 %v2639_v20  ;;  %v2640_v22 = vld [vmem:[%s3995_s7 + $0x10] ss:$8 sps:$4 sm:$0xff]  }
  0xe0   :  { %v139_v25 = vadd.f32 %v138_v24, %v60_v18  ;;  %v140_v26 = vpop.f32.mrb[3].mxu0  ;;  %v173_v28 = vmax.f32 %v135_v21, 0.0  ;;  %v2642_v21 = vld [vmem:[%s3995_s7 + $0x14] ss:$8 sps:$4 sm:$0xff]   ;;  %v2643_v24 = vld [vmem:[%s3995_s7 + $0x20] ss:$8 sps:$4 sm:$0xff]  }
  0xe1   :  { %v141_v27 = vadd.f32 %v140_v26, %v64_v19  ;;  %v174_v30 = vmax.f32 %v137_v23, 0.0  ;;  %v2645_v23 = vld [vmem:[%s3995_s7 + $0x24] ss:$8 sps:$4 sm:$0xff]   ;;  %v2646_v26 = vld [vmem:[%s3995_s7 + $0x30] ss:$8 sps:$4 sm:$0xff]  }
  0xe2   :  { %v175_v29 = vmax.f32 %v139_v25, 0.0  ;;  %v2648_v25 = vld [vmem:[%s3995_s7 + $0x34] ss:$8 sps:$4 sm:$0xff]  }
  0xe3   :  { %v176_v31 = vmax.f32 %v141_v27, 0.0  ;;  %v2651_v27 = vld [vmem:[%s3995_s7 + $0x44] ss:$8 sps:$4 sm:$0xff]  }
  0xe4   :  { %v189_v32 = vpack.c.bf16 %v175_v29, %v173_v28  ;;  %v2649_v28 = vld [vmem:[%s3995_s7 + $0x40] ss:$8 sps:$4 sm:$0xff]   ;;  %v2654_v29 = vld [vmem:[%s3995_s7 + $0x54] ss:$8 sps:$4 sm:$0xff]  }
  0xe5   :  { %v144_v33 = vpop.f32.mrb[4].mxu0  ;;  %v190_v34 = vpack.c.bf16 %v176_v31, %v174_v30  ;;  %v2652_v30 = vld [vmem:[%s3995_s7 + $0x50] ss:$8 sps:$4 sm:$0xff]   ;;  %v2657_v31 = vld [vmem:[%s3995_s7 + $0x64] ss:$8 sps:$4 sm:$0xff]  }
  0xe6   :  { %v145_v35 = vadd.f32 %v144_v33, %v60_v18  ;;  %v146_v36 = vpop.f32.mrb[5].mxu0  ;;  %v2660_v33 = vld [vmem:[%s3995_s7 + $0x74] ss:$8 sps:$4 sm:$0xff]  }
  0xe7   :  { %v147_v37 = vadd.f32 %v146_v36, %v64_v19  ;;  %v148_v38 = vpop.f32.mrb[6].mxu0  ;;  %433 = vmatprep.mubr.bf16.mxu1 %v190_v34  ;;  %v2658_v34 = vld [vmem:[%s3995_s7 + $0x70] ss:$8 sps:$4 sm:$0xff]   ;;  %v2661_v36 = vld [vmem:[%s3995_s7 + $0x80] ss:$8 sps:$4 sm:$0xff]  }
  0xe8   :  { %v177_v39 = vmax.f32 %v145_v35, 0.0  ;;  %v149_v40 = vadd.f32 %v148_v38, %v60_v18  ;;  %v150_v41 = vpop.f32.mrb[7].mxu0  ;;  %434 = vmatmul.mubr.bf16.vlgmr.msra.gmra.mrb[0].mxu1 %v189_v32  ;;  %v2655_v32 = vld [vmem:[%s3995_s7 + $0x60] ss:$8 sps:$4 sm:$0xff]   ;;  %v2663_v35 = vld [vmem:[%s3995_s7 + $0x84] ss:$8 sps:$4 sm:$0xff]  }
  0xe9   :  { %v178_v42 = vmax.f32 %v147_v37, 0.0  ;;  %v151_v43 = vadd.f32 %v150_v41, %v64_v19  ;;  %v2666_v37 = vld [vmem:[%s3995_s7 + $0x94] ss:$8 sps:$4 sm:$0xff]   ;;  %v2664_v38 = vld [vmem:[%s3995_s7 + $0x90] ss:$8 sps:$4 sm:$0xff]  }
  0xea   :  { %v179_v44 = vmax.f32 %v149_v40, 0.0  ;;  %v2667_v40 = vld [vmem:[%s3995_s7 + $0xa0] ss:$8 sps:$4 sm:$0xff]   ;;  %v2672_v41 = vld [vmem:[%s3995_s7 + $0xb4] ss:$8 sps:$4 sm:$0xff]  }
  0xeb   :  { %v180_v45 = vmax.f32 %v151_v43, 0.0  ;;  %v2675_v43 = vld [vmem:[%s3995_s7 + $0xc4] ss:$8 sps:$4 sm:$0xff]  }
  0xec   :  { %v191_v46 = vpack.c.bf16 %v179_v44, %v177_v39  ;;  %v2669_v39 = vld [vmem:[%s3995_s7 + $0xa4] ss:$8 sps:$4 sm:$0xff]   ;;  %v2673_v44 = vld [vmem:[%s3995_s7 + $0xc0] ss:$8 sps:$4 sm:$0xff]  }
  0xed   :  { %v192_v47 = vpack.c.bf16 %v180_v45, %v178_v42  ;;  %v154_v48 = vpop.f32.mrb[8].mxu0  ;;  %v2670_v42 = vld [vmem:[%s3995_s7 + $0xb0] ss:$8 sps:$4 sm:$0xff]   ;;  %v2678_v45 = vld [vmem:[%s3995_s7 + $0xd4] ss:$8 sps:$4 sm:$0xff]  }
  0xee   :  { %v155_v49 = vadd.f32 %v154_v48, %v60_v18  ;;  %v156_v50 = vpop.f32.mrb[9].mxu0 }
  0xef   :  { %v157_v51 = vadd.f32 %v156_v50, %v64_v19  ;;  %v158_v52 = vpop.f32.mrb[10].mxu0  ;;  %443 = vmatprep.mubr.bf16.mxu1 %v192_v47  ;;  %v229_v47 = vld [vmem:[%s3996_s4] sm:$0x3] }
  0xf0   :  { %v181_v53 = vmax.f32 %v155_v49, 0.0  ;;  %v159_v54 = vadd.f32 %v158_v52, %v60_v18  ;;  %v160_v55 = vpop.f32.mrb[11].mxu0  ;;  %444 = vmatmul.mubr.bf16.gmra.mrb[4].mxu1 %v191_v46  ;;  %v2676_v46 = vld [vmem:[%s3995_s7 + $0xd0] ss:$8 sps:$4 sm:$0xff]   ;;  %v234_v48 = vrot.slane %v229_v47, %v2969_v15  ;;  %v238_v49 = vrot.slane %v229_v47, %v2975_v17  ;;  %v2684_v47 = vld [vmem:[%s3995_s7 + $0xf4] ss:$8 sps:$4 sm:$0xff]  }
  0xf1   :  { %v182_v56 = vmax.f32 %v157_v51, 0.0  ;;  %v161_v57 = vadd.f32 %v160_v55, %v64_v19 }
  0xf2   :  { %v183_v58 = vmax.f32 %v159_v54, 0.0 }
  0xf3   :  { %v184_v59 = vmax.f32 %v161_v57, 0.0 }
  0xf4   :  { %v193_v60 = vpack.c.bf16 %v183_v58, %v181_v53 }
  0xf5   :  { %v194_v61 = vpack.c.bf16 %v184_v59, %v182_v56  ;;  %v164_v62 = vpop.f32.mrb[12].mxu0 }
  0xf6   :  { %v165_v63 = vadd.f32 %v164_v62, %v60_v18  ;;  %v166_v0 = vpop.f32.mrb[13].mxu0 }
  0xf7   :  { %v167_v1 = vadd.f32 %v166_v0, %v64_v19  ;;  %v168_v2 = vpop.f32.mrb[14].mxu0  ;;  %453 = vmatprep.mubr.bf16.mxu1 %v194_v61 }
  0xf8   :  { %v185_v3 = vmax.f32 %v165_v63, 0.0  ;;  %v169_v4 = vadd.f32 %v168_v2, %v60_v18  ;;  %v170_v5 = vpop.f32.mrb[15].mxu0  ;;  %454 = vmatmul.mubr.bf16.gmra.mrb[8].mxu1 %v193_v60  ;;  %v2634_v18 = vld [vmem:[%s3993_s5 + $0xf0] ss:$8 sps:$4 sm:$0xff]  }
  0xf9   :  { %v186_v6 = vmax.f32 %v167_v1, 0.0  ;;  %v171_v7 = vadd.f32 %v170_v5, %v64_v19  ;;  %733 = vmatpush1.bf16.msra.mxu0 %v2634_v18  ;;  %v2637_v19 = vld [vmem:[%s3995_s7] ss:$8 sps:$4 sm:$0xff]  }
  0xfa   :  { %v187_v8 = vmax.f32 %v169_v4, 0.0  ;;  %1004 = vmatpush1.bf16.msra.mxu1 %v2637_v19 }
  0xfb   :  { %v188_v9 = vmax.f32 %v171_v7, 0.0  ;;  %1005 = vmatprep.subr.bf16.mxu1 %v2642_v21 }
  0xfc   :  { %v195_v10 = vpack.c.bf16 %v187_v8, %v185_v3 }
  0xfd   :  { %v196_v11 = vpack.c.bf16 %v188_v9, %v186_v6 }
  0xfe   :  { %1006 = vmatpush1.bf16.msra.mxu1 %v2640_v22 }
  0xff   :  { %463 = vmatprep.mubr.bf16.mxu1 %v196_v11  ;;  %1007 = vmatprep.subr.bf16.mxu1 %v2645_v23 }
 0x100   :  { %464 = vmatmul.mubr.bf16.gmra.mrb[12].mxu1 %v195_v10 }
 0x102   :  { %1008 = vmatpush1.bf16.msra.mxu1 %v2643_v24 }
 0x103   :  { %1009 = vmatprep.subr.bf16.mxu1 %v2648_v25 }
 0x106   :  { %1010 = vmatpush1.bf16.msra.mxu1 %v2646_v26 }
 0x107   :  { %1011 = vmatprep.subr.bf16.mxu1 %v2651_v27 }
 0x10a   :  { %1012 = vmatpush1.bf16.msra.mxu1 %v2649_v28 }
 0x10b   :  { %1013 = vmatprep.subr.bf16.mxu1 %v2654_v29 }
 0x10e   :  { %1014 = vmatpush1.bf16.msra.mxu1 %v2652_v30 }
 0x10f   :  { %1015 = vmatprep.subr.bf16.mxu1 %v2657_v31 }
 0x112   :  { %1016 = vmatpush1.bf16.msra.mxu1 %v2655_v32 }
 0x113   :  { %1017 = vmatprep.subr.bf16.mxu1 %v2660_v33 }
 0x116   :  { %1018 = vmatpush1.bf16.msra.mxu1 %v2658_v34 }
 0x117   :  { %1019 = vmatprep.subr.bf16.mxu1 %v2663_v35 }
 0x11a   :  { %1020 = vmatpush1.bf16.msra.mxu1 %v2661_v36 }
 0x11b   :  { %1021 = vmatprep.subr.bf16.mxu1 %v2666_v37 }
 0x11e   :  { %1022 = vmatpush1.bf16.msra.mxu1 %v2664_v38 }
 0x11f   :  { %1023 = vmatprep.subr.bf16.mxu1 %v2669_v39 }
 0x122   :  { %1024 = vmatpush1.bf16.msra.mxu1 %v2667_v40 }
 0x123   :  { %1025 = vmatprep.subr.bf16.mxu1 %v2672_v41 }
 0x126   :  { %1026 = vmatpush1.bf16.msra.mxu1 %v2670_v42 }
 0x127   :  { %1027 = vmatprep.subr.bf16.mxu1 %v2675_v43 }
 0x12a   :  { %1028 = vmatpush1.bf16.msra.mxu1 %v2673_v44 }
 0x12b   :  { %1029 = vmatprep.subr.bf16.mxu1 %v2678_v45  ;;  %v2681_v45 = vld [vmem:[%s3995_s7 + $0xe4] ss:$8 sps:$4 sm:$0xff]  }
 0x12e   :  { %1030 = vmatpush1.bf16.msra.mxu1 %v2676_v46  ;;  %v2679_v46 = vld [vmem:[%s3995_s7 + $0xe0] ss:$8 sps:$4 sm:$0xff]  }
 0x12f   :  { %1031 = vmatprep.subr.bf16.mxu1 %v2681_v45 }
 0x132   :  { %1032 = vmatpush1.bf16.msra.mxu1 %v2679_v46 }
 0x133   :  { %1033 = vmatprep.subr.bf16.mxu1 %v2684_v47 }
 0x1bb   :  { %v435_v50 = vpop.f32.mrb[0].mxu1 }
 0x1bc   :  { %v436_v51 = vadd.f32 %v435_v50, %v234_v48  ;;  %v437_v52 = vpop.f32.mrb[1].mxu1  ;;  %v1104_v50 = vld [vmem:[%s3997_s9 + $0x20] sm:$0xff] }
 0x1bd   :  { %v438_v53 = vadd.f32 %v437_v52, %v238_v49  ;;  %v439_v54 = vpop.f32.mrb[2].mxu1 }
 0x1be   :  { %v440_v55 = vadd.f32 %v439_v54, %v234_v48  ;;  %v441_v56 = vpop.f32.mrb[3].mxu1  ;;  %v474_v58 = vmax.f32 %v436_v51, 0.0  ;;  %v3101_v51 = vld [vmem:[%s3997_s9 + $0x8] sm:$0xff] }
 0x1bf   :  { %v442_v57 = vadd.f32 %v441_v56, %v238_v49  ;;  %v475_v60 = vmax.f32 %v438_v53, 0.0  ;;  %v3106_v54 = vld [vmem:[%s3997_s9 + $0x28] sm:$0xff]  ;;  %v1112_v56 = vld [vmem:[%s3997_s9 + $0x60] sm:$0xff] }
 0x1c0   :  { %v476_v59 = vmax.f32 %v440_v55, 0.0  ;;  %v1108_v55 = vld [vmem:[%s3997_s9 + $0x40] sm:$0xff] }
 0x1c1   :  { %v477_v61 = vmax.f32 %v442_v57, 0.0  ;;  %v2376_v57 = vcombine.low %v3101_v51, %v3106_v54 }
 0x1c2   :  { %v490_v62 = vpack.c.bf16 %v476_v59, %v474_v58  ;;  %v2377_v58 = vcombine.high %v3101_v51, %v3106_v54  ;;  %v2383_v59 = vcombine.high %v1108_v55, %v1112_v56 }
 0x1c3   :  { %v491_v63 = vpack.c.bf16 %v477_v61, %v475_v60  ;;  %v445_v0 = vpop.f32.mrb[4].mxu1  ;;  %v1116_v60 = vld [vmem:[%s3997_s9 + $0x80] sm:$0xff] }
 0x1c4   :  { %v446_v1 = vadd.f32 %v445_v0, %v234_v48  ;;  %v447_v2 = vpop.f32.mrb[5].mxu1  ;;  %v1120_v61 = vld [vmem:[%s3997_s9 + $0xa0] sm:$0xff] }
 0x1c5   :  { %v448_v3 = vadd.f32 %v447_v2, %v238_v49  ;;  %v449_v4 = vpop.f32.mrb[6].mxu1  ;;  %734 = vmatprep.mubr.bf16.mxu0 %v491_v63  ;;  %v2391_v63 = vcombine.high %v1116_v60, %v1120_v61  ;;  %v1124_v0 = vld [vmem:[%s3997_s9 + $0xc0] sm:$0xff]  ;;  %v2390_v2 = vcombine.low %v1116_v60, %v1120_v61 }
 0x1c6   :  { %v478_v5 = vmax.f32 %v446_v1, 0.0  ;;  %v450_v6 = vadd.f32 %v449_v4, %v234_v48  ;;  %v451_v7 = vpop.f32.mrb[7].mxu1  ;;  %735 = vmatmul.mubr.bf16.vlgmr.msra.gmra.mrb[16].mxu0 %v490_v62  ;;  %v2382_v62 = vcombine.low %v1108_v55, %v1112_v56  ;;  %v1128_v1 = vld [vmem:[%s3997_s9 + $0xe0] sm:$0xff] }
 0x1c7   :  { %v479_v8 = vmax.f32 %v448_v3, 0.0  ;;  %v452_v9 = vadd.f32 %v451_v7, %v238_v49  ;;  %v2399_v3 = vcombine.high %v1124_v0, %v1128_v1  ;;  %v1132_v4 = vld [vmem:[%s3997_s9 + $0x100] sm:$0xff] }
 0x1c8   :  { %v480_v10 = vmax.f32 %v450_v6, 0.0  ;;  %v2398_v6 = vcombine.low %v1124_v0, %v1128_v1 }
 0x1c9   :  { %v481_v11 = vmax.f32 %v452_v9, 0.0  ;;  %v1144_v9 = vld [vmem:[%s3997_s9 + $0x160] sm:$0xff] }
 0x1ca   :  { %v492_v12 = vpack.c.bf16 %v480_v10, %v478_v5  ;;  %v1136_v5 = vld [vmem:[%s3997_s9 + $0x120] sm:$0xff] }
 0x1cb   :  { %v493_v13 = vpack.c.bf16 %v481_v11, %v479_v8  ;;  %v455_v16 = vpop.f32.mrb[8].mxu1  ;;  %v2407_v7 = vcombine.high %v1132_v4, %v1136_v5  ;;  %v1140_v8 = vld [vmem:[%s3997_s9 + $0x140] sm:$0xff]  ;;  %v2406_v10 = vcombine.low %v1132_v4, %v1136_v5 }
 0x1cc   :  { %v456_v18 = vadd.f32 %v455_v16, %v234_v48  ;;  %v457_v19 = vpop.f32.mrb[9].mxu1  ;;  %v2415_v11 = vcombine.high %v1140_v8, %v1144_v9  ;;  %v2414_v16 = vcombine.low %v1140_v8, %v1144_v9 }
 0x1cd   :  { %v458_v20 = vadd.f32 %v457_v19, %v238_v49  ;;  %v459_v21 = vpop.f32.mrb[10].mxu1  ;;  %744 = vmatprep.mubr.bf16.mxu0 %v493_v13  ;;  %v1152_v13 = vld [vmem:[%s3997_s9 + $0x1a0] sm:$0xff] }
 0x1ce   :  { %v482_v22 = vmax.f32 %v456_v18, 0.0  ;;  %v460_v23 = vadd.f32 %v459_v21, %v234_v48  ;;  %v461_v24 = vpop.f32.mrb[11].mxu1  ;;  %745 = vmatmul.mubr.bf16.gmra.mrb[20].mxu0 %v492_v12  ;;  %v1148_v12 = vld [vmem:[%s3997_s9 + $0x180] sm:$0xff] }
 0x1cf   :  { %v483_v25 = vmax.f32 %v458_v20, 0.0  ;;  %v462_v26 = vadd.f32 %v461_v24, %v238_v49  ;;  %v2423_v18 = vcombine.high %v1148_v12, %v1152_v13  ;;  %v1156_v19 = vld [vmem:[%s3997_s9 + $0x1c0] sm:$0xff]  ;;  %v2422_v21 = vcombine.low %v1148_v12, %v1152_v13  ;;  %v1117_v12 = vld [vmem:[%s3997_s9 + $0x88] sm:$0xff] }
 0x1d0   :  { %v484_v27 = vmax.f32 %v460_v23, 0.0  ;;  %v1160_v20 = vld [vmem:[%s3997_s9 + $0x1e0] sm:$0xff]  ;;  %v1121_v13 = vld [vmem:[%s3997_s9 + $0xa8] sm:$0xff] }
 0x1d1   :  { %v485_v28 = vmax.f32 %v462_v26, 0.0  ;;  %v1164_v23 = vld [vmem:[%s3997_s9 + $0x200] sm:$0xff] }
 0x1d2   :  { %v494_v29 = vpack.c.bf16 %v484_v27, %v482_v22  ;;  %v2431_v22 = vcombine.high %v1156_v19, %v1160_v20  ;;  %v1168_v24 = vld [vmem:[%s3997_s9 + $0x220] sm:$0xff] }
 0x1d3   :  { %v495_v30 = vpack.c.bf16 %v485_v28, %v483_v25  ;;  %v465_v31 = vpop.f32.mrb[12].mxu1  ;;  %v2430_v25 = vcombine.low %v1156_v19, %v1160_v20  ;;  %v2439_v26 = vcombine.high %v1164_v23, %v1168_v24  ;;  %v1172_v27 = vld [vmem:[%s3997_s9 + $0x240] sm:$0xff] }
 0x1d4   :  { %v466_v32 = vadd.f32 %v465_v31, %v234_v48  ;;  %v467_v33 = vpop.f32.mrb[13].mxu1  ;;  %v1176_v28 = vld [vmem:[%s3997_s9 + $0x260] sm:$0xff] }
 0x1d5   :  { %v468_v34 = vadd.f32 %v467_v33, %v238_v49  ;;  %v469_v35 = vpop.f32.mrb[14].mxu1  ;;  %754 = vmatprep.mubr.bf16.mxu0 %v495_v30  ;;  %v2447_v30 = vcombine.high %v1172_v27, %v1176_v28  ;;  %v1180_v31 = vld [vmem:[%s3997_s9 + $0x280] sm:$0xff]  ;;  %v2446_v33 = vcombine.low %v1172_v27, %v1176_v28  ;;  %v1129_v27 = vld [vmem:[%s3997_s9 + $0xe8] sm:$0xff] }
 0x1d6   :  { %v486_v36 = vmax.f32 %v466_v32, 0.0  ;;  %v470_v37 = vadd.f32 %v469_v35, %v234_v48  ;;  %v471_v38 = vpop.f32.mrb[15].mxu1  ;;  %755 = vmatmul.mubr.bf16.gmra.mrb[24].mxu0 %v494_v29  ;;  %v2682_v48 = vld [vmem:[%s3995_s7 + $0xf0] ss:$8 sps:$4 sm:$0xff]   ;;  %v2438_v29 = vcombine.low %v1164_v23, %v1168_v24  ;;  %v1184_v32 = vld [vmem:[%s3997_s9 + $0x2a0] sm:$0xff]  ;;  %v2393_v24 = vcombine.high %v1117_v12, %v1121_v13 }
 0x1d7   :  { %v487_v39 = vmax.f32 %v468_v34, 0.0  ;;  %v472_v40 = vadd.f32 %v471_v38, %v238_v49  ;;  %1034 = vmatpush1.bf16.msra.mxu1 %v2682_v48  ;;  %v1100_v49 = vld [vmem:[%s3997_s9] sm:$0xff]  ;;  %v2455_v34 = vcombine.high %v1180_v31, %v1184_v32 }
 0x1d8   :  { %v488_v41 = vmax.f32 %v470_v37, 0.0  ;;  %v2374_v52 = vcombine.low %v1100_v49, %v1104_v50  ;;  %v2375_v53 = vcombine.high %v1100_v49, %v1104_v50  ;;  %1983 = vmatprep.subr.bf16.mxu1 %v2377_v58  ;;  %v1188_v35 = vld [vmem:[%s3997_s9 + $0x2c0] sm:$0xff]  ;;  %v2454_v37 = vcombine.low %v1180_v31, %v1184_v32 }
 0x1d9   :  { %v489_v42 = vmax.f32 %v472_v40, 0.0  ;;  %v1200_v40 = vld [vmem:[%s3997_s9 + $0x320] sm:$0xff]  ;;  %v2392_v31 = vcombine.low %v1117_v12, %v1121_v13  ;;  %v1165_v12 = vld [vmem:[%s3997_s9 + $0x208] sm:$0xff] }
 0x1da   :  { %v496_v43 = vpack.c.bf16 %v488_v41, %v486_v36  ;;  %1910 = vmatprep.subr.bf16.mxu0 %v2375_v53  ;;  %v1192_v36 = vld [vmem:[%s3997_s9 + $0x2e0] sm:$0xff]  ;;  %v1169_v13 = vld [vmem:[%s3997_s9 + $0x228] sm:$0xff] }
 0x1db   :  { %v497_v44 = vpack.c.bf16 %v489_v42, %v487_v39  ;;  %1911 = vmatpush1.bf16.msra.mxu0 %v2374_v52  ;;  %v2463_v38 = vcombine.high %v1188_v35, %v1192_v36  ;;  %v1196_v39 = vld [vmem:[%s3997_s9 + $0x300] sm:$0xff]  ;;  %v2462_v41 = vcombine.low %v1188_v35, %v1192_v36  ;;  %v1137_v35 = vld [vmem:[%s3997_s9 + $0x128] sm:$0xff] }
 0x1dc   :  { %1912 = vmatprep.subr.bf16.mxu0 %v2383_v59  ;;  %v2471_v42 = vcombine.high %v1196_v39, %v1200_v40  ;;  %v2470_v45 = vcombine.low %v1196_v39, %v1200_v40  ;;  %v530_v48 = vld [vmem:[%s3998_s6] sm:$0x3] }
 0x1dd   :  { %764 = vmatprep.mubr.bf16.mxu0 %v497_v44  ;;  %v1208_v44 = vld [vmem:[%s3997_s9 + $0x360] sm:$0xff]  ;;  %v3194_v49 = vrot.slane %v530_v48, %v2969_v15  ;;  %v3197_v50 = vrot.slane %v530_v48, %v2975_v17 }
 0x1de   :  { %765 = vmatmul.mubr.bf16.gmra.mrb[28].mxu0 %v496_v43  ;;  %v1204_v43 = vld [vmem:[%s3997_s9 + $0x340] sm:$0xff] }
 0x1df   :  { %1913 = vmatpush1.bf16.msra.mxu0 %v2382_v62  ;;  %v2479_v46 = vcombine.high %v1204_v43, %v1208_v44  ;;  %v2478_v47 = vcombine.low %v1204_v43, %v1208_v44 }
 0x1e0   :  { %1914 = vmatprep.subr.bf16.mxu0 %v2391_v63 }
 0x1e3   :  { %1915 = vmatpush1.bf16.msra.mxu0 %v2390_v2  ;;  %v1109_v2 = vld [vmem:[%s3997_s9 + $0x48] sm:$0xff] }
 0x1e4   :  { %1916 = vmatprep.subr.bf16.mxu0 %v2399_v3  ;;  %v1113_v3 = vld [vmem:[%s3997_s9 + $0x68] sm:$0xff] }
 0x1e5   :  { %v2385_v9 = vcombine.high %v1109_v2, %v1113_v3 }
 0x1e7   :  { %1917 = vmatpush1.bf16.msra.mxu0 %v2398_v6 }
 0x1e8   :  { %1918 = vmatprep.subr.bf16.mxu0 %v2407_v7 }
 0x1eb   :  { %1919 = vmatpush1.bf16.msra.mxu0 %v2406_v10 }
 0x1ec   :  { %1920 = vmatprep.subr.bf16.mxu0 %v2415_v11 }
 0x1ef   :  { %1921 = vmatpush1.bf16.msra.mxu0 %v2414_v16 }
 0x1f0   :  { %1922 = vmatprep.subr.bf16.mxu0 %v2423_v18 }
 0x1f3   :  { %1923 = vmatpush1.bf16.msra.mxu0 %v2422_v21 }
 0x1f4   :  { %1924 = vmatprep.subr.bf16.mxu0 %v2431_v22  ;;  %v2384_v22 = vcombine.low %v1109_v2, %v1113_v3 }
 0x1f7   :  { %1925 = vmatpush1.bf16.msra.mxu0 %v2430_v25 }
 0x1f8   :  { %1926 = vmatprep.subr.bf16.mxu0 %v2439_v26  ;;  %v1125_v26 = vld [vmem:[%s3997_s9 + $0xc8] sm:$0xff] }
 0x1fb   :  { %1927 = vmatpush1.bf16.msra.mxu0 %v2438_v29 }
 0x1fc   :  { %1928 = vmatprep.subr.bf16.mxu0 %v2447_v30 }
 0x1ff   :  { %1929 = vmatpush1.bf16.msra.mxu0 %v2446_v33 }
 0x200   :  { %1930 = vmatprep.subr.bf16.mxu0 %v2455_v34  ;;  %v1133_v34 = vld [vmem:[%s3997_s9 + $0x108] sm:$0xff] }
 0x201   :  { %v2409_v43 = vcombine.high %v1133_v34, %v1137_v35 }
 0x203   :  { %1931 = vmatpush1.bf16.msra.mxu0 %v2454_v37 }
 0x204   :  { %1932 = vmatprep.subr.bf16.mxu0 %v2463_v38 }
 0x207   :  { %1933 = vmatpush1.bf16.msra.mxu0 %v2462_v41  ;;  %v2400_v41 = vcombine.low %v1125_v26, %v1129_v27 }
 0x208   :  { %1934 = vmatprep.subr.bf16.mxu0 %v2471_v42 }
 0x20b   :  { %1935 = vmatpush1.bf16.msra.mxu0 %v2470_v45  ;;  %v1141_v45 = vld [vmem:[%s3997_s9 + $0x148] sm:$0xff] }
 0x20c   :  { %1936 = vmatprep.subr.bf16.mxu0 %v2479_v46  ;;  %v1145_v46 = vld [vmem:[%s3997_s9 + $0x168] sm:$0xff] }
 0x20f   :  { %1937 = vmatpush1.bf16.msra.mxu0 %v2478_v47 }
 0x299   :  { %v736_v52 = vpop.f32.mrb[16].mxu0 }
 0x29a   :  { %v737_v53 = vadd.f32 %v736_v52, %v3194_v49  ;;  %v738_v55 = vpop.f32.mrb[17].mxu0 }
 0x29b   :  { %v739_v56 = vadd.f32 %v738_v55, %v3197_v50  ;;  %v740_v58 = vpop.f32.mrb[18].mxu0 }
 0x29c   :  { %v741_v59 = vadd.f32 %v740_v58, %v3194_v49  ;;  %v742_v60 = vpop.f32.mrb[19].mxu0  ;;  %v775_v62 = vmax.f32 %v737_v53, 0.0  ;;  %v2408_v53 = vcombine.low %v1133_v34, %v1137_v35  ;;  %v2417_v58 = vcombine.high %v1141_v45, %v1145_v46 }
 0x29d   :  { %v743_v61 = vadd.f32 %v742_v60, %v3197_v50  ;;  %v776_v0 = vmax.f32 %v739_v56, 0.0 }
 0x29e   :  { %v777_v63 = vmax.f32 %v741_v59, 0.0 }
 0x29f   :  { %v778_v1 = vmax.f32 %v743_v61, 0.0  ;;  %v1149_v61 = vld [vmem:[%s3997_s9 + $0x188] sm:$0xff] }
 0x2a0   :  { %v791_v4 = vpack.c.bf16 %v777_v63, %v775_v62  ;;  %v1153_v62 = vld [vmem:[%s3997_s9 + $0x1a8] sm:$0xff] }
 0x2a1   :  { %v792_v5 = vpack.c.bf16 %v778_v1, %v776_v0  ;;  %v746_v6 = vpop.f32.mrb[20].mxu0 }
 0x2a2   :  { %v747_v7 = vadd.f32 %v746_v6, %v3194_v49  ;;  %v748_v8 = vpop.f32.mrb[21].mxu0  ;;  %v2425_v6 = vcombine.high %v1149_v61, %v1153_v62 }
 0x2a3   :  { %v749_v10 = vadd.f32 %v748_v8, %v3197_v50  ;;  %v750_v11 = vpop.f32.mrb[22].mxu0  ;;  %1035 = vmatprep.mubr.bf16.mxu1 %v792_v5  ;;  %v1157_v8 = vld [vmem:[%s3997_s9 + $0x1c8] sm:$0xff] }
 0x2a4   :  { %v779_v16 = vmax.f32 %v747_v7, 0.0  ;;  %v751_v18 = vadd.f32 %v750_v11, %v3194_v49  ;;  %v752_v19 = vpop.f32.mrb[23].mxu0  ;;  %1036 = vmatmul.mubr.bf16.vlgmr.msra.gmra.mrb[16].mxu1 %v791_v4  ;;  %v2416_v4 = vcombine.low %v1141_v45, %v1145_v46  ;;  %v2424_v11 = vcombine.low %v1149_v61, %v1153_v62  ;;  %v1220_v45 = vld [vmem:[%s3997_s9 + $0x3c0] sm:$0xff]  ;;  %v1107_v62 = vld [vmem:[%s3997_s9 + $0x38] sm:$0xff] }
 0x2a5   :  { %v780_v20 = vmax.f32 %v749_v10, 0.0  ;;  %v753_v21 = vadd.f32 %v752_v19, %v3197_v50  ;;  %1984 = vmatpush1.bf16.msra.mxu1 %v2376_v57  ;;  %v2401_v57 = vcombine.high %v1125_v26, %v1129_v27  ;;  %v1173_v19 = vld [vmem:[%s3997_s9 + $0x248] sm:$0xff]  ;;  %v1224_v46 = vld [vmem:[%s3997_s9 + $0x3e0] sm:$0xff] }
 0x2a6   :  { %v781_v23 = vmax.f32 %v751_v18, 0.0  ;;  %1985 = vmatprep.subr.bf16.mxu1 %v2385_v9  ;;  %v1161_v9 = vld [vmem:[%s3997_s9 + $0x1e8] sm:$0xff]  ;;  %v2441_v18 = vcombine.high %v1165_v12, %v1169_v13 }
 0x2a7   :  { %v782_v25 = vmax.f32 %v753_v21, 0.0  ;;  %v2440_v21 = vcombine.low %v1165_v12, %v1169_v13  ;;  %v1189_v27 = vld [vmem:[%s3997_s9 + $0x2c8] sm:$0xff]  ;;  %v1110_v13 = vld [vmem:[%s3997_s9 + $0x50] sm:$0xff] }
 0x2a8   :  { %v793_v28 = vpack.c.bf16 %v781_v23, %v779_v16  ;;  %v2432_v16 = vcombine.low %v1157_v8, %v1161_v9  ;;  %v1181_v23 = vld [vmem:[%s3997_s9 + $0x288] sm:$0xff] }
 0x2a9   :  { %v794_v29 = vpack.c.bf16 %v782_v25, %v780_v20  ;;  %v756_v30 = vpop.f32.mrb[24].mxu0  ;;  %1986 = vmatpush1.bf16.msra.mxu1 %v2384_v22  ;;  %v1177_v20 = vld [vmem:[%s3997_s9 + $0x268] sm:$0xff] }
 0x2aa   :  { %v757_v51 = vadd.f32 %v756_v30, %v3194_v49  ;;  %v758_v54 = vpop.f32.mrb[25].mxu0  ;;  %1987 = vmatprep.subr.bf16.mxu1 %v2393_v24  ;;  %v2449_v22 = vcombine.high %v1173_v19, %v1177_v20  ;;  %v1185_v24 = vld [vmem:[%s3997_s9 + $0x2a8] sm:$0xff]  ;;  %v2448_v25 = vcombine.low %v1173_v19, %v1177_v20  ;;  %v1114_v19 = vld [vmem:[%s3997_s9 + $0x70] sm:$0xff]  ;;  %v1111_v20 = vld [vmem:[%s3997_s9 + $0x58] sm:$0xff] }
 0x2ab   :  { %v759_v32 = vadd.f32 %v758_v54, %v3197_v50  ;;  %v760_v33 = vpop.f32.mrb[26].mxu0  ;;  %1045 = vmatprep.mubr.bf16.mxu1 %v794_v29  ;;  %v2457_v26 = vcombine.high %v1181_v23, %v1185_v24  ;;  %v2456_v29 = vcombine.low %v1181_v23, %v1185_v24 }
 0x2ac   :  { %v783_v36 = vmax.f32 %v757_v51, 0.0  ;;  %v761_v37 = vadd.f32 %v760_v33, %v3194_v49  ;;  %v762_v38 = vpop.f32.mrb[27].mxu0  ;;  %1046 = vmatmul.mubr.bf16.gmra.mrb[20].mxu1 %v793_v28  ;;  %v1193_v28 = vld [vmem:[%s3997_s9 + $0x2e8] sm:$0xff] }
 0x2ad   :  { %v784_v39 = vmax.f32 %v759_v32, 0.0  ;;  %v763_v40 = vadd.f32 %v762_v38, %v3197_v50  ;;  %1988 = vmatpush1.bf16.msra.mxu1 %v2392_v31  ;;  %v2465_v30 = vcombine.high %v1189_v27, %v1193_v28  ;;  %v1197_v31 = vld [vmem:[%s3997_s9 + $0x308] sm:$0xff]  ;;  %v2464_v54 = vcombine.low %v1189_v27, %v1193_v28  ;;  %v1216_v38 = vld [vmem:[%s3997_s9 + $0x3a0] sm:$0xff] }
 0x2ae   :  { %v785_v42 = vmax.f32 %v761_v37, 0.0  ;;  %1989 = vmatprep.subr.bf16.mxu1 %v2401_v57  ;;  %v1201_v51 = vld [vmem:[%s3997_s9 + $0x328] sm:$0xff]  ;;  %v1212_v37 = vld [vmem:[%s3997_s9 + $0x380] sm:$0xff]  ;;  %v2387_v27 = vcombine.high %v1110_v13, %v1114_v19 }
 0x2af   :  { %v786_v44 = vmax.f32 %v763_v40, 0.0  ;;  %v2473_v57 = vcombine.high %v1197_v31, %v1201_v51  ;;  %v1205_v32 = vld [vmem:[%s3997_s9 + $0x348] sm:$0xff]  ;;  %v2472_v34 = vcombine.low %v1197_v31, %v1201_v51  ;;  %v2487_v40 = vcombine.high %v1212_v37, %v1216_v38  ;;  %v1122_v51 = vld [vmem:[%s3997_s9 + $0xb0] sm:$0xff] }
 0x2b0   :  { %v795_v47 = vpack.c.bf16 %v785_v42, %v783_v36  ;;  %v1209_v33 = vld [vmem:[%s3997_s9 + $0x368] sm:$0xff]  ;;  %v2486_v42 = vcombine.low %v1212_v37, %v1216_v38  ;;  %v2386_v37 = vcombine.low %v1110_v13, %v1114_v19 }
 0x2b1   :  { %v796_v48 = vpack.c.bf16 %v786_v44, %v784_v39  ;;  %v766_v52 = vpop.f32.mrb[28].mxu0  ;;  %1990 = vmatpush1.bf16.msra.mxu1 %v2400_v41  ;;  %v2481_v35 = vcombine.high %v1205_v32, %v1209_v33  ;;  %v2480_v36 = vcombine.low %v1205_v32, %v1209_v33  ;;  %v1213_v39 = vld [vmem:[%s3997_s9 + $0x388] sm:$0xff]  ;;  %1938 = vmatprep.subr.bf16.mxu0 %v2487_v40 }
 0x2b2   :  { %v767_v55 = vadd.f32 %v766_v52, %v3194_v49  ;;  %v768_v56 = vpop.f32.mrb[29].mxu0  ;;  %1991 = vmatprep.subr.bf16.mxu1 %v2409_v43  ;;  %v1217_v41 = vld [vmem:[%s3997_s9 + $0x3a8] sm:$0xff]  ;;  %1939 = vmatpush1.bf16.msra.mxu0 %v2486_v42  ;;  %v1126_v42 = vld [vmem:[%s3997_s9 + $0xd0] sm:$0xff] }
 0x2b3   :  { %v769_v59 = vadd.f32 %v768_v56, %v3197_v50  ;;  %v770_v60 = vpop.f32.mrb[30].mxu0  ;;  %1055 = vmatprep.mubr.bf16.mxu1 %v796_v48  ;;  %v2488_v43 = vcombine.low %v1213_v39, %v1217_v41  ;;  %v2489_v44 = vcombine.high %v1213_v39, %v1217_v41  ;;  %v2495_v48 = vcombine.high %v1220_v45, %v1224_v46  ;;  %v1225_v52 = vld [vmem:[%s3997_s9 + $0x3e8] sm:$0xff] }
 0x2b4   :  { %v787_v63 = vmax.f32 %v767_v55, 0.0  ;;  %v771_v0 = vadd.f32 %v770_v60, %v3194_v49  ;;  %v772_v1 = vpop.f32.mrb[31].mxu0  ;;  %1056 = vmatmul.mubr.bf16.gmra.mrb[24].mxu1 %v795_v47  ;;  %v1221_v47 = vld [vmem:[%s3997_s9 + $0x3c8] sm:$0xff]  ;;  %v1103_v60 = vld [vmem:[%s3997_s9 + $0x18] sm:$0xff] }
 0x2b5   :  { %v788_v2 = vmax.f32 %v769_v59, 0.0  ;;  %v773_v3 = vadd.f32 %v772_v1, %v3197_v50  ;;  %1992 = vmatpush1.bf16.msra.mxu1 %v2408_v53  ;;  %v2433_v50 = vcombine.high %v1157_v8, %v1161_v9  ;;  %v2494_v53 = vcombine.low %v1220_v45, %v1224_v46  ;;  %1940 = vmatprep.subr.bf16.mxu0 %v2495_v48  ;;  %v1106_v59 = vld [vmem:[%s3997_s9 + $0x30] sm:$0xff]  ;;  %v1127_v45 = vld [vmem:[%s3997_s9 + $0xd8] sm:$0xff] }
 0x2b6   :  { %v789_v5 = vmax.f32 %v771_v0, 0.0  ;;  %1993 = vmatprep.subr.bf16.mxu1 %v2417_v58  ;;  %v2496_v55 = vcombine.low %v1221_v47, %v1225_v52  ;;  %v2497_v56 = vcombine.high %v1221_v47, %v1225_v52  ;;  %v1102_v58 = vld [vmem:[%s3997_s9 + $0x10] sm:$0xff]  ;;  %v3332_v0 = vcombine.low %v1103_v60, %v1107_v62  ;;  %v1131_v46 = vld [vmem:[%s3997_s9 + $0xf8] sm:$0xff] }
 0x2b7   :  { %v790_v7 = vmax.f32 %v773_v3, 0.0  ;;  %1941 = vmatpush1.bf16.msra.mxu0 %v2494_v53  ;;  %v2379_v61 = vcombine.high %v1102_v58, %v1106_v59  ;;  %v3334_v1 = vcombine.high %v1103_v60, %v1107_v62  ;;  %v3415_v60 = vcombine.high %v1127_v45, %v1131_v46 }
 0x2b8   :  { %v797_v49 = vpack.c.bf16 %v789_v5, %v787_v63  ;;  %v2378_v63 = vcombine.low %v1102_v58, %v1106_v59 }
 0x2b9   :  { %v798_v10 = vpack.c.bf16 %v790_v7, %v788_v2  ;;  %1994 = vmatpush1.bf16.msra.mxu1 %v2416_v4  ;;  %2056 = vmatprep.subr.bf16.mxu0 %v2379_v61  ;;  %v831_v2 = vld [vmem:[%s3999_s8] sm:$0x3]  ;;  %v1134_v61 = vld [vmem:[%s3997_s9 + $0x110] sm:$0xff] }
 0x2ba   :  { %1995 = vmatprep.subr.bf16.mxu1 %v2425_v6  ;;  %v3341_v3 = vrot.slane %v831_v2, %v2969_v15  ;;  %v3344_v4 = vrot.slane %v831_v2, %v2975_v17  ;;  %v1138_v2 = vld [vmem:[%s3997_s9 + $0x130] sm:$0xff] }
 0x2bb   :  { %1065 = vmatprep.mubr.bf16.mxu1 %v798_v10  ;;  %v2411_v13 = vcombine.high %v1134_v61, %v1138_v2 }
 0x2bc   :  { %1066 = vmatmul.mubr.bf16.gmra.mrb[28].mxu1 %v797_v49 }
 0x2bd   :  { %1996 = vmatpush1.bf16.msra.mxu1 %v2424_v11 }
 0x2be   :  { %1997 = vmatprep.subr.bf16.mxu1 %v2433_v50 }
 0x2c1   :  { %1998 = vmatpush1.bf16.msra.mxu1 %v2432_v16 }
 0x2c2   :  { %1999 = vmatprep.subr.bf16.mxu1 %v2441_v18 }
 0x2c5   :  { %2000 = vmatpush1.bf16.msra.mxu1 %v2440_v21  ;;  %v1115_v21 = vld [vmem:[%s3997_s9 + $0x78] sm:$0xff] }
 0x2c6   :  { %2001 = vmatprep.subr.bf16.mxu1 %v2449_v22  ;;  %v3367_v28 = vcombine.high %v1111_v20, %v1115_v21  ;;  %v3389_v38 = vcombine.low %v1111_v20, %v1115_v21  ;;  %v1146_v20 = vld [vmem:[%s3997_s9 + $0x170] sm:$0xff]  ;;  %v1143_v21 = vld [vmem:[%s3997_s9 + $0x158] sm:$0xff] }
 0x2c9   :  { %2002 = vmatpush1.bf16.msra.mxu1 %v2448_v25 }
 0x2ca   :  { %2003 = vmatprep.subr.bf16.mxu1 %v2457_v26 }
 0x2cd   :  { %2004 = vmatpush1.bf16.msra.mxu1 %v2456_v29  ;;  %v1118_v29 = vld [vmem:[%s3997_s9 + $0x90] sm:$0xff] }
 0x2ce   :  { %2005 = vmatprep.subr.bf16.mxu1 %v2465_v30  ;;  %v2395_v40 = vcombine.high %v1118_v29, %v1122_v51  ;;  %v2394_v53 = vcombine.low %v1118_v29, %v1122_v51  ;;  %v2410_v29 = vcombine.low %v1134_v61, %v1138_v2  ;;  %v1159_v61 = vld [vmem:[%s3997_s9 + $0x1d8] sm:$0xff] }
 0x2d1   :  { %2006 = vmatpush1.bf16.msra.mxu1 %v2464_v54  ;;  %v1119_v54 = vld [vmem:[%s3997_s9 + $0x98] sm:$0xff] }
 0x2d2   :  { %2007 = vmatprep.subr.bf16.mxu1 %v2473_v57  ;;  %v1123_v57 = vld [vmem:[%s3997_s9 + $0xb8] sm:$0xff] }
 0x2d3   :  { %v3392_v41 = vcombine.high %v1119_v54, %v1123_v57 }
 0x2d5   :  { %2008 = vmatpush1.bf16.msra.mxu1 %v2472_v34 }
 0x2d6   :  { %2009 = vmatprep.subr.bf16.mxu1 %v2481_v35 }
 0x2d9   :  { %2010 = vmatpush1.bf16.msra.mxu1 %v2480_v36 }
 0x2da   :  { %2011 = vmatprep.subr.bf16.mxu1 %v2489_v44  ;;  %v1130_v44 = vld [vmem:[%s3997_s9 + $0xf0] sm:$0xff] }
 0x2db   :  { %v2403_v59 = vcombine.high %v1126_v42, %v1130_v44 }
 0x2dd   :  { %2012 = vmatpush1.bf16.msra.mxu1 %v2488_v43 }
 0x2de   :  { %2013 = vmatprep.subr.bf16.mxu1 %v2497_v56 }
 0x2e1   :  { %2014 = vmatpush1.bf16.msra.mxu1 %v2496_v55  ;;  %v3411_v55 = vcombine.low %v1119_v54, %v1123_v57 }
 0x2e2   :  { %2502 = vmatprep.subr.bf16.mxu1 %v3334_v1 }
 0x377   :  { %v1037_v5 = vpop.f32.mrb[16].mxu1 }
 0x378   :  { %v1038_v6 = vadd.f32 %v1037_v5, %v3341_v3  ;;  %v1039_v7 = vpop.f32.mrb[17].mxu1  ;;  %v1135_v5 = vld [vmem:[%s3997_s9 + $0x118] sm:$0xff] }
 0x379   :  { %v1040_v8 = vadd.f32 %v1039_v7, %v3344_v4  ;;  %v1041_v9 = vpop.f32.mrb[18].mxu1 }
 0x37a   :  { %v1042_v49 = vadd.f32 %v1041_v9, %v3341_v3  ;;  %v1043_v10 = vpop.f32.mrb[19].mxu1  ;;  %v1076_v50 = vmax.f32 %v1038_v6, 0.0  ;;  %v1139_v6 = vld [vmem:[%s3997_s9 + $0x138] sm:$0xff] }
 0x37b   :  { %v1044_v11 = vadd.f32 %v1043_v10, %v3344_v4  ;;  %v1077_v16 = vmax.f32 %v1040_v8, 0.0 }
 0x37c   :  { %v1078_v12 = vmax.f32 %v1042_v49, 0.0 }
 0x37d   :  { %v1079_v18 = vmax.f32 %v1044_v11, 0.0  ;;  %v2402_v11 = vcombine.low %v1126_v42, %v1130_v44 }
 0x37e   :  { %v3362_v22 = vpack.c.bf16 %v1078_v12, %v1076_v50  ;;  %v3437_v50 = vcombine.low %v1127_v45, %v1131_v46 }
 0x37f   :  { %v3364_v23 = vpack.c.bf16 %v1079_v18, %v1077_v16  ;;  %v1047_v24 = vpop.f32.mrb[20].mxu1  ;;  %v3440_v16 = vcombine.high %v1135_v5, %v1139_v6  ;;  %v1142_v18 = vld [vmem:[%s3997_s9 + $0x150] sm:$0xff] }
 0x380   :  { %v1048_v25 = vadd.f32 %v1047_v24, %v3341_v3  ;;  %v1049_v26 = vpop.f32.mrb[21].mxu1  ;;  %v1147_v24 = vld [vmem:[%s3997_s9 + $0x178] sm:$0xff]  ;;  %v2419_v54 = vcombine.high %v1142_v18, %v1146_v20  ;;  %v2418_v45 = vcombine.low %v1142_v18, %v1146_v20  ;;  %v1178_v20 = vld [vmem:[%s3997_s9 + $0x270] sm:$0xff] }
 0x381   :  { %v1050_v30 = vadd.f32 %v1049_v26, %v3344_v4  ;;  %v1051_v31 = vpop.f32.mrb[22].mxu1  ;;  %1942 = vmatprep.mubr.bf16.mxu0 %v3364_v23  ;;  %2015 = vmatprep.mubr.bf16.mxu1 %v3364_v23  ;;  %v3463_v57 = vcombine.high %v1143_v21, %v1147_v24  ;;  %v3485_v46 = vcombine.low %v1143_v21, %v1147_v24  ;;  %v1175_v21 = vld [vmem:[%s3997_s9 + $0x258] sm:$0xff] }
 0x382   :  { %v1080_v32 = vmax.f32 %v1048_v25, 0.0  ;;  %v1052_v33 = vadd.f32 %v1051_v31, %v3341_v3  ;;  %v1053_v34 = vpop.f32.mrb[23].mxu1  ;;  %1943 = vmatmul.mubr.bf16.vlgmr.msra.gmra.mrb[32].mxu0 %v3362_v22  ;;  %2016 = vmatmul.mubr.bf16.vlgmr.msra.gmra.mrb[32].mxu1 %v3362_v22  ;;  %v1179_v24 = vld [vmem:[%s3997_s9 + $0x278] sm:$0xff] }
 0x383   :  { %v1081_v35 = vmax.f32 %v1050_v30, 0.0  ;;  %v1054_v36 = vadd.f32 %v1053_v34, %v3344_v4  ;;  %2057 = vmatpush1.bf16.msra.mxu0 %v2378_v63  ;;  %2518 = vmatpush1.bf16.msra.mxu1 %v3332_v0  ;;  %v3459_v30 = vcombine.low %v1135_v5, %v1139_v6  ;;  %v1166_v6 = vld [vmem:[%s3997_s9 + $0x210] sm:$0xff] }
 0x384   :  { %v1082_v39 = vmax.f32 %v1052_v33, 0.0  ;;  %2058 = vmatprep.subr.bf16.mxu0 %v2387_v27  ;;  %2503 = vmatprep.subr.bf16.mxu1 %v3367_v28 }
 0x385   :  { %v1083_v43 = vmax.f32 %v1054_v36, 0.0  ;;  %v1151_v36 = vld [vmem:[%s3997_s9 + $0x198] sm:$0xff] }
 0x386   :  { %v3406_v47 = vpack.c.bf16 %v1082_v39, %v1080_v32  ;;  %v1150_v32 = vld [vmem:[%s3997_s9 + $0x190] sm:$0xff] }
 0x387   :  { %v3408_v48 = vpack.c.bf16 %v1083_v43, %v1081_v35  ;;  %2059 = vmatpush1.bf16.msra.mxu0 %v2386_v37  ;;  %2519 = vmatpush1.bf16.msra.mxu1 %v3389_v38  ;;  %v1057_v52 = vpop.f32.mrb[24].mxu1  ;;  %v1154_v35 = vld [vmem:[%s3997_s9 + $0x1b0] sm:$0xff]  ;;  %v1155_v37 = vld [vmem:[%s3997_s9 + $0x1b8] sm:$0xff] }
 0x388   :  { %v1058_v56 = vadd.f32 %v1057_v52, %v3341_v3  ;;  %v1059_v58 = vpop.f32.mrb[25].mxu1  ;;  %2060 = vmatprep.subr.bf16.mxu0 %v2395_v40  ;;  %2504 = vmatprep.subr.bf16.mxu1 %v3392_v41  ;;  %v2426_v2 = vcombine.low %v1150_v32, %v1154_v35  ;;  %v3507_v5 = vcombine.low %v1151_v36, %v1155_v37 }
 0x389   :  { %v1060_v62 = vadd.f32 %v1059_v58, %v3344_v4  ;;  %v1061_v63 = vpop.f32.mrb[26].mxu1  ;;  %1952 = vmatprep.mubr.bf16.mxu0 %v3408_v48  ;;  %2025 = vmatprep.mubr.bf16.mxu1 %v3408_v48  ;;  %v1158_v58 = vld [vmem:[%s3997_s9 + $0x1d0] sm:$0xff] }
 0x38a   :  { %v1084_v7 = vmax.f32 %v1058_v56, 0.0  ;;  %v1062_v8 = vadd.f32 %v1061_v63, %v3341_v3  ;;  %v1063_v9 = vpop.f32.mrb[27].mxu1  ;;  %1953 = vmatmul.mubr.bf16.gmra.mrb[36].mxu0 %v3406_v47  ;;  %2026 = vmatmul.mubr.bf16.gmra.mrb[36].mxu1 %v3406_v47 }
 0x38b   :  { %v1085_v49 = vmax.f32 %v1060_v62, 0.0  ;;  %v1064_v10 = vadd.f32 %v1063_v9, %v3344_v4  ;;  %2061 = vmatpush1.bf16.msra.mxu0 %v2394_v53  ;;  %2520 = vmatpush1.bf16.msra.mxu1 %v3411_v55  ;;  %v2427_v53 = vcombine.high %v1150_v32, %v1154_v35  ;;  %v1163_v62 = vld [vmem:[%s3997_s9 + $0x1f8] sm:$0xff]  ;;  %v1170_v9 = vld [vmem:[%s3997_s9 + $0x230] sm:$0xff] }
 0x38c   :  { %v1086_v12 = vmax.f32 %v1062_v8, 0.0  ;;  %2062 = vmatprep.subr.bf16.mxu0 %v2403_v59  ;;  %2505 = vmatprep.subr.bf16.mxu1 %v3415_v60  ;;  %v3515_v8 = vcombine.high %v1159_v61, %v1163_v62  ;;  %v1186_v32 = vld [vmem:[%s3997_s9 + $0x2b0] sm:$0xff] }
 0x38d   :  { %v1087_v19 = vmax.f32 %v1064_v10, 0.0  ;;  %v1171_v10 = vld [vmem:[%s3997_s9 + $0x238] sm:$0xff] }
 0x38e   :  { %v3454_v25 = vpack.c.bf16 %v1086_v12, %v1084_v7  ;;  %v3529_v12 = vcombine.low %v1159_v61, %v1163_v62  ;;  %v1199_v61 = vld [vmem:[%s3997_s9 + $0x318] sm:$0xff] }
 0x38f   :  { %v3456_v26 = vpack.c.bf16 %v1087_v19, %v1085_v49  ;;  %2063 = vmatpush1.bf16.msra.mxu0 %v2402_v11  ;;  %2521 = vmatpush1.bf16.msra.mxu1 %v3437_v50  ;;  %v1067_v27 = vpop.f32.mrb[28].mxu1  ;;  %v1167_v49 = vld [vmem:[%s3997_s9 + $0x218] sm:$0xff]  ;;  %v1174_v19 = vld [vmem:[%s3997_s9 + $0x250] sm:$0xff] }
 0x390   :  { %v1068_v31 = vadd.f32 %v1067_v27, %v3341_v3  ;;  %v1069_v51 = vpop.f32.mrb[29].mxu1  ;;  %2064 = vmatprep.subr.bf16.mxu0 %v2411_v13  ;;  %2506 = vmatprep.subr.bf16.mxu1 %v3440_v16  ;;  %v2443_v13 = vcombine.high %v1166_v6, %v1170_v9  ;;  %v3533_v18 = vcombine.high %v1167_v49, %v1171_v10  ;;  %v1203_v62 = vld [vmem:[%s3997_s9 + $0x338] sm:$0xff] }
 0x391   :  { %v1070_v33 = vadd.f32 %v1069_v51, %v3344_v4  ;;  %v1071_v34 = vpop.f32.mrb[30].mxu1  ;;  %1962 = vmatprep.mubr.bf16.mxu0 %v3456_v26  ;;  %2035 = vmatprep.mubr.bf16.mxu1 %v3456_v26  ;;  %v2442_v27 = vcombine.low %v1166_v6, %v1170_v9  ;;  %v3552_v51 = vcombine.high %v1175_v21, %v1179_v24 }
 0x392   :  { %v1088_v39 = vmax.f32 %v1068_v31, 0.0  ;;  %v1072_v40 = vadd.f32 %v1071_v34, %v3341_v3  ;;  %v1073_v42 = vpop.f32.mrb[31].mxu1  ;;  %1963 = vmatmul.mubr.bf16.gmra.mrb[40].mxu0 %v3454_v25  ;;  %2036 = vmatmul.mubr.bf16.gmra.mrb[40].mxu1 %v3454_v25  ;;  %v3488_v3 = vcombine.high %v1151_v36, %v1155_v37  ;;  %v2451_v31 = vcombine.high %v1174_v19, %v1178_v20  ;;  %v1187_v34 = vld [vmem:[%s3997_s9 + $0x2b8] sm:$0xff] }
 0x393   :  { %v1089_v43 = vmax.f32 %v1070_v33, 0.0  ;;  %v1074_v44 = vadd.f32 %v1073_v42, %v3344_v4  ;;  %2065 = vmatpush1.bf16.msra.mxu0 %v2410_v29  ;;  %2522 = vmatpush1.bf16.msra.mxu1 %v3459_v30  ;;  %v1162_v4 = vld [vmem:[%s3997_s9 + $0x1f0] sm:$0xff]  ;;  %v3549_v29 = vcombine.low %v1167_v49, %v1171_v10  ;;  %v1183_v33 = vld [vmem:[%s3997_s9 + $0x298] sm:$0xff]  ;;  %v2450_v35 = vcombine.low %v1174_v19, %v1178_v20 }
 0x394   :  { %v1090_v52 = vmax.f32 %v1072_v40, 0.0  ;;  %2066 = vmatprep.subr.bf16.mxu0 %v2419_v54  ;;  %2507 = vmatprep.subr.bf16.mxu1 %v3463_v57  ;;  %v2435_v7 = vcombine.high %v1158_v58, %v1162_v4  ;;  %v2434_v11 = vcombine.low %v1158_v58, %v1162_v4  ;;  %v1182_v54 = vld [vmem:[%s3997_s9 + $0x290] sm:$0xff]  ;;  %v3567_v36 = vcombine.low %v1175_v21, %v1179_v24 }
 0x395   :  { %v1091_v56 = vmax.f32 %v1074_v44, 0.0  ;;  %v2459_v37 = vcombine.high %v1182_v54, %v1186_v32  ;;  %v1190_v40 = vld [vmem:[%s3997_s9 + $0x2d0] sm:$0xff]  ;;  %v1195_v44 = vld [vmem:[%s3997_s9 + $0x2f8] sm:$0xff]  ;;  %v3606_v9 = vcombine.high %v1199_v61, %v1203_v62  ;;  %v3621_v20 = vcombine.low %v1199_v61, %v1203_v62 }
 0x396   :  { %v3493_v59 = vpack.c.bf16 %v1090_v52, %v1088_v39  ;;  %v3570_v39 = vcombine.high %v1183_v33, %v1187_v34  ;;  %v1194_v42 = vld [vmem:[%s3997_s9 + $0x2f0] sm:$0xff]  ;;  %v3585_v52 = vcombine.low %v1183_v33, %v1187_v34 }
 0x397   :  { %v3504_v63 = vpack.c.bf16 %v1091_v56, %v1089_v43  ;;  %2067 = vmatpush1.bf16.msra.mxu0 %v2418_v45  ;;  %2523 = vmatpush1.bf16.msra.mxu1 %v3485_v46  ;;  %v1191_v43 = vld [vmem:[%s3997_s9 + $0x2d8] sm:$0xff]  ;;  %v2458_v45 = vcombine.low %v1182_v54, %v1186_v32  ;;  %v1198_v58 = vld [vmem:[%s3997_s9 + $0x310] sm:$0xff] }
 0x398   :  { %2068 = vmatprep.subr.bf16.mxu0 %v2427_v53  ;;  %2508 = vmatprep.subr.bf16.mxu1 %v3488_v3  ;;  %v2467_v53 = vcombine.high %v1190_v40, %v1194_v42  ;;  %v3588_v56 = vcombine.high %v1191_v43, %v1195_v44  ;;  %v1202_v4 = vld [vmem:[%s3997_s9 + $0x330] sm:$0xff]  ;;  %v3603_v6 = vcombine.low %v1191_v43, %v1195_v44  ;;  %v1215_v54 = vld [vmem:[%s3997_s9 + $0x398] sm:$0xff] }
 0x399   :  { %1972 = vmatprep.mubr.bf16.mxu0 %v3504_v63  ;;  %2045 = vmatprep.mubr.bf16.mxu1 %v3504_v63  ;;  %v1206_v49 = vld [vmem:[%s3997_s9 + $0x350] sm:$0xff]  ;;  %v2474_v19 = vcombine.low %v1198_v58, %v1202_v4  ;;  %v1219_v32 = vld [vmem:[%s3997_s9 + $0x3b8] sm:$0xff] }
 0x39a   :  { %1973 = vmatmul.mubr.bf16.gmra.mrb[44].mxu0 %v3493_v59  ;;  %2046 = vmatmul.mubr.bf16.gmra.mrb[44].mxu1 %v3493_v59  ;;  %v1210_v10 = vld [vmem:[%s3997_s9 + $0x370] sm:$0xff]  ;;  %v1223_v43 = vld [vmem:[%s3997_s9 + $0x3d8] sm:$0xff] }
 0x39b   :  { %2069 = vmatpush1.bf16.msra.mxu0 %v2426_v2  ;;  %2524 = vmatpush1.bf16.msra.mxu1 %v3507_v5  ;;  %v2466_v2 = vcombine.low %v1190_v40, %v1194_v42  ;;  %v2483_v21 = vcombine.high %v1206_v49, %v1210_v10  ;;  %v2482_v33 = vcombine.low %v1206_v49, %v1210_v10  ;;  %v1222_v40 = vld [vmem:[%s3997_s9 + $0x3d0] sm:$0xff]  ;;  %v1227_v44 = vld [vmem:[%s3997_s9 + $0x3f8] sm:$0xff] }
 0x39c   :  { %2088 = vmatprep.mubr.bf16.mxu0 %v3364_v23  ;;  %2171 = vmatprep.mubr.bf16.mxu1 %v3408_v48  ;;  %v1226_v42 = vld [vmem:[%s3997_s9 + $0x3f0] sm:$0xff]  ;;  %v2500_v62 = vcombine.low %v1223_v43, %v1227_v44 }
 0x39d   :  { %2070 = vmatprep.subr.bf16.mxu0 %v2435_v7  ;;  %2509 = vmatprep.subr.bf16.mxu1 %v3515_v8  ;;  %v2475_v7 = vcombine.high %v1198_v58, %v1202_v4  ;;  %v2499_v58 = vcombine.high %v1222_v40, %v1226_v42  ;;  %v2501_v4 = vcombine.high %v1223_v43, %v1227_v44 }
 0x39e   :  { %v2498_v61 = vcombine.low %v1222_v40, %v1226_v42 }
 0x39f   :  { %2071 = vmatpush1.bf16.msra.mxu0 %v2434_v11  ;;  %2525 = vmatpush1.bf16.msra.mxu1 %v3529_v12  ;;  %v1207_v11 = vld [vmem:[%s3997_s9 + $0x358] sm:$0xff] }
 0x3a0   :  { %2072 = vmatprep.subr.bf16.mxu0 %v2443_v13  ;;  %2510 = vmatprep.subr.bf16.mxu1 %v3533_v18  ;;  %v1211_v13 = vld [vmem:[%s3997_s9 + $0x378] sm:$0xff] }
 0x3a1   :  { %v3624_v24 = vcombine.high %v1207_v11, %v1211_v13  ;;  %v3639_v34 = vcombine.low %v1207_v11, %v1211_v13 }
 0x3a3   :  { %2073 = vmatpush1.bf16.msra.mxu0 %v2442_v27  ;;  %2526 = vmatpush1.bf16.msra.mxu1 %v3549_v29  ;;  %v1214_v27 = vld [vmem:[%s3997_s9 + $0x390] sm:$0xff] }
 0x3a4   :  { %2074 = vmatprep.subr.bf16.mxu0 %v2451_v31  ;;  %2511 = vmatprep.subr.bf16.mxu1 %v3552_v51  ;;  %v1218_v31 = vld [vmem:[%s3997_s9 + $0x3b0] sm:$0xff] }
 0x3a7   :  { %2075 = vmatpush1.bf16.msra.mxu0 %v2450_v35  ;;  %2527 = vmatpush1.bf16.msra.mxu1 %v3567_v36  ;;  %v2491_v35 = vcombine.high %v1214_v27, %v1218_v31 }
 0x3a8   :  { %2076 = vmatprep.subr.bf16.mxu0 %v2459_v37  ;;  %2512 = vmatprep.subr.bf16.mxu1 %v3570_v39  ;;  %v2493_v37 = vcombine.high %v1215_v54, %v1219_v32 }
 0x3ab   :  { %2077 = vmatpush1.bf16.msra.mxu0 %v2458_v45  ;;  %2528 = vmatpush1.bf16.msra.mxu1 %v3585_v52  ;;  %v2490_v45 = vcombine.low %v1214_v27, %v1218_v31 }
 0x3ac   :  { %2078 = vmatprep.subr.bf16.mxu0 %v2467_v53  ;;  %2513 = vmatprep.subr.bf16.mxu1 %v3588_v56  ;;  %v2492_v53 = vcombine.low %v1215_v54, %v1219_v32 }
 0x3af   :  { %2079 = vmatpush1.bf16.msra.mxu0 %v2466_v2  ;;  %2529 = vmatpush1.bf16.msra.mxu1 %v3603_v6 }
 0x3b0   :  { %2080 = vmatprep.subr.bf16.mxu0 %v2475_v7  ;;  %2514 = vmatprep.subr.bf16.mxu1 %v3606_v9 }
 0x3b3   :  { %2081 = vmatpush1.bf16.msra.mxu0 %v2474_v19  ;;  %2530 = vmatpush1.bf16.msra.mxu1 %v3621_v20 }
 0x3b4   :  { %2082 = vmatprep.subr.bf16.mxu0 %v2483_v21  ;;  %2515 = vmatprep.subr.bf16.mxu1 %v3624_v24 }
 0x3b7   :  { %2083 = vmatpush1.bf16.msra.mxu0 %v2482_v33  ;;  %2531 = vmatpush1.bf16.msra.mxu1 %v3639_v34 }
 0x3b8   :  { %2084 = vmatprep.subr.bf16.mxu0 %v2491_v35  ;;  %2516 = vmatprep.subr.bf16.mxu1 %v2493_v37 }
 0x3bb   :  { %2085 = vmatpush1.bf16.msra.mxu0 %v2490_v45  ;;  %2532 = vmatpush1.bf16.msra.mxu1 %v2492_v53 }
 0x3bc   :  { %2086 = vmatprep.subr.bf16.mxu0 %v2499_v58  ;;  %2517 = vmatprep.subr.bf16.mxu1 %v2501_v4 }
 0x3bf   :  { %2087 = vmatpush1.bf16.msra.mxu0 %v2498_v61  ;;  %2533 = vmatpush1.bf16.msra.mxu1 %v2500_v62 }
 0x3c0   :  { %2129 = vmatprep.subr.bf16.mxu0 %v3334_v1  ;;  %v3701_v1 = vld [vmem:[%s4000_s10] sm:$0xff] }
 0x3c2   :  { %2089 = vmatmul.mubr.bf16.vlgmr.msra.gmra.mrb[48].mxu0 %v3362_v22  ;;  %2172 = vmatmul.mubr.bf16.vlgmr.msra.gmra.mrb[48].mxu1 %v3406_v47 }
 0x3c3   :  { %2098 = vmatprep.mubr.bf16.mxu0 %v3408_v48  ;;  %2130 = vmatpush1.bf16.msra.mxu0 %v3332_v0  ;;  %v1240_v0 = vsub.s32 2, %v2966_v14 }
 0x3c4   :  { %2181 = vmatprep.mubr.bf16.mxu1 %v3456_v26  ;;  %2131 = vmatprep.subr.bf16.mxu0 %v3367_v28  ;;  %v3706_v28 = vrot.slane %v3701_v1, %v2969_v15 }
 0x3c7   :  { %2132 = vmatpush1.bf16.msra.mxu0 %v3389_v38  ;;  %v3709_v38 = vrot.slane %v3701_v1, %v1240_v0 }
 0x3c8   :  { %2133 = vmatprep.subr.bf16.mxu0 %v3392_v41  ;;  %v3713_v41 = vrot.slane %v3701_v1, %v2975_v17 }
 0x3ca   :  { %2099 = vmatmul.mubr.bf16.gmra.mrb[52].mxu0 %v3406_v47  ;;  %2182 = vmatmul.mubr.bf16.gmra.mrb[52].mxu1 %v3454_v25 }
 0x3cb   :  { %2108 = vmatprep.mubr.bf16.mxu0 %v3456_v26  ;;  %2134 = vmatpush1.bf16.msra.mxu0 %v3411_v55 }
 0x3cc   :  { %2191 = vmatprep.mubr.bf16.mxu1 %v3504_v63  ;;  %2135 = vmatprep.subr.bf16.mxu0 %v3415_v60 }
 0x3cf   :  { %2136 = vmatpush1.bf16.msra.mxu0 %v3437_v50 }
 0x3d0   :  { %2137 = vmatprep.subr.bf16.mxu0 %v3440_v16 }
 0x3d2   :  { %2109 = vmatmul.mubr.bf16.gmra.mrb[56].mxu0 %v3454_v25  ;;  %2192 = vmatmul.mubr.bf16.gmra.mrb[56].mxu1 %v3493_v59 }
 0x3d3   :  { %2118 = vmatprep.mubr.bf16.mxu0 %v3504_v63  ;;  %2138 = vmatpush1.bf16.msra.mxu0 %v3459_v30 }
 0x3d4   :  { %2139 = vmatprep.subr.bf16.mxu0 %v3463_v57 }
 0x3d7   :  { %2140 = vmatpush1.bf16.msra.mxu0 %v3485_v46 }
 0x3d8   :  { %2141 = vmatprep.subr.bf16.mxu0 %v3488_v3 }
 0x3da   :  { %2119 = vmatmul.mubr.bf16.gmra.mrb[60].mxu0 %v3493_v59 }
 0x3db   :  { %2142 = vmatpush1.bf16.msra.mxu0 %v3507_v5  ;;  %2161 = vmatprep.mubr.bf16.mxu0 %v3364_v23  ;;  %v1244_v23 = vsub.s32 3, %v2966_v14 }
 0x3dc   :  { %2143 = vmatprep.subr.bf16.mxu0 %v3515_v8 }
 0x3df   :  { %2144 = vmatpush1.bf16.msra.mxu0 %v3529_v12 }
 0x3e0   :  { %2145 = vmatprep.subr.bf16.mxu0 %v3533_v18 }
 0x3e3   :  { %2146 = vmatpush1.bf16.msra.mxu0 %v3549_v29 }
 0x3e4   :  { %2147 = vmatprep.subr.bf16.mxu0 %v3552_v51 }
 0x3e7   :  { %2148 = vmatpush1.bf16.msra.mxu0 %v3567_v36 }
 0x3e8   :  { %2149 = vmatprep.subr.bf16.mxu0 %v3570_v39 }
 0x3eb   :  { %2150 = vmatpush1.bf16.msra.mxu0 %v3585_v52 }
 0x3ec   :  { %2151 = vmatprep.subr.bf16.mxu0 %v3588_v56 }
 0x3ef   :  { %2152 = vmatpush1.bf16.msra.mxu0 %v3603_v6 }
 0x3f0   :  { %2153 = vmatprep.subr.bf16.mxu0 %v3606_v9 }
 0x3f3   :  { %2154 = vmatpush1.bf16.msra.mxu0 %v3621_v20 }
 0x3f4   :  { %2155 = vmatprep.subr.bf16.mxu0 %v3624_v24 }
 0x3f7   :  { %2156 = vmatpush1.bf16.msra.mxu0 %v3639_v34 }
 0x3f8   :  { %2157 = vmatprep.subr.bf16.mxu0 %v2493_v37 }
 0x3fb   :  { %2158 = vmatpush1.bf16.msra.mxu0 %v2492_v53 }
 0x3fc   :  { %2159 = vmatprep.subr.bf16.mxu0 %v2501_v4 }
 0x3ff   :  { %2160 = vmatpush1.bf16.msra.mxu0 %v2500_v62 }
 0x402   :  { %2162 = vmatmul.mubr.bf16.vlgmr.msra.gmra.mrb[64].mxu0 %v3362_v22  ;;  %v3716_v22 = vrot.slane %v3701_v1, %v1244_v23 }
 0x455   :  { %v1944_v47 = vpop.f32.mrb[32].mxu0  ;;  %v2017_v48 = vpop.f32.mrb[32].mxu1 }
 0x456   :  { %v1945_v55 = vadd.f32 %v1944_v47, %v3706_v28  ;;  %v2018_v60 = vadd.f32 %v2017_v48, %v3709_v38  ;;  %v1946_v50 = vpop.f32.mrb[33].mxu0  ;;  %v2019_v16 = vpop.f32.mrb[33].mxu1 }
 0x457   :  { %v1947_v15 = vadd.f32 %v1946_v50, %v3713_v41  ;;  %v2020_v25 = vadd.f32 %v2019_v16, %v3716_v22  ;;  %v1948_v26 = vpop.f32.mrb[34].mxu0  ;;  %v2021_v30 = vpop.f32.mrb[34].mxu1 }
 0x458   :  { %2202 = vst [vmem:[%s4001_s11] sm:$0xff] %v1945_v55  ;;  %2204 = vst [vmem:[%s4001_s11 + $0x10] sm:$0xff] %v2018_v60  ;;  %v1949_v17 = vadd.f32 %v1948_v26, %v3706_v28  ;;  %v2022_v57 = vadd.f32 %v2021_v30, %v3709_v38  ;;  %v1950_v46 = vpop.f32.mrb[35].mxu0  ;;  %v2023_v3 = vpop.f32.mrb[35].mxu1 }
 0x459   :  { %2203 = vst [vmem:[%s4001_s11 + $0x8] sm:$0xff] %v1947_v15  ;;  %2205 = vst [vmem:[%s4001_s11 + $0x18] sm:$0xff] %v2020_v25  ;;  %v1951_v59 = vadd.f32 %v1950_v46, %v3713_v41  ;;  %v2024_v63 = vadd.f32 %v2023_v3, %v3716_v22 }
 0x45a   :  { %2210 = vst [vmem:[%s4001_s11 + $0x40] sm:$0xff] %v1949_v17  ;;  %2212 = vst [vmem:[%s4001_s11 + $0x50] sm:$0xff] %v2022_v57 }
 0x45b   :  { %2211 = vst [vmem:[%s4001_s11 + $0x48] sm:$0xff] %v1951_v59  ;;  %2213 = vst [vmem:[%s4001_s11 + $0x58] sm:$0xff] %v2024_v63 }
 0x45d   :  { %v1954_v5 = vpop.f32.mrb[36].mxu0  ;;  %v2027_v8 = vpop.f32.mrb[36].mxu1 }
 0x45e   :  { %v1955_v12 = vadd.f32 %v1954_v5, %v3706_v28  ;;  %v2028_v18 = vadd.f32 %v2027_v8, %v3709_v38  ;;  %v1956_v29 = vpop.f32.mrb[37].mxu0  ;;  %v2029_v51 = vpop.f32.mrb[37].mxu1 }
 0x45f   :  { %v1957_v36 = vadd.f32 %v1956_v29, %v3713_v41  ;;  %v2030_v39 = vadd.f32 %v2029_v51, %v3716_v22  ;;  %v1958_v52 = vpop.f32.mrb[38].mxu0  ;;  %v2031_v56 = vpop.f32.mrb[38].mxu1 }
 0x460   :  { %2218 = vst [vmem:[%s4001_s11 + $0x80] sm:$0xff] %v1955_v12  ;;  %2220 = vst [vmem:[%s4001_s11 + $0x90] sm:$0xff] %v2028_v18  ;;  %v1959_v2 = vadd.f32 %v1958_v52, %v3706_v28  ;;  %v2032_v6 = vadd.f32 %v2031_v56, %v3709_v38  ;;  %v1960_v7 = vpop.f32.mrb[39].mxu0  ;;  %v2033_v9 = vpop.f32.mrb[39].mxu1 }
 0x461   :  { %2219 = vst [vmem:[%s4001_s11 + $0x88] sm:$0xff] %v1957_v36  ;;  %2221 = vst [vmem:[%s4001_s11 + $0x98] sm:$0xff] %v2030_v39  ;;  %v1961_v49 = vadd.f32 %v1960_v7, %v3713_v41  ;;  %v2034_v10 = vadd.f32 %v2033_v9, %v3716_v22 }
 0x462   :  { %2226 = vst [vmem:[%s4001_s11 + $0xc0] sm:$0xff] %v1959_v2  ;;  %2228 = vst [vmem:[%s4001_s11 + $0xd0] sm:$0xff] %v2032_v6 }
 0x463   :  { %2227 = vst [vmem:[%s4001_s11 + $0xc8] sm:$0xff] %v1961_v49  ;;  %2229 = vst [vmem:[%s4001_s11 + $0xd8] sm:$0xff] %v2034_v10 }
 0x465   :  { %v1964_v11 = vpop.f32.mrb[40].mxu0  ;;  %v2037_v13 = vpop.f32.mrb[40].mxu1 }
 0x466   :  { %v1965_v19 = vadd.f32 %v1964_v11, %v3706_v28  ;;  %v2038_v20 = vadd.f32 %v2037_v13, %v3709_v38  ;;  %v1966_v21 = vpop.f32.mrb[41].mxu0  ;;  %v2039_v24 = vpop.f32.mrb[41].mxu1 }
 0x467   :  { %v1967_v27 = vadd.f32 %v1966_v21, %v3713_v41  ;;  %v2040_v31 = vadd.f32 %v2039_v24, %v3716_v22  ;;  %v1968_v54 = vpop.f32.mrb[42].mxu0  ;;  %v2041_v32 = vpop.f32.mrb[42].mxu1 }
 0x468   :  { %2234 = vst [vmem:[%s4001_s11 + $0x100] sm:$0xff] %v1965_v19  ;;  %2236 = vst [vmem:[%s4001_s11 + $0x110] sm:$0xff] %v2038_v20  ;;  %v1969_v33 = vadd.f32 %v1968_v54, %v3706_v28  ;;  %v2042_v34 = vadd.f32 %v2041_v32, %v3709_v38  ;;  %v1970_v35 = vpop.f32.mrb[43].mxu0  ;;  %v2043_v37 = vpop.f32.mrb[43].mxu1 }
 0x469   :  { %2235 = vst [vmem:[%s4001_s11 + $0x108] sm:$0xff] %v1967_v27  ;;  %2237 = vst [vmem:[%s4001_s11 + $0x118] sm:$0xff] %v2040_v31  ;;  %v1971_v40 = vadd.f32 %v1970_v35, %v3713_v41  ;;  %v2044_v42 = vadd.f32 %v2043_v37, %v3716_v22 }
 0x46a   :  { %2242 = vst [vmem:[%s4001_s11 + $0x140] sm:$0xff] %v1969_v33  ;;  %2244 = vst [vmem:[%s4001_s11 + $0x150] sm:$0xff] %v2042_v34 }
 0x46b   :  { %2243 = vst [vmem:[%s4001_s11 + $0x148] sm:$0xff] %v1971_v40  ;;  %2245 = vst [vmem:[%s4001_s11 + $0x158] sm:$0xff] %v2044_v42 }
 0x46d   :  { %v1974_v43 = vpop.f32.mrb[44].mxu0  ;;  %v2047_v44 = vpop.f32.mrb[44].mxu1 }
 0x46e   :  { %v1975_v45 = vadd.f32 %v1974_v43, %v3706_v28  ;;  %v2048_v53 = vadd.f32 %v2047_v44, %v3709_v38  ;;  %v1976_v58 = vpop.f32.mrb[45].mxu0  ;;  %v2049_v4 = vpop.f32.mrb[45].mxu1 }
 0x46f   :  { %v1977_v61 = vadd.f32 %v1976_v58, %v3713_v41  ;;  %v2050_v62 = vadd.f32 %v2049_v4, %v3716_v22  ;;  %v1978_v0 = vpop.f32.mrb[46].mxu0  ;;  %v2051_v23 = vpop.f32.mrb[46].mxu1 }
 0x470   :  { %2250 = vst [vmem:[%s4001_s11 + $0x180] sm:$0xff] %v1975_v45  ;;  %2252 = vst [vmem:[%s4001_s11 + $0x190] sm:$0xff] %v2048_v53  ;;  %v1979_v47 = vadd.f32 %v1978_v0, %v3706_v28  ;;  %v2052_v48 = vadd.f32 %v2051_v23, %v3709_v38  ;;  %v1980_v55 = vpop.f32.mrb[47].mxu0  ;;  %v2053_v60 = vpop.f32.mrb[47].mxu1  ;;  %v1248_v28 = vsub.s32 4, %v2966_v14  ;;  %v1256_v38 = vsub.s32 6, %v2966_v14 }
 0x471   :  { %2251 = vst [vmem:[%s4001_s11 + $0x188] sm:$0xff] %v1977_v61  ;;  %2253 = vst [vmem:[%s4001_s11 + $0x198] sm:$0xff] %v2050_v62  ;;  %v1981_v50 = vadd.f32 %v1980_v55, %v3713_v41  ;;  %v2054_v16 = vadd.f32 %v2053_v60, %v3716_v22  ;;  %v1252_v41 = vsub.s32 5, %v2966_v14  ;;  %v1260_v22 = vsub.s32 7, %v2966_v14 }
 0x472   :  { %2258 = vst [vmem:[%s4001_s11 + $0x1c0] sm:$0xff] %v1979_v47  ;;  %2260 = vst [vmem:[%s4001_s11 + $0x1d0] sm:$0xff] %v2052_v48  ;;  %v3851_v15 = vrot.slane %v3701_v1, %v1248_v28  ;;  %v3854_v25 = vrot.slane %v3701_v1, %v1256_v38 }
 0x473   :  { %2259 = vst [vmem:[%s4001_s11 + $0x1c8] sm:$0xff] %v1981_v50  ;;  %2261 = vst [vmem:[%s4001_s11 + $0x1d8] sm:$0xff] %v2054_v16  ;;  %v3857_v26 = vrot.slane %v3701_v1, %v1252_v41  ;;  %v3860_v30 = vrot.slane %v3701_v1, %v1260_v22 }
 0x495   :  { %v2090_v17 = vpop.f32.mrb[48].mxu0  ;;  %v2173_v57 = vpop.f32.mrb[48].mxu1 }
 0x496   :  { %v2091_v46 = vadd.f32 %v2090_v17, %v3851_v15  ;;  %v2174_v3 = vadd.f32 %v2173_v57, %v3854_v25  ;;  %v2092_v59 = vpop.f32.mrb[49].mxu0  ;;  %v2175_v14 = vpop.f32.mrb[49].mxu1 }
 0x497   :  { %v2093_v63 = vadd.f32 %v2092_v59, %v3857_v26  ;;  %v2176_v5 = vadd.f32 %v2175_v14, %v3860_v30  ;;  %v2094_v8 = vpop.f32.mrb[50].mxu0  ;;  %v2177_v12 = vpop.f32.mrb[50].mxu1 }
 0x498   :  { %2206 = vst [vmem:[%s4001_s11 + $0x20] sm:$0xff] %v2091_v46  ;;  %2224 = vst [vmem:[%s4001_s11 + $0xb0] sm:$0xff] %v2174_v3  ;;  %v2095_v1 = vadd.f32 %v2094_v8, %v3851_v15  ;;  %v2178_v18 = vadd.f32 %v2177_v12, %v3854_v25  ;;  %v2096_v29 = vpop.f32.mrb[51].mxu0  ;;  %v2179_v51 = vpop.f32.mrb[51].mxu1 }
 0x499   :  { %2207 = vst [vmem:[%s4001_s11 + $0x28] sm:$0xff] %v2093_v63  ;;  %2225 = vst [vmem:[%s4001_s11 + $0xb8] sm:$0xff] %v2176_v5  ;;  %v2097_v36 = vadd.f32 %v2096_v29, %v3857_v26  ;;  %v2180_v39 = vadd.f32 %v2179_v51, %v3860_v30 }
 0x49a   :  { %2214 = vst [vmem:[%s4001_s11 + $0x60] sm:$0xff] %v2095_v1  ;;  %2232 = vst [vmem:[%s4001_s11 + $0xf0] sm:$0xff] %v2178_v18 }
 0x49b   :  { %2215 = vst [vmem:[%s4001_s11 + $0x68] sm:$0xff] %v2097_v36  ;;  %2233 = vst [vmem:[%s4001_s11 + $0xf8] sm:$0xff] %v2180_v39 }
 0x49d   :  { %v2100_v52 = vpop.f32.mrb[52].mxu0  ;;  %v2183_v56 = vpop.f32.mrb[52].mxu1 }
 0x49e   :  { %v2101_v2 = vadd.f32 %v2100_v52, %v3851_v15  ;;  %v2184_v6 = vadd.f32 %v2183_v56, %v3854_v25  ;;  %v2102_v7 = vpop.f32.mrb[53].mxu0  ;;  %v2185_v9 = vpop.f32.mrb[53].mxu1 }
 0x49f   :  { %v2103_v49 = vadd.f32 %v2102_v7, %v3857_v26  ;;  %v2186_v10 = vadd.f32 %v2185_v9, %v3860_v30  ;;  %v2104_v11 = vpop.f32.mrb[54].mxu0  ;;  %v2187_v13 = vpop.f32.mrb[54].mxu1 }
 0x4a0   :  { %2222 = vst [vmem:[%s4001_s11 + $0xa0] sm:$0xff] %v2101_v2  ;;  %2240 = vst [vmem:[%s4001_s11 + $0x130] sm:$0xff] %v2184_v6  ;;  %v2105_v19 = vadd.f32 %v2104_v11, %v3851_v15  ;;  %v2188_v20 = vadd.f32 %v2187_v13, %v3854_v25  ;;  %v2106_v21 = vpop.f32.mrb[55].mxu0  ;;  %v2189_v24 = vpop.f32.mrb[55].mxu1 }
 0x4a1   :  { %2223 = vst [vmem:[%s4001_s11 + $0xa8] sm:$0xff] %v2103_v49  ;;  %2241 = vst [vmem:[%s4001_s11 + $0x138] sm:$0xff] %v2186_v10  ;;  %v2107_v27 = vadd.f32 %v2106_v21, %v3857_v26  ;;  %v2190_v31 = vadd.f32 %v2189_v24, %v3860_v30 }
 0x4a2   :  { %2230 = vst [vmem:[%s4001_s11 + $0xe0] sm:$0xff] %v2105_v19  ;;  %2248 = vst [vmem:[%s4001_s11 + $0x170] sm:$0xff] %v2188_v20 }
 0x4a3   :  { %2231 = vst [vmem:[%s4001_s11 + $0xe8] sm:$0xff] %v2107_v27  ;;  %2249 = vst [vmem:[%s4001_s11 + $0x178] sm:$0xff] %v2190_v31 }
 0x4a5   :  { %v2110_v54 = vpop.f32.mrb[56].mxu0  ;;  %v2193_v32 = vpop.f32.mrb[56].mxu1 }
 0x4a6   :  { %v2111_v33 = vadd.f32 %v2110_v54, %v3851_v15  ;;  %v2194_v34 = vadd.f32 %v2193_v32, %v3854_v25  ;;  %v2112_v35 = vpop.f32.mrb[57].mxu0  ;;  %v2195_v37 = vpop.f32.mrb[57].mxu1 }
 0x4a7   :  { %v2113_v40 = vadd.f32 %v2112_v35, %v3857_v26  ;;  %v2196_v42 = vadd.f32 %v2195_v37, %v3860_v30  ;;  %v2114_v43 = vpop.f32.mrb[58].mxu0  ;;  %v2197_v44 = vpop.f32.mrb[58].mxu1 }
 0x4a8   :  { %2238 = vst [vmem:[%s4001_s11 + $0x120] sm:$0xff] %v2111_v33  ;;  %2256 = vst [vmem:[%s4001_s11 + $0x1b0] sm:$0xff] %v2194_v34  ;;  %v2115_v45 = vadd.f32 %v2114_v43, %v3851_v15  ;;  %v2198_v53 = vadd.f32 %v2197_v44, %v3854_v25  ;;  %v2116_v58 = vpop.f32.mrb[59].mxu0  ;;  %v2199_v4 = vpop.f32.mrb[59].mxu1 }
 0x4a9   :  { %2239 = vst [vmem:[%s4001_s11 + $0x128] sm:$0xff] %v2113_v40  ;;  %2257 = vst [vmem:[%s4001_s11 + $0x1b8] sm:$0xff] %v2196_v42  ;;  %v2117_v61 = vadd.f32 %v2116_v58, %v3857_v26  ;;  %v2200_v62 = vadd.f32 %v2199_v4, %v3860_v30 }
 0x4aa   :  { %2246 = vst [vmem:[%s4001_s11 + $0x160] sm:$0xff] %v2115_v45  ;;  %2264 = vst [vmem:[%s4001_s11 + $0x1f0] sm:$0xff] %v2198_v53 }
 0x4ab   :  { %2247 = vst [vmem:[%s4001_s11 + $0x168] sm:$0xff] %v2117_v61  ;;  %2265 = vst [vmem:[%s4001_s11 + $0x1f8] sm:$0xff] %v2200_v62 }
 0x4ad   :  { %v2120_v0 = vpop.f32.mrb[60].mxu0 }
 0x4ae   :  { %v2121_v23 = vadd.f32 %v2120_v0, %v3851_v15  ;;  %v2122_v47 = vpop.f32.mrb[61].mxu0 }
 0x4af   :  { %v2123_v48 = vadd.f32 %v2122_v47, %v3857_v26  ;;  %v2124_v55 = vpop.f32.mrb[62].mxu0 }
 0x4b0   :  { %2254 = vst [vmem:[%s4001_s11 + $0x1a0] sm:$0xff] %v2121_v23  ;;  %v2125_v60 = vadd.f32 %v2124_v55, %v3851_v15  ;;  %v2126_v50 = vpop.f32.mrb[63].mxu0 }
 0x4b1   :  { %2255 = vst [vmem:[%s4001_s11 + $0x1a8] sm:$0xff] %v2123_v48  ;;  %v2127_v16 = vadd.f32 %v2126_v50, %v3857_v26 }
 0x4b2   :  { %2262 = vst [vmem:[%s4001_s11 + $0x1e0] sm:$0xff] %v2125_v60 }
 0x4b3   :  { %2263 = vst [vmem:[%s4001_s11 + $0x1e8] sm:$0xff] %v2127_v16 }
 0x4d5   :  { %v2163_v28 = vpop.f32.mrb[64].mxu0 }
 0x4d6   :  { %v2164_v38 = vadd.f32 %v2163_v28, %v3854_v25  ;;  %v2165_v41 = vpop.f32.mrb[65].mxu0 }
 0x4d7   :  { %v2166_v22 = vadd.f32 %v2165_v41, %v3860_v30  ;;  %v2167_v15 = vpop.f32.mrb[66].mxu0 }
 0x4d8   :  { %2208 = vst [vmem:[%s4001_s11 + $0x30] sm:$0xff] %v2164_v38  ;;  %v2168_v26 = vadd.f32 %v2167_v15, %v3854_v25  ;;  %v2169_v17 = vpop.f32.mrb[67].mxu0 }
 0x4d9   :  { %2209 = vst [vmem:[%s4001_s11 + $0x38] sm:$0xff] %v2166_v22  ;;  %v2170_v57 = vadd.f32 %v2169_v17, %v3860_v30 }
 0x4da   :  { %2216 = vst [vmem:[%s4001_s11 + $0x70] sm:$0xff] %v2168_v26 }
 0x4db   :  { %2217 = vst [vmem:[%s4001_s11 + $0x78] sm:$0xff] %v2170_v57 }

// kernel: net_forward.3
= control target key start
LH: loop header
LB: loop body
LE: loop exit
PB: predicated region body
PF: predicated region fallthrough
CT: control target
= control target key end

     0   :  { %v5836_v3 = vmov 0.0|0.0   ;;  %s5831_s1 = inlined_call_operand.vmem [shape: bf16[256,1024], index: 1, kind: input, shape index: {}]   ;;  %s5832_s0 = inlined_call_operand.vmem [shape: f32[8,8,1024], index: 0, kind: input, shape index: {}]   ;;  %s5833_s2 = inlined_call_operand.vmem [shape: bf16[256,128], index: 2, kind: input, shape index: {}]   ;;  %s5834_s3 = inlined_call_operand.vmem [shape: f32[1,128], index: 3, kind: input, shape index: {}]   ;;  %s5835_s4 = inlined_call_operand.vmem [shape: f32[64,128], index: 4, kind: output, shape index: {}]  }
   0x1   :  { %v26_v0 = vld [vmem:[%s5831_s1] sm:$0xff]  ;;  %v27_v2 = vld [vmem:[%s5831_s1 + $0x8] sm:$0xff]  ;;  %840 = vmatprep.mubr.bf16.mxu0 %v5836_v3  ;;  %881 = vmatprep.mubr.bf16.mxu1 %v5836_v3 }
   0x2   :  { %v30_v1 = vld [vmem:[%s5831_s1 + $0x20] sm:$0xff]  ;;  %v31_v5 = vld [vmem:[%s5831_s1 + $0x28] sm:$0xff] }
   0x3   :  { %v3667_v4 = vcombine.high %v26_v0, %v30_v1  ;;  %v3672_v6 = vcombine.low %v26_v0, %v30_v1  ;;  %v34_v7 = vld [vmem:[%s5831_s1 + $0x40] sm:$0xff]  ;;  %v3680_v9 = vcombine.high %v27_v2, %v31_v5  ;;  %v3682_v10 = vcombine.low %v27_v2, %v31_v5  ;;  %v35_v12 = vld [vmem:[%s5831_s1 + $0x48] sm:$0xff] }
   0x4   :  { %v38_v8 = vld [vmem:[%s5831_s1 + $0x60] sm:$0xff]  ;;  %v39_v13 = vld [vmem:[%s5831_s1 + $0x68] sm:$0xff] }
   0x5   :  { %6118 = vst [vmem:[#allocation5_spill] sm:$0xff] %v3667_v4  ;;  %6119 = vst [vmem:[#allocation6_spill] sm:$0xff] %v3672_v6  ;;  %v3684_v11 = vcombine.high %v34_v7, %v38_v8  ;;  %v42_v14 = vld [vmem:[%s5831_s1 + $0x80] sm:$0xff]  ;;  %808 = vmatprep.subr.bf16.mxu0 %v3667_v4  ;;  %v3696_v15 = vcombine.high %v35_v12, %v39_v13  ;;  %v43_v17 = vld [vmem:[%s5831_s1 + $0x88] sm:$0xff]  ;;  %849 = vmatprep.subr.bf16.mxu1 %v3680_v9 }
   0x6   :  { %6120 = vst [vmem:[#allocation7_spill] sm:$0xff] %v3680_v9  ;;  %6121 = vst [vmem:[#allocation8_spill] sm:$0xff] %v3682_v10  ;;  %v46_v16 = vld [vmem:[%s5831_s1 + $0xa0] sm:$0xff]  ;;  %v47_v18 = vld [vmem:[%s5831_s1 + $0xa8] sm:$0xff]  ;;  %809 = vmatpush1.bf16.msra.mxu0 %v3672_v6  ;;  %v3709_v19 = vcombine.low %v34_v7, %v38_v8  ;;  %850 = vmatpush1.bf16.msra.mxu1 %v3682_v10  ;;  %v3713_v20 = vcombine.low %v35_v12, %v39_v13 }
   0x7   :  { %6122 = vst [vmem:[#allocation9_spill] sm:$0xff] %v3684_v11  ;;  %6123 = vst [vmem:[#allocation10_spill] sm:$0xff] %v3696_v15  ;;  %810 = vmatprep.subr.bf16.mxu0 %v3684_v11  ;;  %v3715_v21 = vcombine.high %v42_v14, %v46_v16  ;;  %851 = vmatprep.subr.bf16.mxu1 %v3696_v15  ;;  %v3718_v22 = vcombine.high %v43_v17, %v47_v18  ;;  %v50_v23 = vld [vmem:[%s5831_s1 + $0xc0] sm:$0xff]  ;;  %v51_v25 = vld [vmem:[%s5831_s1 + $0xc8] sm:$0xff] }
   0x8   :  { %6124 = vst [vmem:[#allocation11_spill] sm:$0xff] %v3709_v19  ;;  %6125 = vst [vmem:[#allocation12_spill] sm:$0xff] %v3713_v20  ;;  %v54_v24 = vld [vmem:[%s5831_s1 + $0xe0] sm:$0xff]  ;;  %v55_v26 = vld [vmem:[%s5831_s1 + $0xe8] sm:$0xff]  ;;  %v3733_v27 = vcombine.low %v42_v14, %v46_v16  ;;  %v3737_v28 = vcombine.low %v43_v17, %v47_v18 }
   0x9   :  { %6126 = vst [vmem:[#allocation13_spill] sm:$0xff] %v3715_v21  ;;  %6127 = vst [vmem:[#allocation14_spill] sm:$0xff] %v3718_v22  ;;  %v3739_v29 = vcombine.high %v50_v23, %v54_v24  ;;  %v3742_v30 = vcombine.high %v51_v25, %v55_v26  ;;  %v58_v31 = vld [vmem:[%s5831_s1 + $0x100] sm:$0xff]  ;;  %v59_v33 = vld [vmem:[%s5831_s1 + $0x108] sm:$0xff]  ;;  %v3757_v35 = vcombine.low %v50_v23, %v54_v24 }
   0xa   :  { %811 = vmatpush1.bf16.msra.mxu0 %v3709_v19  ;;  %6128 = vst [vmem:[#allocation15_spill] sm:$0xff] %v3733_v27  ;;  %852 = vmatpush1.bf16.msra.mxu1 %v3713_v20  ;;  %6129 = vst [vmem:[#allocation16_spill] sm:$0xff] %v3737_v28  ;;  %v62_v32 = vld [vmem:[%s5831_s1 + $0x120] sm:$0xff]  ;;  %v63_v34 = vld [vmem:[%s5831_s1 + $0x128] sm:$0xff]  ;;  %v3761_v36 = vcombine.low %v51_v25, %v55_v26 }
   0xb   :  { %812 = vmatprep.subr.bf16.mxu0 %v3715_v21  ;;  %6130 = vst [vmem:[#allocation17_spill] sm:$0xff] %v3739_v29  ;;  %853 = vmatprep.subr.bf16.mxu1 %v3718_v22  ;;  %6131 = vst [vmem:[#allocation18_spill] sm:$0xff] %v3742_v30  ;;  %v3763_v37 = vcombine.high %v58_v31, %v62_v32  ;;  %v3766_v38 = vcombine.high %v59_v33, %v63_v34  ;;  %v66_v39 = vld [vmem:[%s5831_s1 + $0x140] sm:$0xff]  ;;  %v67_v41 = vld [vmem:[%s5831_s1 + $0x148] sm:$0xff] }
   0xc   :  { %6132 = vst [vmem:[#allocation19_spill] sm:$0xff] %v3757_v35  ;;  %6133 = vst [vmem:[#allocation20_spill] sm:$0xff] %v3761_v36  ;;  %v70_v40 = vld [vmem:[%s5831_s1 + $0x160] sm:$0xff]  ;;  %v71_v42 = vld [vmem:[%s5831_s1 + $0x168] sm:$0xff]  ;;  %v3781_v43 = vcombine.low %v58_v31, %v62_v32  ;;  %v3785_v44 = vcombine.low %v59_v33, %v63_v34 }
   0xd   :  { %6134 = vst [vmem:[#allocation21_spill] sm:$0xff] %v3763_v37  ;;  %6135 = vst [vmem:[#allocation22_spill] sm:$0xff] %v3766_v38  ;;  %v3787_v45 = vcombine.high %v66_v39, %v70_v40  ;;  %v3790_v46 = vcombine.high %v67_v41, %v71_v42  ;;  %v74_v47 = vld [vmem:[%s5831_s1 + $0x180] sm:$0xff]  ;;  %v75_v49 = vld [vmem:[%s5831_s1 + $0x188] sm:$0xff]  ;;  %v3805_v51 = vcombine.low %v66_v39, %v70_v40 }
   0xe   :  { %813 = vmatpush1.bf16.msra.mxu0 %v3733_v27  ;;  %854 = vmatpush1.bf16.msra.mxu1 %v3737_v28  ;;  %6136 = vst [vmem:[#allocation23_spill] sm:$0xff] %v3781_v43  ;;  %6137 = vst [vmem:[#allocation24_spill] sm:$0xff] %v3785_v44  ;;  %v78_v48 = vld [vmem:[%s5831_s1 + $0x1a0] sm:$0xff]  ;;  %v79_v50 = vld [vmem:[%s5831_s1 + $0x1a8] sm:$0xff]  ;;  %v3809_v52 = vcombine.low %v67_v41, %v71_v42 }
   0xf   :  { %814 = vmatprep.subr.bf16.mxu0 %v3739_v29  ;;  %855 = vmatprep.subr.bf16.mxu1 %v3742_v30  ;;  %6138 = vst [vmem:[#allocation25_spill] sm:$0xff] %v3787_v45  ;;  %6139 = vst [vmem:[#allocation26_spill] sm:$0xff] %v3790_v46  ;;  %v3811_v53 = vcombine.high %v74_v47, %v78_v48  ;;  %v3814_v54 = vcombine.high %v75_v49, %v79_v50  ;;  %v82_v55 = vld [vmem:[%s5831_s1 + $0x1c0] sm:$0xff]  ;;  %v83_v57 = vld [vmem:[%s5831_s1 + $0x1c8] sm:$0xff] }
  0x10   :  { %6140 = vst [vmem:[#allocation27_spill] sm:$0xff] %v3805_v51  ;;  %6141 = vst [vmem:[#allocation28_spill] sm:$0xff] %v3809_v52  ;;  %v86_v56 = vld [vmem:[%s5831_s1 + $0x1e0] sm:$0xff]  ;;  %v87_v58 = vld [vmem:[%s5831_s1 + $0x1e8] sm:$0xff]  ;;  %v3829_v59 = vcombine.low %v74_v47, %v78_v48  ;;  %v3833_v60 = vcombine.low %v75_v49, %v79_v50 }
  0x11   :  { %6142 = vst [vmem:[#allocation29_spill] sm:$0xff] %v3811_v53  ;;  %6143 = vst [vmem:[#allocation30_spill] sm:$0xff] %v3814_v54  ;;  %v3835_v61 = vcombine.high %v82_v55, %v86_v56  ;;  %v3838_v62 = vcombine.high %v83_v57, %v87_v58  ;;  %v90_v63 = vld [vmem:[%s5831_s1 + $0x200] sm:$0xff]  ;;  %v91_v1 = vld [vmem:[%s5831_s1 + $0x208] sm:$0xff]  ;;  %v3853_v5 = vcombine.low %v82_v55, %v86_v56 }
  0x12   :  { %815 = vmatpush1.bf16.msra.mxu0 %v3757_v35  ;;  %856 = vmatpush1.bf16.msra.mxu1 %v3761_v36  ;;  %6144 = vst [vmem:[#allocation31_spill] sm:$0xff] %v3829_v59  ;;  %6145 = vst [vmem:[#allocation32_spill] sm:$0xff] %v3833_v60  ;;  %v94_v0 = vld [vmem:[%s5831_s1 + $0x220] sm:$0xff]  ;;  %v95_v2 = vld [vmem:[%s5831_s1 + $0x228] sm:$0xff]  ;;  %v3857_v7 = vcombine.low %v83_v57, %v87_v58 }
  0x13   :  { %816 = vmatprep.subr.bf16.mxu0 %v3763_v37  ;;  %857 = vmatprep.subr.bf16.mxu1 %v3766_v38  ;;  %6146 = vst [vmem:[#allocation33_spill] sm:$0xff] %v3835_v61  ;;  %6147 = vst [vmem:[#allocation34_spill] sm:$0xff] %v3838_v62  ;;  %v3859_v8 = vcombine.high %v90_v63, %v94_v0  ;;  %v3862_v12 = vcombine.high %v91_v1, %v95_v2  ;;  %v98_v13 = vld [vmem:[%s5831_s1 + $0x240] sm:$0xff]  ;;  %v99_v16 = vld [vmem:[%s5831_s1 + $0x248] sm:$0xff] }
  0x14   :  { %6148 = vst [vmem:[#allocation35_spill] sm:$0xff] %v3853_v5  ;;  %6149 = vst [vmem:[#allocation36_spill] sm:$0xff] %v3857_v7  ;;  %v102_v14 = vld [vmem:[%s5831_s1 + $0x260] sm:$0xff]  ;;  %v103_v17 = vld [vmem:[%s5831_s1 + $0x268] sm:$0xff]  ;;  %v3877_v18 = vcombine.low %v90_v63, %v94_v0  ;;  %v3881_v23 = vcombine.low %v91_v1, %v95_v2 }
  0x15   :  { %6150 = vst [vmem:[#allocation37_spill] sm:$0xff] %v3859_v8  ;;  %6151 = vst [vmem:[#allocation38_spill] sm:$0xff] %v3862_v12  ;;  %v3883_v24 = vcombine.high %v98_v13, %v102_v14  ;;  %v3886_v25 = vcombine.high %v99_v16, %v103_v17  ;;  %v106_v26 = vld [vmem:[%s5831_s1 + $0x280] sm:$0xff]  ;;  %v107_v32 = vld [vmem:[%s5831_s1 + $0x288] sm:$0xff]  ;;  %v3901_v34 = vcombine.low %v98_v13, %v102_v14 }
  0x16   :  { %817 = vmatpush1.bf16.msra.mxu0 %v3781_v43  ;;  %858 = vmatpush1.bf16.msra.mxu1 %v3785_v44  ;;  %6152 = vst [vmem:[#allocation39_spill] sm:$0xff] %v3877_v18  ;;  %6153 = vst [vmem:[#allocation40_spill] sm:$0xff] %v3881_v23  ;;  %v110_v31 = vld [vmem:[%s5831_s1 + $0x2a0] sm:$0xff]  ;;  %v111_v33 = vld [vmem:[%s5831_s1 + $0x2a8] sm:$0xff]  ;;  %v3905_v39 = vcombine.low %v99_v16, %v103_v17 }
  0x17   :  { %818 = vmatprep.subr.bf16.mxu0 %v3787_v45  ;;  %859 = vmatprep.subr.bf16.mxu1 %v3790_v46  ;;  %6154 = vst [vmem:[#allocation41_spill] sm:$0xff] %v3883_v24  ;;  %6155 = vst [vmem:[#allocation42_spill] sm:$0xff] %v3886_v25  ;;  %v3907_v40 = vcombine.high %v106_v26, %v110_v31  ;;  %v3910_v41 = vcombine.high %v107_v32, %v111_v33  ;;  %v114_v42 = vld [vmem:[%s5831_s1 + $0x2c0] sm:$0xff]  ;;  %v115_v48 = vld [vmem:[%s5831_s1 + $0x2c8] sm:$0xff] }
  0x18   :  { %6156 = vst [vmem:[#allocation43_spill] sm:$0xff] %v3901_v34  ;;  %6157 = vst [vmem:[#allocation44_spill] sm:$0xff] %v3905_v39  ;;  %v118_v47 = vld [vmem:[%s5831_s1 + $0x2e0] sm:$0xff]  ;;  %v119_v49 = vld [vmem:[%s5831_s1 + $0x2e8] sm:$0xff]  ;;  %v3925_v50 = vcombine.low %v106_v26, %v110_v31  ;;  %v3929_v55 = vcombine.low %v107_v32, %v111_v33 }
  0x19   :  { %6158 = vst [vmem:[#allocation45_spill] sm:$0xff] %v3907_v40  ;;  %6159 = vst [vmem:[#allocation46_spill] sm:$0xff] %v3910_v41  ;;  %v3931_v56 = vcombine.high %v114_v42, %v118_v47  ;;  %v3934_v57 = vcombine.high %v115_v48, %v119_v49  ;;  %v122_v58 = vld [vmem:[%s5831_s1 + $0x300] sm:$0xff]  ;;  %v123_v0 = vld [vmem:[%s5831_s1 + $0x308] sm:$0xff]  ;;  %v3949_v2 = vcombine.low %v114_v42, %v118_v47 }
  0x1a   :  { %819 = vmatpush1.bf16.msra.mxu0 %v3805_v51  ;;  %860 = vmatpush1.bf16.msra.mxu1 %v3809_v52  ;;  %6160 = vst [vmem:[#allocation47_spill] sm:$0xff] %v3925_v50  ;;  %6161 = vst [vmem:[#allocation48_spill] sm:$0xff] %v3929_v55  ;;  %v126_v63 = vld [vmem:[%s5831_s1 + $0x320] sm:$0xff]  ;;  %v127_v1 = vld [vmem:[%s5831_s1 + $0x328] sm:$0xff]  ;;  %v3953_v13 = vcombine.low %v115_v48, %v119_v49 }
  0x1b   :  { %820 = vmatprep.subr.bf16.mxu0 %v3811_v53  ;;  %861 = vmatprep.subr.bf16.mxu1 %v3814_v54  ;;  %6162 = vst [vmem:[#allocation49_spill] sm:$0xff] %v3931_v56  ;;  %6163 = vst [vmem:[#allocation50_spill] sm:$0xff] %v3934_v57  ;;  %v3955_v14 = vcombine.high %v122_v58, %v126_v63  ;;  %v3958_v16 = vcombine.high %v123_v0, %v127_v1  ;;  %v130_v17 = vld [vmem:[%s5831_s1 + $0x340] sm:$0xff]  ;;  %v131_v31 = vld [vmem:[%s5831_s1 + $0x348] sm:$0xff] }
  0x1c   :  { %6164 = vst [vmem:[#allocation51_spill] sm:$0xff] %v3949_v2  ;;  %6165 = vst [vmem:[#allocation52_spill] sm:$0xff] %v3953_v13  ;;  %v134_v26 = vld [vmem:[%s5831_s1 + $0x360] sm:$0xff]  ;;  %v135_v32 = vld [vmem:[%s5831_s1 + $0x368] sm:$0xff]  ;;  %v3973_v33 = vcombine.low %v122_v58, %v126_v63  ;;  %v3977_v42 = vcombine.low %v123_v0, %v127_v1 }
  0x1d   :  { %6166 = vst [vmem:[#allocation53_spill] sm:$0xff] %v3955_v14  ;;  %6167 = vst [vmem:[#allocation54_spill] sm:$0xff] %v3958_v16  ;;  %v3979_v47 = vcombine.high %v130_v17, %v134_v26  ;;  %v3982_v48 = vcombine.high %v131_v31, %v135_v32  ;;  %v138_v49 = vld [vmem:[%s5831_s1 + $0x380] sm:$0xff]  ;;  %v139_v63 = vld [vmem:[%s5831_s1 + $0x388] sm:$0xff]  ;;  %v3997_v1 = vcombine.low %v130_v17, %v134_v26 }
  0x1e   :  { %821 = vmatpush1.bf16.msra.mxu0 %v3829_v59  ;;  %862 = vmatpush1.bf16.msra.mxu1 %v3833_v60  ;;  %6168 = vst [vmem:[#allocation55_spill] sm:$0xff] %v3973_v33  ;;  %6169 = vst [vmem:[#allocation56_spill] sm:$0xff] %v3977_v42  ;;  %v142_v58 = vld [vmem:[%s5831_s1 + $0x3a0] sm:$0xff]  ;;  %v143_v0 = vld [vmem:[%s5831_s1 + $0x3a8] sm:$0xff]  ;;  %v4001_v3 = vcombine.low %v131_v31, %v135_v32 }
  0x1f   :  { %822 = vmatprep.subr.bf16.mxu0 %v3835_v61  ;;  %863 = vmatprep.subr.bf16.mxu1 %v3838_v62  ;;  %6170 = vst [vmem:[#allocation57_spill] sm:$0xff] %v3979_v47  ;;  %6171 = vst [vmem:[#allocation58_spill] sm:$0xff] %v3982_v48  ;;  %v150_v17 = vld [vmem:[%s5831_s1 + $0x3e0] sm:$0xff]  ;;  %v147_v26 = vld [vmem:[%s5831_s1 + $0x3c8] sm:$0xff]  ;;  %v4021_v32 = vcombine.low %v138_v49, %v142_v58 }
  0x20   :  { %6172 = vst [vmem:[#allocation59_spill] sm:$0xff] %v3997_v1  ;;  %6173 = vst [vmem:[#allocation60_spill] sm:$0xff] %v4001_v3  ;;  %v151_v31 = vld [vmem:[%s5831_s1 + $0x3e8] sm:$0xff] }
  0x21   :  { %6176 = vst [vmem:[#allocation63_spill] sm:$0xff] %v4021_v32 }
  0x22   :  { %823 = vmatpush1.bf16.msra.mxu0 %v3853_v5  ;;  %864 = vmatpush1.bf16.msra.mxu1 %v3857_v7 }
  0x23   :  { %824 = vmatprep.subr.bf16.mxu0 %v3859_v8  ;;  %865 = vmatprep.subr.bf16.mxu1 %v3862_v12 }
  0x26   :  { %825 = vmatpush1.bf16.msra.mxu0 %v3877_v18  ;;  %866 = vmatpush1.bf16.msra.mxu1 %v3881_v23 }
  0x27   :  { %826 = vmatprep.subr.bf16.mxu0 %v3883_v24  ;;  %867 = vmatprep.subr.bf16.mxu1 %v3886_v25 }
  0x2a   :  { %827 = vmatpush1.bf16.msra.mxu0 %v3901_v34  ;;  %868 = vmatpush1.bf16.msra.mxu1 %v3905_v39 }
  0x2b   :  { %828 = vmatprep.subr.bf16.mxu0 %v3907_v40  ;;  %869 = vmatprep.subr.bf16.mxu1 %v3910_v41 }
  0x2e   :  { %829 = vmatpush1.bf16.msra.mxu0 %v3925_v50  ;;  %870 = vmatpush1.bf16.msra.mxu1 %v3929_v55 }
  0x2f   :  { %830 = vmatprep.subr.bf16.mxu0 %v3931_v56  ;;  %871 = vmatprep.subr.bf16.mxu1 %v3934_v57 }
  0x32   :  { %831 = vmatpush1.bf16.msra.mxu0 %v3949_v2  ;;  %872 = vmatpush1.bf16.msra.mxu1 %v3953_v13  ;;  %v146_v13 = vld [vmem:[%s5831_s1 + $0x3c0] sm:$0xff]  ;;  %v52_v2 = vld [vmem:[%s5831_s1 + $0xd0] sm:$0xff] }
  0x33   :  { %832 = vmatprep.subr.bf16.mxu0 %v3955_v14  ;;  %873 = vmatprep.subr.bf16.mxu1 %v3958_v16  ;;  %v4003_v16 = vcombine.high %v138_v49, %v142_v58  ;;  %v4006_v14 = vcombine.high %v139_v63, %v143_v0  ;;  %v32_v49 = vld [vmem:[%s5831_s1 + $0x30] sm:$0xff]  ;;  %v29_v58 = vld [vmem:[%s5831_s1 + $0x18] sm:$0xff] }
  0x35   :  { %6174 = vst [vmem:[#allocation61_spill] sm:$0xff] %v4003_v16  ;;  %6175 = vst [vmem:[#allocation62_spill] sm:$0xff] %v4006_v14 }
  0x36   :  { %833 = vmatpush1.bf16.msra.mxu0 %v3973_v33  ;;  %874 = vmatpush1.bf16.msra.mxu1 %v3977_v42  ;;  %v4030_v42 = vcombine.high %v147_v26, %v151_v31  ;;  %v28_v33 = vld [vmem:[%s5831_s1 + $0x10] sm:$0xff] }
  0x37   :  { %834 = vmatprep.subr.bf16.mxu0 %v3979_v47  ;;  %875 = vmatprep.subr.bf16.mxu1 %v3982_v48  ;;  %v4025_v48 = vcombine.low %v139_v63, %v143_v0  ;;  %v4027_v47 = vcombine.high %v146_v13, %v150_v17  ;;  %v33_v63 = vld [vmem:[%s5831_s1 + $0x38] sm:$0xff]  ;;  %v4045_v0 = vcombine.low %v146_v13, %v150_v17  ;;  %v40_v13 = vld [vmem:[%s5831_s1 + $0x70] sm:$0xff] }
  0x38   :  { %6179 = vst [vmem:[#allocation66_spill] sm:$0xff] %v4030_v42  ;;  %v37_v17 = vld [vmem:[%s5831_s1 + $0x58] sm:$0xff] }
  0x39   :  { %6177 = vst [vmem:[#allocation64_spill] sm:$0xff] %v4025_v48  ;;  %6178 = vst [vmem:[#allocation65_spill] sm:$0xff] %v4027_v47 }
  0x3a   :  { %835 = vmatpush1.bf16.msra.mxu0 %v3997_v1  ;;  %876 = vmatpush1.bf16.msra.mxu1 %v4001_v3  ;;  %6180 = vst [vmem:[#allocation67_spill] sm:$0xff] %v4045_v0  ;;  %v4054_v3 = vcombine.high %v29_v58, %v33_v63  ;;  %v36_v1 = vld [vmem:[%s5831_s1 + $0x50] sm:$0xff] }
  0x3b   :  { %836 = vmatprep.subr.bf16.mxu0 %v4003_v16  ;;  %877 = vmatprep.subr.bf16.mxu1 %v4006_v14  ;;  %v4049_v14 = vcombine.low %v147_v26, %v151_v31  ;;  %v4051_v16 = vcombine.high %v28_v33, %v32_v49  ;;  %v41_v26 = vld [vmem:[%s5831_s1 + $0x78] sm:$0xff]  ;;  %v4069_v31 = vcombine.low %v28_v33, %v32_v49  ;;  %v48_v33 = vld [vmem:[%s5831_s1 + $0xb0] sm:$0xff]  ;;  %v6188_v49 = vmov 0.0|0.0  }
  0x3c   :  { %6183 = vst [vmem:[#allocation70_spill] sm:$0xff] %v4054_v3 }
  0x3d   :  { %6181 = vst [vmem:[#allocation68_spill] sm:$0xff] %v4049_v14  ;;  %6182 = vst [vmem:[#allocation69_spill] sm:$0xff] %v4051_v16 }
  0x3e   :  { %837 = vmatpush1.bf16.msra.mxu0 %v4021_v32  ;;  %878 = vmatpush1.bf16.msra.mxu1 %v4025_v48  ;;  %6184 = vst [vmem:[#allocation71_spill] sm:$0xff] %v4069_v31  ;;  %v4078_v48 = vcombine.high %v37_v17, %v41_v26  ;;  %v44_v32 = vld [vmem:[%s5831_s1 + $0x90] sm:$0xff] }
  0x3f   :  { %838 = vmatprep.subr.bf16.mxu0 %v4027_v47  ;;  %879 = vmatprep.subr.bf16.mxu1 %v4030_v42  ;;  %v4073_v42 = vcombine.low %v29_v58, %v33_v63  ;;  %v4075_v47 = vcombine.high %v36_v1, %v40_v13  ;;  %v45_v58 = vld [vmem:[%s5831_s1 + $0x98] sm:$0xff] }
  0x40   :  { %6187 = vst [vmem:[#allocation74_spill] sm:$0xff] %v4078_v48  ;;  %v49_v63 = vld [vmem:[%s5831_s1 + $0xb8] sm:$0xff] }
  0x41   :  { %6185 = vst [vmem:[#allocation72_spill] sm:$0xff] %v4073_v42  ;;  %6186 = vst [vmem:[#allocation73_spill] sm:$0xff] %v4075_v47 }
  0x42   :  { %839 = vmatpush1.bf16.msra.mxu0 %v4045_v0  ;;  %880 = vmatpush1.bf16.msra.mxu1 %v4049_v14  ;;  %v4101_v14 = vcombine.high %v44_v32, %v48_v33  ;;  %v4104_v0 = vcombine.high %v45_v58, %v49_v63 }
  0x43   :  { %890 = vmatprep.subr.bf16.mxu0 %v4051_v16  ;;  %931 = vmatprep.subr.bf16.mxu1 %v4054_v3  ;;  %v4095_v3 = vcombine.low %v36_v1, %v40_v13  ;;  %v4099_v16 = vcombine.low %v37_v17, %v41_v26  ;;  %v56_v1 = vld [vmem:[%s5831_s1 + $0xf0] sm:$0xff]  ;;  %v53_v13 = vld [vmem:[%s5831_s1 + $0xd8] sm:$0xff]  ;;  %v4121_v26 = vcombine.low %v44_v32, %v48_v33 }
  0x44   :  { %6191 = vst [vmem:[#allocation77_spill] sm:$0xff] %v4101_v14  ;;  %6192 = vst [vmem:[#allocation78_spill] sm:$0xff] %v4104_v0  ;;  %v57_v17 = vld [vmem:[%s5831_s1 + $0xf8] sm:$0xff]  ;;  %v64_v32 = vld [vmem:[%s5831_s1 + $0x130] sm:$0xff] }
  0x45   :  { %841 = vmatmul.mubr.bf16.vlgmr.msra.gmra.mrb[0].mxu0 %v6188_v49  ;;  %882 = vmatmul.mubr.bf16.vlgmr.msra.gmra.mrb[0].mxu1 %v6188_v49  ;;  %6189 = vst [vmem:[#allocation75_spill] sm:$0xff] %v4095_v3  ;;  %6190 = vst [vmem:[#allocation76_spill] sm:$0xff] %v4099_v16  ;;  %v61_v33 = vld [vmem:[%s5831_s1 + $0x118] sm:$0xff] }
  0x46   :  { %891 = vmatpush1.bf16.msra.mxu0 %v4069_v31  ;;  %932 = vmatpush1.bf16.msra.mxu1 %v4073_v42  ;;  %6193 = vst [vmem:[#allocation79_spill] sm:$0xff] %v4121_v26  ;;  %v4130_v42 = vcombine.high %v53_v13, %v57_v17  ;;  %v60_v31 = vld [vmem:[%s5831_s1 + $0x110] sm:$0xff] }
  0x47   :  { %892 = vmatprep.subr.bf16.mxu0 %v4075_v47  ;;  %933 = vmatprep.subr.bf16.mxu1 %v4078_v48  ;;  %v4125_v48 = vcombine.low %v45_v58, %v49_v63  ;;  %v4127_v47 = vcombine.high %v52_v2, %v56_v1  ;;  %v65_v58 = vld [vmem:[%s5831_s1 + $0x138] sm:$0xff]  ;;  %v4145_v63 = vcombine.low %v52_v2, %v56_v1  ;;  %v72_v2 = vld [vmem:[%s5831_s1 + $0x170] sm:$0xff] }
  0x48   :  { %922 = vmatprep.mubr.bf16.mxu0 %v6188_v49  ;;  %963 = vmatprep.mubr.bf16.mxu1 %v6188_v49  ;;  %6196 = vst [vmem:[#allocation82_spill] sm:$0xff] %v4130_v42  ;;  %v69_v1 = vld [vmem:[%s5831_s1 + $0x158] sm:$0xff] }
  0x49   :  { %6194 = vst [vmem:[#allocation80_spill] sm:$0xff] %v4125_v48  ;;  %6195 = vst [vmem:[#allocation81_spill] sm:$0xff] %v4127_v47 }
  0x4a   :  { %893 = vmatpush1.bf16.msra.mxu0 %v4095_v3  ;;  %934 = vmatpush1.bf16.msra.mxu1 %v4099_v16  ;;  %6197 = vst [vmem:[#allocation83_spill] sm:$0xff] %v4145_v63  ;;  %v4154_v16 = vcombine.high %v61_v33, %v65_v58  ;;  %v68_v3 = vld [vmem:[%s5831_s1 + $0x150] sm:$0xff] }
  0x4b   :  { %894 = vmatprep.subr.bf16.mxu0 %v4101_v14  ;;  %935 = vmatprep.subr.bf16.mxu1 %v4104_v0  ;;  %v4149_v0 = vcombine.low %v53_v13, %v57_v17  ;;  %v4151_v14 = vcombine.high %v60_v31, %v64_v32  ;;  %v73_v13 = vld [vmem:[%s5831_s1 + $0x178] sm:$0xff]  ;;  %v4169_v17 = vcombine.low %v60_v31, %v64_v32  ;;  %v80_v31 = vld [vmem:[%s5831_s1 + $0x1b0] sm:$0xff] }
  0x4c   :  { %6200 = vst [vmem:[#allocation86_spill] sm:$0xff] %v4154_v16  ;;  %v77_v32 = vld [vmem:[%s5831_s1 + $0x198] sm:$0xff] }
  0x4d   :  { %6198 = vst [vmem:[#allocation84_spill] sm:$0xff] %v4149_v0  ;;  %6199 = vst [vmem:[#allocation85_spill] sm:$0xff] %v4151_v14 }
  0x4e   :  { %895 = vmatpush1.bf16.msra.mxu0 %v4121_v26  ;;  %936 = vmatpush1.bf16.msra.mxu1 %v4125_v48  ;;  %6201 = vst [vmem:[#allocation87_spill] sm:$0xff] %v4169_v17  ;;  %v4178_v48 = vcombine.high %v69_v1, %v73_v13  ;;  %v76_v26 = vld [vmem:[%s5831_s1 + $0x190] sm:$0xff] }
  0x4f   :  { %896 = vmatprep.subr.bf16.mxu0 %v4127_v47  ;;  %937 = vmatprep.subr.bf16.mxu1 %v4130_v42  ;;  %v4173_v42 = vcombine.low %v61_v33, %v65_v58  ;;  %v4175_v47 = vcombine.high %v68_v3, %v72_v2  ;;  %v81_v33 = vld [vmem:[%s5831_s1 + $0x1b8] sm:$0xff]  ;;  %v4193_v58 = vcombine.low %v68_v3, %v72_v2  ;;  %v88_v3 = vld [vmem:[%s5831_s1 + $0x1f0] sm:$0xff] }
  0x50   :  { %6204 = vst [vmem:[#allocation90_spill] sm:$0xff] %v4178_v48  ;;  %v85_v2 = vld [vmem:[%s5831_s1 + $0x1d8] sm:$0xff] }
  0x51   :  { %6202 = vst [vmem:[#allocation88_spill] sm:$0xff] %v4173_v42  ;;  %6203 = vst [vmem:[#allocation89_spill] sm:$0xff] %v4175_v47 }
  0x52   :  { %897 = vmatpush1.bf16.msra.mxu0 %v4145_v63  ;;  %938 = vmatpush1.bf16.msra.mxu1 %v4149_v0  ;;  %6205 = vst [vmem:[#allocation91_spill] sm:$0xff] %v4193_v58  ;;  %v4202_v0 = vcombine.high %v77_v32, %v81_v33  ;;  %v84_v63 = vld [vmem:[%s5831_s1 + $0x1d0] sm:$0xff] }
  0x53   :  { %898 = vmatprep.subr.bf16.mxu0 %v4151_v14  ;;  %939 = vmatprep.subr.bf16.mxu1 %v4154_v16  ;;  %v4197_v16 = vcombine.low %v69_v1, %v73_v13  ;;  %v4199_v14 = vcombine.high %v76_v26, %v80_v31  ;;  %v89_v1 = vld [vmem:[%s5831_s1 + $0x1f8] sm:$0xff]  ;;  %v4217_v13 = vcombine.low %v76_v26, %v80_v31  ;;  %v96_v26 = vld [vmem:[%s5831_s1 + $0x230] sm:$0xff] }
  0x54   :  { %6208 = vst [vmem:[#allocation94_spill] sm:$0xff] %v4202_v0  ;;  %v93_v31 = vld [vmem:[%s5831_s1 + $0x218] sm:$0xff] }
  0x55   :  { %6206 = vst [vmem:[#allocation92_spill] sm:$0xff] %v4197_v16  ;;  %6207 = vst [vmem:[#allocation93_spill] sm:$0xff] %v4199_v14 }
  0x56   :  { %899 = vmatpush1.bf16.msra.mxu0 %v4169_v17  ;;  %940 = vmatpush1.bf16.msra.mxu1 %v4173_v42  ;;  %6209 = vst [vmem:[#allocation95_spill] sm:$0xff] %v4217_v13  ;;  %v4226_v42 = vcombine.high %v85_v2, %v89_v1  ;;  %v92_v17 = vld [vmem:[%s5831_s1 + $0x210] sm:$0xff] }
  0x57   :  { %900 = vmatprep.subr.bf16.mxu0 %v4175_v47  ;;  %941 = vmatprep.subr.bf16.mxu1 %v4178_v48  ;;  %v4221_v48 = vcombine.low %v77_v32, %v81_v33  ;;  %v4223_v47 = vcombine.high %v84_v63, %v88_v3  ;;  %v97_v32 = vld [vmem:[%s5831_s1 + $0x238] sm:$0xff]  ;;  %v4241_v33 = vcombine.low %v84_v63, %v88_v3  ;;  %v104_v63 = vld [vmem:[%s5831_s1 + $0x270] sm:$0xff] }
  0x58   :  { %6212 = vst [vmem:[#allocation98_spill] sm:$0xff] %v4226_v42  ;;  %v101_v3 = vld [vmem:[%s5831_s1 + $0x258] sm:$0xff] }
  0x59   :  { %6210 = vst [vmem:[#allocation96_spill] sm:$0xff] %v4221_v48  ;;  %6211 = vst [vmem:[#allocation97_spill] sm:$0xff] %v4223_v47 }
  0x5a   :  { %901 = vmatpush1.bf16.msra.mxu0 %v4193_v58  ;;  %942 = vmatpush1.bf16.msra.mxu1 %v4197_v16  ;;  %6213 = vst [vmem:[#allocation99_spill] sm:$0xff] %v4241_v33  ;;  %v4250_v16 = vcombine.high %v93_v31, %v97_v32  ;;  %v100_v58 = vld [vmem:[%s5831_s1 + $0x250] sm:$0xff] }
  0x5b   :  { %902 = vmatprep.subr.bf16.mxu0 %v4199_v14  ;;  %943 = vmatprep.subr.bf16.mxu1 %v4202_v0  ;;  %v4245_v0 = vcombine.low %v85_v2, %v89_v1  ;;  %v4247_v14 = vcombine.high %v92_v17, %v96_v26  ;;  %v105_v2 = vld [vmem:[%s5831_s1 + $0x278] sm:$0xff]  ;;  %v4265_v1 = vcombine.low %v92_v17, %v96_v26  ;;  %v112_v17 = vld [vmem:[%s5831_s1 + $0x2b0] sm:$0xff] }
  0x5c   :  { %6216 = vst [vmem:[#allocation102_spill] sm:$0xff] %v4250_v16  ;;  %v109_v26 = vld [vmem:[%s5831_s1 + $0x298] sm:$0xff] }
  0x5d   :  { %6214 = vst [vmem:[#allocation100_spill] sm:$0xff] %v4245_v0  ;;  %6215 = vst [vmem:[#allocation101_spill] sm:$0xff] %v4247_v14 }
  0x5e   :  { %903 = vmatpush1.bf16.msra.mxu0 %v4217_v13  ;;  %944 = vmatpush1.bf16.msra.mxu1 %v4221_v48  ;;  %6217 = vst [vmem:[#allocation103_spill] sm:$0xff] %v4265_v1  ;;  %v4274_v48 = vcombine.high %v101_v3, %v105_v2  ;;  %v108_v13 = vld [vmem:[%s5831_s1 + $0x290] sm:$0xff] }
  0x5f   :  { %904 = vmatprep.subr.bf16.mxu0 %v4223_v47  ;;  %945 = vmatprep.subr.bf16.mxu1 %v4226_v42  ;;  %v4269_v42 = vcombine.low %v93_v31, %v97_v32  ;;  %v4271_v47 = vcombine.high %v100_v58, %v104_v63  ;;  %v113_v31 = vld [vmem:[%s5831_s1 + $0x2b8] sm:$0xff]  ;;  %v4289_v32 = vcombine.low %v100_v58, %v104_v63  ;;  %v120_v58 = vld [vmem:[%s5831_s1 + $0x2f0] sm:$0xff] }
  0x60   :  { %6220 = vst [vmem:[#allocation106_spill] sm:$0xff] %v4274_v48  ;;  %v117_v63 = vld [vmem:[%s5831_s1 + $0x2d8] sm:$0xff] }
  0x61   :  { %6218 = vst [vmem:[#allocation104_spill] sm:$0xff] %v4269_v42  ;;  %6219 = vst [vmem:[#allocation105_spill] sm:$0xff] %v4271_v47 }
  0x62   :  { %905 = vmatpush1.bf16.msra.mxu0 %v4241_v33  ;;  %946 = vmatpush1.bf16.msra.mxu1 %v4245_v0  ;;  %6221 = vst [vmem:[#allocation107_spill] sm:$0xff] %v4289_v32  ;;  %v4298_v0 = vcombine.high %v109_v26, %v113_v31  ;;  %v116_v33 = vld [vmem:[%s5831_s1 + $0x2d0] sm:$0xff] }
  0x63   :  { %906 = vmatprep.subr.bf16.mxu0 %v4247_v14  ;;  %947 = vmatprep.subr.bf16.mxu1 %v4250_v16  ;;  %v4293_v16 = vcombine.low %v101_v3, %v105_v2  ;;  %v4295_v14 = vcombine.high %v108_v13, %v112_v17  ;;  %v121_v3 = vld [vmem:[%s5831_s1 + $0x2f8] sm:$0xff]  ;;  %v4313_v2 = vcombine.low %v108_v13, %v112_v17  ;;  %v128_v13 = vld [vmem:[%s5831_s1 + $0x330] sm:$0xff] }
  0x64   :  { %6224 = vst [vmem:[#allocation110_spill] sm:$0xff] %v4298_v0  ;;  %v125_v17 = vld [vmem:[%s5831_s1 + $0x318] sm:$0xff] }
  0x65   :  { %6222 = vst [vmem:[#allocation108_spill] sm:$0xff] %v4293_v16  ;;  %6223 = vst [vmem:[#allocation109_spill] sm:$0xff] %v4295_v14 }
  0x66   :  { %907 = vmatpush1.bf16.msra.mxu0 %v4265_v1  ;;  %948 = vmatpush1.bf16.msra.mxu1 %v4269_v42  ;;  %6225 = vst [vmem:[#allocation111_spill] sm:$0xff] %v4313_v2  ;;  %v4322_v42 = vcombine.high %v117_v63, %v121_v3  ;;  %v124_v1 = vld [vmem:[%s5831_s1 + $0x310] sm:$0xff] }
  0x67   :  { %908 = vmatprep.subr.bf16.mxu0 %v4271_v47  ;;  %949 = vmatprep.subr.bf16.mxu1 %v4274_v48  ;;  %v4317_v48 = vcombine.low %v109_v26, %v113_v31  ;;  %v4319_v47 = vcombine.high %v116_v33, %v120_v58  ;;  %v129_v26 = vld [vmem:[%s5831_s1 + $0x338] sm:$0xff]  ;;  %v4337_v31 = vcombine.low %v116_v33, %v120_v58  ;;  %v136_v33 = vld [vmem:[%s5831_s1 + $0x370] sm:$0xff] }
  0x68   :  { %6228 = vst [vmem:[#allocation114_spill] sm:$0xff] %v4322_v42  ;;  %v133_v58 = vld [vmem:[%s5831_s1 + $0x358] sm:$0xff] }
  0x69   :  { %6226 = vst [vmem:[#allocation112_spill] sm:$0xff] %v4317_v48  ;;  %6227 = vst [vmem:[#allocation113_spill] sm:$0xff] %v4319_v47 }
  0x6a   :  { %909 = vmatpush1.bf16.msra.mxu0 %v4289_v32  ;;  %950 = vmatpush1.bf16.msra.mxu1 %v4293_v16  ;;  %6229 = vst [vmem:[#allocation115_spill] sm:$0xff] %v4337_v31  ;;  %v4346_v16 = vcombine.high %v125_v17, %v129_v26  ;;  %v132_v32 = vld [vmem:[%s5831_s1 + $0x350] sm:$0xff] }
  0x6b   :  { %910 = vmatprep.subr.bf16.mxu0 %v4295_v14  ;;  %951 = vmatprep.subr.bf16.mxu1 %v4298_v0  ;;  %v4341_v0 = vcombine.low %v117_v63, %v121_v3  ;;  %v4343_v14 = vcombine.high %v124_v1, %v128_v13  ;;  %v137_v63 = vld [vmem:[%s5831_s1 + $0x378] sm:$0xff]  ;;  %v4361_v3 = vcombine.low %v124_v1, %v128_v13  ;;  %v144_v1 = vld [vmem:[%s5831_s1 + $0x3b0] sm:$0xff] }
  0x6c   :  { %6232 = vst [vmem:[#allocation118_spill] sm:$0xff] %v4346_v16  ;;  %v141_v13 = vld [vmem:[%s5831_s1 + $0x398] sm:$0xff] }
  0x6d   :  { %6230 = vst [vmem:[#allocation116_spill] sm:$0xff] %v4341_v0  ;;  %6231 = vst [vmem:[#allocation117_spill] sm:$0xff] %v4343_v14 }
  0x6e   :  { %911 = vmatpush1.bf16.msra.mxu0 %v4313_v2  ;;  %952 = vmatpush1.bf16.msra.mxu1 %v4317_v48  ;;  %6233 = vst [vmem:[#allocation119_spill] sm:$0xff] %v4361_v3  ;;  %v4370_v48 = vcombine.high %v133_v58, %v137_v63  ;;  %v140_v2 = vld [vmem:[%s5831_s1 + $0x390] sm:$0xff] }
  0x6f   :  { %912 = vmatprep.subr.bf16.mxu0 %v4319_v47  ;;  %953 = vmatprep.subr.bf16.mxu1 %v4322_v42  ;;  %v4365_v42 = vcombine.low %v125_v17, %v129_v26  ;;  %v4367_v47 = vcombine.high %v132_v32, %v136_v33  ;;  %v145_v17 = vld [vmem:[%s5831_s1 + $0x3b8] sm:$0xff]  ;;  %v4385_v26 = vcombine.low %v132_v32, %v136_v33  ;;  %v152_v32 = vld [vmem:[%s5831_s1 + $0x3f0] sm:$0xff] }
  0x70   :  { %6236 = vst [vmem:[#allocation122_spill] sm:$0xff] %v4370_v48  ;;  %v149_v33 = vld [vmem:[%s5831_s1 + $0x3d8] sm:$0xff] }
  0x71   :  { %6234 = vst [vmem:[#allocation120_spill] sm:$0xff] %v4365_v42  ;;  %6235 = vst [vmem:[#allocation121_spill] sm:$0xff] %v4367_v47 }
  0x72   :  { %913 = vmatpush1.bf16.msra.mxu0 %v4337_v31  ;;  %954 = vmatpush1.bf16.msra.mxu1 %v4341_v0  ;;  %6237 = vst [vmem:[#allocation123_spill] sm:$0xff] %v4385_v26  ;;  %v4394_v0 = vcombine.high %v141_v13, %v145_v17  ;;  %v148_v31 = vld [vmem:[%s5831_s1 + $0x3d0] sm:$0xff] }
  0x73   :  { %914 = vmatprep.subr.bf16.mxu0 %v4343_v14  ;;  %955 = vmatprep.subr.bf16.mxu1 %v4346_v16  ;;  %v4389_v16 = vcombine.low %v133_v58, %v137_v63  ;;  %v4391_v14 = vcombine.high %v140_v2, %v144_v1  ;;  %v153_v58 = vld [vmem:[%s5831_s1 + $0x3f8] sm:$0xff]  ;;  %v4409_v63 = vcombine.low %v140_v2, %v144_v1  ;;  %v6249_v1 = vld [vmem:[#allocation53_spill] sm:$0xff] }
  0x74   :  { %6240 = vst [vmem:[#allocation126_spill] sm:$0xff] %v4394_v0  ;;  %v4425_v2 = vcombine.low %v149_v33, %v153_v58 }
  0x75   :  { %6238 = vst [vmem:[#allocation124_spill] sm:$0xff] %v4389_v16  ;;  %6239 = vst [vmem:[#allocation125_spill] sm:$0xff] %v4391_v14 }
  0x76   :  { %915 = vmatpush1.bf16.msra.mxu0 %v4361_v3  ;;  %956 = vmatpush1.bf16.msra.mxu1 %v4365_v42  ;;  %6241 = vst [vmem:[#allocation127_spill] sm:$0xff] %v4409_v63  ;;  %v4418_v42 = vcombine.high %v149_v33, %v153_v58  ;;  %v4421_v3 = vcombine.low %v148_v31, %v152_v32  ;;  %6246 = vst [vmem:[#allocation132_spill] sm:$0xff] %v4425_v2  ;;  %v6253_v33 = vld [vmem:[#allocation57_spill] sm:$0xff]  ;;  %v6254_v58 = vld [vmem:[#allocation58_spill] sm:$0xff] }
  0x77   :  { %916 = vmatprep.subr.bf16.mxu0 %v4367_v47  ;;  %957 = vmatprep.subr.bf16.mxu1 %v4370_v48  ;;  %v4413_v48 = vcombine.low %v141_v13, %v145_v17  ;;  %v4415_v47 = vcombine.high %v148_v31, %v152_v32  ;;  %v6248_v31 = vld [vmem:[#allocation52_spill] sm:$0xff]  ;;  %v6250_v13 = vld [vmem:[#allocation54_spill] sm:$0xff]  ;;  %v6251_v17 = vld [vmem:[#allocation55_spill] sm:$0xff] }
  0x78   :  { %6244 = vst [vmem:[#allocation130_spill] sm:$0xff] %v4418_v42  ;;  %6245 = vst [vmem:[#allocation131_spill] sm:$0xff] %v4421_v3  ;;  %v6252_v32 = vld [vmem:[#allocation56_spill] sm:$0xff] }
  0x79   :  { %6242 = vst [vmem:[#allocation128_spill] sm:$0xff] %v4413_v48  ;;  %6243 = vst [vmem:[#allocation129_spill] sm:$0xff] %v4415_v47 }
  0x7a   :  { %917 = vmatpush1.bf16.msra.mxu0 %v4385_v26  ;;  %958 = vmatpush1.bf16.msra.mxu1 %v4389_v16 }
  0x7b   :  { %918 = vmatprep.subr.bf16.mxu0 %v4391_v14  ;;  %959 = vmatprep.subr.bf16.mxu1 %v4394_v0 }
  0x7e   :  { %919 = vmatpush1.bf16.msra.mxu0 %v4409_v63  ;;  %960 = vmatpush1.bf16.msra.mxu1 %v4413_v48 }
  0x7f   :  { %920 = vmatprep.subr.bf16.mxu0 %v4415_v47  ;;  %961 = vmatprep.subr.bf16.mxu1 %v4418_v42 }
  0x82   :  { %921 = vmatpush1.bf16.msra.mxu0 %v4421_v3  ;;  %962 = vmatpush1.bf16.msra.mxu1 %v4425_v2 }
  0x83   :  { %1044 = vmatprep.subr.bf16.mxu0 %v3667_v4  ;;  %1085 = vmatprep.subr.bf16.mxu1 %v3680_v9 }
  0x85   :  { %923 = vmatmul.mubr.bf16.vlgmr.msra.gmra.mrb[4].mxu0 %v6188_v49  ;;  %964 = vmatmul.mubr.bf16.vlgmr.msra.gmra.mrb[4].mxu1 %v6188_v49  ;;  %v6247_v49 = vld [vmem:[#allocation51_spill] sm:$0xff] }
  0x86   :  { %1045 = vmatpush1.bf16.msra.mxu0 %v3672_v6  ;;  %1086 = vmatpush1.bf16.msra.mxu1 %v3682_v10 }
  0x87   :  { %1046 = vmatprep.subr.bf16.mxu0 %v3684_v11  ;;  %1087 = vmatprep.subr.bf16.mxu1 %v3696_v15 }
  0x8a   :  { %1047 = vmatpush1.bf16.msra.mxu0 %v3709_v19  ;;  %1088 = vmatpush1.bf16.msra.mxu1 %v3713_v20 }
  0x8b   :  { %1048 = vmatprep.subr.bf16.mxu0 %v3715_v21  ;;  %1089 = vmatprep.subr.bf16.mxu1 %v3718_v22 }
  0x8e   :  { %1049 = vmatpush1.bf16.msra.mxu0 %v3733_v27  ;;  %1090 = vmatpush1.bf16.msra.mxu1 %v3737_v28 }
  0x8f   :  { %1050 = vmatprep.subr.bf16.mxu0 %v3739_v29  ;;  %1091 = vmatprep.subr.bf16.mxu1 %v3742_v30 }
  0x92   :  { %1051 = vmatpush1.bf16.msra.mxu0 %v3757_v35  ;;  %1092 = vmatpush1.bf16.msra.mxu1 %v3761_v36 }
  0x93   :  { %1052 = vmatprep.subr.bf16.mxu0 %v3763_v37  ;;  %1093 = vmatprep.subr.bf16.mxu1 %v3766_v38 }
  0x96   :  { %1053 = vmatpush1.bf16.msra.mxu0 %v3781_v43  ;;  %1094 = vmatpush1.bf16.msra.mxu1 %v3785_v44 }
  0x97   :  { %1054 = vmatprep.subr.bf16.mxu0 %v3787_v45  ;;  %1095 = vmatprep.subr.bf16.mxu1 %v3790_v46 }
  0x9a   :  { %1055 = vmatpush1.bf16.msra.mxu0 %v3805_v51  ;;  %1096 = vmatpush1.bf16.msra.mxu1 %v3809_v52 }
  0x9b   :  { %1056 = vmatprep.subr.bf16.mxu0 %v3811_v53  ;;  %1097 = vmatprep.subr.bf16.mxu1 %v3814_v54 }
  0x9e   :  { %1057 = vmatpush1.bf16.msra.mxu0 %v3829_v59  ;;  %1098 = vmatpush1.bf16.msra.mxu1 %v3833_v60 }
  0x9f   :  { %1058 = vmatprep.subr.bf16.mxu0 %v3835_v61  ;;  %1099 = vmatprep.subr.bf16.mxu1 %v3838_v62 }
  0xa2   :  { %1059 = vmatpush1.bf16.msra.mxu0 %v3853_v5  ;;  %1100 = vmatpush1.bf16.msra.mxu1 %v3857_v7 }
  0xa3   :  { %1060 = vmatprep.subr.bf16.mxu0 %v3859_v8  ;;  %1101 = vmatprep.subr.bf16.mxu1 %v3862_v12 }
  0xa6   :  { %1061 = vmatpush1.bf16.msra.mxu0 %v3877_v18  ;;  %1102 = vmatpush1.bf16.msra.mxu1 %v3881_v23 }
  0xa7   :  { %1062 = vmatprep.subr.bf16.mxu0 %v3883_v24  ;;  %1103 = vmatprep.subr.bf16.mxu1 %v3886_v25 }
  0xaa   :  { %1063 = vmatpush1.bf16.msra.mxu0 %v3901_v34  ;;  %1104 = vmatpush1.bf16.msra.mxu1 %v3905_v39 }
  0xab   :  { %1064 = vmatprep.subr.bf16.mxu0 %v3907_v40  ;;  %1105 = vmatprep.subr.bf16.mxu1 %v3910_v41 }
  0xae   :  { %1065 = vmatpush1.bf16.msra.mxu0 %v3925_v50  ;;  %1106 = vmatpush1.bf16.msra.mxu1 %v3929_v55  ;;  %v6255_v55 = vld [vmem:[#allocation59_spill] sm:$0xff] }
  0xaf   :  { %1066 = vmatprep.subr.bf16.mxu0 %v3931_v56  ;;  %1107 = vmatprep.subr.bf16.mxu1 %v3934_v57  ;;  %v6256_v56 = vld [vmem:[#allocation60_spill] sm:$0xff]  ;;  %v6257_v57 = vld [vmem:[#allocation61_spill] sm:$0xff] }
  0xb2   :  { %1067 = vmatpush1.bf16.msra.mxu0 %v6247_v49  ;;  %1108 = vmatpush1.bf16.msra.mxu1 %v6248_v31  ;;  %v6258_v49 = vld [vmem:[#allocation62_spill] sm:$0xff]  ;;  %v6259_v31 = vld [vmem:[#allocation63_spill] sm:$0xff] }
  0xb3   :  { %1068 = vmatprep.subr.bf16.mxu0 %v6249_v1  ;;  %1109 = vmatprep.subr.bf16.mxu1 %v6250_v13  ;;  %v6260_v1 = vld [vmem:[#allocation64_spill] sm:$0xff]  ;;  %v6261_v13 = vld [vmem:[#allocation65_spill] sm:$0xff] }
  0xb6   :  { %1069 = vmatpush1.bf16.msra.mxu0 %v6251_v17  ;;  %1110 = vmatpush1.bf16.msra.mxu1 %v6252_v32  ;;  %v6262_v17 = vld [vmem:[#allocation66_spill] sm:$0xff]  ;;  %v6263_v32 = vld [vmem:[#allocation67_spill] sm:$0xff] }
  0xb7   :  { %1070 = vmatprep.subr.bf16.mxu0 %v6253_v33  ;;  %1111 = vmatprep.subr.bf16.mxu1 %v6254_v58  ;;  %v6264_v33 = vld [vmem:[#allocation68_spill] sm:$0xff]  ;;  %v6265_v58 = vld [vmem:[#allocation69_spill] sm:$0xff] }
  0xba   :  { %1071 = vmatpush1.bf16.msra.mxu0 %v6255_v55  ;;  %1112 = vmatpush1.bf16.msra.mxu1 %v6256_v56  ;;  %v6266_v55 = vld [vmem:[#allocation70_spill] sm:$0xff] }
  0xbb   :  { %1072 = vmatprep.subr.bf16.mxu0 %v6257_v57  ;;  %1113 = vmatprep.subr.bf16.mxu1 %v6258_v49 }
  0xbe   :  { %1073 = vmatpush1.bf16.msra.mxu0 %v6259_v31  ;;  %1114 = vmatpush1.bf16.msra.mxu1 %v6260_v1 }
  0xbf   :  { %1074 = vmatprep.subr.bf16.mxu0 %v6261_v13  ;;  %1115 = vmatprep.subr.bf16.mxu1 %v6262_v17  ;;  %v158_v17 = vld [vmem:[%s5832_s0] sm:$0xff] }
  0xc2   :  { %1075 = vmatpush1.bf16.msra.mxu0 %v6263_v32  ;;  %1116 = vmatpush1.bf16.msra.mxu1 %v6264_v33  ;;  %v160_v33 = vld [vmem:[%s5832_s0 + $0x10] sm:$0xff] }
  0xc3   :  { %1126 = vmatprep.subr.bf16.mxu0 %v6265_v58  ;;  %1167 = vmatprep.subr.bf16.mxu1 %v6266_v55  ;;  %v159_v55 = vld [vmem:[%s5832_s0 + $0x8] sm:$0xff] }
 0x118   :  { %v842_v56 = vpop.f32.mrb[0].mxu0  ;;  %v883_v57 = vpop.f32.mrb[0].mxu1 }
 0x119   :  { %v844_v50 = vpop.f32.mrb[1].mxu0  ;;  %v885_v49 = vpop.f32.mrb[1].mxu1  ;;  %v972_v58 = vadd.f32 %v842_v56, %v158_v17 }
 0x11a   :  { %v846_v41 = vpop.f32.mrb[2].mxu0  ;;  %v887_v31 = vpop.f32.mrb[2].mxu1 }
 0x11b   :  { %v847_v40 = vpop.f32.mrb[3].mxu0  ;;  %v888_v1 = vpop.f32.mrb[3].mxu1  ;;  %v161_v41 = vld [vmem:[%s5832_s0 + $0x18] sm:$0xff]  ;;  %v974_v31 = vadd.f32 %v883_v57, %v160_v33  ;;  %v3148_v32 = vmul.f32 -1.442695, %v972_v58 }
 0x11c   :  { %v973_v40 = vadd.f32 %v844_v50, %v159_v55  ;;  %v975_v1 = vadd.f32 %v885_v49, %v161_v41  ;;  %v162_v50 = vld [vmem:[%s5832_s0 + $0x20] sm:$0xff]  ;;  %v164_v55 = vld [vmem:[%s5832_s0 + $0x30] sm:$0xff] }
 0x11d   :  { %v3150_v13 = vmul.f32 -1.442695, %v974_v31  ;;  %3342 = vpow2.f32 %v3148_v32 }
 0x11e   :  { %v3149_v39 = vmul.f32 -1.442695, %v973_v40  ;;  %v3151_v34 = vmul.f32 -1.442695, %v975_v1 }
 0x11f   :  { %3344 = vpow2.f32 %v3150_v13 }
 0x120   :  { %3346 = vpow2.f32 %v3149_v39 }
 0x121   :  { %3348 = vpow2.f32 %v3151_v34  ;;  %v163_v34 = vld [vmem:[%s5832_s0 + $0x28] sm:$0xff] }
 0x127   :  { %v3343_v25 = vpop.eup %3342 }
 0x128   :  { %v986_v56 = vadd.f32 1.0, %v3343_v25 }
 0x129   :  { %v3345_v24 = vpop.eup %3344 }
 0x12a   :  { %v3347_v23 = vpop.eup %3346  ;;  %v998_v17 = vadd.f32 1.0, %v3345_v24  ;;  %3350 = vrcp.f32 %v986_v56 }
 0x12b   :  { %v3349_v18 = vpop.eup %3348  ;;  %v987_v12 = vadd.f32 1.0, %v3347_v23  ;;  %v165_v23 = vld [vmem:[%s5832_s0 + $0x38] sm:$0xff] }
 0x12c   :  { %v999_v8 = vadd.f32 1.0, %v3349_v18  ;;  %3352 = vrcp.f32 %v998_v17 }
 0x12d   :  { %3354 = vrcp.f32 %v987_v12 }
 0x12e   :  { %3356 = vrcp.f32 %v999_v8 }
 0x134   :  { %v3351_v56 = vpop.eup %3350 }
 0x136   :  { %v3353_v12 = vpop.eup %3352 }
 0x137   :  { %v3355_v17 = vpop.eup %3354 }
 0x158   :  { %v924_v39 = vpop.f32.mrb[4].mxu0  ;;  %v965_v24 = vpop.f32.mrb[4].mxu1 }
 0x159   :  { %v976_v18 = vadd.f32 %v924_v39, %v162_v50  ;;  %v926_v25 = vpop.f32.mrb[5].mxu0  ;;  %v978_v57 = vadd.f32 %v965_v24, %v164_v55  ;;  %v967_v13 = vpop.f32.mrb[5].mxu1  ;;  %v1018_v55 = vmul.f32 0.0, %v3353_v12 }
 0x15a   :  { %v977_v49 = vadd.f32 %v926_v25, %v163_v34  ;;  %v928_v32 = vpop.f32.mrb[6].mxu0  ;;  %v979_v33 = vadd.f32 %v967_v13, %v165_v23  ;;  %v969_v58 = vpop.f32.mrb[6].mxu1 }
 0x15b   :  { %3358 = vtanh.f32 %v976_v18  ;;  %v929_v41 = vpop.f32.mrb[7].mxu0  ;;  %v3152_v31 = vmul.f32 -1.442695, %v978_v57  ;;  %v970_v40 = vpop.f32.mrb[7].mxu1 }
 0x15c   :  { %3360 = vtanh.f32 %v977_v49  ;;  %v3153_v1 = vmul.f32 -1.442695, %v979_v33  ;;  %v3357_v50 = vpop.eup %3356 }
 0x15d   :  { %3362 = vpow2.f32 %v3152_v31  ;;  %v1019_v24 = vmul.f32 0.0, %v3357_v50  ;;  %v6270_v50 = vld [vmem:[#allocation72_spill] sm:$0xff] }
 0x15e   :  { %3364 = vpow2.f32 %v3153_v1 }
 0x165   :  { %v3359_v39 = vpop.eup %3358 }
 0x166   :  { %v3361_v8 = vpop.eup %3360  ;;  %v1020_v34 = vmul.f32 %v3359_v39, %v3351_v56  ;;  %v6271_v39 = vld [vmem:[#allocation73_spill] sm:$0xff] }
 0x167   :  { %v1021_v25 = vmul.f32 %v3361_v8, %v3355_v17  ;;  %v3363_v18 = vpop.eup %3362  ;;  %v6269_v17 = vld [vmem:[#allocation71_spill] sm:$0xff]  ;;  %v6272_v8 = vld [vmem:[#allocation74_spill] sm:$0xff] }
 0x168   :  { %v4522_v23 = vadd.f32 %v1020_v34, %v1018_v55  ;;  %v3365_v13 = vpop.eup %3364  ;;  %v1012_v57 = vadd.f32 1.0, %v3363_v18  ;;  %v6273_v55 = vld [vmem:[#allocation75_spill] sm:$0xff]  ;;  %v6274_v34 = vld [vmem:[#allocation76_spill] sm:$0xff] }
 0x169   :  { %v4524_v49 = vadd.f32 %v1021_v25, %v1019_v24  ;;  %v1013_v32 = vadd.f32 1.0, %v3365_v13  ;;  %v6275_v24 = vld [vmem:[#allocation77_spill] sm:$0xff]  ;;  %v6276_v25 = vld [vmem:[#allocation78_spill] sm:$0xff]  ;;  %v6277_v18 = vld [vmem:[#allocation79_spill] sm:$0xff] }
 0x16a   :  { %3366 = vtanh.f32 %v4522_v23  ;;  %v6278_v13 = vld [vmem:[#allocation80_spill] sm:$0xff] }
 0x16b   :  { %3368 = vrcp.f32 %v1012_v57  ;;  %v6279_v57 = vld [vmem:[#allocation81_spill] sm:$0xff] }
 0x16c   :  { %3370 = vtanh.f32 %v4524_v49 }
 0x16d   :  { %3372 = vrcp.f32 %v1013_v32  ;;  %v6280_v32 = vld [vmem:[#allocation82_spill] sm:$0xff] }
 0x174   :  { %v3367_v33 = vpop.eup %3366 }
 0x175   :  { %v3369_v58 = vpop.eup %3368 }
 0x176   :  { %v3371_v41 = vpop.eup %3370  ;;  %v4528_v40 = vmul.f32 %v3369_v58, %v3367_v33  ;;  %v6281_v33 = vld [vmem:[#allocation83_spill] sm:$0xff]  ;;  %v6282_v58 = vld [vmem:[#allocation84_spill] sm:$0xff] }
 0x177   :  { %v3373_v31 = vpop.eup %3372 }
 0x178   :  { %6267 = vst [vmem:[#allocation133_spill] sm:$0xff] %v4528_v40  ;;  %v4530_v1 = vmul.f32 %v3373_v31, %v3371_v41  ;;  %v4536_v12 = vpack.c.bf16 %v4528_v40, %v4528_v40  ;;  %v6283_v41 = vld [vmem:[#allocation85_spill] sm:$0xff]  ;;  %v6284_v31 = vld [vmem:[#allocation86_spill] sm:$0xff]  ;;  %v6286_v40 = vld [vmem:[#allocation88_spill] sm:$0xff] }
 0x17a   :  { %6268 = vst [vmem:[#allocation134_spill] sm:$0xff] %v4530_v1  ;;  %v1043_v56 = vpack.c.bf16 %v4530_v1, %v4530_v1  ;;  %v6287_v1 = vld [vmem:[#allocation89_spill] sm:$0xff] }
 0x17c   :  { %1076 = vmatprep.mubr.bf16.mxu0 %v1043_v56  ;;  %1117 = vmatprep.mubr.bf16.mxu1 %v1043_v56 }
 0x17d   :  { %1077 = vmatmul.mubr.bf16.vlgmr.msra.gmra.mrb[8].mxu0 %v4536_v12  ;;  %1118 = vmatmul.mubr.bf16.vlgmr.msra.gmra.mrb[8].mxu1 %v4536_v12 }
 0x17e   :  { %1127 = vmatpush1.bf16.msra.mxu0 %v6269_v17  ;;  %1168 = vmatpush1.bf16.msra.mxu1 %v6270_v50 }
 0x17f   :  { %1158 = vmatprep.mubr.bf16.mxu0 %v1043_v56  ;;  %1199 = vmatprep.mubr.bf16.mxu1 %v1043_v56  ;;  %v6285_v56 = vld [vmem:[#allocation87_spill] sm:$0xff] }
 0x180   :  { %1128 = vmatprep.subr.bf16.mxu0 %v6271_v39  ;;  %1169 = vmatprep.subr.bf16.mxu1 %v6272_v8 }
 0x182   :  { %1129 = vmatpush1.bf16.msra.mxu0 %v6273_v55  ;;  %1170 = vmatpush1.bf16.msra.mxu1 %v6274_v34 }
 0x183   :  { %1130 = vmatprep.subr.bf16.mxu0 %v6275_v24  ;;  %1171 = vmatprep.subr.bf16.mxu1 %v6276_v25 }
 0x186   :  { %1131 = vmatpush1.bf16.msra.mxu0 %v6277_v18  ;;  %1172 = vmatpush1.bf16.msra.mxu1 %v6278_v13  ;;  %v6288_v18 = vld [vmem:[#allocation90_spill] sm:$0xff]  ;;  %v6289_v13 = vld [vmem:[#allocation91_spill] sm:$0xff] }
 0x187   :  { %1132 = vmatprep.subr.bf16.mxu0 %v6279_v57  ;;  %1173 = vmatprep.subr.bf16.mxu1 %v6280_v32  ;;  %v6290_v57 = vld [vmem:[#allocation92_spill] sm:$0xff]  ;;  %v6291_v32 = vld [vmem:[#allocation93_spill] sm:$0xff] }
 0x18a   :  { %1133 = vmatpush1.bf16.msra.mxu0 %v6281_v33  ;;  %1174 = vmatpush1.bf16.msra.mxu1 %v6282_v58  ;;  %v6292_v33 = vld [vmem:[#allocation94_spill] sm:$0xff]  ;;  %v6293_v58 = vld [vmem:[#allocation95_spill] sm:$0xff] }
 0x18b   :  { %1134 = vmatprep.subr.bf16.mxu0 %v6283_v41  ;;  %1175 = vmatprep.subr.bf16.mxu1 %v6284_v31  ;;  %v6294_v41 = vld [vmem:[#allocation96_spill] sm:$0xff]  ;;  %v6295_v31 = vld [vmem:[#allocation97_spill] sm:$0xff] }
 0x18e   :  { %1135 = vmatpush1.bf16.msra.mxu0 %v6285_v56  ;;  %1176 = vmatpush1.bf16.msra.mxu1 %v6286_v40  ;;  %v6296_v56 = vld [vmem:[#allocation98_spill] sm:$0xff]  ;;  %v6297_v40 = vld [vmem:[#allocation99_spill] sm:$0xff] }
 0x18f   :  { %1136 = vmatprep.subr.bf16.mxu0 %v6287_v1  ;;  %1177 = vmatprep.subr.bf16.mxu1 %v6288_v18  ;;  %v6298_v1 = vld [vmem:[#allocation100_spill] sm:$0xff]  ;;  %v6299_v18 = vld [vmem:[#allocation101_spill] sm:$0xff] }
 0x192   :  { %1137 = vmatpush1.bf16.msra.mxu0 %v6289_v13  ;;  %1178 = vmatpush1.bf16.msra.mxu1 %v6290_v57  ;;  %v6300_v13 = vld [vmem:[#allocation102_spill] sm:$0xff]  ;;  %v6301_v57 = vld [vmem:[#allocation103_spill] sm:$0xff] }
 0x193   :  { %1138 = vmatprep.subr.bf16.mxu0 %v6291_v32  ;;  %1179 = vmatprep.subr.bf16.mxu1 %v6292_v33  ;;  %v6302_v32 = vld [vmem:[#allocation104_spill] sm:$0xff]  ;;  %v6303_v33 = vld [vmem:[#allocation105_spill] sm:$0xff] }
 0x196   :  { %1139 = vmatpush1.bf16.msra.mxu0 %v6293_v58  ;;  %1180 = vmatpush1.bf16.msra.mxu1 %v6294_v41  ;;  %v6304_v58 = vld [vmem:[#allocation106_spill] sm:$0xff]  ;;  %v6305_v41 = vld [vmem:[#allocation107_spill] sm:$0xff] }
 0x197   :  { %1140 = vmatprep.subr.bf16.mxu0 %v6295_v31  ;;  %1181 = vmatprep.subr.bf16.mxu1 %v6296_v56  ;;  %v6306_v31 = vld [vmem:[#allocation108_spill] sm:$0xff]  ;;  %v6307_v56 = vld [vmem:[#allocation109_spill] sm:$0xff] }
 0x19a   :  { %1141 = vmatpush1.bf16.msra.mxu0 %v6297_v40  ;;  %1182 = vmatpush1.bf16.msra.mxu1 %v6298_v1  ;;  %v6308_v40 = vld [vmem:[#allocation110_spill] sm:$0xff]  ;;  %v6309_v1 = vld [vmem:[#allocation111_spill] sm:$0xff] }
 0x19b   :  { %1142 = vmatprep.subr.bf16.mxu0 %v6299_v18  ;;  %1183 = vmatprep.subr.bf16.mxu1 %v6300_v13  ;;  %v6310_v18 = vld [vmem:[#allocation112_spill] sm:$0xff]  ;;  %v6311_v13 = vld [vmem:[#allocation113_spill] sm:$0xff] }
 0x19e   :  { %1143 = vmatpush1.bf16.msra.mxu0 %v6301_v57  ;;  %1184 = vmatpush1.bf16.msra.mxu1 %v6302_v32  ;;  %v6312_v57 = vld [vmem:[#allocation114_spill] sm:$0xff]  ;;  %v6313_v32 = vld [vmem:[#allocation115_spill] sm:$0xff] }
 0x19f   :  { %1144 = vmatprep.subr.bf16.mxu0 %v6303_v33  ;;  %1185 = vmatprep.subr.bf16.mxu1 %v6304_v58  ;;  %v6314_v33 = vld [vmem:[#allocation116_spill] sm:$0xff]  ;;  %v6315_v58 = vld [vmem:[#allocation117_spill] sm:$0xff] }
 0x1a2   :  { %1145 = vmatpush1.bf16.msra.mxu0 %v6305_v41  ;;  %1186 = vmatpush1.bf16.msra.mxu1 %v6306_v31  ;;  %v6316_v41 = vld [vmem:[#allocation118_spill] sm:$0xff]  ;;  %v6317_v31 = vld [vmem:[#allocation119_spill] sm:$0xff] }
 0x1a3   :  { %1146 = vmatprep.subr.bf16.mxu0 %v6307_v56  ;;  %1187 = vmatprep.subr.bf16.mxu1 %v6308_v40  ;;  %v6318_v56 = vld [vmem:[#allocation120_spill] sm:$0xff]  ;;  %v6319_v40 = vld [vmem:[#allocation121_spill] sm:$0xff] }
 0x1a6   :  { %1147 = vmatpush1.bf16.msra.mxu0 %v6309_v1  ;;  %1188 = vmatpush1.bf16.msra.mxu1 %v6310_v18  ;;  %v6320_v1 = vld [vmem:[#allocation122_spill] sm:$0xff] }
 0x1a7   :  { %1148 = vmatprep.subr.bf16.mxu0 %v6311_v13  ;;  %1189 = vmatprep.subr.bf16.mxu1 %v6312_v57 }
 0x1aa   :  { %1149 = vmatpush1.bf16.msra.mxu0 %v6313_v32  ;;  %1190 = vmatpush1.bf16.msra.mxu1 %v6314_v33 }
 0x1ab   :  { %1150 = vmatprep.subr.bf16.mxu0 %v6315_v58  ;;  %1191 = vmatprep.subr.bf16.mxu1 %v6316_v41 }
 0x1ae   :  { %1151 = vmatpush1.bf16.msra.mxu0 %v6317_v31  ;;  %1192 = vmatpush1.bf16.msra.mxu1 %v6318_v56 }
 0x1af   :  { %1152 = vmatprep.subr.bf16.mxu0 %v6319_v40  ;;  %1193 = vmatprep.subr.bf16.mxu1 %v6320_v1 }
 0x1b2   :  { %1153 = vmatpush1.bf16.msra.mxu0 %v4385_v26  ;;  %1194 = vmatpush1.bf16.msra.mxu1 %v4389_v16 }
 0x1b3   :  { %1154 = vmatprep.subr.bf16.mxu0 %v4391_v14  ;;  %1195 = vmatprep.subr.bf16.mxu1 %v4394_v0 }
 0x1b6   :  { %1155 = vmatpush1.bf16.msra.mxu0 %v4409_v63  ;;  %1196 = vmatpush1.bf16.msra.mxu1 %v4413_v48 }
 0x1b7   :  { %1156 = vmatprep.subr.bf16.mxu0 %v4415_v47  ;;  %1197 = vmatprep.subr.bf16.mxu1 %v4418_v42 }
 0x1ba   :  { %1157 = vmatpush1.bf16.msra.mxu0 %v4421_v3  ;;  %1198 = vmatpush1.bf16.msra.mxu1 %v4425_v2 }
 0x1bb   :  { %1280 = vmatprep.subr.bf16.mxu0 %v3667_v4  ;;  %1321 = vmatprep.subr.bf16.mxu1 %v3680_v9 }
 0x1bd   :  { %1159 = vmatmul.mubr.bf16.vlgmr.msra.gmra.mrb[12].mxu0 %v4536_v12  ;;  %1200 = vmatmul.mubr.bf16.vlgmr.msra.gmra.mrb[12].mxu1 %v4536_v12  ;;  %v6321_v12 = vld [vmem:[#allocation37_spill] sm:$0xff] }
 0x1be   :  { %1281 = vmatpush1.bf16.msra.mxu0 %v3672_v6  ;;  %1322 = vmatpush1.bf16.msra.mxu1 %v3682_v10 }
 0x1bf   :  { %1282 = vmatprep.subr.bf16.mxu0 %v3684_v11  ;;  %1323 = vmatprep.subr.bf16.mxu1 %v3696_v15 }
 0x1c2   :  { %1283 = vmatpush1.bf16.msra.mxu0 %v3709_v19  ;;  %1324 = vmatpush1.bf16.msra.mxu1 %v3713_v20 }
 0x1c3   :  { %1284 = vmatprep.subr.bf16.mxu0 %v3715_v21  ;;  %1325 = vmatprep.subr.bf16.mxu1 %v3718_v22 }
 0x1c6   :  { %1285 = vmatpush1.bf16.msra.mxu0 %v3733_v27  ;;  %1326 = vmatpush1.bf16.msra.mxu1 %v3737_v28 }
 0x1c7   :  { %1286 = vmatprep.subr.bf16.mxu0 %v3739_v29  ;;  %1327 = vmatprep.subr.bf16.mxu1 %v3742_v30 }
 0x1ca   :  { %1287 = vmatpush1.bf16.msra.mxu0 %v3757_v35  ;;  %1328 = vmatpush1.bf16.msra.mxu1 %v3761_v36 }
 0x1cb   :  { %1288 = vmatprep.subr.bf16.mxu0 %v3763_v37  ;;  %1329 = vmatprep.subr.bf16.mxu1 %v3766_v38 }
 0x1ce   :  { %1289 = vmatpush1.bf16.msra.mxu0 %v3781_v43  ;;  %1330 = vmatpush1.bf16.msra.mxu1 %v3785_v44 }
 0x1cf   :  { %1290 = vmatprep.subr.bf16.mxu0 %v3787_v45  ;;  %1331 = vmatprep.subr.bf16.mxu1 %v3790_v46 }
 0x1d2   :  { %1291 = vmatpush1.bf16.msra.mxu0 %v3805_v51  ;;  %1332 = vmatpush1.bf16.msra.mxu1 %v3809_v52  ;;  %v6322_v51 = vld [vmem:[#allocation38_spill] sm:$0xff]  ;;  %v6323_v52 = vld [vmem:[#allocation39_spill] sm:$0xff] }
 0x1d3   :  { %1292 = vmatprep.subr.bf16.mxu0 %v3811_v53  ;;  %1333 = vmatprep.subr.bf16.mxu1 %v3814_v54  ;;  %v6324_v53 = vld [vmem:[#allocation40_spill] sm:$0xff]  ;;  %v6325_v54 = vld [vmem:[#allocation41_spill] sm:$0xff] }
 0x1d6   :  { %1293 = vmatpush1.bf16.msra.mxu0 %v3829_v59  ;;  %1334 = vmatpush1.bf16.msra.mxu1 %v3833_v60  ;;  %v6326_v59 = vld [vmem:[#allocation42_spill] sm:$0xff]  ;;  %v6327_v60 = vld [vmem:[#allocation43_spill] sm:$0xff] }
 0x1d7   :  { %1294 = vmatprep.subr.bf16.mxu0 %v3835_v61  ;;  %1335 = vmatprep.subr.bf16.mxu1 %v3838_v62  ;;  %v6328_v61 = vld [vmem:[#allocation44_spill] sm:$0xff]  ;;  %v6329_v62 = vld [vmem:[#allocation45_spill] sm:$0xff] }
 0x1da   :  { %1295 = vmatpush1.bf16.msra.mxu0 %v3853_v5  ;;  %1336 = vmatpush1.bf16.msra.mxu1 %v3857_v7  ;;  %v6330_v5 = vld [vmem:[#allocation46_spill] sm:$0xff]  ;;  %v6331_v7 = vld [vmem:[#allocation47_spill] sm:$0xff] }
 0x1db   :  { %1296 = vmatprep.subr.bf16.mxu0 %v6321_v12  ;;  %1337 = vmatprep.subr.bf16.mxu1 %v6322_v51  ;;  %v6332_v12 = vld [vmem:[#allocation48_spill] sm:$0xff]  ;;  %v6333_v51 = vld [vmem:[#allocation49_spill] sm:$0xff] }
 0x1de   :  { %1297 = vmatpush1.bf16.msra.mxu0 %v6323_v52  ;;  %1338 = vmatpush1.bf16.msra.mxu1 %v6324_v53  ;;  %v6334_v52 = vld [vmem:[#allocation50_spill] sm:$0xff]  ;;  %v6335_v53 = vld [vmem:[#allocation51_spill] sm:$0xff] }
 0x1df   :  { %1298 = vmatprep.subr.bf16.mxu0 %v6325_v54  ;;  %1339 = vmatprep.subr.bf16.mxu1 %v6326_v59  ;;  %v6336_v54 = vld [vmem:[#allocation52_spill] sm:$0xff]  ;;  %v6337_v59 = vld [vmem:[#allocation53_spill] sm:$0xff] }
 0x1e2   :  { %1299 = vmatpush1.bf16.msra.mxu0 %v6327_v60  ;;  %1340 = vmatpush1.bf16.msra.mxu1 %v6328_v61  ;;  %v6338_v60 = vld [vmem:[#allocation54_spill] sm:$0xff]  ;;  %v6339_v61 = vld [vmem:[#allocation55_spill] sm:$0xff] }
 0x1e3   :  { %1300 = vmatprep.subr.bf16.mxu0 %v6329_v62  ;;  %1341 = vmatprep.subr.bf16.mxu1 %v6330_v5  ;;  %v6340_v62 = vld [vmem:[#allocation56_spill] sm:$0xff]  ;;  %v6341_v5 = vld [vmem:[#allocation57_spill] sm:$0xff] }
 0x1e6   :  { %1301 = vmatpush1.bf16.msra.mxu0 %v6331_v7  ;;  %1342 = vmatpush1.bf16.msra.mxu1 %v6332_v12  ;;  %v6342_v7 = vld [vmem:[#allocation58_spill] sm:$0xff]  ;;  %v6343_v12 = vld [vmem:[#allocation59_spill] sm:$0xff] }
 0x1e7   :  { %1302 = vmatprep.subr.bf16.mxu0 %v6333_v51  ;;  %1343 = vmatprep.subr.bf16.mxu1 %v6334_v52  ;;  %v6344_v51 = vld [vmem:[#allocation60_spill] sm:$0xff]  ;;  %v6345_v52 = vld [vmem:[#allocation61_spill] sm:$0xff] }
 0x1ea   :  { %1303 = vmatpush1.bf16.msra.mxu0 %v6335_v53  ;;  %1344 = vmatpush1.bf16.msra.mxu1 %v6336_v54  ;;  %v6346_v53 = vld [vmem:[#allocation62_spill] sm:$0xff]  ;;  %v6347_v54 = vld [vmem:[#allocation63_spill] sm:$0xff] }
 0x1eb   :  { %1304 = vmatprep.subr.bf16.mxu0 %v6337_v59  ;;  %1345 = vmatprep.subr.bf16.mxu1 %v6338_v60  ;;  %v6348_v59 = vld [vmem:[#allocation64_spill] sm:$0xff]  ;;  %v6349_v60 = vld [vmem:[#allocation65_spill] sm:$0xff] }
 0x1ee   :  { %1305 = vmatpush1.bf16.msra.mxu0 %v6339_v61  ;;  %1346 = vmatpush1.bf16.msra.mxu1 %v6340_v62  ;;  %v6350_v61 = vld [vmem:[#allocation66_spill] sm:$0xff]  ;;  %v6351_v62 = vld [vmem:[#allocation67_spill] sm:$0xff] }
 0x1ef   :  { %1306 = vmatprep.subr.bf16.mxu0 %v6341_v5  ;;  %1347 = vmatprep.subr.bf16.mxu1 %v6342_v7  ;;  %v6352_v5 = vld [vmem:[#allocation68_spill] sm:$0xff]  ;;  %v6353_v7 = vld [vmem:[#allocation69_spill] sm:$0xff] }
 0x1f2   :  { %1307 = vmatpush1.bf16.msra.mxu0 %v6343_v12  ;;  %1348 = vmatpush1.bf16.msra.mxu1 %v6344_v51  ;;  %v6354_v12 = vld [vmem:[#allocation70_spill] sm:$0xff] }
 0x1f3   :  { %1308 = vmatprep.subr.bf16.mxu0 %v6345_v52  ;;  %1349 = vmatprep.subr.bf16.mxu1 %v6346_v53 }
 0x1f6   :  { %1309 = vmatpush1.bf16.msra.mxu0 %v6347_v54  ;;  %1350 = vmatpush1.bf16.msra.mxu1 %v6348_v59 }
 0x1f7   :  { %1310 = vmatprep.subr.bf16.mxu0 %v6349_v60  ;;  %1351 = vmatprep.subr.bf16.mxu1 %v6350_v61  ;;  %v3154_v61 = vld [vmem:[%s5832_s0 + $0x40] sm:$0xff] }
 0x1fa   :  { %1311 = vmatpush1.bf16.msra.mxu0 %v6351_v62  ;;  %1352 = vmatpush1.bf16.msra.mxu1 %v6352_v5  ;;  %v3156_v5 = vld [vmem:[%s5832_s0 + $0x50] sm:$0xff] }
 0x1fb   :  { %1362 = vmatprep.subr.bf16.mxu0 %v6353_v7  ;;  %1403 = vmatprep.subr.bf16.mxu1 %v6354_v12  ;;  %v3155_v12 = vld [vmem:[%s5832_s0 + $0x48] sm:$0xff] }
 0x250   :  { %v1078_v51 = vpop.f32.mrb[8].mxu0  ;;  %v1119_v52 = vpop.f32.mrb[8].mxu1 }
 0x251   :  { %v1080_v46 = vpop.f32.mrb[9].mxu0  ;;  %v1121_v53 = vpop.f32.mrb[9].mxu1  ;;  %v1208_v7 = vadd.f32 %v3154_v61, %v1078_v51 }
 0x252   :  { %v1082_v45 = vpop.f32.mrb[10].mxu0  ;;  %v1123_v54 = vpop.f32.mrb[10].mxu1 }
 0x253   :  { %v1083_v44 = vpop.f32.mrb[11].mxu0  ;;  %v1124_v59 = vpop.f32.mrb[11].mxu1  ;;  %v3157_v45 = vld [vmem:[%s5832_s0 + $0x58] sm:$0xff]  ;;  %v1210_v54 = vadd.f32 %v3156_v5, %v1119_v52  ;;  %v3162_v62 = vmul.f32 -1.442695, %v1208_v7  ;;  %v3160_v52 = vld [vmem:[%s5832_s0 + $0x70] sm:$0xff] }
 0x254   :  { %v1209_v44 = vadd.f32 %v3155_v12, %v1080_v46  ;;  %v1211_v59 = vadd.f32 %v3157_v45, %v1121_v53  ;;  %v3158_v46 = vld [vmem:[%s5832_s0 + $0x60] sm:$0xff] }
 0x255   :  { %v3164_v60 = vmul.f32 -1.442695, %v1210_v54  ;;  %3374 = vpow2.f32 %v3162_v62 }
 0x256   :  { %v3163_v43 = vmul.f32 -1.442695, %v1209_v44  ;;  %v3165_v38 = vmul.f32 -1.442695, %v1211_v59 }
 0x257   :  { %3376 = vpow2.f32 %v3164_v60 }
 0x258   :  { %3378 = vpow2.f32 %v3163_v43 }
 0x259   :  { %3380 = vpow2.f32 %v3165_v38  ;;  %v3159_v38 = vld [vmem:[%s5832_s0 + $0x68] sm:$0xff] }
 0x25f   :  { %v3375_v37 = vpop.eup %3374 }
 0x260   :  { %v1222_v51 = vadd.f32 1.0, %v3375_v37  ;;  %v3161_v37 = vld [vmem:[%s5832_s0 + $0x78] sm:$0xff] }
 0x261   :  { %v3377_v36 = vpop.eup %3376 }
 0x262   :  { %v3379_v35 = vpop.eup %3378  ;;  %v1234_v61 = vadd.f32 1.0, %v3377_v36  ;;  %3382 = vrcp.f32 %v1222_v51 }
 0x263   :  { %v3381_v30 = vpop.eup %3380  ;;  %v1223_v29 = vadd.f32 1.0, %v3379_v35 }
 0x264   :  { %v1235_v28 = vadd.f32 1.0, %v3381_v30  ;;  %3384 = vrcp.f32 %v1234_v61 }
 0x265   :  { %3386 = vrcp.f32 %v1223_v29 }
 0x266   :  { %3388 = vrcp.f32 %v1235_v28 }
 0x26c   :  { %v3383_v51 = vpop.eup %3382 }
 0x26e   :  { %v3385_v61 = vpop.eup %3384 }
 0x26f   :  { %v3387_v29 = vpop.eup %3386  ;;  %v1254_v28 = vmul.f32 %v3385_v61, %v4522_v23  ;;  %v6358_v61 = vld [vmem:[#allocation80_spill] sm:$0xff] }
 0x290   :  { %v1160_v35 = vpop.f32.mrb[12].mxu0  ;;  %v1201_v30 = vpop.f32.mrb[12].mxu1 }
 0x291   :  { %v1212_v36 = vadd.f32 %v3158_v46, %v1160_v35  ;;  %v1214_v43 = vadd.f32 %v3160_v52, %v1201_v30  ;;  %v1162_v53 = vpop.f32.mrb[13].mxu0  ;;  %v1203_v60 = vpop.f32.mrb[13].mxu1 }
 0x292   :  { %v1213_v62 = vadd.f32 %v3159_v38, %v1162_v53  ;;  %v1215_v5 = vadd.f32 %v3161_v37, %v1203_v60  ;;  %v1164_v7 = vpop.f32.mrb[14].mxu0  ;;  %v1205_v12 = vpop.f32.mrb[14].mxu1 }
 0x293   :  { %3390 = vtanh.f32 %v1212_v36  ;;  %v3166_v45 = vmul.f32 -1.442695, %v1214_v43  ;;  %v1165_v54 = vpop.f32.mrb[15].mxu0  ;;  %v1206_v44 = vpop.f32.mrb[15].mxu1 }
 0x294   :  { %3392 = vtanh.f32 %v1213_v62  ;;  %v3167_v59 = vmul.f32 -1.442695, %v1215_v5  ;;  %v3389_v46 = vpop.eup %3388 }
 0x295   :  { %3394 = vpow2.f32 %v3166_v45  ;;  %v1255_v30 = vmul.f32 %v3389_v46, %v4524_v49  ;;  %v6360_v46 = vld [vmem:[#allocation82_spill] sm:$0xff] }
 0x296   :  { %3396 = vpow2.f32 %v3167_v59 }
 0x29d   :  { %v3391_v52 = vpop.eup %3390 }
 0x29e   :  { %v3393_v35 = vpop.eup %3392  ;;  %v1256_v38 = vmul.f32 %v3391_v52, %v3383_v51  ;;  %v6357_v51 = vld [vmem:[#allocation79_spill] sm:$0xff] }
 0x29f   :  { %v3395_v37 = vpop.eup %3394  ;;  %v1257_v36 = vmul.f32 %v3393_v35, %v3387_v29  ;;  %v6359_v29 = vld [vmem:[#allocation81_spill] sm:$0xff]  ;;  %v6361_v52 = vld [vmem:[#allocation83_spill] sm:$0xff]  ;;  %v6362_v35 = vld [vmem:[#allocation84_spill] sm:$0xff] }
 0x2a0   :  { %v3397_v43 = vpop.eup %3396  ;;  %v4696_v53 = vadd.f32 %v1256_v38, %v1254_v28  ;;  %v1248_v60 = vadd.f32 1.0, %v3395_v37  ;;  %v6363_v28 = vld [vmem:[#allocation85_spill] sm:$0xff]  ;;  %v6364_v38 = vld [vmem:[#allocation86_spill] sm:$0xff]  ;;  %v6365_v37 = vld [vmem:[#allocation87_spill] sm:$0xff] }
 0x2a1   :  { %v4698_v62 = vadd.f32 %v1257_v36, %v1255_v30  ;;  %v1249_v5 = vadd.f32 1.0, %v3397_v43  ;;  %v6366_v30 = vld [vmem:[#allocation88_spill] sm:$0xff]  ;;  %v6367_v36 = vld [vmem:[#allocation89_spill] sm:$0xff]  ;;  %v6368_v43 = vld [vmem:[#allocation90_spill] sm:$0xff] }
 0x2a2   :  { %3398 = vtanh.f32 %v4696_v53 }
 0x2a3   :  { %3400 = vrcp.f32 %v1248_v60  ;;  %v6369_v60 = vld [vmem:[#allocation91_spill] sm:$0xff] }
 0x2a4   :  { %3402 = vtanh.f32 %v4698_v62 }
 0x2a5   :  { %3404 = vrcp.f32 %v1249_v5  ;;  %v6370_v5 = vld [vmem:[#allocation92_spill] sm:$0xff] }
 0x2ac   :  { %v3399_v7 = vpop.eup %3398 }
 0x2ad   :  { %v3401_v23 = vpop.eup %3400 }
 0x2ae   :  { %v3403_v12 = vpop.eup %3402  ;;  %v4702_v54 = vmul.f32 %v3401_v23, %v3399_v7  ;;  %v6371_v7 = vld [vmem:[#allocation93_spill] sm:$0xff]  ;;  %v6372_v23 = vld [vmem:[#allocation94_spill] sm:$0xff] }
 0x2af   :  { %v3405_v45 = vpop.eup %3404 }
 0x2b0   :  { %6355 = vst [vmem:[#allocation71_spill] sm:$0xff] %v4702_v54  ;;  %v4704_v49 = vmul.f32 %v3405_v45, %v3403_v12  ;;  %v4710_v59 = vpack.c.bf16 %v4702_v54, %v4702_v54  ;;  %v6373_v12 = vld [vmem:[#allocation95_spill] sm:$0xff]  ;;  %v6374_v45 = vld [vmem:[#allocation96_spill] sm:$0xff]  ;;  %v6376_v54 = vld [vmem:[#allocation98_spill] sm:$0xff] }
 0x2b2   :  { %6356 = vst [vmem:[#allocation72_spill] sm:$0xff] %v4704_v49  ;;  %v1279_v44 = vpack.c.bf16 %v4704_v49, %v4704_v49  ;;  %v6377_v49 = vld [vmem:[#allocation99_spill] sm:$0xff] }
 0x2b4   :  { %1312 = vmatprep.mubr.bf16.mxu0 %v1279_v44  ;;  %1353 = vmatprep.mubr.bf16.mxu1 %v1279_v44 }
 0x2b5   :  { %1313 = vmatmul.mubr.bf16.vlgmr.msra.gmra.mrb[16].mxu0 %v4710_v59  ;;  %1354 = vmatmul.mubr.bf16.vlgmr.msra.gmra.mrb[16].mxu1 %v4710_v59 }
 0x2b6   :  { %1363 = vmatpush1.bf16.msra.mxu0 %v6269_v17  ;;  %1404 = vmatpush1.bf16.msra.mxu1 %v6270_v50 }
 0x2b7   :  { %1394 = vmatprep.mubr.bf16.mxu0 %v1279_v44  ;;  %1435 = vmatprep.mubr.bf16.mxu1 %v1279_v44  ;;  %v6375_v44 = vld [vmem:[#allocation97_spill] sm:$0xff] }
 0x2b8   :  { %1364 = vmatprep.subr.bf16.mxu0 %v6271_v39  ;;  %1405 = vmatprep.subr.bf16.mxu1 %v6272_v8 }
 0x2ba   :  { %1365 = vmatpush1.bf16.msra.mxu0 %v6273_v55  ;;  %1406 = vmatpush1.bf16.msra.mxu1 %v6274_v34 }
 0x2bb   :  { %1366 = vmatprep.subr.bf16.mxu0 %v6275_v24  ;;  %1407 = vmatprep.subr.bf16.mxu1 %v6276_v25 }
 0x2be   :  { %1367 = vmatpush1.bf16.msra.mxu0 %v6357_v51  ;;  %1408 = vmatpush1.bf16.msra.mxu1 %v6358_v61 }
 0x2bf   :  { %1368 = vmatprep.subr.bf16.mxu0 %v6359_v29  ;;  %1409 = vmatprep.subr.bf16.mxu1 %v6360_v46 }
 0x2c2   :  { %1369 = vmatpush1.bf16.msra.mxu0 %v6361_v52  ;;  %1410 = vmatpush1.bf16.msra.mxu1 %v6362_v35 }
 0x2c3   :  { %1370 = vmatprep.subr.bf16.mxu0 %v6363_v28  ;;  %1411 = vmatprep.subr.bf16.mxu1 %v6364_v38 }
 0x2c6   :  { %1371 = vmatpush1.bf16.msra.mxu0 %v6365_v37  ;;  %1412 = vmatpush1.bf16.msra.mxu1 %v6366_v30 }
 0x2c7   :  { %1372 = vmatprep.subr.bf16.mxu0 %v6367_v36  ;;  %1413 = vmatprep.subr.bf16.mxu1 %v6368_v43  ;;  %v6378_v36 = vld [vmem:[#allocation100_spill] sm:$0xff]  ;;  %v6379_v43 = vld [vmem:[#allocation101_spill] sm:$0xff] }
 0x2ca   :  { %1373 = vmatpush1.bf16.msra.mxu0 %v6369_v60  ;;  %1414 = vmatpush1.bf16.msra.mxu1 %v6370_v5  ;;  %v6380_v60 = vld [vmem:[#allocation102_spill] sm:$0xff]  ;;  %v6381_v5 = vld [vmem:[#allocation103_spill] sm:$0xff] }
 0x2cb   :  { %1374 = vmatprep.subr.bf16.mxu0 %v6371_v7  ;;  %1415 = vmatprep.subr.bf16.mxu1 %v6372_v23  ;;  %v6382_v7 = vld [vmem:[#allocation104_spill] sm:$0xff]  ;;  %v6383_v23 = vld [vmem:[#allocation105_spill] sm:$0xff] }
 0x2ce   :  { %1375 = vmatpush1.bf16.msra.mxu0 %v6373_v12  ;;  %1416 = vmatpush1.bf16.msra.mxu1 %v6374_v45  ;;  %v6384_v12 = vld [vmem:[#allocation106_spill] sm:$0xff]  ;;  %v6385_v45 = vld [vmem:[#allocation107_spill] sm:$0xff] }
 0x2cf   :  { %1376 = vmatprep.subr.bf16.mxu0 %v6375_v44  ;;  %1417 = vmatprep.subr.bf16.mxu1 %v6376_v54  ;;  %v6386_v44 = vld [vmem:[#allocation108_spill] sm:$0xff]  ;;  %v6387_v54 = vld [vmem:[#allocation109_spill] sm:$0xff] }
 0x2d2   :  { %1377 = vmatpush1.bf16.msra.mxu0 %v6377_v49  ;;  %1418 = vmatpush1.bf16.msra.mxu1 %v6378_v36  ;;  %v6388_v49 = vld [vmem:[#allocation110_spill] sm:$0xff]  ;;  %v6389_v36 = vld [vmem:[#allocation111_spill] sm:$0xff] }
 0x2d3   :  { %1378 = vmatprep.subr.bf16.mxu0 %v6379_v43  ;;  %1419 = vmatprep.subr.bf16.mxu1 %v6380_v60 }
 0x2d6   :  { %1379 = vmatpush1.bf16.msra.mxu0 %v6381_v5  ;;  %1420 = vmatpush1.bf16.msra.mxu1 %v6382_v7 }
 0x2d7   :  { %1380 = vmatprep.subr.bf16.mxu0 %v6383_v23  ;;  %1421 = vmatprep.subr.bf16.mxu1 %v6384_v12 }
 0x2da   :  { %1381 = vmatpush1.bf16.msra.mxu0 %v6385_v45  ;;  %1422 = vmatpush1.bf16.msra.mxu1 %v6386_v44 }
 0x2db   :  { %1382 = vmatprep.subr.bf16.mxu0 %v6387_v54  ;;  %1423 = vmatprep.subr.bf16.mxu1 %v6388_v49 }
 0x2de   :  { %1383 = vmatpush1.bf16.msra.mxu0 %v6389_v36  ;;  %1424 = vmatpush1.bf16.msra.mxu1 %v6310_v18 }
 0x2df   :  { %1384 = vmatprep.subr.bf16.mxu0 %v6311_v13  ;;  %1425 = vmatprep.subr.bf16.mxu1 %v6312_v57 }
 0x2e2   :  { %1385 = vmatpush1.bf16.msra.mxu0 %v6313_v32  ;;  %1426 = vmatpush1.bf16.msra.mxu1 %v6314_v33 }
 0x2e3   :  { %1386 = vmatprep.subr.bf16.mxu0 %v6315_v58  ;;  %1427 = vmatprep.subr.bf16.mxu1 %v6316_v41 }
 0x2e6   :  { %1387 = vmatpush1.bf16.msra.mxu0 %v6317_v31  ;;  %1428 = vmatpush1.bf16.msra.mxu1 %v6318_v56 }
 0x2e7   :  { %1388 = vmatprep.subr.bf16.mxu0 %v6319_v40  ;;  %1429 = vmatprep.subr.bf16.mxu1 %v6320_v1 }
 0x2ea   :  { %1389 = vmatpush1.bf16.msra.mxu0 %v4385_v26  ;;  %1430 = vmatpush1.bf16.msra.mxu1 %v4389_v16 }
 0x2eb   :  { %1390 = vmatprep.subr.bf16.mxu0 %v4391_v14  ;;  %1431 = vmatprep.subr.bf16.mxu1 %v4394_v0 }
 0x2ee   :  { %1391 = vmatpush1.bf16.msra.mxu0 %v4409_v63  ;;  %1432 = vmatpush1.bf16.msra.mxu1 %v4413_v48 }
 0x2ef   :  { %1392 = vmatprep.subr.bf16.mxu0 %v4415_v47  ;;  %1433 = vmatprep.subr.bf16.mxu1 %v4418_v42 }
 0x2f2   :  { %1393 = vmatpush1.bf16.msra.mxu0 %v4421_v3  ;;  %1434 = vmatpush1.bf16.msra.mxu1 %v4425_v2 }
 0x2f3   :  { %1516 = vmatprep.subr.bf16.mxu0 %v3667_v4  ;;  %1557 = vmatprep.subr.bf16.mxu1 %v3680_v9  ;;  %v6390_v9 = vld [vmem:[#allocation16_spill] sm:$0xff] }
 0x2f5   :  { %1395 = vmatmul.mubr.bf16.vlgmr.msra.gmra.mrb[20].mxu0 %v4710_v59  ;;  %1436 = vmatmul.mubr.bf16.vlgmr.msra.gmra.mrb[20].mxu1 %v4710_v59  ;;  %v6391_v59 = vld [vmem:[#allocation17_spill] sm:$0xff] }
 0x2f6   :  { %1517 = vmatpush1.bf16.msra.mxu0 %v3672_v6  ;;  %1558 = vmatpush1.bf16.msra.mxu1 %v3682_v10  ;;  %v6392_v6 = vld [vmem:[#allocation18_spill] sm:$0xff]  ;;  %v6393_v10 = vld [vmem:[#allocation19_spill] sm:$0xff] }
 0x2f7   :  { %1518 = vmatprep.subr.bf16.mxu0 %v3684_v11  ;;  %1559 = vmatprep.subr.bf16.mxu1 %v3696_v15  ;;  %v6394_v11 = vld [vmem:[#allocation20_spill] sm:$0xff]  ;;  %v6395_v15 = vld [vmem:[#allocation21_spill] sm:$0xff] }
 0x2fa   :  { %1519 = vmatpush1.bf16.msra.mxu0 %v3709_v19  ;;  %1560 = vmatpush1.bf16.msra.mxu1 %v3713_v20  ;;  %v6396_v19 = vld [vmem:[#allocation22_spill] sm:$0xff]  ;;  %v6397_v20 = vld [vmem:[#allocation23_spill] sm:$0xff] }
 0x2fb   :  { %1520 = vmatprep.subr.bf16.mxu0 %v3715_v21  ;;  %1561 = vmatprep.subr.bf16.mxu1 %v3718_v22  ;;  %v6398_v21 = vld [vmem:[#allocation24_spill] sm:$0xff]  ;;  %v6399_v22 = vld [vmem:[#allocation25_spill] sm:$0xff] }
 0x2fe   :  { %1521 = vmatpush1.bf16.msra.mxu0 %v3733_v27  ;;  %1562 = vmatpush1.bf16.msra.mxu1 %v6390_v9  ;;  %v6400_v27 = vld [vmem:[#allocation26_spill] sm:$0xff]  ;;  %v6401_v9 = vld [vmem:[#allocation27_spill] sm:$0xff] }
 0x2ff   :  { %1522 = vmatprep.subr.bf16.mxu0 %v6391_v59  ;;  %1563 = vmatprep.subr.bf16.mxu1 %v6392_v6  ;;  %v6402_v59 = vld [vmem:[#allocation28_spill] sm:$0xff]  ;;  %v6403_v6 = vld [vmem:[#allocation29_spill] sm:$0xff] }
 0x302   :  { %1523 = vmatpush1.bf16.msra.mxu0 %v6393_v10  ;;  %1564 = vmatpush1.bf16.msra.mxu1 %v6394_v11  ;;  %v6404_v10 = vld [vmem:[#allocation30_spill] sm:$0xff]  ;;  %v6405_v11 = vld [vmem:[#allocation31_spill] sm:$0xff] }
 0x303   :  { %1524 = vmatprep.subr.bf16.mxu0 %v6395_v15  ;;  %1565 = vmatprep.subr.bf16.mxu1 %v6396_v19  ;;  %v6406_v15 = vld [vmem:[#allocation32_spill] sm:$0xff]  ;;  %v6407_v19 = vld [vmem:[#allocation33_spill] sm:$0xff] }
 0x306   :  { %1525 = vmatpush1.bf16.msra.mxu0 %v6397_v20  ;;  %1566 = vmatpush1.bf16.msra.mxu1 %v6398_v21  ;;  %v6408_v20 = vld [vmem:[#allocation34_spill] sm:$0xff]  ;;  %v6409_v21 = vld [vmem:[#allocation35_spill] sm:$0xff] }
 0x307   :  { %1526 = vmatprep.subr.bf16.mxu0 %v6399_v22  ;;  %1567 = vmatprep.subr.bf16.mxu1 %v6400_v27  ;;  %v6410_v22 = vld [vmem:[#allocation36_spill] sm:$0xff]  ;;  %v6411_v27 = vld [vmem:[#allocation37_spill] sm:$0xff] }
 0x30a   :  { %1527 = vmatpush1.bf16.msra.mxu0 %v6401_v9  ;;  %1568 = vmatpush1.bf16.msra.mxu1 %v6402_v59  ;;  %v6412_v9 = vld [vmem:[#allocation38_spill] sm:$0xff]  ;;  %v6413_v59 = vld [vmem:[#allocation39_spill] sm:$0xff] }
 0x30b   :  { %1528 = vmatprep.subr.bf16.mxu0 %v6403_v6  ;;  %1569 = vmatprep.subr.bf16.mxu1 %v6404_v10  ;;  %v6414_v6 = vld [vmem:[#allocation40_spill] sm:$0xff]  ;;  %v6415_v10 = vld [vmem:[#allocation41_spill] sm:$0xff] }
 0x30e   :  { %1529 = vmatpush1.bf16.msra.mxu0 %v6405_v11  ;;  %1570 = vmatpush1.bf16.msra.mxu1 %v6406_v15  ;;  %v6416_v11 = vld [vmem:[#allocation42_spill] sm:$0xff]  ;;  %v6417_v15 = vld [vmem:[#allocation43_spill] sm:$0xff] }
 0x30f   :  { %1530 = vmatprep.subr.bf16.mxu0 %v6407_v19  ;;  %1571 = vmatprep.subr.bf16.mxu1 %v6408_v20  ;;  %v6418_v19 = vld [vmem:[#allocation44_spill] sm:$0xff]  ;;  %v6419_v20 = vld [vmem:[#allocation45_spill] sm:$0xff] }
 0x312   :  { %1531 = vmatpush1.bf16.msra.mxu0 %v6409_v21  ;;  %1572 = vmatpush1.bf16.msra.mxu1 %v6410_v22  ;;  %v6420_v21 = vld [vmem:[#allocation46_spill] sm:$0xff]  ;;  %v6421_v22 = vld [vmem:[#allocation47_spill] sm:$0xff] }
 0x313   :  { %1532 = vmatprep.subr.bf16.mxu0 %v6411_v27  ;;  %1573 = vmatprep.subr.bf16.mxu1 %v6412_v9  ;;  %v6422_v27 = vld [vmem:[#allocation48_spill] sm:$0xff]  ;;  %v6423_v9 = vld [vmem:[#allocation49_spill] sm:$0xff] }
 0x316   :  { %1533 = vmatpush1.bf16.msra.mxu0 %v6413_v59  ;;  %1574 = vmatpush1.bf16.msra.mxu1 %v6414_v6  ;;  %v6424_v59 = vld [vmem:[#allocation50_spill] sm:$0xff]  ;;  %v6425_v6 = vld [vmem:[#allocation51_spill] sm:$0xff] }
 0x317   :  { %1534 = vmatprep.subr.bf16.mxu0 %v6415_v10  ;;  %1575 = vmatprep.subr.bf16.mxu1 %v6416_v11  ;;  %v6426_v10 = vld [vmem:[#allocation52_spill] sm:$0xff]  ;;  %v6427_v11 = vld [vmem:[#allocation53_spill] sm:$0xff] }
 0x31a   :  { %1535 = vmatpush1.bf16.msra.mxu0 %v6417_v15  ;;  %1576 = vmatpush1.bf16.msra.mxu1 %v6418_v19  ;;  %v6428_v15 = vld [vmem:[#allocation54_spill] sm:$0xff]  ;;  %v6429_v19 = vld [vmem:[#allocation55_spill] sm:$0xff] }
 0x31b   :  { %1536 = vmatprep.subr.bf16.mxu0 %v6419_v20  ;;  %1577 = vmatprep.subr.bf16.mxu1 %v6420_v21  ;;  %v6430_v20 = vld [vmem:[#allocation56_spill] sm:$0xff]  ;;  %v6431_v21 = vld [vmem:[#allocation57_spill] sm:$0xff] }
 0x31e   :  { %1537 = vmatpush1.bf16.msra.mxu0 %v6421_v22  ;;  %1578 = vmatpush1.bf16.msra.mxu1 %v6422_v27  ;;  %v6432_v22 = vld [vmem:[#allocation58_spill] sm:$0xff]  ;;  %v6433_v27 = vld [vmem:[#allocation59_spill] sm:$0xff] }
 0x31f   :  { %1538 = vmatprep.subr.bf16.mxu0 %v6423_v9  ;;  %1579 = vmatprep.subr.bf16.mxu1 %v6424_v59  ;;  %v6434_v9 = vld [vmem:[#allocation60_spill] sm:$0xff]  ;;  %v6435_v59 = vld [vmem:[#allocation61_spill] sm:$0xff] }
 0x322   :  { %1539 = vmatpush1.bf16.msra.mxu0 %v6425_v6  ;;  %1580 = vmatpush1.bf16.msra.mxu1 %v6426_v10  ;;  %v6436_v6 = vld [vmem:[#allocation62_spill] sm:$0xff]  ;;  %v6437_v10 = vld [vmem:[#allocation63_spill] sm:$0xff] }
 0x323   :  { %1540 = vmatprep.subr.bf16.mxu0 %v6427_v11  ;;  %1581 = vmatprep.subr.bf16.mxu1 %v6428_v15  ;;  %v6438_v11 = vld [vmem:[#allocation64_spill] sm:$0xff]  ;;  %v6439_v15 = vld [vmem:[#allocation65_spill] sm:$0xff] }
 0x326   :  { %1541 = vmatpush1.bf16.msra.mxu0 %v6429_v19  ;;  %1582 = vmatpush1.bf16.msra.mxu1 %v6430_v20  ;;  %v6440_v19 = vld [vmem:[#allocation66_spill] sm:$0xff]  ;;  %v6441_v20 = vld [vmem:[#allocation67_spill] sm:$0xff] }
 0x327   :  { %1542 = vmatprep.subr.bf16.mxu0 %v6431_v21  ;;  %1583 = vmatprep.subr.bf16.mxu1 %v6432_v22  ;;  %v6442_v21 = vld [vmem:[#allocation68_spill] sm:$0xff]  ;;  %v6443_v22 = vld [vmem:[#allocation69_spill] sm:$0xff] }
 0x32a   :  { %1543 = vmatpush1.bf16.msra.mxu0 %v6433_v27  ;;  %1584 = vmatpush1.bf16.msra.mxu1 %v6434_v9  ;;  %v6444_v27 = vld [vmem:[#allocation70_spill] sm:$0xff] }
 0x32b   :  { %1544 = vmatprep.subr.bf16.mxu0 %v6435_v59  ;;  %1585 = vmatprep.subr.bf16.mxu1 %v6436_v6 }
 0x32e   :  { %1545 = vmatpush1.bf16.msra.mxu0 %v6437_v10  ;;  %1586 = vmatpush1.bf16.msra.mxu1 %v6438_v11 }
 0x32f   :  { %1546 = vmatprep.subr.bf16.mxu0 %v6439_v15  ;;  %1587 = vmatprep.subr.bf16.mxu1 %v6440_v19  ;;  %v3168_v19 = vld [vmem:[%s5832_s0 + $0x80] sm:$0xff] }
 0x332   :  { %1547 = vmatpush1.bf16.msra.mxu0 %v6441_v20  ;;  %1588 = vmatpush1.bf16.msra.mxu1 %v6442_v21  ;;  %v3170_v21 = vld [vmem:[%s5832_s0 + $0x90] sm:$0xff] }
 0x333   :  { %1598 = vmatprep.subr.bf16.mxu0 %v6443_v22  ;;  %1639 = vmatprep.subr.bf16.mxu1 %v6444_v27  ;;  %v3169_v27 = vld [vmem:[%s5832_s0 + $0x88] sm:$0xff] }
 0x388   :  { %v1314_v9 = vpop.f32.mrb[16].mxu0  ;;  %v1355_v59 = vpop.f32.mrb[16].mxu1 }
 0x389   :  { %v1316_v4 = vpop.f32.mrb[17].mxu0  ;;  %v1357_v6 = vpop.f32.mrb[17].mxu1  ;;  %v1444_v22 = vadd.f32 %v3168_v19, %v1314_v9 }
 0x38a   :  { %v1318_v2 = vpop.f32.mrb[18].mxu0  ;;  %v1359_v10 = vpop.f32.mrb[18].mxu1 }
 0x38b   :  { %v1319_v3 = vpop.f32.mrb[19].mxu0  ;;  %v1360_v11 = vpop.f32.mrb[19].mxu1  ;;  %v3171_v2 = vld [vmem:[%s5832_s0 + $0x98] sm:$0xff]  ;;  %v1446_v10 = vadd.f32 %v3170_v21, %v1355_v59  ;;  %v3176_v20 = vmul.f32 -1.442695, %v1444_v22 }
 0x38c   :  { %v1445_v3 = vadd.f32 %v3169_v27, %v1316_v4  ;;  %v1447_v11 = vadd.f32 %v3171_v2, %v1357_v6  ;;  %v3172_v4 = vld [vmem:[%s5832_s0 + $0xa0] sm:$0xff]  ;;  %v3174_v6 = vld [vmem:[%s5832_s0 + $0xb0] sm:$0xff] }
 0x38d   :  { %v3178_v15 = vmul.f32 -1.442695, %v1446_v10  ;;  %3406 = vpow2.f32 %v3176_v20  ;;  %v3175_v20 = vld [vmem:[%s5832_s0 + $0xb8] sm:$0xff] }
 0x38e   :  { %v3177_v42 = vmul.f32 -1.442695, %v1445_v3  ;;  %v3179_v47 = vmul.f32 -1.442695, %v1447_v11 }
 0x38f   :  { %3408 = vpow2.f32 %v3178_v15  ;;  %v3173_v15 = vld [vmem:[%s5832_s0 + $0xa8] sm:$0xff] }
 0x390   :  { %3410 = vpow2.f32 %v3177_v42 }
 0x391   :  { %3412 = vpow2.f32 %v3179_v47 }
 0x397   :  { %v3407_v48 = vpop.eup %3406 }
 0x398   :  { %v1458_v9 = vadd.f32 1.0, %v3407_v48 }
 0x399   :  { %v3409_v63 = vpop.eup %3408 }
 0x39a   :  { %v3411_v0 = vpop.eup %3410  ;;  %v1470_v19 = vadd.f32 1.0, %v3409_v63  ;;  %3414 = vrcp.f32 %v1458_v9 }
 0x39b   :  { %v3413_v14 = vpop.eup %3412  ;;  %v1459_v16 = vadd.f32 1.0, %v3411_v0 }
 0x39c   :  { %v1471_v26 = vadd.f32 1.0, %v3413_v14  ;;  %3416 = vrcp.f32 %v1470_v19 }
 0x39d   :  { %3418 = vrcp.f32 %v1459_v16 }
 0x39e   :  { %3420 = vrcp.f32 %v1471_v26 }
 0x3a4   :  { %v3415_v9 = vpop.eup %3414 }
 0x3a6   :  { %v3417_v19 = vpop.eup %3416 }
 0x3a7   :  { %v3419_v16 = vpop.eup %3418  ;;  %v1490_v26 = vmul.f32 %v3417_v19, %v4696_v53  ;;  %v6448_v19 = vld [vmem:[#allocation90_spill] sm:$0xff] }
 0x3c8   :  { %v1396_v21 = vpop.f32.mrb[20].mxu0  ;;  %v1437_v22 = vpop.f32.mrb[20].mxu1 }
 0x3c9   :  { %v1448_v27 = vadd.f32 %v3172_v4, %v1396_v21  ;;  %v1450_v14 = vadd.f32 %v3174_v6, %v1437_v22  ;;  %v1398_v42 = vpop.f32.mrb[21].mxu0  ;;  %v1439_v47 = vpop.f32.mrb[21].mxu1 }
 0x3ca   :  { %v1449_v48 = vadd.f32 %v3173_v15, %v1398_v42  ;;  %v1451_v0 = vadd.f32 %v3175_v20, %v1439_v47  ;;  %v1400_v63 = vpop.f32.mrb[22].mxu0  ;;  %v1441_v59 = vpop.f32.mrb[22].mxu1 }
 0x3cb   :  { %3422 = vtanh.f32 %v1448_v27  ;;  %v3180_v2 = vmul.f32 -1.442695, %v1450_v14  ;;  %v1401_v10 = vpop.f32.mrb[23].mxu0  ;;  %v1442_v3 = vpop.f32.mrb[23].mxu1 }
 0x3cc   :  { %3424 = vtanh.f32 %v1449_v48  ;;  %v3181_v11 = vmul.f32 -1.442695, %v1451_v0  ;;  %v3421_v4 = vpop.eup %3420 }
 0x3cd   :  { %3426 = vpow2.f32 %v3180_v2  ;;  %v1491_v22 = vmul.f32 %v3421_v4, %v4698_v62  ;;  %v6450_v4 = vld [vmem:[#allocation92_spill] sm:$0xff] }
 0x3ce   :  { %3428 = vpow2.f32 %v3181_v11 }
 0x3d5   :  { %v3423_v6 = vpop.eup %3422 }
 0x3d6   :  { %v3425_v21 = vpop.eup %3424  ;;  %v1492_v15 = vmul.f32 %v3423_v6, %v3415_v9  ;;  %v6447_v9 = vld [vmem:[#allocation89_spill] sm:$0xff] }
 0x3d7   :  { %v3427_v20 = vpop.eup %3426  ;;  %v1493_v27 = vmul.f32 %v3425_v21, %v3419_v16  ;;  %v6449_v16 = vld [vmem:[#allocation91_spill] sm:$0xff]  ;;  %v6451_v6 = vld [vmem:[#allocation93_spill] sm:$0xff]  ;;  %v6452_v21 = vld [vmem:[#allocation94_spill] sm:$0xff] }
 0x3d8   :  { %v3429_v14 = vpop.eup %3428  ;;  %v4870_v42 = vadd.f32 %v1492_v15, %v1490_v26  ;;  %v1484_v47 = vadd.f32 1.0, %v3427_v20  ;;  %v6453_v26 = vld [vmem:[#allocation95_spill] sm:$0xff]  ;;  %v6454_v15 = vld [vmem:[#allocation96_spill] sm:$0xff]  ;;  %v6455_v20 = vld [vmem:[#allocation97_spill] sm:$0xff] }
 0x3d9   :  { %v4872_v48 = vadd.f32 %v1493_v27, %v1491_v22  ;;  %v1485_v0 = vadd.f32 1.0, %v3429_v14  ;;  %v6456_v22 = vld [vmem:[#allocation98_spill] sm:$0xff]  ;;  %v6457_v27 = vld [vmem:[#allocation99_spill] sm:$0xff]  ;;  %v6458_v14 = vld [vmem:[#allocation100_spill] sm:$0xff] }
 0x3da   :  { %3430 = vtanh.f32 %v4870_v42 }
 0x3db   :  { %3432 = vrcp.f32 %v1484_v47  ;;  %v6459_v47 = vld [vmem:[#allocation123_spill] sm:$0xff] }
 0x3dc   :  { %3434 = vtanh.f32 %v4872_v48 }
 0x3dd   :  { %3436 = vrcp.f32 %v1485_v0  ;;  %v6460_v0 = vld [vmem:[#allocation124_spill] sm:$0xff] }
 0x3e4   :  { %v3431_v63 = vpop.eup %3430 }
 0x3e5   :  { %v3433_v53 = vpop.eup %3432 }
 0x3e6   :  { %v3435_v59 = vpop.eup %3434  ;;  %v4876_v10 = vmul.f32 %v3433_v53, %v3431_v63  ;;  %v6461_v63 = vld [vmem:[#allocation125_spill] sm:$0xff]  ;;  %v6462_v53 = vld [vmem:[#allocation126_spill] sm:$0xff] }
 0x3e7   :  { %v3437_v2 = vpop.eup %3436 }
 0x3e8   :  { %6445 = vst [vmem:[#allocation73_spill] sm:$0xff] %v4876_v10  ;;  %v4878_v62 = vmul.f32 %v3437_v2, %v3435_v59  ;;  %v4884_v11 = vpack.c.bf16 %v4876_v10, %v4876_v10  ;;  %v6463_v59 = vld [vmem:[#allocation127_spill] sm:$0xff]  ;;  %v6464_v2 = vld [vmem:[#allocation128_spill] sm:$0xff]  ;;  %v6466_v10 = vld [vmem:[#allocation130_spill] sm:$0xff] }
 0x3ea   :  { %6446 = vst [vmem:[#allocation74_spill] sm:$0xff] %v4878_v62  ;;  %v1515_v3 = vpack.c.bf16 %v4878_v62, %v4878_v62  ;;  %v6467_v62 = vld [vmem:[#allocation131_spill] sm:$0xff] }
 0x3ec   :  { %1548 = vmatprep.mubr.bf16.mxu0 %v1515_v3  ;;  %1589 = vmatprep.mubr.bf16.mxu1 %v1515_v3 }
 0x3ed   :  { %1549 = vmatmul.mubr.bf16.vlgmr.msra.gmra.mrb[24].mxu0 %v4884_v11  ;;  %1590 = vmatmul.mubr.bf16.vlgmr.msra.gmra.mrb[24].mxu1 %v4884_v11 }
 0x3ee   :  { %1599 = vmatpush1.bf16.msra.mxu0 %v6269_v17  ;;  %1640 = vmatpush1.bf16.msra.mxu1 %v6270_v50 }
 0x3ef   :  { %1630 = vmatprep.mubr.bf16.mxu0 %v1515_v3  ;;  %1671 = vmatprep.mubr.bf16.mxu1 %v1515_v3  ;;  %v6465_v3 = vld [vmem:[#allocation129_spill] sm:$0xff] }
 0x3f0   :  { %1600 = vmatprep.subr.bf16.mxu0 %v6271_v39  ;;  %1641 = vmatprep.subr.bf16.mxu1 %v6272_v8 }
 0x3f2   :  { %1601 = vmatpush1.bf16.msra.mxu0 %v6273_v55  ;;  %1642 = vmatpush1.bf16.msra.mxu1 %v6274_v34 }
 0x3f3   :  { %1602 = vmatprep.subr.bf16.mxu0 %v6275_v24  ;;  %1643 = vmatprep.subr.bf16.mxu1 %v6276_v25 }
 0x3f6   :  { %1603 = vmatpush1.bf16.msra.mxu0 %v6357_v51  ;;  %1644 = vmatpush1.bf16.msra.mxu1 %v6358_v61 }
 0x3f7   :  { %1604 = vmatprep.subr.bf16.mxu0 %v6359_v29  ;;  %1645 = vmatprep.subr.bf16.mxu1 %v6360_v46 }
 0x3fa   :  { %1605 = vmatpush1.bf16.msra.mxu0 %v6361_v52  ;;  %1646 = vmatpush1.bf16.msra.mxu1 %v6362_v35 }
 0x3fb   :  { %1606 = vmatprep.subr.bf16.mxu0 %v6363_v28  ;;  %1647 = vmatprep.subr.bf16.mxu1 %v6364_v38 }
 0x3fe   :  { %1607 = vmatpush1.bf16.msra.mxu0 %v6365_v37  ;;  %1648 = vmatpush1.bf16.msra.mxu1 %v6366_v30 }
 0x3ff   :  { %1608 = vmatprep.subr.bf16.mxu0 %v6447_v9  ;;  %1649 = vmatprep.subr.bf16.mxu1 %v6448_v19 }
 0x402   :  { %1609 = vmatpush1.bf16.msra.mxu0 %v6449_v16  ;;  %1650 = vmatpush1.bf16.msra.mxu1 %v6450_v4 }
 0x403   :  { %1610 = vmatprep.subr.bf16.mxu0 %v6451_v6  ;;  %1651 = vmatprep.subr.bf16.mxu1 %v6452_v21 }
 0x406   :  { %1611 = vmatpush1.bf16.msra.mxu0 %v6453_v26  ;;  %1652 = vmatpush1.bf16.msra.mxu1 %v6454_v15 }
 0x407   :  { %1612 = vmatprep.subr.bf16.mxu0 %v6455_v20  ;;  %1653 = vmatprep.subr.bf16.mxu1 %v6456_v22 }
 0x40a   :  { %1613 = vmatpush1.bf16.msra.mxu0 %v6457_v27  ;;  %1654 = vmatpush1.bf16.msra.mxu1 %v6458_v14 }
 0x40b   :  { %1614 = vmatprep.subr.bf16.mxu0 %v6379_v43  ;;  %1655 = vmatprep.subr.bf16.mxu1 %v6380_v60 }
 0x40e   :  { %1615 = vmatpush1.bf16.msra.mxu0 %v6381_v5  ;;  %1656 = vmatpush1.bf16.msra.mxu1 %v6382_v7 }
 0x40f   :  { %1616 = vmatprep.subr.bf16.mxu0 %v6383_v23  ;;  %1657 = vmatprep.subr.bf16.mxu1 %v6384_v12 }
 0x412   :  { %1617 = vmatpush1.bf16.msra.mxu0 %v6385_v45  ;;  %1658 = vmatpush1.bf16.msra.mxu1 %v6386_v44 }
 0x413   :  { %1618 = vmatprep.subr.bf16.mxu0 %v6387_v54  ;;  %1659 = vmatprep.subr.bf16.mxu1 %v6388_v49 }
 0x416   :  { %1619 = vmatpush1.bf16.msra.mxu0 %v6389_v36  ;;  %1660 = vmatpush1.bf16.msra.mxu1 %v6310_v18 }
 0x417   :  { %1620 = vmatprep.subr.bf16.mxu0 %v6311_v13  ;;  %1661 = vmatprep.subr.bf16.mxu1 %v6312_v57 }
 0x41a   :  { %1621 = vmatpush1.bf16.msra.mxu0 %v6313_v32  ;;  %1662 = vmatpush1.bf16.msra.mxu1 %v6314_v33 }
 0x41b   :  { %1622 = vmatprep.subr.bf16.mxu0 %v6315_v58  ;;  %1663 = vmatprep.subr.bf16.mxu1 %v6316_v41 }
 0x41e   :  { %1623 = vmatpush1.bf16.msra.mxu0 %v6317_v31  ;;  %1664 = vmatpush1.bf16.msra.mxu1 %v6318_v56 }
 0x41f   :  { %1624 = vmatprep.subr.bf16.mxu0 %v6319_v40  ;;  %1665 = vmatprep.subr.bf16.mxu1 %v6320_v1  ;;  %v6468_v40 = vld [vmem:[#allocation132_spill] sm:$0xff]  ;;  %v6469_v1 = vld [vmem:[#allocation5_spill] sm:$0xff] }
 0x422   :  { %1625 = vmatpush1.bf16.msra.mxu0 %v6459_v47  ;;  %1666 = vmatpush1.bf16.msra.mxu1 %v6460_v0  ;;  %v6470_v47 = vld [vmem:[#allocation7_spill] sm:$0xff] }
 0x423   :  { %1626 = vmatprep.subr.bf16.mxu0 %v6461_v63  ;;  %1667 = vmatprep.subr.bf16.mxu1 %v6462_v53  ;;  %v6471_v53 = vld [vmem:[#allocation6_spill] sm:$0xff]  ;;  %v6480_v63 = vld [vmem:[#allocation16_spill] sm:$0xff] }
 0x426   :  { %1627 = vmatpush1.bf16.msra.mxu0 %v6463_v59  ;;  %1668 = vmatpush1.bf16.msra.mxu1 %v6464_v2  ;;  %v6472_v59 = vld [vmem:[#allocation8_spill] sm:$0xff]  ;;  %v6473_v2 = vld [vmem:[#allocation9_spill] sm:$0xff] }
 0x427   :  { %1628 = vmatprep.subr.bf16.mxu0 %v6465_v3  ;;  %1669 = vmatprep.subr.bf16.mxu1 %v6466_v10  ;;  %v6474_v3 = vld [vmem:[#allocation10_spill] sm:$0xff]  ;;  %v6475_v10 = vld [vmem:[#allocation11_spill] sm:$0xff] }
 0x42a   :  { %1629 = vmatpush1.bf16.msra.mxu0 %v6467_v62  ;;  %1670 = vmatpush1.bf16.msra.mxu1 %v6468_v40  ;;  %v6476_v62 = vld [vmem:[#allocation12_spill] sm:$0xff]  ;;  %v6477_v40 = vld [vmem:[#allocation13_spill] sm:$0xff] }
 0x42b   :  { %1752 = vmatprep.subr.bf16.mxu0 %v6469_v1  ;;  %1793 = vmatprep.subr.bf16.mxu1 %v6470_v47  ;;  %v6478_v1 = vld [vmem:[#allocation14_spill] sm:$0xff]  ;;  %v6479_v47 = vld [vmem:[#allocation15_spill] sm:$0xff] }
 0x42d   :  { %1631 = vmatmul.mubr.bf16.vlgmr.msra.gmra.mrb[28].mxu0 %v4884_v11  ;;  %1672 = vmatmul.mubr.bf16.vlgmr.msra.gmra.mrb[28].mxu1 %v4884_v11  ;;  %v6481_v11 = vld [vmem:[#allocation17_spill] sm:$0xff] }
 0x42e   :  { %1753 = vmatpush1.bf16.msra.mxu0 %v6471_v53  ;;  %1794 = vmatpush1.bf16.msra.mxu1 %v6472_v59  ;;  %v6482_v53 = vld [vmem:[#allocation18_spill] sm:$0xff]  ;;  %v6483_v59 = vld [vmem:[#allocation19_spill] sm:$0xff] }
 0x42f   :  { %1754 = vmatprep.subr.bf16.mxu0 %v6473_v2  ;;  %1795 = vmatprep.subr.bf16.mxu1 %v6474_v3  ;;  %v6484_v2 = vld [vmem:[#allocation20_spill] sm:$0xff]  ;;  %v6485_v3 = vld [vmem:[#allocation21_spill] sm:$0xff] }
 0x432   :  { %1755 = vmatpush1.bf16.msra.mxu0 %v6475_v10  ;;  %1796 = vmatpush1.bf16.msra.mxu1 %v6476_v62  ;;  %v6486_v10 = vld [vmem:[#allocation22_spill] sm:$0xff]  ;;  %v6487_v62 = vld [vmem:[#allocation23_spill] sm:$0xff] }
 0x433   :  { %1756 = vmatprep.subr.bf16.mxu0 %v6477_v40  ;;  %1797 = vmatprep.subr.bf16.mxu1 %v6478_v1  ;;  %v6488_v40 = vld [vmem:[#allocation24_spill] sm:$0xff]  ;;  %v6489_v1 = vld [vmem:[#allocation25_spill] sm:$0xff] }
 0x436   :  { %1757 = vmatpush1.bf16.msra.mxu0 %v6479_v47  ;;  %1798 = vmatpush1.bf16.msra.mxu1 %v6480_v63  ;;  %v6490_v47 = vld [vmem:[#allocation26_spill] sm:$0xff]  ;;  %v6491_v63 = vld [vmem:[#allocation27_spill] sm:$0xff] }
 0x437   :  { %1758 = vmatprep.subr.bf16.mxu0 %v6481_v11  ;;  %1799 = vmatprep.subr.bf16.mxu1 %v6482_v53  ;;  %v6492_v11 = vld [vmem:[#allocation28_spill] sm:$0xff]  ;;  %v6493_v53 = vld [vmem:[#allocation29_spill] sm:$0xff] }
 0x43a   :  { %1759 = vmatpush1.bf16.msra.mxu0 %v6483_v59  ;;  %1800 = vmatpush1.bf16.msra.mxu1 %v6484_v2  ;;  %v6494_v59 = vld [vmem:[#allocation30_spill] sm:$0xff]  ;;  %v6495_v2 = vld [vmem:[#allocation31_spill] sm:$0xff] }
 0x43b   :  { %1760 = vmatprep.subr.bf16.mxu0 %v6485_v3  ;;  %1801 = vmatprep.subr.bf16.mxu1 %v6486_v10  ;;  %v6496_v3 = vld [vmem:[#allocation32_spill] sm:$0xff]  ;;  %v6497_v10 = vld [vmem:[#allocation33_spill] sm:$0xff] }
 0x43e   :  { %1761 = vmatpush1.bf16.msra.mxu0 %v6487_v62  ;;  %1802 = vmatpush1.bf16.msra.mxu1 %v6488_v40  ;;  %v6498_v62 = vld [vmem:[#allocation34_spill] sm:$0xff]  ;;  %v6499_v40 = vld [vmem:[#allocation35_spill] sm:$0xff] }
 0x43f   :  { %1762 = vmatprep.subr.bf16.mxu0 %v6489_v1  ;;  %1803 = vmatprep.subr.bf16.mxu1 %v6490_v47  ;;  %v6500_v1 = vld [vmem:[#allocation36_spill] sm:$0xff]  ;;  %v6501_v47 = vld [vmem:[#allocation37_spill] sm:$0xff] }
 0x442   :  { %1763 = vmatpush1.bf16.msra.mxu0 %v6491_v63  ;;  %1804 = vmatpush1.bf16.msra.mxu1 %v6492_v11  ;;  %v6502_v63 = vld [vmem:[#allocation38_spill] sm:$0xff]  ;;  %v6503_v11 = vld [vmem:[#allocation39_spill] sm:$0xff] }
 0x443   :  { %1764 = vmatprep.subr.bf16.mxu0 %v6493_v53  ;;  %1805 = vmatprep.subr.bf16.mxu1 %v6494_v59  ;;  %v6504_v53 = vld [vmem:[#allocation40_spill] sm:$0xff]  ;;  %v6505_v59 = vld [vmem:[#allocation41_spill] sm:$0xff] }
 0x446   :  { %1765 = vmatpush1.bf16.msra.mxu0 %v6495_v2  ;;  %1806 = vmatpush1.bf16.msra.mxu1 %v6496_v3  ;;  %v6506_v2 = vld [vmem:[#allocation42_spill] sm:$0xff]  ;;  %v6507_v3 = vld [vmem:[#allocation43_spill] sm:$0xff] }
 0x447   :  { %1766 = vmatprep.subr.bf16.mxu0 %v6497_v10  ;;  %1807 = vmatprep.subr.bf16.mxu1 %v6498_v62  ;;  %v6508_v10 = vld [vmem:[#allocation44_spill] sm:$0xff]  ;;  %v6509_v62 = vld [vmem:[#allocation45_spill] sm:$0xff] }
 0x44a   :  { %1767 = vmatpush1.bf16.msra.mxu0 %v6499_v40  ;;  %1808 = vmatpush1.bf16.msra.mxu1 %v6500_v1  ;;  %v6510_v40 = vld [vmem:[#allocation46_spill] sm:$0xff]  ;;  %v6511_v1 = vld [vmem:[#allocation47_spill] sm:$0xff] }
 0x44b   :  { %1768 = vmatprep.subr.bf16.mxu0 %v6501_v47  ;;  %1809 = vmatprep.subr.bf16.mxu1 %v6502_v63  ;;  %v6512_v47 = vld [vmem:[#allocation48_spill] sm:$0xff]  ;;  %v6513_v63 = vld [vmem:[#allocation49_spill] sm:$0xff] }
 0x44e   :  { %1769 = vmatpush1.bf16.msra.mxu0 %v6503_v11  ;;  %1810 = vmatpush1.bf16.msra.mxu1 %v6504_v53  ;;  %v6514_v11 = vld [vmem:[#allocation50_spill] sm:$0xff]  ;;  %v6515_v53 = vld [vmem:[#allocation51_spill] sm:$0xff] }
 0x44f   :  { %1770 = vmatprep.subr.bf16.mxu0 %v6505_v59  ;;  %1811 = vmatprep.subr.bf16.mxu1 %v6506_v2  ;;  %v6516_v59 = vld [vmem:[#allocation52_spill] sm:$0xff]  ;;  %v6517_v2 = vld [vmem:[#allocation53_spill] sm:$0xff] }
 0x452   :  { %1771 = vmatpush1.bf16.msra.mxu0 %v6507_v3  ;;  %1812 = vmatpush1.bf16.msra.mxu1 %v6508_v10  ;;  %v6518_v3 = vld [vmem:[#allocation54_spill] sm:$0xff]  ;;  %v6519_v10 = vld [vmem:[#allocation55_spill] sm:$0xff] }
 0x453   :  { %1772 = vmatprep.subr.bf16.mxu0 %v6509_v62  ;;  %1813 = vmatprep.subr.bf16.mxu1 %v6510_v40  ;;  %v6520_v62 = vld [vmem:[#allocation56_spill] sm:$0xff]  ;;  %v6521_v40 = vld [vmem:[#allocation57_spill] sm:$0xff] }
 0x456   :  { %1773 = vmatpush1.bf16.msra.mxu0 %v6511_v1  ;;  %1814 = vmatpush1.bf16.msra.mxu1 %v6512_v47  ;;  %v6522_v1 = vld [vmem:[#allocation58_spill] sm:$0xff]  ;;  %v6523_v47 = vld [vmem:[#allocation59_spill] sm:$0xff] }
 0x457   :  { %1774 = vmatprep.subr.bf16.mxu0 %v6513_v63  ;;  %1815 = vmatprep.subr.bf16.mxu1 %v6514_v11  ;;  %v6524_v63 = vld [vmem:[#allocation60_spill] sm:$0xff]  ;;  %v6525_v11 = vld [vmem:[#allocation61_spill] sm:$0xff] }
 0x45a   :  { %1775 = vmatpush1.bf16.msra.mxu0 %v6515_v53  ;;  %1816 = vmatpush1.bf16.msra.mxu1 %v6516_v59  ;;  %v6526_v53 = vld [vmem:[#allocation62_spill] sm:$0xff]  ;;  %v6527_v59 = vld [vmem:[#allocation63_spill] sm:$0xff] }
 0x45b   :  { %1776 = vmatprep.subr.bf16.mxu0 %v6517_v2  ;;  %1817 = vmatprep.subr.bf16.mxu1 %v6518_v3  ;;  %v6528_v2 = vld [vmem:[#allocation64_spill] sm:$0xff]  ;;  %v6529_v3 = vld [vmem:[#allocation65_spill] sm:$0xff] }
 0x45e   :  { %1777 = vmatpush1.bf16.msra.mxu0 %v6519_v10  ;;  %1818 = vmatpush1.bf16.msra.mxu1 %v6520_v62  ;;  %v6530_v10 = vld [vmem:[#allocation66_spill] sm:$0xff]  ;;  %v6531_v62 = vld [vmem:[#allocation67_spill] sm:$0xff] }
 0x45f   :  { %1778 = vmatprep.subr.bf16.mxu0 %v6521_v40  ;;  %1819 = vmatprep.subr.bf16.mxu1 %v6522_v1  ;;  %v6532_v40 = vld [vmem:[#allocation68_spill] sm:$0xff]  ;;  %v6533_v1 = vld [vmem:[#allocation69_spill] sm:$0xff] }
 0x462   :  { %1779 = vmatpush1.bf16.msra.mxu0 %v6523_v47  ;;  %1820 = vmatpush1.bf16.msra.mxu1 %v6524_v63  ;;  %v6534_v47 = vld [vmem:[#allocation70_spill] sm:$0xff] }
 0x463   :  { %1780 = vmatprep.subr.bf16.mxu0 %v6525_v11  ;;  %1821 = vmatprep.subr.bf16.mxu1 %v6526_v53 }
 0x466   :  { %1781 = vmatpush1.bf16.msra.mxu0 %v6527_v59  ;;  %1822 = vmatpush1.bf16.msra.mxu1 %v6528_v2 }
 0x467   :  { %1782 = vmatprep.subr.bf16.mxu0 %v6529_v3  ;;  %1823 = vmatprep.subr.bf16.mxu1 %v6530_v10  ;;  %v3182_v10 = vld [vmem:[%s5832_s0 + $0xc0] sm:$0xff] }
 0x46a   :  { %1783 = vmatpush1.bf16.msra.mxu0 %v6531_v62  ;;  %1824 = vmatpush1.bf16.msra.mxu1 %v6532_v40  ;;  %v3184_v40 = vld [vmem:[%s5832_s0 + $0xd0] sm:$0xff] }
 0x46b   :  { %1834 = vmatprep.subr.bf16.mxu0 %v6533_v1  ;;  %1875 = vmatprep.subr.bf16.mxu1 %v6534_v47  ;;  %v3183_v47 = vld [vmem:[%s5832_s0 + $0xc8] sm:$0xff] }
 0x4c0   :  { %v1550_v63 = vpop.f32.mrb[24].mxu0  ;;  %v1591_v11 = vpop.f32.mrb[24].mxu1 }
 0x4c1   :  { %v1552_v0 = vpop.f32.mrb[25].mxu0  ;;  %v1593_v53 = vpop.f32.mrb[25].mxu1  ;;  %v1680_v1 = vadd.f32 %v3182_v10, %v1550_v63 }
 0x4c2   :  { %v1554_v56 = vpop.f32.mrb[26].mxu0  ;;  %v1595_v59 = vpop.f32.mrb[26].mxu1 }
 0x4c3   :  { %v1555_v31 = vpop.f32.mrb[27].mxu0  ;;  %v1596_v2 = vpop.f32.mrb[27].mxu1  ;;  %v3185_v56 = vld [vmem:[%s5832_s0 + $0xd8] sm:$0xff]  ;;  %v1682_v59 = vadd.f32 %v3184_v40, %v1591_v11  ;;  %v3190_v62 = vmul.f32 -1.442695, %v1680_v1  ;;  %v3186_v40 = vld [vmem:[%s5832_s0 + $0xe0] sm:$0xff] }
 0x4c4   :  { %v1681_v31 = vadd.f32 %v3183_v47, %v1552_v0  ;;  %v1683_v2 = vadd.f32 %v3185_v56, %v1593_v53  ;;  %v3188_v1 = vld [vmem:[%s5832_s0 + $0xf0] sm:$0xff] }
 0x4c5   :  { %v3192_v3 = vmul.f32 -1.442695, %v1682_v59  ;;  %3438 = vpow2.f32 %v3190_v62 }
 0x4c6   :  { %v3191_v41 = vmul.f32 -1.442695, %v1681_v31  ;;  %v3193_v58 = vmul.f32 -1.442695, %v1683_v2 }
 0x4c7   :  { %3440 = vpow2.f32 %v3192_v3 }
 0x4c8   :  { %3442 = vpow2.f32 %v3191_v41 }
 0x4c9   :  { %3444 = vpow2.f32 %v3193_v58  ;;  %v3187_v58 = vld [vmem:[%s5832_s0 + $0xe8] sm:$0xff] }
 0x4cf   :  { %v3439_v33 = vpop.eup %3438 }
 0x4d0   :  { %v1694_v10 = vadd.f32 1.0, %v3439_v33  ;;  %v3189_v33 = vld [vmem:[%s5832_s0 + $0xf8] sm:$0xff] }
 0x4d1   :  { %v3441_v32 = vpop.eup %3440 }
 0x4d2   :  { %v3443_v57 = vpop.eup %3442  ;;  %v1706_v63 = vadd.f32 1.0, %v3441_v32  ;;  %3446 = vrcp.f32 %v1694_v10 }
 0x4d3   :  { %v3445_v13 = vpop.eup %3444  ;;  %v1695_v18 = vadd.f32 1.0, %v3443_v57 }
 0x4d4   :  { %v1707_v36 = vadd.f32 1.0, %v3445_v13  ;;  %3448 = vrcp.f32 %v1706_v63 }
 0x4d5   :  { %3450 = vrcp.f32 %v1695_v18 }
 0x4d6   :  { %3452 = vrcp.f32 %v1707_v36 }
 0x4dc   :  { %v3447_v10 = vpop.eup %3446 }
 0x4de   :  { %v3449_v63 = vpop.eup %3448 }
 0x4df   :  { %v3451_v18 = vpop.eup %3450  ;;  %v1726_v36 = vmul.f32 %v3449_v63, %v4870_v42  ;;  %v6538_v63 = vld [vmem:[#allocation112_spill] sm:$0xff] }
 0x500   :  { %v1632_v57 = vpop.f32.mrb[28].mxu0  ;;  %v1673_v13 = vpop.f32.mrb[28].mxu1 }
 0x501   :  { %v1684_v32 = vadd.f32 %v3186_v40, %v1632_v57  ;;  %v1686_v41 = vadd.f32 %v3188_v1, %v1673_v13  ;;  %v1634_v62 = vpop.f32.mrb[29].mxu0  ;;  %v1675_v47 = vpop.f32.mrb[29].mxu1 }
 0x502   :  { %v1685_v0 = vadd.f32 %v3187_v58, %v1634_v62  ;;  %v1687_v53 = vadd.f32 %v3189_v33, %v1675_v47  ;;  %v1636_v3 = vpop.f32.mrb[30].mxu0  ;;  %v1677_v11 = vpop.f32.mrb[30].mxu1 }
 0x503   :  { %3454 = vtanh.f32 %v1684_v32  ;;  %v3194_v56 = vmul.f32 -1.442695, %v1686_v41  ;;  %v1637_v59 = vpop.f32.mrb[31].mxu0  ;;  %v1678_v31 = vpop.f32.mrb[31].mxu1 }
 0x504   :  { %3456 = vtanh.f32 %v1685_v0  ;;  %v3195_v2 = vmul.f32 -1.442695, %v1687_v53  ;;  %v3453_v40 = vpop.eup %3452 }
 0x505   :  { %3458 = vpow2.f32 %v3194_v56  ;;  %v1727_v13 = vmul.f32 %v3453_v40, %v4872_v48  ;;  %v6540_v40 = vld [vmem:[#allocation114_spill] sm:$0xff] }
 0x506   :  { %3460 = vpow2.f32 %v3195_v2 }
 0x50d   :  { %v3455_v1 = vpop.eup %3454 }
 0x50e   :  { %v3457_v57 = vpop.eup %3456  ;;  %v1728_v58 = vmul.f32 %v3455_v1, %v3447_v10  ;;  %v6537_v10 = vld [vmem:[#allocation111_spill] sm:$0xff] }
 0x50f   :  { %v3459_v33 = vpop.eup %3458  ;;  %v1729_v32 = vmul.f32 %v3457_v57, %v3451_v18  ;;  %v6539_v18 = vld [vmem:[#allocation113_spill] sm:$0xff]  ;;  %v6541_v1 = vld [vmem:[#allocation115_spill] sm:$0xff]  ;;  %v6542_v57 = vld [vmem:[#allocation116_spill] sm:$0xff] }
 0x510   :  { %v3461_v41 = vpop.eup %3460  ;;  %v5044_v62 = vadd.f32 %v1728_v58, %v1726_v36  ;;  %v1720_v47 = vadd.f32 1.0, %v3459_v33  ;;  %v6543_v36 = vld [vmem:[#allocation117_spill] sm:$0xff]  ;;  %v6544_v58 = vld [vmem:[#allocation118_spill] sm:$0xff]  ;;  %v6545_v33 = vld [vmem:[#allocation119_spill] sm:$0xff] }
 0x511   :  { %v5046_v0 = vadd.f32 %v1729_v32, %v1727_v13  ;;  %v1721_v53 = vadd.f32 1.0, %v3461_v41  ;;  %v6546_v13 = vld [vmem:[#allocation120_spill] sm:$0xff]  ;;  %v6547_v32 = vld [vmem:[#allocation121_spill] sm:$0xff]  ;;  %v6548_v41 = vld [vmem:[#allocation122_spill] sm:$0xff] }
 0x512   :  { %3462 = vtanh.f32 %v5044_v62 }
 0x513   :  { %3464 = vrcp.f32 %v1720_v47  ;;  %v6549_v47 = vld [vmem:[#allocation123_spill] sm:$0xff] }
 0x514   :  { %3466 = vtanh.f32 %v5046_v0 }
 0x515   :  { %3468 = vrcp.f32 %v1721_v53  ;;  %v6550_v53 = vld [vmem:[#allocation124_spill] sm:$0xff] }
 0x51c   :  { %v3463_v3 = vpop.eup %3462 }
 0x51d   :  { %v3465_v42 = vpop.eup %3464 }
 0x51e   :  { %v3467_v11 = vpop.eup %3466  ;;  %v5050_v59 = vmul.f32 %v3465_v42, %v3463_v3  ;;  %v6551_v3 = vld [vmem:[#allocation125_spill] sm:$0xff]  ;;  %v6552_v42 = vld [vmem:[#allocation126_spill] sm:$0xff] }
 0x51f   :  { %v3469_v56 = vpop.eup %3468 }
 0x520   :  { %6535 = vst [vmem:[#allocation75_spill] sm:$0xff] %v5050_v59  ;;  %v5052_v48 = vmul.f32 %v3469_v56, %v3467_v11  ;;  %v5058_v2 = vpack.c.bf16 %v5050_v59, %v5050_v59  ;;  %v6553_v11 = vld [vmem:[#allocation127_spill] sm:$0xff]  ;;  %v6554_v56 = vld [vmem:[#allocation128_spill] sm:$0xff]  ;;  %v6556_v59 = vld [vmem:[#allocation130_spill] sm:$0xff] }
 0x522   :  { %6536 = vst [vmem:[#allocation76_spill] sm:$0xff] %v5052_v48  ;;  %v1751_v31 = vpack.c.bf16 %v5052_v48, %v5052_v48  ;;  %v6557_v48 = vld [vmem:[#allocation131_spill] sm:$0xff] }
 0x524   :  { %1784 = vmatprep.mubr.bf16.mxu0 %v1751_v31  ;;  %1825 = vmatprep.mubr.bf16.mxu1 %v1751_v31 }
 0x525   :  { %1785 = vmatmul.mubr.bf16.vlgmr.msra.gmra.mrb[32].mxu0 %v5058_v2  ;;  %1826 = vmatmul.mubr.bf16.vlgmr.msra.gmra.mrb[32].mxu1 %v5058_v2 }
 0x526   :  { %1835 = vmatpush1.bf16.msra.mxu0 %v6269_v17  ;;  %1876 = vmatpush1.bf16.msra.mxu1 %v6270_v50 }
 0x527   :  { %1866 = vmatprep.mubr.bf16.mxu0 %v1751_v31  ;;  %1907 = vmatprep.mubr.bf16.mxu1 %v1751_v31  ;;  %v6555_v31 = vld [vmem:[#allocation129_spill] sm:$0xff] }
 0x528   :  { %1836 = vmatprep.subr.bf16.mxu0 %v6271_v39  ;;  %1877 = vmatprep.subr.bf16.mxu1 %v6272_v8 }
 0x52a   :  { %1837 = vmatpush1.bf16.msra.mxu0 %v6273_v55  ;;  %1878 = vmatpush1.bf16.msra.mxu1 %v6274_v34 }
 0x52b   :  { %1838 = vmatprep.subr.bf16.mxu0 %v6275_v24  ;;  %1879 = vmatprep.subr.bf16.mxu1 %v6276_v25 }
 0x52e   :  { %1839 = vmatpush1.bf16.msra.mxu0 %v6357_v51  ;;  %1880 = vmatpush1.bf16.msra.mxu1 %v6358_v61 }
 0x52f   :  { %1840 = vmatprep.subr.bf16.mxu0 %v6359_v29  ;;  %1881 = vmatprep.subr.bf16.mxu1 %v6360_v46 }
 0x532   :  { %1841 = vmatpush1.bf16.msra.mxu0 %v6361_v52  ;;  %1882 = vmatpush1.bf16.msra.mxu1 %v6362_v35 }
 0x533   :  { %1842 = vmatprep.subr.bf16.mxu0 %v6363_v28  ;;  %1883 = vmatprep.subr.bf16.mxu1 %v6364_v38 }
 0x536   :  { %1843 = vmatpush1.bf16.msra.mxu0 %v6365_v37  ;;  %1884 = vmatpush1.bf16.msra.mxu1 %v6366_v30 }
 0x537   :  { %1844 = vmatprep.subr.bf16.mxu0 %v6447_v9  ;;  %1885 = vmatprep.subr.bf16.mxu1 %v6448_v19 }
 0x53a   :  { %1845 = vmatpush1.bf16.msra.mxu0 %v6449_v16  ;;  %1886 = vmatpush1.bf16.msra.mxu1 %v6450_v4 }
 0x53b   :  { %1846 = vmatprep.subr.bf16.mxu0 %v6451_v6  ;;  %1887 = vmatprep.subr.bf16.mxu1 %v6452_v21 }
 0x53e   :  { %1847 = vmatpush1.bf16.msra.mxu0 %v6453_v26  ;;  %1888 = vmatpush1.bf16.msra.mxu1 %v6454_v15 }
 0x53f   :  { %1848 = vmatprep.subr.bf16.mxu0 %v6455_v20  ;;  %1889 = vmatprep.subr.bf16.mxu1 %v6456_v22 }
 0x542   :  { %1849 = vmatpush1.bf16.msra.mxu0 %v6457_v27  ;;  %1890 = vmatpush1.bf16.msra.mxu1 %v6458_v14 }
 0x543   :  { %1850 = vmatprep.subr.bf16.mxu0 %v6379_v43  ;;  %1891 = vmatprep.subr.bf16.mxu1 %v6380_v60 }
 0x546   :  { %1851 = vmatpush1.bf16.msra.mxu0 %v6381_v5  ;;  %1892 = vmatpush1.bf16.msra.mxu1 %v6382_v7 }
 0x547   :  { %1852 = vmatprep.subr.bf16.mxu0 %v6383_v23  ;;  %1893 = vmatprep.subr.bf16.mxu1 %v6384_v12 }
 0x54a   :  { %1853 = vmatpush1.bf16.msra.mxu0 %v6385_v45  ;;  %1894 = vmatpush1.bf16.msra.mxu1 %v6386_v44 }
 0x54b   :  { %1854 = vmatprep.subr.bf16.mxu0 %v6387_v54  ;;  %1895 = vmatprep.subr.bf16.mxu1 %v6388_v49 }
 0x54e   :  { %1855 = vmatpush1.bf16.msra.mxu0 %v6537_v10  ;;  %1896 = vmatpush1.bf16.msra.mxu1 %v6538_v63 }
 0x54f   :  { %1856 = vmatprep.subr.bf16.mxu0 %v6539_v18  ;;  %1897 = vmatprep.subr.bf16.mxu1 %v6540_v40 }
 0x552   :  { %1857 = vmatpush1.bf16.msra.mxu0 %v6541_v1  ;;  %1898 = vmatpush1.bf16.msra.mxu1 %v6542_v57 }
 0x553   :  { %1858 = vmatprep.subr.bf16.mxu0 %v6543_v36  ;;  %1899 = vmatprep.subr.bf16.mxu1 %v6544_v58 }
 0x556   :  { %1859 = vmatpush1.bf16.msra.mxu0 %v6545_v33  ;;  %1900 = vmatpush1.bf16.msra.mxu1 %v6546_v13 }
 0x557   :  { %1860 = vmatprep.subr.bf16.mxu0 %v6547_v32  ;;  %1901 = vmatprep.subr.bf16.mxu1 %v6548_v41  ;;  %v6558_v32 = vld [vmem:[#allocation132_spill] sm:$0xff]  ;;  %v6559_v41 = vld [vmem:[#allocation5_spill] sm:$0xff] }
 0x55a   :  { %1861 = vmatpush1.bf16.msra.mxu0 %v6549_v47  ;;  %1902 = vmatpush1.bf16.msra.mxu1 %v6550_v53  ;;  %v6560_v47 = vld [vmem:[#allocation7_spill] sm:$0xff] }
 0x55b   :  { %1862 = vmatprep.subr.bf16.mxu0 %v6551_v3  ;;  %1903 = vmatprep.subr.bf16.mxu1 %v6552_v42  ;;  %v6561_v42 = vld [vmem:[#allocation6_spill] sm:$0xff]  ;;  %v6570_v3 = vld [vmem:[#allocation16_spill] sm:$0xff] }
 0x55e   :  { %1863 = vmatpush1.bf16.msra.mxu0 %v6553_v11  ;;  %1904 = vmatpush1.bf16.msra.mxu1 %v6554_v56  ;;  %v6562_v11 = vld [vmem:[#allocation8_spill] sm:$0xff]  ;;  %v6563_v56 = vld [vmem:[#allocation9_spill] sm:$0xff] }
 0x55f   :  { %1864 = vmatprep.subr.bf16.mxu0 %v6555_v31  ;;  %1905 = vmatprep.subr.bf16.mxu1 %v6556_v59  ;;  %v6564_v31 = vld [vmem:[#allocation10_spill] sm:$0xff]  ;;  %v6565_v59 = vld [vmem:[#allocation11_spill] sm:$0xff] }
 0x562   :  { %1865 = vmatpush1.bf16.msra.mxu0 %v6557_v48  ;;  %1906 = vmatpush1.bf16.msra.mxu1 %v6558_v32  ;;  %v6566_v48 = vld [vmem:[#allocation12_spill] sm:$0xff]  ;;  %v6567_v32 = vld [vmem:[#allocation13_spill] sm:$0xff] }
 0x563   :  { %1988 = vmatprep.subr.bf16.mxu0 %v6559_v41  ;;  %2029 = vmatprep.subr.bf16.mxu1 %v6560_v47  ;;  %v6568_v41 = vld [vmem:[#allocation14_spill] sm:$0xff]  ;;  %v6569_v47 = vld [vmem:[#allocation15_spill] sm:$0xff] }
 0x565   :  { %1867 = vmatmul.mubr.bf16.vlgmr.msra.gmra.mrb[36].mxu0 %v5058_v2  ;;  %1908 = vmatmul.mubr.bf16.vlgmr.msra.gmra.mrb[36].mxu1 %v5058_v2  ;;  %v6571_v2 = vld [vmem:[#allocation17_spill] sm:$0xff] }
 0x566   :  { %1989 = vmatpush1.bf16.msra.mxu0 %v6561_v42  ;;  %2030 = vmatpush1.bf16.msra.mxu1 %v6562_v11  ;;  %v6572_v42 = vld [vmem:[#allocation18_spill] sm:$0xff]  ;;  %v6573_v11 = vld [vmem:[#allocation19_spill] sm:$0xff] }
 0x567   :  { %1990 = vmatprep.subr.bf16.mxu0 %v6563_v56  ;;  %2031 = vmatprep.subr.bf16.mxu1 %v6564_v31  ;;  %v6574_v56 = vld [vmem:[#allocation20_spill] sm:$0xff]  ;;  %v6575_v31 = vld [vmem:[#allocation21_spill] sm:$0xff] }
 0x56a   :  { %1991 = vmatpush1.bf16.msra.mxu0 %v6565_v59  ;;  %2032 = vmatpush1.bf16.msra.mxu1 %v6566_v48  ;;  %v6576_v59 = vld [vmem:[#allocation22_spill] sm:$0xff]  ;;  %v6577_v48 = vld [vmem:[#allocation23_spill] sm:$0xff] }
 0x56b   :  { %1992 = vmatprep.subr.bf16.mxu0 %v6567_v32  ;;  %2033 = vmatprep.subr.bf16.mxu1 %v6568_v41  ;;  %v6578_v32 = vld [vmem:[#allocation24_spill] sm:$0xff]  ;;  %v6579_v41 = vld [vmem:[#allocation25_spill] sm:$0xff] }
 0x56e   :  { %1993 = vmatpush1.bf16.msra.mxu0 %v6569_v47  ;;  %2034 = vmatpush1.bf16.msra.mxu1 %v6570_v3  ;;  %v6580_v47 = vld [vmem:[#allocation26_spill] sm:$0xff]  ;;  %v6581_v3 = vld [vmem:[#allocation27_spill] sm:$0xff] }
 0x56f   :  { %1994 = vmatprep.subr.bf16.mxu0 %v6571_v2  ;;  %2035 = vmatprep.subr.bf16.mxu1 %v6572_v42  ;;  %v6582_v2 = vld [vmem:[#allocation28_spill] sm:$0xff]  ;;  %v6583_v42 = vld [vmem:[#allocation29_spill] sm:$0xff] }
 0x572   :  { %1995 = vmatpush1.bf16.msra.mxu0 %v6573_v11  ;;  %2036 = vmatpush1.bf16.msra.mxu1 %v6574_v56  ;;  %v6584_v11 = vld [vmem:[#allocation30_spill] sm:$0xff]  ;;  %v6585_v56 = vld [vmem:[#allocation31_spill] sm:$0xff] }
 0x573   :  { %1996 = vmatprep.subr.bf16.mxu0 %v6575_v31  ;;  %2037 = vmatprep.subr.bf16.mxu1 %v6576_v59  ;;  %v6586_v31 = vld [vmem:[#allocation32_spill] sm:$0xff]  ;;  %v6587_v59 = vld [vmem:[#allocation33_spill] sm:$0xff] }
 0x576   :  { %1997 = vmatpush1.bf16.msra.mxu0 %v6577_v48  ;;  %2038 = vmatpush1.bf16.msra.mxu1 %v6578_v32  ;;  %v6588_v48 = vld [vmem:[#allocation34_spill] sm:$0xff]  ;;  %v6589_v32 = vld [vmem:[#allocation35_spill] sm:$0xff] }
 0x577   :  { %1998 = vmatprep.subr.bf16.mxu0 %v6579_v41  ;;  %2039 = vmatprep.subr.bf16.mxu1 %v6580_v47  ;;  %v6590_v41 = vld [vmem:[#allocation36_spill] sm:$0xff]  ;;  %v6591_v47 = vld [vmem:[#allocation37_spill] sm:$0xff] }
 0x57a   :  { %1999 = vmatpush1.bf16.msra.mxu0 %v6581_v3  ;;  %2040 = vmatpush1.bf16.msra.mxu1 %v6582_v2  ;;  %v6592_v3 = vld [vmem:[#allocation38_spill] sm:$0xff]  ;;  %v6593_v2 = vld [vmem:[#allocation39_spill] sm:$0xff] }
 0x57b   :  { %2000 = vmatprep.subr.bf16.mxu0 %v6583_v42  ;;  %2041 = vmatprep.subr.bf16.mxu1 %v6584_v11  ;;  %v6594_v42 = vld [vmem:[#allocation40_spill] sm:$0xff]  ;;  %v6595_v11 = vld [vmem:[#allocation41_spill] sm:$0xff] }
 0x57e   :  { %2001 = vmatpush1.bf16.msra.mxu0 %v6585_v56  ;;  %2042 = vmatpush1.bf16.msra.mxu1 %v6586_v31  ;;  %v6596_v56 = vld [vmem:[#allocation42_spill] sm:$0xff]  ;;  %v6597_v31 = vld [vmem:[#allocation43_spill] sm:$0xff] }
 0x57f   :  { %2002 = vmatprep.subr.bf16.mxu0 %v6587_v59  ;;  %2043 = vmatprep.subr.bf16.mxu1 %v6588_v48  ;;  %v6598_v59 = vld [vmem:[#allocation44_spill] sm:$0xff]  ;;  %v6599_v48 = vld [vmem:[#allocation45_spill] sm:$0xff] }
 0x582   :  { %2003 = vmatpush1.bf16.msra.mxu0 %v6589_v32  ;;  %2044 = vmatpush1.bf16.msra.mxu1 %v6590_v41  ;;  %v6600_v32 = vld [vmem:[#allocation46_spill] sm:$0xff]  ;;  %v6601_v41 = vld [vmem:[#allocation47_spill] sm:$0xff] }
 0x583   :  { %2004 = vmatprep.subr.bf16.mxu0 %v6591_v47  ;;  %2045 = vmatprep.subr.bf16.mxu1 %v6592_v3  ;;  %v6602_v47 = vld [vmem:[#allocation48_spill] sm:$0xff]  ;;  %v6603_v3 = vld [vmem:[#allocation49_spill] sm:$0xff] }
 0x586   :  { %2005 = vmatpush1.bf16.msra.mxu0 %v6593_v2  ;;  %2046 = vmatpush1.bf16.msra.mxu1 %v6594_v42  ;;  %v6604_v2 = vld [vmem:[#allocation50_spill] sm:$0xff]  ;;  %v6605_v42 = vld [vmem:[#allocation51_spill] sm:$0xff] }
 0x587   :  { %2006 = vmatprep.subr.bf16.mxu0 %v6595_v11  ;;  %2047 = vmatprep.subr.bf16.mxu1 %v6596_v56  ;;  %v6606_v11 = vld [vmem:[#allocation52_spill] sm:$0xff]  ;;  %v6607_v56 = vld [vmem:[#allocation53_spill] sm:$0xff] }
 0x58a   :  { %2007 = vmatpush1.bf16.msra.mxu0 %v6597_v31  ;;  %2048 = vmatpush1.bf16.msra.mxu1 %v6598_v59  ;;  %v6608_v31 = vld [vmem:[#allocation54_spill] sm:$0xff]  ;;  %v6609_v59 = vld [vmem:[#allocation55_spill] sm:$0xff] }
 0x58b   :  { %2008 = vmatprep.subr.bf16.mxu0 %v6599_v48  ;;  %2049 = vmatprep.subr.bf16.mxu1 %v6600_v32  ;;  %v6610_v48 = vld [vmem:[#allocation56_spill] sm:$0xff]  ;;  %v6611_v32 = vld [vmem:[#allocation57_spill] sm:$0xff] }
 0x58e   :  { %2009 = vmatpush1.bf16.msra.mxu0 %v6601_v41  ;;  %2050 = vmatpush1.bf16.msra.mxu1 %v6602_v47  ;;  %v6612_v41 = vld [vmem:[#allocation58_spill] sm:$0xff]  ;;  %v6613_v47 = vld [vmem:[#allocation59_spill] sm:$0xff] }
 0x58f   :  { %2010 = vmatprep.subr.bf16.mxu0 %v6603_v3  ;;  %2051 = vmatprep.subr.bf16.mxu1 %v6604_v2  ;;  %v6614_v3 = vld [vmem:[#allocation60_spill] sm:$0xff]  ;;  %v6615_v2 = vld [vmem:[#allocation61_spill] sm:$0xff] }
 0x592   :  { %2011 = vmatpush1.bf16.msra.mxu0 %v6605_v42  ;;  %2052 = vmatpush1.bf16.msra.mxu1 %v6606_v11  ;;  %v6616_v42 = vld [vmem:[#allocation62_spill] sm:$0xff]  ;;  %v6617_v11 = vld [vmem:[#allocation63_spill] sm:$0xff] }
 0x593   :  { %2012 = vmatprep.subr.bf16.mxu0 %v6607_v56  ;;  %2053 = vmatprep.subr.bf16.mxu1 %v6608_v31  ;;  %v6618_v56 = vld [vmem:[#allocation64_spill] sm:$0xff]  ;;  %v6619_v31 = vld [vmem:[#allocation65_spill] sm:$0xff] }
 0x596   :  { %2013 = vmatpush1.bf16.msra.mxu0 %v6609_v59  ;;  %2054 = vmatpush1.bf16.msra.mxu1 %v6610_v48  ;;  %v6620_v59 = vld [vmem:[#allocation66_spill] sm:$0xff]  ;;  %v6621_v48 = vld [vmem:[#allocation67_spill] sm:$0xff] }
 0x597   :  { %2014 = vmatprep.subr.bf16.mxu0 %v6611_v32  ;;  %2055 = vmatprep.subr.bf16.mxu1 %v6612_v41  ;;  %v6622_v32 = vld [vmem:[#allocation68_spill] sm:$0xff]  ;;  %v6623_v41 = vld [vmem:[#allocation69_spill] sm:$0xff] }
 0x59a   :  { %2015 = vmatpush1.bf16.msra.mxu0 %v6613_v47  ;;  %2056 = vmatpush1.bf16.msra.mxu1 %v6614_v3  ;;  %v6624_v47 = vld [vmem:[#allocation70_spill] sm:$0xff] }
 0x59b   :  { %2016 = vmatprep.subr.bf16.mxu0 %v6615_v2  ;;  %2057 = vmatprep.subr.bf16.mxu1 %v6616_v42 }
 0x59e   :  { %2017 = vmatpush1.bf16.msra.mxu0 %v6617_v11  ;;  %2058 = vmatpush1.bf16.msra.mxu1 %v6618_v56 }
 0x59f   :  { %2018 = vmatprep.subr.bf16.mxu0 %v6619_v31  ;;  %2059 = vmatprep.subr.bf16.mxu1 %v6620_v59  ;;  %v3196_v59 = vld [vmem:[%s5832_s0 + $0x100] sm:$0xff] }
 0x5a2   :  { %2019 = vmatpush1.bf16.msra.mxu0 %v6621_v48  ;;  %2060 = vmatpush1.bf16.msra.mxu1 %v6622_v32  ;;  %v3198_v32 = vld [vmem:[%s5832_s0 + $0x110] sm:$0xff] }
 0x5a3   :  { %2070 = vmatprep.subr.bf16.mxu0 %v6623_v41  ;;  %2111 = vmatprep.subr.bf16.mxu1 %v6624_v47  ;;  %v3197_v47 = vld [vmem:[%s5832_s0 + $0x108] sm:$0xff] }
 0x5f8   :  { %v1786_v3 = vpop.f32.mrb[32].mxu0  ;;  %v1827_v2 = vpop.f32.mrb[32].mxu1 }
 0x5f9   :  { %v1788_v53 = vpop.f32.mrb[33].mxu0  ;;  %v1829_v42 = vpop.f32.mrb[33].mxu1  ;;  %v1916_v41 = vadd.f32 %v3196_v59, %v1786_v3 }
 0x5fa   :  { %v1790_v13 = vpop.f32.mrb[34].mxu0  ;;  %v1831_v11 = vpop.f32.mrb[34].mxu1 }
 0x5fb   :  { %v1791_v33 = vpop.f32.mrb[35].mxu0  ;;  %v1832_v56 = vpop.f32.mrb[35].mxu1  ;;  %v3199_v13 = vld [vmem:[%s5832_s0 + $0x118] sm:$0xff]  ;;  %v1918_v11 = vadd.f32 %v3198_v32, %v1827_v2  ;;  %v3204_v48 = vmul.f32 -1.442695, %v1916_v41  ;;  %v3200_v32 = vld [vmem:[%s5832_s0 + $0x120] sm:$0xff] }
 0x5fc   :  { %v1917_v33 = vadd.f32 %v3197_v47, %v1788_v53  ;;  %v1919_v56 = vadd.f32 %v3199_v13, %v1829_v42  ;;  %v3202_v41 = vld [vmem:[%s5832_s0 + $0x130] sm:$0xff] }
 0x5fd   :  { %v3206_v31 = vmul.f32 -1.442695, %v1918_v11  ;;  %3470 = vpow2.f32 %v3204_v48  ;;  %v3201_v48 = vld [vmem:[%s5832_s0 + $0x128] sm:$0xff] }
 0x5fe   :  { %v3205_v58 = vmul.f32 -1.442695, %v1917_v33  ;;  %v3207_v36 = vmul.f32 -1.442695, %v1919_v56 }
 0x5ff   :  { %3472 = vpow2.f32 %v3206_v31 }
 0x600   :  { %3474 = vpow2.f32 %v3205_v58 }
 0x601   :  { %3476 = vpow2.f32 %v3207_v36 }
 0x607   :  { %v3471_v57 = vpop.eup %3470 }
 0x608   :  { %v1930_v59 = vadd.f32 1.0, %v3471_v57  ;;  %v3203_v57 = vld [vmem:[%s5832_s0 + $0x138] sm:$0xff] }
 0x609   :  { %v3473_v1 = vpop.eup %3472 }
 0x60a   :  { %v3475_v40 = vpop.eup %3474  ;;  %v1942_v3 = vadd.f32 1.0, %v3473_v1  ;;  %3478 = vrcp.f32 %v1930_v59 }
 0x60b   :  { %v3477_v18 = vpop.eup %3476  ;;  %v1931_v63 = vadd.f32 1.0, %v3475_v40 }
 0x60c   :  { %v1943_v10 = vadd.f32 1.0, %v3477_v18  ;;  %3480 = vrcp.f32 %v1942_v3 }
 0x60d   :  { %3482 = vrcp.f32 %v1931_v63 }
 0x60e   :  { %3484 = vrcp.f32 %v1943_v10 }
 0x614   :  { %v3479_v59 = vpop.eup %3478 }
 0x616   :  { %v3481_v3 = vpop.eup %3480 }
 0x617   :  { %v3483_v63 = vpop.eup %3482  ;;  %v1962_v10 = vmul.f32 %v3481_v3, %v5044_v62  ;;  %v6628_v3 = vld [vmem:[#allocation112_spill] sm:$0xff] }
 0x638   :  { %v1868_v40 = vpop.f32.mrb[36].mxu0  ;;  %v1909_v18 = vpop.f32.mrb[36].mxu1 }
 0x639   :  { %v1920_v1 = vadd.f32 %v3200_v32, %v1868_v40  ;;  %v1922_v36 = vadd.f32 %v3202_v41, %v1909_v18  ;;  %v1870_v58 = vpop.f32.mrb[37].mxu0  ;;  %v1911_v47 = vpop.f32.mrb[37].mxu1 }
 0x63a   :  { %v1921_v53 = vadd.f32 %v3201_v48, %v1870_v58  ;;  %v1923_v42 = vadd.f32 %v3203_v57, %v1911_v47  ;;  %v1872_v31 = vpop.f32.mrb[38].mxu0  ;;  %v1913_v2 = vpop.f32.mrb[38].mxu1 }
 0x63b   :  { %3486 = vtanh.f32 %v1920_v1  ;;  %v3208_v13 = vmul.f32 -1.442695, %v1922_v36  ;;  %v1873_v11 = vpop.f32.mrb[39].mxu0  ;;  %v1914_v33 = vpop.f32.mrb[39].mxu1 }
 0x63c   :  { %3488 = vtanh.f32 %v1921_v53  ;;  %v3209_v56 = vmul.f32 -1.442695, %v1923_v42  ;;  %v3485_v32 = vpop.eup %3484 }
 0x63d   :  { %3490 = vpow2.f32 %v3208_v13  ;;  %v1963_v18 = vmul.f32 %v3485_v32, %v5046_v0  ;;  %v6630_v32 = vld [vmem:[#allocation114_spill] sm:$0xff] }
 0x63e   :  { %3492 = vpow2.f32 %v3209_v56 }
 0x645   :  { %v3487_v41 = vpop.eup %3486 }
 0x646   :  { %v3489_v40 = vpop.eup %3488  ;;  %v1964_v48 = vmul.f32 %v3487_v41, %v3479_v59  ;;  %v6627_v59 = vld [vmem:[#allocation111_spill] sm:$0xff] }
 0x647   :  { %v3491_v57 = vpop.eup %3490  ;;  %v1965_v1 = vmul.f32 %v3489_v40, %v3483_v63  ;;  %v6629_v63 = vld [vmem:[#allocation113_spill] sm:$0xff]  ;;  %v6631_v41 = vld [vmem:[#allocation115_spill] sm:$0xff]  ;;  %v6632_v40 = vld [vmem:[#allocation116_spill] sm:$0xff] }
 0x648   :  { %v3493_v36 = vpop.eup %3492  ;;  %v5218_v58 = vadd.f32 %v1964_v48, %v1962_v10  ;;  %v1956_v47 = vadd.f32 1.0, %v3491_v57  ;;  %v6633_v10 = vld [vmem:[#allocation117_spill] sm:$0xff]  ;;  %v6634_v48 = vld [vmem:[#allocation118_spill] sm:$0xff]  ;;  %v6635_v57 = vld [vmem:[#allocation119_spill] sm:$0xff] }
 0x649   :  { %v5220_v53 = vadd.f32 %v1965_v1, %v1963_v18  ;;  %v1957_v42 = vadd.f32 1.0, %v3493_v36  ;;  %v6636_v18 = vld [vmem:[#allocation120_spill] sm:$0xff]  ;;  %v6637_v1 = vld [vmem:[#allocation121_spill] sm:$0xff]  ;;  %v6638_v36 = vld [vmem:[#allocation122_spill] sm:$0xff] }
 0x64a   :  { %3494 = vtanh.f32 %v5218_v58 }
 0x64b   :  { %3496 = vrcp.f32 %v1956_v47  ;;  %v6639_v47 = vld [vmem:[#allocation123_spill] sm:$0xff] }
 0x64c   :  { %3498 = vtanh.f32 %v5220_v53 }
 0x64d   :  { %3500 = vrcp.f32 %v1957_v42  ;;  %v6640_v42 = vld [vmem:[#allocation124_spill] sm:$0xff] }
 0x654   :  { %v3495_v31 = vpop.eup %3494 }
 0x655   :  { %v3497_v62 = vpop.eup %3496 }
 0x656   :  { %v3499_v2 = vpop.eup %3498  ;;  %v5224_v11 = vmul.f32 %v3497_v62, %v3495_v31  ;;  %v6641_v31 = vld [vmem:[#allocation125_spill] sm:$0xff]  ;;  %v6642_v62 = vld [vmem:[#allocation126_spill] sm:$0xff] }
 0x657   :  { %v3501_v13 = vpop.eup %3500 }
 0x658   :  { %6625 = vst [vmem:[#allocation77_spill] sm:$0xff] %v5224_v11  ;;  %v5226_v0 = vmul.f32 %v3501_v13, %v3499_v2  ;;  %v5232_v56 = vpack.c.bf16 %v5224_v11, %v5224_v11  ;;  %v6643_v2 = vld [vmem:[#allocation127_spill] sm:$0xff]  ;;  %v6644_v13 = vld [vmem:[#allocation128_spill] sm:$0xff]  ;;  %v6646_v11 = vld [vmem:[#allocation130_spill] sm:$0xff] }
 0x65a   :  { %6626 = vst [vmem:[#allocation78_spill] sm:$0xff] %v5226_v0  ;;  %v1987_v33 = vpack.c.bf16 %v5226_v0, %v5226_v0  ;;  %v6647_v0 = vld [vmem:[#allocation131_spill] sm:$0xff] }
 0x65c   :  { %2020 = vmatprep.mubr.bf16.mxu0 %v1987_v33  ;;  %2061 = vmatprep.mubr.bf16.mxu1 %v1987_v33 }
 0x65d   :  { %2021 = vmatmul.mubr.bf16.vlgmr.msra.gmra.mrb[40].mxu0 %v5232_v56  ;;  %2062 = vmatmul.mubr.bf16.vlgmr.msra.gmra.mrb[40].mxu1 %v5232_v56 }
 0x65e   :  { %2071 = vmatpush1.bf16.msra.mxu0 %v6269_v17  ;;  %2112 = vmatpush1.bf16.msra.mxu1 %v6270_v50 }
 0x65f   :  { %2102 = vmatprep.mubr.bf16.mxu0 %v1987_v33  ;;  %2143 = vmatprep.mubr.bf16.mxu1 %v1987_v33  ;;  %v6645_v33 = vld [vmem:[#allocation129_spill] sm:$0xff] }
 0x660   :  { %2072 = vmatprep.subr.bf16.mxu0 %v6271_v39  ;;  %2113 = vmatprep.subr.bf16.mxu1 %v6272_v8 }
 0x662   :  { %2073 = vmatpush1.bf16.msra.mxu0 %v6273_v55  ;;  %2114 = vmatpush1.bf16.msra.mxu1 %v6274_v34 }
 0x663   :  { %2074 = vmatprep.subr.bf16.mxu0 %v6275_v24  ;;  %2115 = vmatprep.subr.bf16.mxu1 %v6276_v25 }
 0x666   :  { %2075 = vmatpush1.bf16.msra.mxu0 %v6357_v51  ;;  %2116 = vmatpush1.bf16.msra.mxu1 %v6358_v61 }
 0x667   :  { %2076 = vmatprep.subr.bf16.mxu0 %v6359_v29  ;;  %2117 = vmatprep.subr.bf16.mxu1 %v6360_v46 }
 0x66a   :  { %2077 = vmatpush1.bf16.msra.mxu0 %v6361_v52  ;;  %2118 = vmatpush1.bf16.msra.mxu1 %v6362_v35 }
 0x66b   :  { %2078 = vmatprep.subr.bf16.mxu0 %v6363_v28  ;;  %2119 = vmatprep.subr.bf16.mxu1 %v6364_v38 }
 0x66e   :  { %2079 = vmatpush1.bf16.msra.mxu0 %v6365_v37  ;;  %2120 = vmatpush1.bf16.msra.mxu1 %v6366_v30 }
 0x66f   :  { %2080 = vmatprep.subr.bf16.mxu0 %v6447_v9  ;;  %2121 = vmatprep.subr.bf16.mxu1 %v6448_v19 }
 0x672   :  { %2081 = vmatpush1.bf16.msra.mxu0 %v6449_v16  ;;  %2122 = vmatpush1.bf16.msra.mxu1 %v6450_v4 }
 0x673   :  { %2082 = vmatprep.subr.bf16.mxu0 %v6451_v6  ;;  %2123 = vmatprep.subr.bf16.mxu1 %v6452_v21 }
 0x676   :  { %2083 = vmatpush1.bf16.msra.mxu0 %v6453_v26  ;;  %2124 = vmatpush1.bf16.msra.mxu1 %v6454_v15 }
 0x677   :  { %2084 = vmatprep.subr.bf16.mxu0 %v6455_v20  ;;  %2125 = vmatprep.subr.bf16.mxu1 %v6456_v22 }
 0x67a   :  { %2085 = vmatpush1.bf16.msra.mxu0 %v6457_v27  ;;  %2126 = vmatpush1.bf16.msra.mxu1 %v6458_v14 }
 0x67b   :  { %2086 = vmatprep.subr.bf16.mxu0 %v6379_v43  ;;  %2127 = vmatprep.subr.bf16.mxu1 %v6380_v60 }
 0x67e   :  { %2087 = vmatpush1.bf16.msra.mxu0 %v6381_v5  ;;  %2128 = vmatpush1.bf16.msra.mxu1 %v6382_v7 }
 0x67f   :  { %2088 = vmatprep.subr.bf16.mxu0 %v6383_v23  ;;  %2129 = vmatprep.subr.bf16.mxu1 %v6384_v12 }
 0x682   :  { %2089 = vmatpush1.bf16.msra.mxu0 %v6385_v45  ;;  %2130 = vmatpush1.bf16.msra.mxu1 %v6386_v44 }
 0x683   :  { %2090 = vmatprep.subr.bf16.mxu0 %v6387_v54  ;;  %2131 = vmatprep.subr.bf16.mxu1 %v6388_v49 }
 0x686   :  { %2091 = vmatpush1.bf16.msra.mxu0 %v6627_v59  ;;  %2132 = vmatpush1.bf16.msra.mxu1 %v6628_v3 }
 0x687   :  { %2092 = vmatprep.subr.bf16.mxu0 %v6629_v63  ;;  %2133 = vmatprep.subr.bf16.mxu1 %v6630_v32 }
 0x68a   :  { %2093 = vmatpush1.bf16.msra.mxu0 %v6631_v41  ;;  %2134 = vmatpush1.bf16.msra.mxu1 %v6632_v40 }
 0x68b   :  { %2094 = vmatprep.subr.bf16.mxu0 %v6633_v10  ;;  %2135 = vmatprep.subr.bf16.mxu1 %v6634_v48 }
 0x68e   :  { %2095 = vmatpush1.bf16.msra.mxu0 %v6635_v57  ;;  %2136 = vmatpush1.bf16.msra.mxu1 %v6636_v18 }
 0x68f   :  { %2096 = vmatprep.subr.bf16.mxu0 %v6637_v1  ;;  %2137 = vmatprep.subr.bf16.mxu1 %v6638_v36  ;;  %v6648_v1 = vld [vmem:[#allocation132_spill] sm:$0xff]  ;;  %v6649_v36 = vld [vmem:[#allocation5_spill] sm:$0xff] }
 0x692   :  { %2097 = vmatpush1.bf16.msra.mxu0 %v6639_v47  ;;  %2138 = vmatpush1.bf16.msra.mxu1 %v6640_v42  ;;  %v6650_v47 = vld [vmem:[#allocation7_spill] sm:$0xff] }
 0x693   :  { %2098 = vmatprep.subr.bf16.mxu0 %v6641_v31  ;;  %2139 = vmatprep.subr.bf16.mxu1 %v6642_v62  ;;  %v6651_v62 = vld [vmem:[#allocation6_spill] sm:$0xff]  ;;  %v6660_v31 = vld [vmem:[#allocation16_spill] sm:$0xff] }
 0x696   :  { %2099 = vmatpush1.bf16.msra.mxu0 %v6643_v2  ;;  %2140 = vmatpush1.bf16.msra.mxu1 %v6644_v13  ;;  %v6652_v2 = vld [vmem:[#allocation8_spill] sm:$0xff]  ;;  %v6653_v13 = vld [vmem:[#allocation9_spill] sm:$0xff] }
 0x697   :  { %2100 = vmatprep.subr.bf16.mxu0 %v6645_v33  ;;  %2141 = vmatprep.subr.bf16.mxu1 %v6646_v11  ;;  %v6654_v33 = vld [vmem:[#allocation10_spill] sm:$0xff]  ;;  %v6655_v11 = vld [vmem:[#allocation11_spill] sm:$0xff] }
 0x69a   :  { %2101 = vmatpush1.bf16.msra.mxu0 %v6647_v0  ;;  %2142 = vmatpush1.bf16.msra.mxu1 %v6648_v1  ;;  %v6656_v0 = vld [vmem:[#allocation12_spill] sm:$0xff]  ;;  %v6657_v1 = vld [vmem:[#allocation13_spill] sm:$0xff] }
 0x69b   :  { %2224 = vmatprep.subr.bf16.mxu0 %v6649_v36  ;;  %2265 = vmatprep.subr.bf16.mxu1 %v6650_v47  ;;  %v6658_v36 = vld [vmem:[#allocation14_spill] sm:$0xff]  ;;  %v6659_v47 = vld [vmem:[#allocation15_spill] sm:$0xff] }
 0x69d   :  { %2103 = vmatmul.mubr.bf16.vlgmr.msra.gmra.mrb[44].mxu0 %v5232_v56  ;;  %2144 = vmatmul.mubr.bf16.vlgmr.msra.gmra.mrb[44].mxu1 %v5232_v56  ;;  %v6661_v56 = vld [vmem:[#allocation17_spill] sm:$0xff] }
 0x69e   :  { %2225 = vmatpush1.bf16.msra.mxu0 %v6651_v62  ;;  %2266 = vmatpush1.bf16.msra.mxu1 %v6652_v2  ;;  %v6662_v62 = vld [vmem:[#allocation18_spill] sm:$0xff]  ;;  %v6663_v2 = vld [vmem:[#allocation19_spill] sm:$0xff] }
 0x69f   :  { %2226 = vmatprep.subr.bf16.mxu0 %v6653_v13  ;;  %2267 = vmatprep.subr.bf16.mxu1 %v6654_v33  ;;  %v6664_v13 = vld [vmem:[#allocation20_spill] sm:$0xff]  ;;  %v6665_v33 = vld [vmem:[#allocation21_spill] sm:$0xff] }
 0x6a2   :  { %2227 = vmatpush1.bf16.msra.mxu0 %v6655_v11  ;;  %2268 = vmatpush1.bf16.msra.mxu1 %v6656_v0  ;;  %v6666_v11 = vld [vmem:[#allocation22_spill] sm:$0xff]  ;;  %v6667_v0 = vld [vmem:[#allocation23_spill] sm:$0xff] }
 0x6a3   :  { %2228 = vmatprep.subr.bf16.mxu0 %v6657_v1  ;;  %2269 = vmatprep.subr.bf16.mxu1 %v6658_v36  ;;  %v6668_v1 = vld [vmem:[#allocation24_spill] sm:$0xff]  ;;  %v6669_v36 = vld [vmem:[#allocation25_spill] sm:$0xff] }
 0x6a6   :  { %2229 = vmatpush1.bf16.msra.mxu0 %v6659_v47  ;;  %2270 = vmatpush1.bf16.msra.mxu1 %v6660_v31  ;;  %v6670_v47 = vld [vmem:[#allocation26_spill] sm:$0xff]  ;;  %v6671_v31 = vld [vmem:[#allocation27_spill] sm:$0xff] }
 0x6a7   :  { %2230 = vmatprep.subr.bf16.mxu0 %v6661_v56  ;;  %2271 = vmatprep.subr.bf16.mxu1 %v6662_v62  ;;  %v6672_v56 = vld [vmem:[#allocation28_spill] sm:$0xff]  ;;  %v6673_v62 = vld [vmem:[#allocation29_spill] sm:$0xff] }
 0x6aa   :  { %2231 = vmatpush1.bf16.msra.mxu0 %v6663_v2  ;;  %2272 = vmatpush1.bf16.msra.mxu1 %v6664_v13  ;;  %v6674_v2 = vld [vmem:[#allocation30_spill] sm:$0xff]  ;;  %v6675_v13 = vld [vmem:[#allocation31_spill] sm:$0xff] }
 0x6ab   :  { %2232 = vmatprep.subr.bf16.mxu0 %v6665_v33  ;;  %2273 = vmatprep.subr.bf16.mxu1 %v6666_v11  ;;  %v6676_v33 = vld [vmem:[#allocation32_spill] sm:$0xff]  ;;  %v6677_v11 = vld [vmem:[#allocation33_spill] sm:$0xff] }
 0x6ae   :  { %2233 = vmatpush1.bf16.msra.mxu0 %v6667_v0  ;;  %2274 = vmatpush1.bf16.msra.mxu1 %v6668_v1  ;;  %v6678_v0 = vld [vmem:[#allocation34_spill] sm:$0xff]  ;;  %v6679_v1 = vld [vmem:[#allocation35_spill] sm:$0xff] }
 0x6af   :  { %2234 = vmatprep.subr.bf16.mxu0 %v6669_v36  ;;  %2275 = vmatprep.subr.bf16.mxu1 %v6670_v47  ;;  %v6680_v36 = vld [vmem:[#allocation36_spill] sm:$0xff]  ;;  %v6681_v47 = vld [vmem:[#allocation37_spill] sm:$0xff] }
 0x6b2   :  { %2235 = vmatpush1.bf16.msra.mxu0 %v6671_v31  ;;  %2276 = vmatpush1.bf16.msra.mxu1 %v6672_v56  ;;  %v6682_v31 = vld [vmem:[#allocation38_spill] sm:$0xff]  ;;  %v6683_v56 = vld [vmem:[#allocation39_spill] sm:$0xff] }
 0x6b3   :  { %2236 = vmatprep.subr.bf16.mxu0 %v6673_v62  ;;  %2277 = vmatprep.subr.bf16.mxu1 %v6674_v2  ;;  %v6684_v62 = vld [vmem:[#allocation40_spill] sm:$0xff]  ;;  %v6685_v2 = vld [vmem:[#allocation41_spill] sm:$0xff] }
 0x6b6   :  { %2237 = vmatpush1.bf16.msra.mxu0 %v6675_v13  ;;  %2278 = vmatpush1.bf16.msra.mxu1 %v6676_v33  ;;  %v6686_v13 = vld [vmem:[#allocation42_spill] sm:$0xff]  ;;  %v6687_v33 = vld [vmem:[#allocation43_spill] sm:$0xff] }
 0x6b7   :  { %2238 = vmatprep.subr.bf16.mxu0 %v6677_v11  ;;  %2279 = vmatprep.subr.bf16.mxu1 %v6678_v0  ;;  %v6688_v11 = vld [vmem:[#allocation44_spill] sm:$0xff]  ;;  %v6689_v0 = vld [vmem:[#allocation45_spill] sm:$0xff] }
 0x6ba   :  { %2239 = vmatpush1.bf16.msra.mxu0 %v6679_v1  ;;  %2280 = vmatpush1.bf16.msra.mxu1 %v6680_v36  ;;  %v6690_v1 = vld [vmem:[#allocation46_spill] sm:$0xff]  ;;  %v6691_v36 = vld [vmem:[#allocation47_spill] sm:$0xff] }
 0x6bb   :  { %2240 = vmatprep.subr.bf16.mxu0 %v6681_v47  ;;  %2281 = vmatprep.subr.bf16.mxu1 %v6682_v31  ;;  %v6692_v47 = vld [vmem:[#allocation48_spill] sm:$0xff]  ;;  %v6693_v31 = vld [vmem:[#allocation49_spill] sm:$0xff] }
 0x6be   :  { %2241 = vmatpush1.bf16.msra.mxu0 %v6683_v56  ;;  %2282 = vmatpush1.bf16.msra.mxu1 %v6684_v62  ;;  %v6694_v56 = vld [vmem:[#allocation50_spill] sm:$0xff]  ;;  %v6695_v62 = vld [vmem:[#allocation51_spill] sm:$0xff] }
 0x6bf   :  { %2242 = vmatprep.subr.bf16.mxu0 %v6685_v2  ;;  %2283 = vmatprep.subr.bf16.mxu1 %v6686_v13  ;;  %v6696_v2 = vld [vmem:[#allocation52_spill] sm:$0xff]  ;;  %v6697_v13 = vld [vmem:[#allocation53_spill] sm:$0xff] }
 0x6c2   :  { %2243 = vmatpush1.bf16.msra.mxu0 %v6687_v33  ;;  %2284 = vmatpush1.bf16.msra.mxu1 %v6688_v11  ;;  %v6698_v33 = vld [vmem:[#allocation54_spill] sm:$0xff]  ;;  %v6699_v11 = vld [vmem:[#allocation55_spill] sm:$0xff] }
 0x6c3   :  { %2244 = vmatprep.subr.bf16.mxu0 %v6689_v0  ;;  %2285 = vmatprep.subr.bf16.mxu1 %v6690_v1  ;;  %v6700_v0 = vld [vmem:[#allocation56_spill] sm:$0xff]  ;;  %v6701_v1 = vld [vmem:[#allocation57_spill] sm:$0xff] }
 0x6c6   :  { %2245 = vmatpush1.bf16.msra.mxu0 %v6691_v36  ;;  %2286 = vmatpush1.bf16.msra.mxu1 %v6692_v47  ;;  %v6702_v36 = vld [vmem:[#allocation58_spill] sm:$0xff]  ;;  %v6703_v47 = vld [vmem:[#allocation59_spill] sm:$0xff] }
 0x6c7   :  { %2246 = vmatprep.subr.bf16.mxu0 %v6693_v31  ;;  %2287 = vmatprep.subr.bf16.mxu1 %v6694_v56  ;;  %v6704_v31 = vld [vmem:[#allocation60_spill] sm:$0xff]  ;;  %v6705_v56 = vld [vmem:[#allocation61_spill] sm:$0xff] }
 0x6ca   :  { %2247 = vmatpush1.bf16.msra.mxu0 %v6695_v62  ;;  %2288 = vmatpush1.bf16.msra.mxu1 %v6696_v2  ;;  %v6706_v62 = vld [vmem:[#allocation62_spill] sm:$0xff]  ;;  %v6707_v2 = vld [vmem:[#allocation63_spill] sm:$0xff] }
 0x6cb   :  { %2248 = vmatprep.subr.bf16.mxu0 %v6697_v13  ;;  %2289 = vmatprep.subr.bf16.mxu1 %v6698_v33  ;;  %v6708_v13 = vld [vmem:[#allocation64_spill] sm:$0xff]  ;;  %v6709_v33 = vld [vmem:[#allocation65_spill] sm:$0xff] }
 0x6ce   :  { %2249 = vmatpush1.bf16.msra.mxu0 %v6699_v11  ;;  %2290 = vmatpush1.bf16.msra.mxu1 %v6700_v0  ;;  %v6710_v11 = vld [vmem:[#allocation66_spill] sm:$0xff]  ;;  %v6711_v0 = vld [vmem:[#allocation67_spill] sm:$0xff] }
 0x6cf   :  { %2250 = vmatprep.subr.bf16.mxu0 %v6701_v1  ;;  %2291 = vmatprep.subr.bf16.mxu1 %v6702_v36  ;;  %v6712_v1 = vld [vmem:[#allocation68_spill] sm:$0xff]  ;;  %v6713_v36 = vld [vmem:[#allocation69_spill] sm:$0xff] }
 0x6d2   :  { %2251 = vmatpush1.bf16.msra.mxu0 %v6703_v47  ;;  %2292 = vmatpush1.bf16.msra.mxu1 %v6704_v31  ;;  %v6714_v47 = vld [vmem:[#allocation70_spill] sm:$0xff] }
 0x6d3   :  { %2252 = vmatprep.subr.bf16.mxu0 %v6705_v56  ;;  %2293 = vmatprep.subr.bf16.mxu1 %v6706_v62 }
 0x6d6   :  { %2253 = vmatpush1.bf16.msra.mxu0 %v6707_v2  ;;  %2294 = vmatpush1.bf16.msra.mxu1 %v6708_v13 }
 0x6d7   :  { %2254 = vmatprep.subr.bf16.mxu0 %v6709_v33  ;;  %2295 = vmatprep.subr.bf16.mxu1 %v6710_v11  ;;  %v3210_v11 = vld [vmem:[%s5832_s0 + $0x140] sm:$0xff] }
 0x6da   :  { %2255 = vmatpush1.bf16.msra.mxu0 %v6711_v0  ;;  %2296 = vmatpush1.bf16.msra.mxu1 %v6712_v1  ;;  %v3212_v1 = vld [vmem:[%s5832_s0 + $0x150] sm:$0xff] }
 0x6db   :  { %2306 = vmatprep.subr.bf16.mxu0 %v6713_v36  ;;  %2347 = vmatprep.subr.bf16.mxu1 %v6714_v47  ;;  %v3211_v47 = vld [vmem:[%s5832_s0 + $0x148] sm:$0xff] }
 0x730   :  { %v2022_v31 = vpop.f32.mrb[40].mxu0  ;;  %v2063_v56 = vpop.f32.mrb[40].mxu1 }
 0x731   :  { %v2024_v42 = vpop.f32.mrb[41].mxu0  ;;  %v2065_v62 = vpop.f32.mrb[41].mxu1  ;;  %v2152_v36 = vadd.f32 %v3210_v11, %v2022_v31 }
 0x732   :  { %v2026_v18 = vpop.f32.mrb[42].mxu0  ;;  %v2067_v2 = vpop.f32.mrb[42].mxu1 }
 0x733   :  { %v2027_v57 = vpop.f32.mrb[43].mxu0  ;;  %v2068_v13 = vpop.f32.mrb[43].mxu1  ;;  %v3213_v18 = vld [vmem:[%s5832_s0 + $0x158] sm:$0xff]  ;;  %v2154_v2 = vadd.f32 %v3212_v1, %v2063_v56  ;;  %v3218_v0 = vmul.f32 -1.442695, %v2152_v36  ;;  %v3214_v1 = vld [vmem:[%s5832_s0 + $0x160] sm:$0xff] }
 0x734   :  { %v2153_v57 = vadd.f32 %v3211_v47, %v2024_v42  ;;  %v2155_v13 = vadd.f32 %v3213_v18, %v2065_v62  ;;  %v3216_v36 = vld [vmem:[%s5832_s0 + $0x170] sm:$0xff] }
 0x735   :  { %v3220_v33 = vmul.f32 -1.442695, %v2154_v2  ;;  %3502 = vpow2.f32 %v3218_v0  ;;  %v3215_v0 = vld [vmem:[%s5832_s0 + $0x168] sm:$0xff] }
 0x736   :  { %v3219_v48 = vmul.f32 -1.442695, %v2153_v57  ;;  %v3221_v10 = vmul.f32 -1.442695, %v2155_v13 }
 0x737   :  { %3504 = vpow2.f32 %v3220_v33 }
 0x738   :  { %3506 = vpow2.f32 %v3219_v48 }
 0x739   :  { %3508 = vpow2.f32 %v3221_v10 }
 0x73f   :  { %v3503_v40 = vpop.eup %3502 }
 0x740   :  { %v2166_v11 = vadd.f32 1.0, %v3503_v40  ;;  %v3217_v40 = vld [vmem:[%s5832_s0 + $0x178] sm:$0xff] }
 0x741   :  { %v3505_v41 = vpop.eup %3504 }
 0x742   :  { %v3507_v32 = vpop.eup %3506  ;;  %v2178_v31 = vadd.f32 1.0, %v3505_v41  ;;  %3510 = vrcp.f32 %v2166_v11 }
 0x743   :  { %v3509_v63 = vpop.eup %3508  ;;  %v2167_v3 = vadd.f32 1.0, %v3507_v32 }
 0x744   :  { %v2179_v59 = vadd.f32 1.0, %v3509_v63  ;;  %3512 = vrcp.f32 %v2178_v31 }
 0x745   :  { %3514 = vrcp.f32 %v2167_v3 }
 0x746   :  { %3516 = vrcp.f32 %v2179_v59 }
 0x74c   :  { %v3511_v11 = vpop.eup %3510 }
 0x74e   :  { %v3513_v31 = vpop.eup %3512 }
 0x74f   :  { %v3515_v3 = vpop.eup %3514  ;;  %v2198_v59 = vmul.f32 %v3513_v31, %v5218_v58  ;;  %v6718_v31 = vld [vmem:[#allocation112_spill] sm:$0xff] }
 0x770   :  { %v2104_v32 = vpop.f32.mrb[44].mxu0  ;;  %v2145_v63 = vpop.f32.mrb[44].mxu1 }
 0x771   :  { %v2156_v41 = vadd.f32 %v3214_v1, %v2104_v32  ;;  %v2158_v10 = vadd.f32 %v3216_v36, %v2145_v63  ;;  %v2106_v48 = vpop.f32.mrb[45].mxu0  ;;  %v2147_v47 = vpop.f32.mrb[45].mxu1 }
 0x772   :  { %v2157_v42 = vadd.f32 %v3215_v0, %v2106_v48  ;;  %v2159_v62 = vadd.f32 %v3217_v40, %v2147_v47  ;;  %v2108_v33 = vpop.f32.mrb[46].mxu0  ;;  %v2149_v56 = vpop.f32.mrb[46].mxu1 }
 0x773   :  { %3518 = vtanh.f32 %v2156_v41  ;;  %v3222_v18 = vmul.f32 -1.442695, %v2158_v10  ;;  %v2109_v2 = vpop.f32.mrb[47].mxu0  ;;  %v2150_v57 = vpop.f32.mrb[47].mxu1 }
 0x774   :  { %3520 = vtanh.f32 %v2157_v42  ;;  %v3223_v13 = vmul.f32 -1.442695, %v2159_v62  ;;  %v3517_v1 = vpop.eup %3516 }
 0x775   :  { %3522 = vpow2.f32 %v3222_v18  ;;  %v2199_v63 = vmul.f32 %v3517_v1, %v5220_v53  ;;  %v6720_v1 = vld [vmem:[#allocation114_spill] sm:$0xff] }
 0x776   :  { %3524 = vpow2.f32 %v3223_v13 }
 0x77d   :  { %v3519_v36 = vpop.eup %3518 }
 0x77e   :  { %v3521_v32 = vpop.eup %3520  ;;  %v2200_v0 = vmul.f32 %v3519_v36, %v3511_v11  ;;  %v6717_v11 = vld [vmem:[#allocation111_spill] sm:$0xff] }
 0x77f   :  { %v3523_v40 = vpop.eup %3522  ;;  %v2201_v41 = vmul.f32 %v3521_v32, %v3515_v3  ;;  %v6719_v3 = vld [vmem:[#allocation113_spill] sm:$0xff]  ;;  %v6721_v36 = vld [vmem:[#allocation115_spill] sm:$0xff]  ;;  %v6722_v32 = vld [vmem:[#allocation116_spill] sm:$0xff] }
 0x780   :  { %v3525_v10 = vpop.eup %3524  ;;  %v5392_v48 = vadd.f32 %v2200_v0, %v2198_v59  ;;  %v2192_v47 = vadd.f32 1.0, %v3523_v40  ;;  %v6723_v59 = vld [vmem:[#allocation117_spill] sm:$0xff]  ;;  %v6724_v0 = vld [vmem:[#allocation118_spill] sm:$0xff]  ;;  %v6725_v40 = vld [vmem:[#allocation119_spill] sm:$0xff] }
 0x781   :  { %v5394_v42 = vadd.f32 %v2201_v41, %v2199_v63  ;;  %v2193_v62 = vadd.f32 1.0, %v3525_v10  ;;  %v6726_v63 = vld [vmem:[#allocation120_spill] sm:$0xff]  ;;  %v6727_v41 = vld [vmem:[#allocation121_spill] sm:$0xff]  ;;  %v6728_v10 = vld [vmem:[#allocation122_spill] sm:$0xff] }
 0x782   :  { %3526 = vtanh.f32 %v5392_v48 }
 0x783   :  { %3528 = vrcp.f32 %v2192_v47  ;;  %v6729_v47 = vld [vmem:[#allocation123_spill] sm:$0xff] }
 0x784   :  { %3530 = vtanh.f32 %v5394_v42 }
 0x785   :  { %3532 = vrcp.f32 %v2193_v62  ;;  %v6730_v62 = vld [vmem:[#allocation124_spill] sm:$0xff] }
 0x78c   :  { %v3527_v33 = vpop.eup %3526 }
 0x78d   :  { %v3529_v58 = vpop.eup %3528 }
 0x78e   :  { %v3531_v56 = vpop.eup %3530  ;;  %v5398_v2 = vmul.f32 %v3529_v58, %v3527_v33  ;;  %v6731_v33 = vld [vmem:[#allocation125_spill] sm:$0xff]  ;;  %v6732_v58 = vld [vmem:[#allocation126_spill] sm:$0xff] }
 0x78f   :  { %v3533_v18 = vpop.eup %3532 }
 0x790   :  { %6715 = vst [vmem:[#allocation79_spill] sm:$0xff] %v5398_v2  ;;  %v5400_v53 = vmul.f32 %v3533_v18, %v3531_v56  ;;  %v5406_v13 = vpack.c.bf16 %v5398_v2, %v5398_v2  ;;  %v6733_v56 = vld [vmem:[#allocation127_spill] sm:$0xff]  ;;  %v6734_v18 = vld [vmem:[#allocation128_spill] sm:$0xff]  ;;  %v6736_v2 = vld [vmem:[#allocation130_spill] sm:$0xff] }
 0x792   :  { %6716 = vst [vmem:[#allocation80_spill] sm:$0xff] %v5400_v53  ;;  %v2223_v57 = vpack.c.bf16 %v5400_v53, %v5400_v53  ;;  %v6737_v53 = vld [vmem:[#allocation131_spill] sm:$0xff] }
 0x794   :  { %2256 = vmatprep.mubr.bf16.mxu0 %v2223_v57  ;;  %2297 = vmatprep.mubr.bf16.mxu1 %v2223_v57 }
 0x795   :  { %2257 = vmatmul.mubr.bf16.vlgmr.msra.gmra.mrb[48].mxu0 %v5406_v13  ;;  %2298 = vmatmul.mubr.bf16.vlgmr.msra.gmra.mrb[48].mxu1 %v5406_v13 }
 0x796   :  { %2307 = vmatpush1.bf16.msra.mxu0 %v6269_v17  ;;  %2348 = vmatpush1.bf16.msra.mxu1 %v6270_v50 }
 0x797   :  { %2338 = vmatprep.mubr.bf16.mxu0 %v2223_v57  ;;  %2379 = vmatprep.mubr.bf16.mxu1 %v2223_v57  ;;  %v6735_v57 = vld [vmem:[#allocation129_spill] sm:$0xff] }
 0x798   :  { %2308 = vmatprep.subr.bf16.mxu0 %v6271_v39  ;;  %2349 = vmatprep.subr.bf16.mxu1 %v6272_v8 }
 0x79a   :  { %2309 = vmatpush1.bf16.msra.mxu0 %v6273_v55  ;;  %2350 = vmatpush1.bf16.msra.mxu1 %v6274_v34 }
 0x79b   :  { %2310 = vmatprep.subr.bf16.mxu0 %v6275_v24  ;;  %2351 = vmatprep.subr.bf16.mxu1 %v6276_v25 }
 0x79e   :  { %2311 = vmatpush1.bf16.msra.mxu0 %v6357_v51  ;;  %2352 = vmatpush1.bf16.msra.mxu1 %v6358_v61 }
 0x79f   :  { %2312 = vmatprep.subr.bf16.mxu0 %v6359_v29  ;;  %2353 = vmatprep.subr.bf16.mxu1 %v6360_v46 }
 0x7a2   :  { %2313 = vmatpush1.bf16.msra.mxu0 %v6361_v52  ;;  %2354 = vmatpush1.bf16.msra.mxu1 %v6362_v35 }
 0x7a3   :  { %2314 = vmatprep.subr.bf16.mxu0 %v6363_v28  ;;  %2355 = vmatprep.subr.bf16.mxu1 %v6364_v38 }
 0x7a6   :  { %2315 = vmatpush1.bf16.msra.mxu0 %v6365_v37  ;;  %2356 = vmatpush1.bf16.msra.mxu1 %v6366_v30 }
 0x7a7   :  { %2316 = vmatprep.subr.bf16.mxu0 %v6447_v9  ;;  %2357 = vmatprep.subr.bf16.mxu1 %v6448_v19 }
 0x7aa   :  { %2317 = vmatpush1.bf16.msra.mxu0 %v6449_v16  ;;  %2358 = vmatpush1.bf16.msra.mxu1 %v6450_v4 }
 0x7ab   :  { %2318 = vmatprep.subr.bf16.mxu0 %v6451_v6  ;;  %2359 = vmatprep.subr.bf16.mxu1 %v6452_v21 }
 0x7ae   :  { %2319 = vmatpush1.bf16.msra.mxu0 %v6453_v26  ;;  %2360 = vmatpush1.bf16.msra.mxu1 %v6454_v15 }
 0x7af   :  { %2320 = vmatprep.subr.bf16.mxu0 %v6455_v20  ;;  %2361 = vmatprep.subr.bf16.mxu1 %v6456_v22 }
 0x7b2   :  { %2321 = vmatpush1.bf16.msra.mxu0 %v6457_v27  ;;  %2362 = vmatpush1.bf16.msra.mxu1 %v6458_v14 }
 0x7b3   :  { %2322 = vmatprep.subr.bf16.mxu0 %v6379_v43  ;;  %2363 = vmatprep.subr.bf16.mxu1 %v6380_v60 }
 0x7b6   :  { %2323 = vmatpush1.bf16.msra.mxu0 %v6381_v5  ;;  %2364 = vmatpush1.bf16.msra.mxu1 %v6382_v7 }
 0x7b7   :  { %2324 = vmatprep.subr.bf16.mxu0 %v6383_v23  ;;  %2365 = vmatprep.subr.bf16.mxu1 %v6384_v12 }
 0x7ba   :  { %2325 = vmatpush1.bf16.msra.mxu0 %v6385_v45  ;;  %2366 = vmatpush1.bf16.msra.mxu1 %v6386_v44 }
 0x7bb   :  { %2326 = vmatprep.subr.bf16.mxu0 %v6387_v54  ;;  %2367 = vmatprep.subr.bf16.mxu1 %v6388_v49 }
 0x7be   :  { %2327 = vmatpush1.bf16.msra.mxu0 %v6717_v11  ;;  %2368 = vmatpush1.bf16.msra.mxu1 %v6718_v31 }
 0x7bf   :  { %2328 = vmatprep.subr.bf16.mxu0 %v6719_v3  ;;  %2369 = vmatprep.subr.bf16.mxu1 %v6720_v1 }
 0x7c2   :  { %2329 = vmatpush1.bf16.msra.mxu0 %v6721_v36  ;;  %2370 = vmatpush1.bf16.msra.mxu1 %v6722_v32 }
 0x7c3   :  { %2330 = vmatprep.subr.bf16.mxu0 %v6723_v59  ;;  %2371 = vmatprep.subr.bf16.mxu1 %v6724_v0 }
 0x7c6   :  { %2331 = vmatpush1.bf16.msra.mxu0 %v6725_v40  ;;  %2372 = vmatpush1.bf16.msra.mxu1 %v6726_v63 }
 0x7c7   :  { %2332 = vmatprep.subr.bf16.mxu0 %v6727_v41  ;;  %2373 = vmatprep.subr.bf16.mxu1 %v6728_v10  ;;  %v6738_v41 = vld [vmem:[#allocation132_spill] sm:$0xff]  ;;  %v6739_v10 = vld [vmem:[#allocation5_spill] sm:$0xff] }
 0x7ca   :  { %2333 = vmatpush1.bf16.msra.mxu0 %v6729_v47  ;;  %2374 = vmatpush1.bf16.msra.mxu1 %v6730_v62  ;;  %v6740_v47 = vld [vmem:[#allocation7_spill] sm:$0xff] }
 0x7cb   :  { %2334 = vmatprep.subr.bf16.mxu0 %v6731_v33  ;;  %2375 = vmatprep.subr.bf16.mxu1 %v6732_v58  ;;  %v6741_v58 = vld [vmem:[#allocation6_spill] sm:$0xff]  ;;  %v6750_v33 = vld [vmem:[#allocation16_spill] sm:$0xff] }
 0x7ce   :  { %2335 = vmatpush1.bf16.msra.mxu0 %v6733_v56  ;;  %2376 = vmatpush1.bf16.msra.mxu1 %v6734_v18  ;;  %v6742_v56 = vld [vmem:[#allocation8_spill] sm:$0xff]  ;;  %v6743_v18 = vld [vmem:[#allocation9_spill] sm:$0xff] }
 0x7cf   :  { %2336 = vmatprep.subr.bf16.mxu0 %v6735_v57  ;;  %2377 = vmatprep.subr.bf16.mxu1 %v6736_v2  ;;  %v6744_v57 = vld [vmem:[#allocation10_spill] sm:$0xff]  ;;  %v6745_v2 = vld [vmem:[#allocation11_spill] sm:$0xff] }
 0x7d2   :  { %2337 = vmatpush1.bf16.msra.mxu0 %v6737_v53  ;;  %2378 = vmatpush1.bf16.msra.mxu1 %v6738_v41  ;;  %v6746_v53 = vld [vmem:[#allocation12_spill] sm:$0xff]  ;;  %v6747_v41 = vld [vmem:[#allocation13_spill] sm:$0xff] }
 0x7d3   :  { %2460 = vmatprep.subr.bf16.mxu0 %v6739_v10  ;;  %2501 = vmatprep.subr.bf16.mxu1 %v6740_v47  ;;  %v6748_v10 = vld [vmem:[#allocation14_spill] sm:$0xff]  ;;  %v6749_v47 = vld [vmem:[#allocation15_spill] sm:$0xff] }
 0x7d5   :  { %2339 = vmatmul.mubr.bf16.vlgmr.msra.gmra.mrb[52].mxu0 %v5406_v13  ;;  %2380 = vmatmul.mubr.bf16.vlgmr.msra.gmra.mrb[52].mxu1 %v5406_v13  ;;  %v6751_v13 = vld [vmem:[#allocation17_spill] sm:$0xff] }
 0x7d6   :  { %2461 = vmatpush1.bf16.msra.mxu0 %v6741_v58  ;;  %2502 = vmatpush1.bf16.msra.mxu1 %v6742_v56  ;;  %v6752_v58 = vld [vmem:[#allocation18_spill] sm:$0xff]  ;;  %v6753_v56 = vld [vmem:[#allocation19_spill] sm:$0xff] }
 0x7d7   :  { %2462 = vmatprep.subr.bf16.mxu0 %v6743_v18  ;;  %2503 = vmatprep.subr.bf16.mxu1 %v6744_v57  ;;  %v6754_v18 = vld [vmem:[#allocation20_spill] sm:$0xff]  ;;  %v6755_v57 = vld [vmem:[#allocation21_spill] sm:$0xff] }
 0x7da   :  { %2463 = vmatpush1.bf16.msra.mxu0 %v6745_v2  ;;  %2504 = vmatpush1.bf16.msra.mxu1 %v6746_v53  ;;  %v6756_v2 = vld [vmem:[#allocation22_spill] sm:$0xff]  ;;  %v6757_v53 = vld [vmem:[#allocation23_spill] sm:$0xff] }
 0x7db   :  { %2464 = vmatprep.subr.bf16.mxu0 %v6747_v41  ;;  %2505 = vmatprep.subr.bf16.mxu1 %v6748_v10  ;;  %v6758_v41 = vld [vmem:[#allocation24_spill] sm:$0xff]  ;;  %v6759_v10 = vld [vmem:[#allocation25_spill] sm:$0xff] }
 0x7de   :  { %2465 = vmatpush1.bf16.msra.mxu0 %v6749_v47  ;;  %2506 = vmatpush1.bf16.msra.mxu1 %v6750_v33  ;;  %v6760_v47 = vld [vmem:[#allocation26_spill] sm:$0xff]  ;;  %v6761_v33 = vld [vmem:[#allocation27_spill] sm:$0xff] }
 0x7df   :  { %2466 = vmatprep.subr.bf16.mxu0 %v6751_v13  ;;  %2507 = vmatprep.subr.bf16.mxu1 %v6752_v58  ;;  %v6762_v13 = vld [vmem:[#allocation28_spill] sm:$0xff]  ;;  %v6763_v58 = vld [vmem:[#allocation29_spill] sm:$0xff] }
 0x7e2   :  { %2467 = vmatpush1.bf16.msra.mxu0 %v6753_v56  ;;  %2508 = vmatpush1.bf16.msra.mxu1 %v6754_v18  ;;  %v6764_v56 = vld [vmem:[#allocation30_spill] sm:$0xff]  ;;  %v6765_v18 = vld [vmem:[#allocation31_spill] sm:$0xff] }
 0x7e3   :  { %2468 = vmatprep.subr.bf16.mxu0 %v6755_v57  ;;  %2509 = vmatprep.subr.bf16.mxu1 %v6756_v2  ;;  %v6766_v57 = vld [vmem:[#allocation32_spill] sm:$0xff]  ;;  %v6767_v2 = vld [vmem:[#allocation33_spill] sm:$0xff] }
 0x7e6   :  { %2469 = vmatpush1.bf16.msra.mxu0 %v6757_v53  ;;  %2510 = vmatpush1.bf16.msra.mxu1 %v6758_v41  ;;  %v6768_v53 = vld [vmem:[#allocation34_spill] sm:$0xff]  ;;  %v6769_v41 = vld [vmem:[#allocation35_spill] sm:$0xff] }
 0x7e7   :  { %2470 = vmatprep.subr.bf16.mxu0 %v6759_v10  ;;  %2511 = vmatprep.subr.bf16.mxu1 %v6760_v47  ;;  %v6770_v10 = vld [vmem:[#allocation36_spill] sm:$0xff]  ;;  %v6771_v47 = vld [vmem:[#allocation37_spill] sm:$0xff] }
 0x7ea   :  { %2471 = vmatpush1.bf16.msra.mxu0 %v6761_v33  ;;  %2512 = vmatpush1.bf16.msra.mxu1 %v6762_v13  ;;  %v6772_v33 = vld [vmem:[#allocation38_spill] sm:$0xff]  ;;  %v6773_v13 = vld [vmem:[#allocation39_spill] sm:$0xff] }
 0x7eb   :  { %2472 = vmatprep.subr.bf16.mxu0 %v6763_v58  ;;  %2513 = vmatprep.subr.bf16.mxu1 %v6764_v56  ;;  %v6774_v58 = vld [vmem:[#allocation40_spill] sm:$0xff]  ;;  %v6775_v56 = vld [vmem:[#allocation41_spill] sm:$0xff] }
 0x7ee   :  { %2473 = vmatpush1.bf16.msra.mxu0 %v6765_v18  ;;  %2514 = vmatpush1.bf16.msra.mxu1 %v6766_v57  ;;  %v6776_v18 = vld [vmem:[#allocation42_spill] sm:$0xff]  ;;  %v6777_v57 = vld [vmem:[#allocation43_spill] sm:$0xff] }
 0x7ef   :  { %2474 = vmatprep.subr.bf16.mxu0 %v6767_v2  ;;  %2515 = vmatprep.subr.bf16.mxu1 %v6768_v53  ;;  %v6778_v2 = vld [vmem:[#allocation44_spill] sm:$0xff]  ;;  %v6779_v53 = vld [vmem:[#allocation45_spill] sm:$0xff] }
 0x7f2   :  { %2475 = vmatpush1.bf16.msra.mxu0 %v6769_v41  ;;  %2516 = vmatpush1.bf16.msra.mxu1 %v6770_v10  ;;  %v6780_v41 = vld [vmem:[#allocation46_spill] sm:$0xff]  ;;  %v6781_v10 = vld [vmem:[#allocation47_spill] sm:$0xff] }
 0x7f3   :  { %2476 = vmatprep.subr.bf16.mxu0 %v6771_v47  ;;  %2517 = vmatprep.subr.bf16.mxu1 %v6772_v33  ;;  %v6782_v47 = vld [vmem:[#allocation48_spill] sm:$0xff]  ;;  %v6783_v33 = vld [vmem:[#allocation49_spill] sm:$0xff] }
 0x7f6   :  { %2477 = vmatpush1.bf16.msra.mxu0 %v6773_v13  ;;  %2518 = vmatpush1.bf16.msra.mxu1 %v6774_v58  ;;  %v6784_v13 = vld [vmem:[#allocation50_spill] sm:$0xff]  ;;  %v6785_v58 = vld [vmem:[#allocation51_spill] sm:$0xff] }
 0x7f7   :  { %2478 = vmatprep.subr.bf16.mxu0 %v6775_v56  ;;  %2519 = vmatprep.subr.bf16.mxu1 %v6776_v18  ;;  %v6786_v56 = vld [vmem:[#allocation52_spill] sm:$0xff]  ;;  %v6787_v18 = vld [vmem:[#allocation53_spill] sm:$0xff] }
 0x7fa   :  { %2479 = vmatpush1.bf16.msra.mxu0 %v6777_v57  ;;  %2520 = vmatpush1.bf16.msra.mxu1 %v6778_v2  ;;  %v6788_v57 = vld [vmem:[#allocation54_spill] sm:$0xff]  ;;  %v6789_v2 = vld [vmem:[#allocation55_spill] sm:$0xff] }
 0x7fb   :  { %2480 = vmatprep.subr.bf16.mxu0 %v6779_v53  ;;  %2521 = vmatprep.subr.bf16.mxu1 %v6780_v41  ;;  %v6790_v53 = vld [vmem:[#allocation56_spill] sm:$0xff]  ;;  %v6791_v41 = vld [vmem:[#allocation57_spill] sm:$0xff] }
 0x7fe   :  { %2481 = vmatpush1.bf16.msra.mxu0 %v6781_v10  ;;  %2522 = vmatpush1.bf16.msra.mxu1 %v6782_v47  ;;  %v6792_v10 = vld [vmem:[#allocation58_spill] sm:$0xff]  ;;  %v6793_v47 = vld [vmem:[#allocation59_spill] sm:$0xff] }
 0x7ff   :  { %2482 = vmatprep.subr.bf16.mxu0 %v6783_v33  ;;  %2523 = vmatprep.subr.bf16.mxu1 %v6784_v13  ;;  %v6794_v33 = vld [vmem:[#allocation60_spill] sm:$0xff]  ;;  %v6795_v13 = vld [vmem:[#allocation61_spill] sm:$0xff] }
 0x802   :  { %2483 = vmatpush1.bf16.msra.mxu0 %v6785_v58  ;;  %2524 = vmatpush1.bf16.msra.mxu1 %v6786_v56  ;;  %v6796_v58 = vld [vmem:[#allocation62_spill] sm:$0xff]  ;;  %v6797_v56 = vld [vmem:[#allocation63_spill] sm:$0xff] }
 0x803   :  { %2484 = vmatprep.subr.bf16.mxu0 %v6787_v18  ;;  %2525 = vmatprep.subr.bf16.mxu1 %v6788_v57  ;;  %v6798_v18 = vld [vmem:[#allocation64_spill] sm:$0xff]  ;;  %v6799_v57 = vld [vmem:[#allocation65_spill] sm:$0xff] }
 0x806   :  { %2485 = vmatpush1.bf16.msra.mxu0 %v6789_v2  ;;  %2526 = vmatpush1.bf16.msra.mxu1 %v6790_v53  ;;  %v6800_v2 = vld [vmem:[#allocation66_spill] sm:$0xff]  ;;  %v6801_v53 = vld [vmem:[#allocation67_spill] sm:$0xff] }
 0x807   :  { %2486 = vmatprep.subr.bf16.mxu0 %v6791_v41  ;;  %2527 = vmatprep.subr.bf16.mxu1 %v6792_v10  ;;  %v6802_v41 = vld [vmem:[#allocation68_spill] sm:$0xff]  ;;  %v6803_v10 = vld [vmem:[#allocation69_spill] sm:$0xff] }
 0x80a   :  { %2487 = vmatpush1.bf16.msra.mxu0 %v6793_v47  ;;  %2528 = vmatpush1.bf16.msra.mxu1 %v6794_v33  ;;  %v6804_v47 = vld [vmem:[#allocation70_spill] sm:$0xff] }
 0x80b   :  { %2488 = vmatprep.subr.bf16.mxu0 %v6795_v13  ;;  %2529 = vmatprep.subr.bf16.mxu1 %v6796_v58 }
 0x80e   :  { %2489 = vmatpush1.bf16.msra.mxu0 %v6797_v56  ;;  %2530 = vmatpush1.bf16.msra.mxu1 %v6798_v18 }
 0x80f   :  { %2490 = vmatprep.subr.bf16.mxu0 %v6799_v57  ;;  %2531 = vmatprep.subr.bf16.mxu1 %v6800_v2  ;;  %v3224_v57 = vld [vmem:[%s5832_s0 + $0x180] sm:$0xff]  ;;  %v3226_v2 = vld [vmem:[%s5832_s0 + $0x190] sm:$0xff] }
 0x812   :  { %2491 = vmatpush1.bf16.msra.mxu0 %v6801_v53  ;;  %2532 = vmatpush1.bf16.msra.mxu1 %v6802_v41  ;;  %v3225_v41 = vld [vmem:[%s5832_s0 + $0x188] sm:$0xff] }
 0x813   :  { %2542 = vmatprep.subr.bf16.mxu0 %v6803_v10  ;;  %2583 = vmatprep.subr.bf16.mxu1 %v6804_v47 }
 0x868   :  { %v2258_v33 = vpop.f32.mrb[48].mxu0  ;;  %v2299_v13 = vpop.f32.mrb[48].mxu1 }
 0x869   :  { %v2260_v62 = vpop.f32.mrb[49].mxu0  ;;  %v2301_v58 = vpop.f32.mrb[49].mxu1  ;;  %v2388_v53 = vadd.f32 %v3224_v57, %v2258_v33  ;;  %v2390_v10 = vadd.f32 %v3226_v2, %v2299_v13 }
 0x86a   :  { %v2262_v63 = vpop.f32.mrb[50].mxu0  ;;  %v2303_v56 = vpop.f32.mrb[50].mxu1 }
 0x86b   :  { %v2263_v40 = vpop.f32.mrb[51].mxu0  ;;  %v2304_v18 = vpop.f32.mrb[51].mxu1  ;;  %v3227_v63 = vld [vmem:[%s5832_s0 + $0x198] sm:$0xff]  ;;  %v3232_v47 = vmul.f32 -1.442695, %v2388_v53 }
 0x86c   :  { %v2389_v40 = vadd.f32 %v3225_v41, %v2260_v62  ;;  %v2391_v56 = vadd.f32 %v3227_v63, %v2301_v58  ;;  %v3234_v18 = vmul.f32 -1.442695, %v2390_v10  ;;  %v3228_v62 = vld [vmem:[%s5832_s0 + $0x1a0] sm:$0xff]  ;;  %v3230_v58 = vld [vmem:[%s5832_s0 + $0x1b0] sm:$0xff] }
 0x86d   :  { %3534 = vpow2.f32 %v3232_v47 }
 0x86e   :  { %v3233_v0 = vmul.f32 -1.442695, %v2389_v40  ;;  %v3235_v59 = vmul.f32 -1.442695, %v2391_v56  ;;  %3536 = vpow2.f32 %v3234_v18 }
 0x870   :  { %3538 = vpow2.f32 %v3233_v0  ;;  %v3231_v0 = vld [vmem:[%s5832_s0 + $0x1b8] sm:$0xff] }
 0x871   :  { %3540 = vpow2.f32 %v3235_v59  ;;  %v3229_v59 = vld [vmem:[%s5832_s0 + $0x1a8] sm:$0xff] }
 0x877   :  { %v3535_v33 = vpop.eup %3534 }
 0x878   :  { %v3537_v57 = vpop.eup %3536  ;;  %v2402_v1 = vadd.f32 1.0, %v3535_v33 }
 0x879   :  { %v2414_v13 = vadd.f32 1.0, %v3537_v57 }
 0x87a   :  { %v3539_v32 = vpop.eup %3538  ;;  %3542 = vrcp.f32 %v2402_v1 }
 0x87b   :  { %v3541_v36 = vpop.eup %3540  ;;  %v2403_v2 = vadd.f32 1.0, %v3539_v32  ;;  %3544 = vrcp.f32 %v2414_v13 }
 0x87c   :  { %v2415_v3 = vadd.f32 1.0, %v3541_v36 }
 0x87d   :  { %3546 = vrcp.f32 %v2403_v2 }
 0x87e   :  { %3548 = vrcp.f32 %v2415_v3 }
 0x884   :  { %v3543_v13 = vpop.eup %3542 }
 0x885   :  { %v3545_v11 = vpop.eup %3544 }
 0x886   :  { %v2434_v3 = vmul.f32 %v3545_v11, %v5392_v48 }
 0x887   :  { %v3547_v2 = vpop.eup %3546 }
 0x8a8   :  { %v2340_v32 = vpop.f32.mrb[52].mxu0  ;;  %v2381_v36 = vpop.f32.mrb[52].mxu1 }
 0x8a9   :  { %v2392_v53 = vadd.f32 %v3228_v62, %v2340_v32  ;;  %v2394_v41 = vadd.f32 %v3230_v58, %v2381_v36  ;;  %v2342_v10 = vpop.f32.mrb[53].mxu0  ;;  %v2383_v63 = vpop.f32.mrb[53].mxu1 }
 0x8aa   :  { %v2393_v40 = vadd.f32 %v3229_v59, %v2342_v10  ;;  %v2395_v47 = vadd.f32 %v3231_v0, %v2383_v63  ;;  %v2344_v1 = vpop.f32.mrb[54].mxu0  ;;  %v2385_v56 = vpop.f32.mrb[54].mxu1 }
 0x8ab   :  { %3550 = vtanh.f32 %v2392_v53  ;;  %v3236_v18 = vmul.f32 -1.442695, %v2394_v41  ;;  %v2345_v33 = vpop.f32.mrb[55].mxu0  ;;  %v2386_v57 = vpop.f32.mrb[55].mxu1 }
 0x8ac   :  { %3552 = vtanh.f32 %v2393_v40  ;;  %v3237_v31 = vmul.f32 -1.442695, %v2395_v47  ;;  %v3549_v62 = vpop.eup %3548  ;;  %v3338_v57 = vld [vmem:[%s5833_s2 + $0x70] sm:$0xff]  }
 0x8ad   :  { %3554 = vpow2.f32 %v3236_v18  ;;  %v2435_v36 = vmul.f32 %v3549_v62, %v5394_v42  ;;  %v3341_v62 = vld [vmem:[%s5833_s2 + $0x38] sm:$0xff]  }
 0x8ae   :  { %3556 = vpow2.f32 %v3237_v31 }
 0x8b5   :  { %v3551_v58 = vpop.eup %3550 }
 0x8b6   :  { %v3553_v32 = vpop.eup %3552  ;;  %v2436_v59 = vmul.f32 %v3551_v58, %v3543_v13  ;;  %v3339_v13 = vld [vmem:[%s5833_s2 + $0x30] sm:$0xff]   ;;  %v6831_v58 = vld [vmem:[#allocation133_spill] sm:$0xff] }
 0x8b7   :  { %v3555_v0 = vpop.eup %3554  ;;  %v2437_v53 = vmul.f32 %v3553_v32, %v3547_v2  ;;  %v3340_v2 = vld [vmem:[%s5833_s2 + $0x78] sm:$0xff]   ;;  %v6832_v32 = vld [vmem:[#allocation71_spill] sm:$0xff] }
 0x8b8   :  { %v3557_v41 = vpop.eup %3556  ;;  %v5566_v10 = vadd.f32 %v2436_v59, %v2434_v3  ;;  %v2428_v63 = vadd.f32 1.0, %v3555_v0  ;;  %v2705_v3 = vpack.c.bf16 %v6832_v32, %v6831_v58  ;;  %v6833_v59 = vld [vmem:[#allocation77_spill] sm:$0xff]  ;;  %v6834_v0 = vld [vmem:[#allocation79_spill] sm:$0xff] }
 0x8b9   :  { %v5568_v40 = vadd.f32 %v2437_v53, %v2435_v36  ;;  %v2429_v31 = vadd.f32 1.0, %v3557_v41  ;;  %v2709_v36 = vpack.c.bf16 %v6834_v0, %v6833_v59  ;;  %v6835_v53 = vld [vmem:[#allocation74_spill] sm:$0xff]  ;;  %v6836_v41 = vld [vmem:[#allocation76_spill] sm:$0xff] }
 0x8ba   :  { %3558 = vtanh.f32 %v5566_v10 }
 0x8bb   :  { %3560 = vrcp.f32 %v2428_v63  ;;  %v2708_v63 = vpack.c.bf16 %v6836_v41, %v6835_v53 }
 0x8bc   :  { %3562 = vtanh.f32 %v5568_v40 }
 0x8bd   :  { %3564 = vrcp.f32 %v2429_v31  ;;  %v6837_v31 = vld [vmem:[#allocation73_spill] sm:$0xff] }
 0x8c4   :  { %v3559_v47 = vpop.eup %3558 }
 0x8c5   :  { %v3561_v48 = vpop.eup %3560 }
 0x8c6   :  { %v3563_v11 = vpop.eup %3562  ;;  %v5572_v56 = vmul.f32 %v3561_v48, %v3559_v47  ;;  %v6838_v47 = vld [vmem:[#allocation75_spill] sm:$0xff] }
 0x8c7   :  { %v3565_v1 = vpop.eup %3564  ;;  %v2707_v48 = vpack.c.bf16 %v6838_v47, %v6837_v31 }
 0x8c8   :  { %v5574_v42 = vmul.f32 %v3565_v1, %v3563_v11  ;;  %v5580_v33 = vpack.c.bf16 %v5572_v56, %v5572_v56 }
 0x8ca   :  { %v2459_v18 = vpack.c.bf16 %v5574_v42, %v5574_v42 }
 0x8cc   :  { %2492 = vmatprep.mubr.bf16.mxu0 %v2459_v18  ;;  %2533 = vmatprep.mubr.bf16.mxu1 %v2459_v18 }
 0x8cd   :  { %2493 = vmatmul.mubr.bf16.vlgmr.msra.gmra.mrb[56].mxu0 %v5580_v33  ;;  %2534 = vmatmul.mubr.bf16.vlgmr.msra.gmra.mrb[56].mxu1 %v5580_v33 }
 0x8ce   :  { %2543 = vmatpush1.bf16.msra.mxu0 %v6269_v17  ;;  %2584 = vmatpush1.bf16.msra.mxu1 %v6270_v50  ;;  %v6805_v17 = vld [vmem:[#allocation111_spill] sm:$0xff]  ;;  %v6806_v50 = vld [vmem:[#allocation112_spill] sm:$0xff] }
 0x8cf   :  { %2574 = vmatprep.mubr.bf16.mxu0 %v2459_v18  ;;  %2615 = vmatprep.mubr.bf16.mxu1 %v2459_v18 }
 0x8d0   :  { %2544 = vmatprep.subr.bf16.mxu0 %v6271_v39  ;;  %2585 = vmatprep.subr.bf16.mxu1 %v6272_v8  ;;  %v6807_v39 = vld [vmem:[#allocation113_spill] sm:$0xff]  ;;  %v6808_v8 = vld [vmem:[#allocation114_spill] sm:$0xff] }
 0x8d2   :  { %2545 = vmatpush1.bf16.msra.mxu0 %v6273_v55  ;;  %2586 = vmatpush1.bf16.msra.mxu1 %v6274_v34  ;;  %v6809_v55 = vld [vmem:[#allocation115_spill] sm:$0xff]  ;;  %v6810_v34 = vld [vmem:[#allocation116_spill] sm:$0xff] }
 0x8d3   :  { %2546 = vmatprep.subr.bf16.mxu0 %v6275_v24  ;;  %2587 = vmatprep.subr.bf16.mxu1 %v6276_v25  ;;  %v6811_v24 = vld [vmem:[#allocation117_spill] sm:$0xff]  ;;  %v6812_v25 = vld [vmem:[#allocation118_spill] sm:$0xff] }
 0x8d6   :  { %2547 = vmatpush1.bf16.msra.mxu0 %v6357_v51  ;;  %2588 = vmatpush1.bf16.msra.mxu1 %v6358_v61  ;;  %v6813_v51 = vld [vmem:[#allocation119_spill] sm:$0xff]  ;;  %v6816_v61 = vld [vmem:[#allocation122_spill] sm:$0xff] }
 0x8d7   :  { %2548 = vmatprep.subr.bf16.mxu0 %v6359_v29  ;;  %2589 = vmatprep.subr.bf16.mxu1 %v6360_v46  ;;  %v6817_v29 = vld [vmem:[#allocation123_spill] sm:$0xff]  ;;  %v6818_v46 = vld [vmem:[#allocation124_spill] sm:$0xff] }
 0x8da   :  { %2549 = vmatpush1.bf16.msra.mxu0 %v6361_v52  ;;  %2590 = vmatpush1.bf16.msra.mxu1 %v6362_v35  ;;  %v6819_v52 = vld [vmem:[#allocation125_spill] sm:$0xff]  ;;  %v6820_v35 = vld [vmem:[#allocation126_spill] sm:$0xff] }
 0x8db   :  { %2550 = vmatprep.subr.bf16.mxu0 %v6363_v28  ;;  %2591 = vmatprep.subr.bf16.mxu1 %v6364_v38  ;;  %v6821_v28 = vld [vmem:[#allocation127_spill] sm:$0xff]  ;;  %v6822_v38 = vld [vmem:[#allocation128_spill] sm:$0xff] }
 0x8de   :  { %2551 = vmatpush1.bf16.msra.mxu0 %v6365_v37  ;;  %2592 = vmatpush1.bf16.msra.mxu1 %v6366_v30  ;;  %v6823_v37 = vld [vmem:[#allocation129_spill] sm:$0xff]  ;;  %v6824_v30 = vld [vmem:[#allocation130_spill] sm:$0xff] }
 0x8df   :  { %2552 = vmatprep.subr.bf16.mxu0 %v6447_v9  ;;  %2593 = vmatprep.subr.bf16.mxu1 %v6448_v19  ;;  %v6829_v9 = vld [vmem:[#allocation78_spill] sm:$0xff]  ;;  %v6830_v19 = vld [vmem:[#allocation80_spill] sm:$0xff] }
 0x8e2   :  { %2553 = vmatpush1.bf16.msra.mxu0 %v6449_v16  ;;  %2594 = vmatpush1.bf16.msra.mxu1 %v6450_v4  ;;  %v2710_v16 = vpack.c.bf16 %v6830_v19, %v6829_v9  ;;  %v3329_v4 = vld [vmem:[%s5833_s2 + $0x8] sm:$0xff]  }
 0x8e3   :  { %2554 = vmatprep.subr.bf16.mxu0 %v6451_v6  ;;  %2595 = vmatprep.subr.bf16.mxu1 %v6452_v21  ;;  %v3330_v6 = vld [vmem:[%s5833_s2 + $0x50] sm:$0xff]  }
 0x8e4   :  { %v3331_v21 = vld [vmem:[%s5833_s2 + $0x10] sm:$0xff]  }
 0x8e6   :  { %2555 = vmatpush1.bf16.msra.mxu0 %v6453_v26  ;;  %2596 = vmatpush1.bf16.msra.mxu1 %v6454_v15  ;;  %v3332_v26 = vld [vmem:[%s5833_s2 + $0x58] sm:$0xff]  }
 0x8e7   :  { %2556 = vmatprep.subr.bf16.mxu0 %v6455_v20  ;;  %2597 = vmatprep.subr.bf16.mxu1 %v6456_v22  ;;  %v3333_v15 = vld [vmem:[%s5833_s2 + $0x18] sm:$0xff]   ;;  %v3334_v20 = vld [vmem:[%s5833_s2 + $0x60] sm:$0xff]  }
 0x8e8   :  { %v3335_v22 = vld [vmem:[%s5833_s2 + $0x20] sm:$0xff]  }
 0x8ea   :  { %2557 = vmatpush1.bf16.msra.mxu0 %v6457_v27  ;;  %2598 = vmatpush1.bf16.msra.mxu1 %v6458_v14  ;;  %v3336_v27 = vld [vmem:[%s5833_s2 + $0x68] sm:$0xff]  }
 0x8eb   :  { %2558 = vmatprep.subr.bf16.mxu0 %v6379_v43  ;;  %2599 = vmatprep.subr.bf16.mxu1 %v6380_v60  ;;  %v3326_v43 = vld [vmem:[%s5833_s2 + $0x40] sm:$0xff]   ;;  %v6825_v60 = vld [vmem:[#allocation131_spill] sm:$0xff]  ;;  %v3337_v14 = vld [vmem:[%s5833_s2 + $0x28] sm:$0xff]  }
 0x8ee   :  { %2559 = vmatpush1.bf16.msra.mxu0 %v6381_v5  ;;  %2600 = vmatpush1.bf16.msra.mxu1 %v6382_v7  ;;  %v6826_v5 = vld [vmem:[#allocation132_spill] sm:$0xff]  ;;  %v3327_v7 = vld [vmem:[%s5833_s2] sm:$0xff]  }
 0x8ef   :  { %2560 = vmatprep.subr.bf16.mxu0 %v6383_v23  ;;  %2601 = vmatprep.subr.bf16.mxu1 %v6384_v12  ;;  %v3328_v23 = vld [vmem:[%s5833_s2 + $0x48] sm:$0xff]  }
 0x8f0   :  { %v6827_v12 = vld [vmem:[#allocation134_spill] sm:$0xff] }
 0x8f2   :  { %2561 = vmatpush1.bf16.msra.mxu0 %v6385_v45  ;;  %2602 = vmatpush1.bf16.msra.mxu1 %v6386_v44  ;;  %v6828_v45 = vld [vmem:[#allocation72_spill] sm:$0xff] }
 0x8f3   :  { %2562 = vmatprep.subr.bf16.mxu0 %v6387_v54  ;;  %2603 = vmatprep.subr.bf16.mxu1 %v6388_v49  ;;  %v6814_v54 = vld [vmem:[#allocation120_spill] sm:$0xff]  ;;  %v6815_v49 = vld [vmem:[#allocation121_spill] sm:$0xff]  ;;  %v2706_v44 = vpack.c.bf16 %v6828_v45, %v6827_v12  ;;  %v3244_v12 = vld [vmem:[%s5832_s0 + $0x1f0] sm:$0xff] }
 0x8f4   :  { %v3243_v45 = vld [vmem:[%s5832_s0 + $0x1e8] sm:$0xff] }
 0x8f6   :  { %2563 = vmatpush1.bf16.msra.mxu0 %v6805_v17  ;;  %2604 = vmatpush1.bf16.msra.mxu1 %v6806_v50 }
 0x8f7   :  { %2564 = vmatprep.subr.bf16.mxu0 %v6807_v39  ;;  %2605 = vmatprep.subr.bf16.mxu1 %v6808_v8 }
 0x8fa   :  { %2565 = vmatpush1.bf16.msra.mxu0 %v6809_v55  ;;  %2606 = vmatpush1.bf16.msra.mxu1 %v6810_v34  ;;  %v3238_v55 = vld [vmem:[%s5832_s0 + $0x1c0] sm:$0xff]  ;;  %v3240_v34 = vld [vmem:[%s5832_s0 + $0x1d0] sm:$0xff] }
 0x8fb   :  { %2566 = vmatprep.subr.bf16.mxu0 %v6811_v24  ;;  %2607 = vmatprep.subr.bf16.mxu1 %v6812_v25  ;;  %v3239_v24 = vld [vmem:[%s5832_s0 + $0x1c8] sm:$0xff] }
 0x8fe   :  { %2567 = vmatpush1.bf16.msra.mxu0 %v6813_v51  ;;  %2608 = vmatpush1.bf16.msra.mxu1 %v6814_v54  ;;  %v3241_v51 = vld [vmem:[%s5832_s0 + $0x1d8] sm:$0xff] }
 0x8ff   :  { %2568 = vmatprep.subr.bf16.mxu0 %v6815_v49  ;;  %2609 = vmatprep.subr.bf16.mxu1 %v6816_v61 }
 0x902   :  { %2569 = vmatpush1.bf16.msra.mxu0 %v6817_v29  ;;  %2610 = vmatpush1.bf16.msra.mxu1 %v6818_v46 }
 0x903   :  { %2570 = vmatprep.subr.bf16.mxu0 %v6819_v52  ;;  %2611 = vmatprep.subr.bf16.mxu1 %v6820_v35 }
 0x906   :  { %2571 = vmatpush1.bf16.msra.mxu0 %v6821_v28  ;;  %2612 = vmatpush1.bf16.msra.mxu1 %v6822_v38 }
 0x907   :  { %2572 = vmatprep.subr.bf16.mxu0 %v6823_v37  ;;  %2613 = vmatprep.subr.bf16.mxu1 %v6824_v30 }
 0x90a   :  { %2573 = vmatpush1.bf16.msra.mxu0 %v6825_v60  ;;  %2614 = vmatpush1.bf16.msra.mxu1 %v6826_v5 }
 0x90b   :  { %3269 = vmatprep.subr.bf16.mxu0 %v3326_v43  ;;  %3309 = vmatprep.subr.bf16.mxu1 %v3326_v43 }
 0x90d   :  { %2575 = vmatmul.mubr.bf16.vlgmr.msra.gmra.mrb[60].mxu0 %v5580_v33  ;;  %2616 = vmatmul.mubr.bf16.vlgmr.msra.gmra.mrb[60].mxu1 %v5580_v33 }
 0x90e   :  { %3270 = vmatpush3.bf16.msra.mxu0 %v3327_v7  ;;  %3317 = vmatpush3.bf16.msra.mxu1 %v3327_v7 }
 0x90f   :  { %2880 = vmatprep.mubr.bf16.mxu0 %v2706_v44  ;;  %2896 = vmatprep.mubr.bf16.mxu1 %v2710_v16  ;;  %v3245_v44 = vld [vmem:[%s5832_s0 + $0x1f8] sm:$0xff] }
 0x910   :  { %3271 = vmatprep.subr.bf16.mxu0 %v3328_v23  ;;  %3310 = vmatprep.subr.bf16.mxu1 %v3328_v23  ;;  %v3242_v23 = vld [vmem:[%s5832_s0 + $0x1e0] sm:$0xff] }
 0x912   :  { %3272 = vmatpush3.bf16.msra.mxu0 %v3329_v4  ;;  %3318 = vmatpush3.bf16.msra.mxu1 %v3329_v4 }
 0x913   :  { %3273 = vmatprep.subr.bf16.mxu0 %v3330_v6  ;;  %3311 = vmatprep.subr.bf16.mxu1 %v3330_v6 }
 0x916   :  { %3274 = vmatpush3.bf16.msra.mxu0 %v3331_v21  ;;  %3319 = vmatpush3.bf16.msra.mxu1 %v3331_v21 }
 0x917   :  { %3275 = vmatprep.subr.bf16.mxu0 %v3332_v26  ;;  %3312 = vmatprep.subr.bf16.mxu1 %v3332_v26 }
 0x91a   :  { %3276 = vmatpush3.bf16.msra.mxu0 %v3333_v15  ;;  %3320 = vmatpush3.bf16.msra.mxu1 %v3333_v15 }
 0x91b   :  { %3277 = vmatprep.subr.bf16.mxu0 %v3334_v20  ;;  %3313 = vmatprep.subr.bf16.mxu1 %v3334_v20 }
 0x91e   :  { %3278 = vmatpush3.bf16.msra.mxu0 %v3335_v22  ;;  %3321 = vmatpush3.bf16.msra.mxu1 %v3335_v22 }
 0x91f   :  { %3279 = vmatprep.subr.bf16.mxu0 %v3336_v27  ;;  %3314 = vmatprep.subr.bf16.mxu1 %v3336_v27 }
 0x922   :  { %3280 = vmatpush3.bf16.msra.mxu0 %v3337_v14  ;;  %3322 = vmatpush3.bf16.msra.mxu1 %v3337_v14 }
 0x923   :  { %3281 = vmatprep.subr.bf16.mxu0 %v3338_v57  ;;  %3315 = vmatprep.subr.bf16.mxu1 %v3338_v57 }
 0x926   :  { %3282 = vmatpush3.bf16.msra.mxu0 %v3339_v13  ;;  %3323 = vmatpush3.bf16.msra.mxu1 %v3339_v13 }
 0x927   :  { %3283 = vmatprep.subr.bf16.mxu0 %v3340_v2  ;;  %3316 = vmatprep.subr.bf16.mxu1 %v3340_v2 }
 0x92a   :  { %3284 = vmatpush3.bf16.msra.mxu0 %v3341_v62  ;;  %3324 = vmatpush3.bf16.msra.mxu1 %v3341_v62 }
 0x92d   :  { %2881 = vmatmul.mubr.bf16.vlgmr.msra.gmra.mrb[64].mxu0 %v2705_v3  ;;  %2897 = vmatmul.mubr.bf16.vlgmr.msra.gmra.mrb[64].mxu1 %v2709_v36 }
 0x92e   :  { %2888 = vmatprep.mubr.bf16.mxu0 %v2708_v63 }
 0x935   :  { %2889 = vmatmul.mubr.bf16.gmra.mrb[68].mxu0 %v2707_v48 }
 0x9a0   :  { %v2494_v11 = vpop.f32.mrb[56].mxu0  ;;  %v2535_v1 = vpop.f32.mrb[56].mxu1 }
 0x9a1   :  { %v2496_v18 = vpop.f32.mrb[57].mxu0  ;;  %v2537_v33 = vpop.f32.mrb[57].mxu1  ;;  %v2624_v25 = vadd.f32 %v3238_v55, %v2494_v11  ;;  %v2626_v54 = vadd.f32 %v3240_v34, %v2535_v1 }
 0x9a2   :  { %v2498_v17 = vpop.f32.mrb[58].mxu0  ;;  %v2539_v50 = vpop.f32.mrb[58].mxu1  ;;  %v2625_v49 = vadd.f32 %v3239_v24, %v2496_v18  ;;  %v2627_v61 = vadd.f32 %v3241_v51, %v2537_v33 }
 0x9a3   :  { %v2499_v39 = vpop.f32.mrb[59].mxu0  ;;  %v2540_v8 = vpop.f32.mrb[59].mxu1  ;;  %v3246_v29 = vmul.f32 -1.442695, %v2624_v25  ;;  %v3248_v46 = vmul.f32 -1.442695, %v2626_v54 }
 0x9a4   :  { %v3247_v52 = vmul.f32 -1.442695, %v2625_v49  ;;  %v3249_v35 = vmul.f32 -1.442695, %v2627_v61 }
 0x9a5   :  { %3566 = vpow2.f32 %v3246_v29 }
 0x9a6   :  { %3568 = vpow2.f32 %v3248_v46 }
 0x9a7   :  { %3570 = vpow2.f32 %v3247_v52 }
 0x9a8   :  { %3572 = vpow2.f32 %v3249_v35 }
 0x9af   :  { %v3567_v28 = vpop.eup %3566 }
 0x9b0   :  { %v3569_v38 = vpop.eup %3568  ;;  %v2638_v43 = vadd.f32 1.0, %v3567_v28 }
 0x9b1   :  { %v3571_v37 = vpop.eup %3570  ;;  %v2650_v60 = vadd.f32 1.0, %v3569_v38 }
 0x9b2   :  { %v3573_v30 = vpop.eup %3572  ;;  %v2639_v5 = vadd.f32 1.0, %v3571_v37  ;;  %3574 = vrcp.f32 %v2638_v43 }
 0x9b3   :  { %v2651_v7 = vadd.f32 1.0, %v3573_v30  ;;  %3576 = vrcp.f32 %v2650_v60 }
 0x9b4   :  { %3578 = vrcp.f32 %v2639_v5 }
 0x9b5   :  { %3580 = vrcp.f32 %v2651_v7 }
 0x9bc   :  { %v3575_v2 = vpop.eup %3574 }
 0x9bd   :  { %v3577_v62 = vpop.eup %3576 }
 0x9be   :  { %v3579_v58 = vpop.eup %3578  ;;  %v2670_v0 = vmul.f32 %v3577_v62, %v5566_v10 }
 0x9bf   :  { %v3581_v32 = vpop.eup %3580 }
 0x9c0   :  { %v2671_v41 = vmul.f32 %v3581_v32, %v5568_v40  ;;  %v3252_v40 = vld [vmem:[%s5834_s3] ss:$0 sm:$0xff] }
 0x9e0   :  { %v2576_v9 = vpop.f32.mrb[60].mxu0  ;;  %v2617_v19 = vpop.f32.mrb[60].mxu1 }
 0x9e1   :  { %v2628_v16 = vadd.f32 %v3242_v23, %v2576_v9  ;;  %v2630_v4 = vadd.f32 %v3244_v12, %v2617_v19  ;;  %v2578_v6 = vpop.f32.mrb[61].mxu0  ;;  %v2619_v21 = vpop.f32.mrb[61].mxu1 }
 0x9e2   :  { %v2629_v26 = vadd.f32 %v3243_v45, %v2578_v6  ;;  %v2631_v15 = vadd.f32 %v3245_v44, %v2619_v21  ;;  %v2580_v20 = vpop.f32.mrb[62].mxu0  ;;  %v2621_v22 = vpop.f32.mrb[62].mxu1 }
 0x9e3   :  { %3582 = vtanh.f32 %v2628_v16  ;;  %v3250_v27 = vmul.f32 -1.442695, %v2630_v4  ;;  %v2581_v14 = vpop.f32.mrb[63].mxu0  ;;  %v2622_v57 = vpop.f32.mrb[63].mxu1 }
 0x9e4   :  { %3584 = vtanh.f32 %v2629_v26  ;;  %v3251_v13 = vmul.f32 -1.442695, %v2631_v15 }
 0x9e5   :  { %3586 = vpow2.f32 %v3250_v27 }
 0x9e6   :  { %3588 = vpow2.f32 %v3251_v13 }
 0x9ed   :  { %v3583_v3 = vpop.eup %3582 }
 0x9ee   :  { %v3585_v59 = vpop.eup %3584  ;;  %v2672_v36 = vmul.f32 %v3583_v3, %v3575_v2 }
 0x9ef   :  { %v3587_v53 = vpop.eup %3586  ;;  %v2673_v63 = vmul.f32 %v3585_v59, %v3579_v58 }
 0x9f0   :  { %v3589_v31 = vpop.eup %3588  ;;  %v2674_v47 = vadd.f32 %v2672_v36, %v2670_v0  ;;  %v2664_v48 = vadd.f32 1.0, %v3587_v53 }
 0x9f1   :  { %v2675_v11 = vadd.f32 %v2673_v63, %v2671_v41  ;;  %v2665_v1 = vadd.f32 1.0, %v3589_v31 }
 0x9f2   :  { %3590 = vtanh.f32 %v2674_v47 }
 0x9f3   :  { %3592 = vrcp.f32 %v2664_v48 }
 0x9f4   :  { %3594 = vtanh.f32 %v2675_v11 }
 0x9f5   :  { %3596 = vrcp.f32 %v2665_v1 }
 0x9fc   :  { %v3591_v18 = vpop.eup %3590 }
 0x9fd   :  { %v3593_v33 = vpop.eup %3592 }
 0x9fe   :  { %v3595_v17 = vpop.eup %3594  ;;  %v2678_v50 = vmul.f32 %v3593_v33, %v3591_v18 }
 0x9ff   :  { %v3597_v39 = vpop.eup %3596 }
 0xa00   :  { %v3285_v10 = vpop.f32.mrb[64].mxu0  ;;  %v3297_v8 = vpop.f32.mrb[64].mxu1  ;;  %v2679_v55 = vmul.f32 %v3597_v39, %v3595_v17  ;;  %v2711_v52 = vpack.c.bf16 %v2678_v50, %v5572_v56 }
 0xa01   :  { %v3286_v34 = vpop.f32.mrb[65].mxu0  ;;  %v3298_v24 = vpop.f32.mrb[65].mxu1 }
 0xa02   :  { %v3287_v25 = vadd.f32 %v3286_v34, %v3285_v10  ;;  %v3299_v51 = vadd.f32 %v3298_v24, %v3297_v8  ;;  %v3288_v54 = vpop.f32.mrb[66].mxu0  ;;  %v3300_v49 = vpop.f32.mrb[66].mxu1  ;;  %v2712_v61 = vpack.c.bf16 %v2679_v55, %v5574_v42 }
 0xa03   :  { %v3289_v29 = vpop.f32.mrb[67].mxu0  ;;  %v3301_v46 = vpop.f32.mrb[67].mxu1 }
 0xa04   :  { %v5739_v35 = vadd.f32 %v3287_v25, %v3252_v40  ;;  %2904 = vmatprep.mubr.bf16.mxu1 %v2712_v61  ;;  %v3290_v28 = vadd.f32 %v3289_v29, %v3288_v54  ;;  %v3302_v38 = vadd.f32 %v3301_v46, %v3300_v49  ;;  %v5744_v30 = vadd.f32 %v3299_v51, %v3252_v40 }
 0xa05   :  { %2905 = vmatmul.mubr.bf16.gmra.mrb[68].mxu1 %v2711_v52 }
 0xa06   :  { %v5741_v37 = vadd.f32 %v3302_v38, %v3252_v40  ;;  %2913 = vmax.xlane.f32.xlu0 %v5739_v35  ;;  %v5748_v7 = vadd.f32 %v3290_v28, %v3252_v40 }
 0xa08   :  { %2923 = vmax.xlane.f32.xlu1 %v5741_v37  ;;  %v3291_v43 = vpop.f32.mrb[68].mxu0 }
 0xa09   :  { %v3292_v42 = vpop.f32.mrb[69].mxu0 }
 0xa0a   :  { %v3293_v60 = vadd.f32 %v3292_v42, %v3291_v43  ;;  %v3294_v5 = vpop.f32.mrb[70].mxu0  ;;  %2921 = vmax.xlane.f32.xlu0 %v5744_v30 }
 0xa0b   :  { %v3295_v56 = vpop.f32.mrb[71].mxu0 }
 0xa0c   :  { %v5750_v23 = vadd.f32 %v3293_v60, %v3252_v40  ;;  %v3296_v12 = vadd.f32 %v3295_v56, %v3294_v5 }
 0xa0e   :  { %2917 = vmax.xlane.f32.xlu1 %v5750_v23  ;;  %2915 = vmax.xlane.f32.xlu0 %v5748_v7  ;;  %v5754_v45 = vadd.f32 %v3296_v12, %v3252_v40 }
 0xa12   :  { %2919 = vmax.xlane.f32.xlu1 %v5754_v45 }
 0xa93   :  { %v5757_v44 = vpop.xlane.xlu0 %2913 }
 0xa94   :  { %v2929_v6 = vsub.f32 %v5739_v35, %v5757_v44 }
 0xa95   :  { %v5759_v9 = vpop.xlane.xlu1 %2923 }
 0xa96   :  { %v2937_v15 = vmul.f32 1.442695, %v2929_v6  ;;  %v2934_v2 = vsub.f32 %v5741_v37, %v5759_v9 }
 0xa97   :  { %v5761_v19 = vpop.xlane.xlu0 %2921 }
 0xa98   :  { %3598 = vpow2.f32 %v2937_v15  ;;  %v2933_v14 = vsub.f32 %v5744_v30, %v5761_v19  ;;  %v2947_v41 = vmul.f32 1.442695, %v2934_v2 }
 0xa9a   :  { %v2945_v59 = vmul.f32 1.442695, %v2933_v14 }
 0xa9b   :  { %v5763_v16 = vpop.xlane.xlu1 %2917  ;;  %v5765_v4 = vpop.xlane.xlu0 %2915 }
 0xa9c   :  { %v2930_v21 = vsub.f32 %v5748_v7, %v5765_v4  ;;  %v2931_v20 = vsub.f32 %v5750_v23, %v5763_v16 }
 0xa9e   :  { %v2939_v22 = vmul.f32 1.442695, %v2930_v21  ;;  %v2941_v57 = vmul.f32 1.442695, %v2931_v20 }
 0xa9f   :  { %v5771_v26 = vpop.xlane.xlu1 %2919 }
 0xaa0   :  { %v2932_v27 = vsub.f32 %v5754_v45, %v5771_v26  ;;  %3600 = vpow2.f32 %v2939_v22 }
 0xaa1   :  { %3602 = vpow2.f32 %v2941_v57 }
 0xaa2   :  { %v2943_v62 = vmul.f32 1.442695, %v2932_v27  ;;  %v3599_v31 = vpop.eup %3598 }
 0xaa4   :  { %3604 = vpow2.f32 %v2943_v62 }
 0xaa5   :  { %3606 = vpow2.f32 %v2945_v59 }
 0xaa6   :  { %3608 = vpow2.f32 %v2947_v41 }
 0xaaa   :  { %v3601_v47 = vpop.eup %3600 }
 0xaab   :  { %v3603_v48 = vpop.eup %3602 }
 0xaae   :  { %v3605_v11 = vpop.eup %3604 }
 0xaaf   :  { %v3607_v1 = vpop.eup %3606 }
 0xab0   :  { %v3609_v18 = vpop.eup %3608 }
 0xad8   :  { %v3303_v13 = vpop.f32.mrb[68].mxu1 }
 0xad9   :  { %v3304_v58 = vpop.f32.mrb[69].mxu1 }
 0xada   :  { %v3305_v32 = vadd.f32 %v3304_v58, %v3303_v13  ;;  %v3306_v3 = vpop.f32.mrb[70].mxu1 }
 0xadb   :  { %v3307_v0 = vpop.f32.mrb[71].mxu1 }
 0xadc   :  { %v5781_v36 = vadd.f32 %v3305_v32, %v3252_v40  ;;  %v3308_v53 = vadd.f32 %v3307_v0, %v3306_v3 }
 0xade   :  { %v5783_v63 = vadd.f32 %v3308_v53, %v3252_v40  ;;  %2925 = vmax.xlane.f32.xlu0 %v5781_v36 }
 0xae0   :  { %2927 = vmax.xlane.f32.xlu1 %v5783_v63 }
 0xae2   :  { %2953 = vadd.xlane.f32.xlu0 %v3599_v31 }
 0xae4   :  { %2955 = vadd.xlane.f32.xlu1 %v3601_v47 }
 0xae6   :  { %2957 = vadd.xlane.f32.xlu0 %v3603_v48 }
 0xae8   :  { %2959 = vadd.xlane.f32.xlu1 %v3605_v11 }
 0xaea   :  { %2961 = vadd.xlane.f32.xlu0 %v3607_v1 }
 0xaec   :  { %2963 = vadd.xlane.f32.xlu1 %v3609_v18 }
 0xb6b   :  { %v2926_v33 = vpop.xlane.xlu0 %2925 }
 0xb6c   :  { %v2935_v17 = vsub.f32 %v5781_v36, %v2926_v33 }
 0xb6d   :  { %v5788_v50 = vpop.xlane.xlu1 %2927 }
 0xb6e   :  { %v2949_v39 = vmul.f32 1.442695, %v2935_v17  ;;  %v2936_v10 = vsub.f32 %v5783_v63, %v5788_v50 }
 0xb6f   :  { %v2954_v8 = vpop.xlane.xlu0 %2953 }
 0xb70   :  { %3610 = vpow2.f32 %v2949_v39  ;;  %v2951_v55 = vmul.f32 1.442695, %v2936_v10 }
 0xb71   :  { %3612 = vlog2.f32 %v2954_v8  ;;  %v2956_v40 = vpop.xlane.xlu1 %2955 }
 0xb72   :  { %3614 = vpow2.f32 %v2951_v55 }
 0xb73   :  { %3616 = vlog2.f32 %v2956_v40  ;;  %v2958_v34 = vpop.xlane.xlu0 %2957 }
 0xb74   :  { %3618 = vlog2.f32 %v2958_v34 }
 0xb75   :  { %v2960_v24 = vpop.xlane.xlu1 %2959 }
 0xb76   :  { %3620 = vlog2.f32 %v2960_v24 }
 0xb77   :  { %v2962_v25 = vpop.xlane.xlu0 %2961 }
 0xb78   :  { %3622 = vlog2.f32 %v2962_v25 }
 0xb79   :  { %v2964_v51 = vpop.xlane.xlu1 %2963 }
 0xb7a   :  { %v3611_v54 = vpop.eup %3610  ;;  %3624 = vlog2.f32 %v2964_v51 }
 0xb7b   :  { %v3613_v49 = vpop.eup %3612  ;;  %2965 = vadd.xlane.f32.xlu0 %v3611_v54 }
 0xb7c   :  { %v3615_v61 = vpop.eup %3614  ;;  %v2970_v29 = vmul.f32 0.6931472, %v3613_v49 }
 0xb7d   :  { %v3617_v46 = vpop.eup %3616  ;;  %2967 = vadd.xlane.f32.xlu1 %v3615_v61 }
 0xb7e   :  { %v3619_v52 = vpop.eup %3618  ;;  %v2985_v28 = vadd.f32 %v2970_v29, %v5757_v44  ;;  %v2972_v38 = vmul.f32 0.6931472, %v3617_v46 }
 0xb7f   :  { %v2974_v43 = vmul.f32 0.6931472, %v3619_v52 }
 0xb80   :  { %v3621_v42 = vpop.eup %3620  ;;  %v2993_v60 = vsub.f32 %v5739_v35, %v2985_v28  ;;  %v2986_v5 = vadd.f32 %v2972_v38, %v5765_v4 }
 0xb81   :  { %v2987_v56 = vadd.f32 %v2974_v43, %v5763_v16  ;;  %v2976_v12 = vmul.f32 0.6931472, %v3621_v42 }
 0xb82   :  { %v3623_v6 = vpop.eup %3622  ;;  %3001 = vst [vmem:[%s5835_s4] sm:$0xff] %v2993_v60  ;;  %v2994_v21 = vsub.f32 %v5748_v7, %v2986_v5 }
 0xb83   :  { %v2995_v15 = vsub.f32 %v5750_v23, %v2987_v56  ;;  %v2988_v44 = vadd.f32 %v2976_v12, %v5771_v26  ;;  %v2978_v20 = vmul.f32 0.6931472, %v3623_v6 }
 0xb84   :  { %v3625_v22 = vpop.eup %3624  ;;  %3002 = vst [vmem:[%s5835_s4 + $0x8] sm:$0xff] %v2994_v21 }
 0xb85   :  { %3003 = vst [vmem:[%s5835_s4 + $0x10] sm:$0xff] %v2995_v15  ;;  %v2996_v35 = vsub.f32 %v5754_v45, %v2988_v44  ;;  %v2989_v16 = vadd.f32 %v2978_v20, %v5761_v19  ;;  %v2980_v4 = vmul.f32 0.6931472, %v3625_v22 }
 0xb87   :  { %3004 = vst [vmem:[%s5835_s4 + $0x18] sm:$0xff] %v2996_v35  ;;  %v2997_v7 = vsub.f32 %v5744_v30, %v2989_v16  ;;  %v2990_v23 = vadd.f32 %v2980_v4, %v5759_v9 }
 0xb89   :  { %3005 = vst [vmem:[%s5835_s4 + $0x20] sm:$0xff] %v2997_v7  ;;  %v2998_v26 = vsub.f32 %v5741_v37, %v2990_v23 }
 0xb8b   :  { %3006 = vst [vmem:[%s5835_s4 + $0x28] sm:$0xff] %v2998_v26 }
 0xc08   :  { %v2966_v45 = vpop.xlane.xlu0 %2965 }
 0xc09   :  { %3626 = vlog2.f32 %v2966_v45 }
 0xc0a   :  { %v2968_v19 = vpop.xlane.xlu1 %2967 }
 0xc0b   :  { %3628 = vlog2.f32 %v2968_v19 }
 0xc13   :  { %v3627_v27 = vpop.eup %3626 }
 0xc14   :  { %v2982_v14 = vmul.f32 0.6931472, %v3627_v27 }
 0xc15   :  { %v3629_v57 = vpop.eup %3628 }
 0xc16   :  { %v2991_v30 = vadd.f32 %v2982_v14, %v2926_v33  ;;  %v2984_v13 = vmul.f32 0.6931472, %v3629_v57 }
 0xc18   :  { %v2999_v9 = vsub.f32 %v5781_v36, %v2991_v30  ;;  %v2992_v2 = vadd.f32 %v2984_v13, %v5788_v50 }
 0xc1a   :  { %3007 = vst [vmem:[%s5835_s4 + $0x30] sm:$0xff] %v2999_v9  ;;  %v3000_v37 = vsub.f32 %v5783_v63, %v2992_v2 }
 0xc1c   :  { %3008 = vst [vmem:[%s5835_s4 + $0x38] sm:$0xff] %v3000_v37 }

</bundles_post_ra>
